<compile_context>
chip_gen: v6e
topology: v6e:2x2x1
jax: 0.10.0
libtpu: 0.0.40
codegen_flags: <defaults>
</compile_context>

<pallas_src>
import functools

import jax
import jax.numpy as jnp
from jax import lax
from jax.experimental import pallas as pl
from jax.experimental.pallas import tpu as pltpu

MAX_DIM = 64 * 16
BN_EPS = 1e-5
LRELU_SLOPE = 0.01  # nn.LeakyReLU() default (the spec uses the default slope)


def _round_up(x, m):
    return (x + m - 1) // m * m


# ---------------------------------------------------------------------------
# Pallas kernels
# ---------------------------------------------------------------------------
def _fused_conv_bn_act_kernel(x_ref, w_ref, g_ref, b_ref, o_ref, *, act, inv_count):
    """Fused per-layer body: P phase matmuls -> BN batch stats -> affine -> act.

    x_ref: [P, M, K]  im2col patches (K = true contraction size, NOT padded)
    w_ref: [P, K, C]  weights (C padded to a lane-dense multiple of 128)
    g_ref/b_ref: [1, C]  BN gamma / beta (zero padded)
    o_ref: [P, M, C]
    """
    P = x_ref.shape[0]
    ys = [jnp.dot(x_ref[p], w_ref[p], preferred_element_type=jnp.float32)
          for p in range(P)]

    # BatchNorm2d training-mode statistics over all N*H*W rows (biased variance).
    s1 = ys[0].sum(axis=0, keepdims=True)
    for p in range(1, P):
        s1 = s1 + ys[p].sum(axis=0, keepdims=True)
    mean = s1 * inv_count
    s2 = ((ys[0] - mean) ** 2).sum(axis=0, keepdims=True)
    for p in range(1, P):
        s2 = s2 + ((ys[p] - mean) ** 2).sum(axis=0, keepdims=True)
    var = s2 * inv_count

    scale = g_ref[...] * lax.rsqrt(var + BN_EPS)
    shift = b_ref[...] - mean * scale

    for p in range(P):
        z = ys[p] * scale + shift
        if act == "relu":
            z = jnp.maximum(z, 0.0)
        else:  # lrelu
            z = jnp.where(z >= 0, z, LRELU_SLOPE * z)
        o_ref[p] = z


def pallas_conv_bn_act(patches, w, gamma, beta, act):
    """patches: [P, M, K], w: [P, K, C], gamma/beta: [1, C] -> [P, M, C] (f32)."""
    P, M, K = patches.shape
    C = w.shape[-1]
    kernel = functools.partial(_fused_conv_bn_act_kernel, act=act,
                               inv_count=1.0 / float(P * M))
    return pl.pallas_call(
        kernel,
        out_shape=jax.ShapeDtypeStruct((P, M, C), jnp.float32),
        grid_spec=pltpu.PrefetchScalarGridSpec(
            num_scalar_prefetch=0,
            grid=(1,),
            in_specs=[
                pl.BlockSpec((P, M, K), lambda i: (0, 0, 0)),
                pl.BlockSpec((P, K, C), lambda i: (0, 0, 0)),
                pl.BlockSpec((1, C), lambda i: (0, 0)),
                pl.BlockSpec((1, C), lambda i: (0, 0)),
            ],
            out_specs=pl.BlockSpec((P, M, C), lambda i: (0, 0, 0)),
        ),
        compiler_params=pltpu.CompilerParams(dimension_semantics=("arbitrary",)),
    )(patches, w, gamma, beta)


def _convT_bias_tanh_kernel(x_ref, w_ref, b_ref, o_ref):
    y = jnp.dot(x_ref[0], w_ref[0], preferred_element_type=jnp.float32)
    o_ref[0] = jnp.tanh(y + b_ref[...])


def pallas_convT_bias_tanh(patches, w, bias):
    """patches: [P, M, K], w: [P, K, C], bias: [1, C] -> [P, M, C].
    No cross-row coupling -> the phase axis is 'parallel' (keeps v7x's 2 TCs busy)."""
    P, M, K = patches.shape
    C = w.shape[-1]
    return pl.pallas_call(
        _convT_bias_tanh_kernel,
        out_shape=jax.ShapeDtypeStruct((P, M, C), jnp.float32),
        grid_spec=pltpu.PrefetchScalarGridSpec(
            num_scalar_prefetch=0,
            grid=(P,),
            in_specs=[
                pl.BlockSpec((1, M, K), lambda p: (p, 0, 0)),
                pl.BlockSpec((1, K, C), lambda p: (p, 0, 0)),
                pl.BlockSpec((1, C), lambda p: (0, 0)),
            ],
            out_specs=pl.BlockSpec((1, M, C), lambda p: (p, 0, 0)),
        ),
        compiler_params=pltpu.CompilerParams(dimension_semantics=("parallel",)),
    )(patches, w, bias)


# ---------------------------------------------------------------------------
# Layout glue (pure data movement, executed inside the surrounding jit)
# ---------------------------------------------------------------------------
def _im2col_conv_s2(x):
    """Conv2d(k=4, s=2, p=1) patches. x: [N,H,W,C] -> [1, N*Ho*Wo, 16*C]."""
    N, H, W, C = x.shape
    k, s, p = 4, 2, 1
    Ho = (H + 2 * p - k) // s + 1
    Wo = (W + 2 * p - k) // s + 1
    xp = jnp.pad(x, ((0, 0), (p, p), (p, p), (0, 0)))
    cols = []
    for i in range(k):
        for j in range(k):
            cols.append(xp[:, i:i + s * (Ho - 1) + 1:s, j:j + s * (Wo - 1) + 1:s, :])
    patches = jnp.stack(cols, axis=3)          # (N, Ho, Wo, 16, C); order (kh, kw, cin)
    return patches.reshape(1, N * Ho * Wo, k * k * C), (N, Ho, Wo)


# ConvTranspose2d(k=4,s=2,p=1): output parity (oy%2, ox%2) only touches a 2x2 subset
# of the (flipped) 4x4 kernel:
#   parity 0:  input offsets (-1, 0)  <->  kernel taps (0, 2)
#   parity 1:  input offsets ( 0,+1)  <->  kernel taps (1, 3)
_PHASE_OFFS = {0: (-1, 0), 1: (0, 1)}
_PHASE_KTAPS = {0: (0, 2), 1: (1, 3)}


def _phase_patches_convT(x):
    """x: [N,H,W,C] -> patches [4, N*H*W, 4*C]; phase index = py*2 + px."""
    N, H, W, C = x.shape
    xp = jnp.pad(x, ((0, 0), (1, 1), (1, 1), (0, 0)))

    def shifted(dy, dx):
        return xp[:, 1 + dy:1 + dy + H, 1 + dx:1 + dx + W, :]

    phases = []
    for py in (0, 1):
        for px in (0, 1):
            taps = [shifted(dy, dx)
                    for dy in _PHASE_OFFS[py] for dx in _PHASE_OFFS[px]]
            t = jnp.stack(taps, axis=3)        # (N, H, W, 4, C)
            phases.append(t.reshape(N * H * W, 4 * C))
    return jnp.stack(phases, axis=0), (N, H, W)


def _phase_weights_convT(wf, c_pad):
    """wf: [4,4,Cin,Cout] (already flipped / in-out swapped convT kernel) ->
    per-phase weights [4, 4*Cin, c_pad] matching _phase_patches_convT tap order."""
    Cin, Cout = wf.shape[2], wf.shape[3]
    ws = []
    for py in (0, 1):
        for px in (0, 1):
            sub = jnp.stack(
                [jnp.stack([wf[kh, kw] for kw in _PHASE_KTAPS[px]], axis=0)
                 for kh in _PHASE_KTAPS[py]], axis=0)      # (2, 2, Cin, Cout)
            ws.append(sub.reshape(4 * Cin, Cout))
    w4 = jnp.stack(ws, axis=0)                             # (4, 4*Cin, Cout)
    return jnp.pad(w4, ((0, 0), (0, 0), (0, c_pad - Cout)))


def _interleave_phases(y, N, H, W, Cout):
    """y: [4, N*H*W, Cp] (phase = py*2+px) -> [N, 2H, 2W, Cout]."""
    y = y[:, :, :Cout].reshape(2, 2, N, H, W, Cout)
    y = jnp.transpose(y, (2, 3, 0, 4, 1, 5))               # N, H, py, W, px, C
    return y.reshape(N, 2 * H, 2 * W, Cout)


def _pad_vec(v, c_pad):
    return jnp.pad(v.reshape(1, -1), ((0, 0), (0, c_pad - v.shape[0])))


# ---------------------------------------------------------------------------
# Blocks (Conv2dBlock / ConvTranspose2dBlock equivalents)
# ---------------------------------------------------------------------------
def _enc_block(x, w, gamma, beta):
    patches, (N, Ho, Wo) = _im2col_conv_s2(x)
    Cout = w.shape[-1]
    Cp = _round_up(Cout, 128)
    wp = jnp.pad(w.reshape(1, -1, Cout), ((0, 0), (0, 0), (0, Cp - Cout)))
    y = pallas_conv_bn_act(patches, wp, _pad_vec(gamma, Cp), _pad_vec(beta, Cp),
                           "lrelu")
    return y[0, :, :Cout].reshape(N, Ho, Wo, Cout)


def _dec_block(x, w, gamma, beta):
    patches, (N, H, W) = _phase_patches_convT(x)
    Cout = w.shape[-1]
    Cp = _round_up(Cout, 128)
    w4 = _phase_weights_convT(w, Cp)
    y = pallas_conv_bn_act(patches, w4, _pad_vec(gamma, Cp), _pad_vec(beta, Cp),
                           "relu")
    return _interleave_phases(y, N, H, W, Cout)


def _final_block(x, w, bias):
    patches, (N, H, W) = _phase_patches_convT(x)
    Cout = w.shape[-1]
    Cp = _round_up(Cout, 128)
    w4 = _phase_weights_convT(w, Cp)
    y = pallas_convT_bias_tanh(patches, w4, _pad_vec(bias, Cp))
    return _interleave_phases(y, N, H, W, Cout)


# ---------------------------------------------------------------------------
# Generator_face parameters + forward
# ---------------------------------------------------------------------------
def init_generator_params(key, enc_dim=8, enc_layers=3, dec_dim=8, dec_layers=3,
                          shortcut_layers=1):
    sc = min(shortcut_layers, dec_layers - 1)
    params = {"enc": [], "dec": []}

    def nk():
        nonlocal key
        key, sub = jax.random.split(key)
        return sub

    n_in = 3
    for i in range(enc_layers):
        n_out = min(enc_dim * 2 ** i, MAX_DIM)
        params["enc"].append({
            "w": 0.1 * jax.random.normal(nk(), (4, 4, n_in, n_out), jnp.float32),
            "gamma": 1.0 + 0.05 * jax.random.normal(nk(), (n_out,), jnp.float32),
            "beta": 0.05 * jax.random.normal(nk(), (n_out,), jnp.float32),
        })
        n_in = n_out

    for i in range(dec_layers):
        if i < dec_layers - 1:
            n_out = min(dec_dim * 2 ** (dec_layers - i - 1), MAX_DIM)
            # Weights stored as the equivalent (spatially flipped, in/out-swapped)
            # stride-1 conv kernel of the ConvTranspose2d: (4, 4, Cin, Cout).
            params["dec"].append({
                "w": 0.1 * jax.random.normal(nk(), (4, 4, n_in, n_out), jnp.float32),
                "gamma": 1.0 + 0.05 * jax.random.normal(nk(), (n_out,), jnp.float32),
                "beta": 0.05 * jax.random.normal(nk(), (n_out,), jnp.float32),
            })
            n_in = n_out
            n_in = n_in + n_in // 2 if sc > i else n_in
        else:
            params["dec"].append({
                "w": 0.1 * jax.random.normal(nk(), (4, 4, n_in, 3), jnp.float32),
                "bias": 0.05 * jax.random.normal(nk(), (3,), jnp.float32),
            })
    return params, sc


def generator_face_forward(params, x_nchw, shortcut_layers=1):
    """x_nchw: [N, 3, H, W] (PyTorch layout). Returns [N, 3, H, W]."""
    z = jnp.transpose(x_nchw, (0, 2, 3, 1)).astype(jnp.float32)  # -> NHWC

    # encode
    zs = []
    for p in params["enc"]:
        z = _enc_block(z, p["w"], p["gamma"], p["beta"])
        zs.append(z)

    # decode
    z = zs[-1]
    ndec = len(params["dec"])
    for i, p in enumerate(params["dec"]):
        if "gamma" in p:
            z = _dec_block(z, p["w"], p["gamma"], p["beta"])
        else:
            z = _final_block(z, p["w"], p["bias"])
        if shortcut_layers > i:
            z = jnp.concatenate([z, zs[ndec - 2 - i]], axis=-1)  # channel concat

    return jnp.transpose(z, (0, 3, 1, 2))  # back to NCHW


# ---------------------------------------------------------------------------
# Pure-JAX reference (lax convs) for a correctness check
# ---------------------------------------------------------------------------
def _reference_forward(params, x_nchw, shortcut_layers=1):
    z = jnp.transpose(x_nchw, (0, 2, 3, 1)).astype(jnp.float32)
    dn = ("NHWC", "HWIO", "NHWC")
    hi = lax.Precision.HIGHEST

    def bn(y, g, b):
        m = jnp.mean(y, axis=(0, 1, 2))
        v = jnp.mean((y - m) ** 2, axis=(0, 1, 2))
        return (y - m) * (g / jnp.sqrt(v + BN_EPS)) + b

    zs = []
    for p in params["enc"]:
        y = lax.conv_general_dilated(z, p["w"], (2, 2), [(1, 1), (1, 1)],
                                     dimension_numbers=dn, precision=hi)
        y = bn(y, p["gamma"], p["beta"])
        z = jnp.where(y >= 0, y, LRELU_SLOPE * y)
        zs.append(z)

    z = zs[-1]
    ndec = len(params["dec"])
    for i, p in enumerate(params["dec"]):
        y = lax.conv_general_dilated(z, p["w"], (1, 1), [(2, 2), (2, 2)],
                                     lhs_dilation=(2, 2),
                                     dimension_numbers=dn, precision=hi)
        if "gamma" in p:
            z = jnp.maximum(bn(y, p["gamma"], p["beta"]), 0.0)
        else:
            z = jnp.tanh(y + p["bias"])
        if shortcut_layers > i:
            z = jnp.concatenate([z, zs[ndec - 2 - i]], axis=-1)
    return jnp.transpose(z, (0, 3, 1, 2))


# ---------------------------------------------------------------------------
if __name__ == "__main__":
    key = jax.random.PRNGKey(0)
    pkey, xkey = jax.random.split(key)

    # Small, constructor-consistent configuration:
    # enc_dim=8, enc_layers=3, dec_dim=8, dec_layers=3, img_size=32, shortcut=1
    params, sc = init_generator_params(pkey, enc_dim=8, enc_layers=3,
                                       dec_dim=8, dec_layers=3, shortcut_layers=1)

    x = jax.random.normal(xkey, (2, 3, 32, 32), jnp.float32)  # NCHW, like PyTorch

    fwd = jax.jit(functools.partial(generator_face_forward, shortcut_layers=sc))
    out = jax.block_until_ready(fwd(params, x))
    assert out.shape == (2, 3, 32, 32), out.shape
    assert bool(jnp.all(jnp.isfinite(out)))

    ref = jax.block_until_ready(
        jax.jit(functools.partial(_reference_forward, shortcut_layers=sc))(params, x))
    max_diff = float(jnp.max(jnp.abs(out - ref)))
    assert max_diff < 1e-1, max_diff

    print("KERNEL_OK")
</pallas_src>

<mosaic_0001>
module attributes {stable_mosaic.version = 11 : i64} {
  func.func @_fused_conv_bn_act_kernel(%arg0: i32, %arg1: memref<1x512x48xf32, #tpu.memory_space<vmem>>, %arg2: memref<1x48x128xf32, #tpu.memory_space<vmem>>, %arg3: memref<1x128xf32, #tpu.memory_space<vmem>>, %arg4: memref<1x128xf32, #tpu.memory_space<vmem>>, %arg5: memref<1x512x128xf32, #tpu.memory_space<vmem>>) attributes {dimension_semantics = [#tpu.dimension_semantics<arbitrary>], iteration_bounds = array<i64: 1>, scalar_prefetch = 0 : i64, scratch_operands = 0 : i64, tpu.core_type = #tpu.core_type<tc>, window_params = [{pipeline_mode = #tpu.pipeline_mode<synchronous>, transform_indices = @transform_0, window_bounds = array<i64: 1, 512, 48>}, {pipeline_mode = #tpu.pipeline_mode<synchronous>, transform_indices = @transform_1, window_bounds = array<i64: 1, 48, 128>}, {pipeline_mode = #tpu.pipeline_mode<synchronous>, transform_indices = @transform_2, window_bounds = array<i64: 1, 128>}, {pipeline_mode = #tpu.pipeline_mode<synchronous>, transform_indices = @transform_3, window_bounds = array<i64: 1, 128>}, {pipeline_mode = #tpu.pipeline_mode<synchronous>, transform_indices = @transform_4, window_bounds = array<i64: 1, 512, 128>}]} {
    %c0 = arith.constant 0 : index
    %c0_0 = arith.constant 0 : index
    %c0_1 = arith.constant 0 : index
    %0 = vector.load %arg1[%c0, %c0_0, %c0_1] : memref<1x512x48xf32, #tpu.memory_space<vmem>>, vector<1x512x48xf32>
    %1 = vector.shape_cast %0 : vector<1x512x48xf32> to vector<512x48xf32>
    %c0_2 = arith.constant 0 : index
    %c0_3 = arith.constant 0 : index
    %c0_4 = arith.constant 0 : index
    %2 = vector.load %arg2[%c0_2, %c0_3, %c0_4] : memref<1x48x128xf32, #tpu.memory_space<vmem>>, vector<1x48x128xf32>
    %3 = vector.shape_cast %2 : vector<1x48x128xf32> to vector<48x128xf32>
    %cst = arith.constant dense<0.000000e+00> : vector<512x128xf32>
    %4 = tpu.matmul %1, %3, %cst {dimension_numbers = #tpu.dot_dimension_numbers<[1], [0], [0], [1], [0, 0, 1, 1], [], []>} : vector<512x48xf32>, vector<48x128xf32>, vector<512x128xf32> -> vector<512x128xf32>
    %cst_5 = arith.constant dense<0.000000e+00> : vector<128xf32>
    %5 = vector.multi_reduction <add>, %4, %cst_5 [0] : vector<512x128xf32> to vector<128xf32>
    %6 = vector.shape_cast %5 : vector<128xf32> to vector<1x128xf32>
    %cst_6 = arith.constant 0.001953125 : f32
    %7 = vector.broadcast %cst_6 : f32 to vector<1x128xf32>
    %8 = arith.mulf %6, %7 : vector<1x128xf32>
    %9 = vector.broadcast %8 : vector<1x128xf32> to vector<512x128xf32>
    %10 = arith.subf %4, %9 : vector<512x128xf32>
    %11 = arith.mulf %10, %10 : vector<512x128xf32>
    %cst_7 = arith.constant dense<0.000000e+00> : vector<128xf32>
    %12 = vector.multi_reduction <add>, %11, %cst_7 [0] : vector<512x128xf32> to vector<128xf32>
    %13 = vector.shape_cast %12 : vector<128xf32> to vector<1x128xf32>
    %cst_8 = arith.constant 0.001953125 : f32
    %14 = vector.broadcast %cst_8 : f32 to vector<1x128xf32>
    %15 = arith.mulf %13, %14 : vector<1x128xf32>
    %c0_9 = arith.constant 0 : index
    %c0_10 = arith.constant 0 : index
    %16 = vector.load %arg3[%c0_9, %c0_10] : memref<1x128xf32, #tpu.memory_space<vmem>>, vector<1x128xf32>
    %cst_11 = arith.constant 9.99999974E-6 : f32
    %17 = vector.broadcast %cst_11 : f32 to vector<1x128xf32>
    %18 = arith.addf %15, %17 : vector<1x128xf32>
    %19 = math.rsqrt %18 : vector<1x128xf32>
    %20 = arith.mulf %16, %19 : vector<1x128xf32>
    %c0_12 = arith.constant 0 : index
    %c0_13 = arith.constant 0 : index
    %21 = vector.load %arg4[%c0_12, %c0_13] : memref<1x128xf32, #tpu.memory_space<vmem>>, vector<1x128xf32>
    %22 = arith.mulf %8, %20 : vector<1x128xf32>
    %23 = arith.subf %21, %22 : vector<1x128xf32>
    %24 = vector.broadcast %20 : vector<1x128xf32> to vector<512x128xf32>
    %25 = arith.mulf %4, %24 : vector<512x128xf32>
    %26 = vector.broadcast %23 : vector<1x128xf32> to vector<512x128xf32>
    %27 = arith.addf %25, %26 : vector<512x128xf32>
    %cst_14 = arith.constant 0.000000e+00 : f32
    %28 = vector.broadcast %cst_14 : f32 to vector<512x128xf32>
    %29 = arith.cmpf oge, %27, %28 : vector<512x128xf32>
    %cst_15 = arith.constant 0.00999999977 : f32
    %30 = vector.broadcast %cst_15 : f32 to vector<512x128xf32>
    %31 = arith.mulf %30, %27 : vector<512x128xf32>
    %32 = arith.select %29, %27, %31 : vector<512x128xi1>, vector<512x128xf32>
    %c0_16 = arith.constant 0 : index
    %c0_17 = arith.constant 0 : index
    %c0_18 = arith.constant 0 : index
    %33 = vector.load %arg5[%c0_16, %c0_17, %c0_18] : memref<1x512x128xf32, #tpu.memory_space<vmem>>, vector<1x512x128xf32>
    %34 = vector.shape_cast %33 : vector<1x512x128xf32> to vector<512x128xf32>
    %35 = vector.shape_cast %32 : vector<512x128xf32> to vector<1x512x128xf32>
    tpu.vector_store %arg5[%c0_16, %c0_17, %c0_18], %35 {strides = array<i32>} : memref<1x512x128xf32, #tpu.memory_space<vmem>>, vector<1x512x128xf32>,
    return
  }
  func.func @transform_0(%arg0: i32) -> (i32, i32, i32) {
    %c0_i32 = arith.constant 0 : i32
    %c0_i32_0 = arith.constant 0 : i32
    %c0_i32_1 = arith.constant 0 : i32
    %c0_i32_2 = arith.constant 0 : i32
    return %c0_i32, %c0_i32_0, %c0_i32_1 : i32, i32, i32
  }
  func.func @transform_1(%arg0: i32) -> (i32, i32, i32) {
    %c0_i32 = arith.constant 0 : i32
    %c0_i32_0 = arith.constant 0 : i32
    %c0_i32_1 = arith.constant 0 : i32
    %c0_i32_2 = arith.constant 0 : i32
    return %c0_i32, %c0_i32_0, %c0_i32_1 : i32, i32, i32
  }
  func.func @transform_2(%arg0: i32) -> (i32, i32) {
    %c0_i32 = arith.constant 0 : i32
    %c0_i32_0 = arith.constant 0 : i32
    %c0_i32_1 = arith.constant 0 : i32
    return %c0_i32, %c0_i32_0 : i32, i32
  }
  func.func @transform_3(%arg0: i32) -> (i32, i32) {
    %c0_i32 = arith.constant 0 : i32
    %c0_i32_0 = arith.constant 0 : i32
    %c0_i32_1 = arith.constant 0 : i32
    return %c0_i32, %c0_i32_0 : i32, i32
  }
  func.func @transform_4(%arg0: i32) -> (i32, i32, i32) {
    %c0_i32 = arith.constant 0 : i32
    %c0_i32_0 = arith.constant 0 : i32
    %c0_i32_1 = arith.constant 0 : i32
    %c0_i32_2 = arith.constant 0 : i32
    return %c0_i32, %c0_i32_0, %c0_i32_1 : i32, i32, i32
  }
}

module attributes {stable_mosaic.version = 11 : i64} {
  func.func @_fused_conv_bn_act_kernel(%arg0: i32, %arg1: memref<1x128x128xf32, #tpu.memory_space<vmem>>, %arg2: memref<1x128x128xf32, #tpu.memory_space<vmem>>, %arg3: memref<1x128xf32, #tpu.memory_space<vmem>>, %arg4: memref<1x128xf32, #tpu.memory_space<vmem>>, %arg5: memref<1x128x128xf32, #tpu.memory_space<vmem>>) attributes {dimension_semantics = [#tpu.dimension_semantics<arbitrary>], iteration_bounds = array<i64: 1>, scalar_prefetch = 0 : i64, scratch_operands = 0 : i64, tpu.core_type = #tpu.core_type<tc>, window_params = [{pipeline_mode = #tpu.pipeline_mode<synchronous>, transform_indices = @transform_0, window_bounds = array<i64: 1, 128, 128>}, {pipeline_mode = #tpu.pipeline_mode<synchronous>, transform_indices = @transform_1, window_bounds = array<i64: 1, 128, 128>}, {pipeline_mode = #tpu.pipeline_mode<synchronous>, transform_indices = @transform_2, window_bounds = array<i64: 1, 128>}, {pipeline_mode = #tpu.pipeline_mode<synchronous>, transform_indices = @transform_3, window_bounds = array<i64: 1, 128>}, {pipeline_mode = #tpu.pipeline_mode<synchronous>, transform_indices = @transform_4, window_bounds = array<i64: 1, 128, 128>}]} {
    %c0 = arith.constant 0 : index
    %c0_0 = arith.constant 0 : index
    %c0_1 = arith.constant 0 : index
    %0 = vector.load %arg1[%c0, %c0_0, %c0_1] : memref<1x128x128xf32, #tpu.memory_space<vmem>>, vector<1x128x128xf32>
    %1 = vector.shape_cast %0 : vector<1x128x128xf32> to vector<128x128xf32>
    %c0_2 = arith.constant 0 : index
    %c0_3 = arith.constant 0 : index
    %c0_4 = arith.constant 0 : index
    %2 = vector.load %arg2[%c0_2, %c0_3, %c0_4] : memref<1x128x128xf32, #tpu.memory_space<vmem>>, vector<1x128x128xf32>
    %3 = vector.shape_cast %2 : vector<1x128x128xf32> to vector<128x128xf32>
    %cst = arith.constant dense<0.000000e+00> : vector<128x128xf32>
    %4 = tpu.matmul %1, %3, %cst {dimension_numbers = #tpu.dot_dimension_numbers<[1], [0], [0], [1], [0, 0, 1, 1], [], []>} : vector<128x128xf32>, vector<128x128xf32>, vector<128x128xf32> -> vector<128x128xf32>
    %cst_5 = arith.constant dense<0.000000e+00> : vector<128xf32>
    %5 = vector.multi_reduction <add>, %4, %cst_5 [0] : vector<128x128xf32> to vector<128xf32>
    %6 = vector.shape_cast %5 : vector<128xf32> to vector<1x128xf32>
    %cst_6 = arith.constant 7.812500e-03 : f32
    %7 = vector.broadcast %cst_6 : f32 to vector<1x128xf32>
    %8 = arith.mulf %6, %7 : vector<1x128xf32>
    %9 = vector.broadcast %8 : vector<1x128xf32> to vector<128x128xf32>
    %10 = arith.subf %4, %9 : vector<128x128xf32>
    %11 = arith.mulf %10, %10 : vector<128x128xf32>
    %cst_7 = arith.constant dense<0.000000e+00> : vector<128xf32>
    %12 = vector.multi_reduction <add>, %11, %cst_7 [0] : vector<128x128xf32> to vector<128xf32>
    %13 = vector.shape_cast %12 : vector<128xf32> to vector<1x128xf32>
    %cst_8 = arith.constant 7.812500e-03 : f32
    %14 = vector.broadcast %cst_8 : f32 to vector<1x128xf32>
    %15 = arith.mulf %13, %14 : vector<1x128xf32>
    %c0_9 = arith.constant 0 : index
    %c0_10 = arith.constant 0 : index
    %16 = vector.load %arg3[%c0_9, %c0_10] : memref<1x128xf32, #tpu.memory_space<vmem>>, vector<1x128xf32>
    %cst_11 = arith.constant 9.99999974E-6 : f32
    %17 = vector.broadcast %cst_11 : f32 to vector<1x128xf32>
    %18 = arith.addf %15, %17 : vector<1x128xf32>
    %19 = math.rsqrt %18 : vector<1x128xf32>
    %20 = arith.mulf %16, %19 : vector<1x128xf32>
    %c0_12 = arith.constant 0 : index
    %c0_13 = arith.constant 0 : index
    %21 = vector.load %arg4[%c0_12, %c0_13] : memref<1x128xf32, #tpu.memory_space<vmem>>, vector<1x128xf32>
    %22 = arith.mulf %8, %20 : vector<1x128xf32>
    %23 = arith.subf %21, %22 : vector<1x128xf32>
    %24 = vector.broadcast %20 : vector<1x128xf32> to vector<128x128xf32>
    %25 = arith.mulf %4, %24 : vector<128x128xf32>
    %26 = vector.broadcast %23 : vector<1x128xf32> to vector<128x128xf32>
    %27 = arith.addf %25, %26 : vector<128x128xf32>
    %cst_14 = arith.constant 0.000000e+00 : f32
    %28 = vector.broadcast %cst_14 : f32 to vector<128x128xf32>
    %29 = arith.cmpf oge, %27, %28 : vector<128x128xf32>
    %cst_15 = arith.constant 0.00999999977 : f32
    %30 = vector.broadcast %cst_15 : f32 to vector<128x128xf32>
    %31 = arith.mulf %30, %27 : vector<128x128xf32>
    %32 = arith.select %29, %27, %31 : vector<128x128xi1>, vector<128x128xf32>
    %c0_16 = arith.constant 0 : index
    %c0_17 = arith.constant 0 : index
    %c0_18 = arith.constant 0 : index
    %33 = vector.load %arg5[%c0_16, %c0_17, %c0_18] : memref<1x128x128xf32, #tpu.memory_space<vmem>>, vector<1x128x128xf32>
    %34 = vector.shape_cast %33 : vector<1x128x128xf32> to vector<128x128xf32>
    %35 = vector.shape_cast %32 : vector<128x128xf32> to vector<1x128x128xf32>
    tpu.vector_store %arg5[%c0_16, %c0_17, %c0_18], %35 {strides = array<i32>} : memref<1x128x128xf32, #tpu.memory_space<vmem>>, vector<1x128x128xf32>,
    return
  }
  func.func @transform_0(%arg0: i32) -> (i32, i32, i32) {
    %c0_i32 = arith.constant 0 : i32
    %c0_i32_0 = arith.constant 0 : i32
    %c0_i32_1 = arith.constant 0 : i32
    %c0_i32_2 = arith.constant 0 : i32
    return %c0_i32, %c0_i32_0, %c0_i32_1 : i32, i32, i32
  }
  func.func @transform_1(%arg0: i32) -> (i32, i32, i32) {
    %c0_i32 = arith.constant 0 : i32
    %c0_i32_0 = arith.constant 0 : i32
    %c0_i32_1 = arith.constant 0 : i32
    %c0_i32_2 = arith.constant 0 : i32
    return %c0_i32, %c0_i32_0, %c0_i32_1 : i32, i32, i32
  }
  func.func @transform_2(%arg0: i32) -> (i32, i32) {
    %c0_i32 = arith.constant 0 : i32
    %c0_i32_0 = arith.constant 0 : i32
    %c0_i32_1 = arith.constant 0 : i32
    return %c0_i32, %c0_i32_0 : i32, i32
  }
  func.func @transform_3(%arg0: i32) -> (i32, i32) {
    %c0_i32 = arith.constant 0 : i32
    %c0_i32_0 = arith.constant 0 : i32
    %c0_i32_1 = arith.constant 0 : i32
    return %c0_i32, %c0_i32_0 : i32, i32
  }
  func.func @transform_4(%arg0: i32) -> (i32, i32, i32) {
    %c0_i32 = arith.constant 0 : i32
    %c0_i32_0 = arith.constant 0 : i32
    %c0_i32_1 = arith.constant 0 : i32
    %c0_i32_2 = arith.constant 0 : i32
    return %c0_i32, %c0_i32_0, %c0_i32_1 : i32, i32, i32
  }
}

module attributes {stable_mosaic.version = 11 : i64} {
  func.func @_fused_conv_bn_act_kernel(%arg0: i32, %arg1: memref<1x32x256xf32, #tpu.memory_space<vmem>>, %arg2: memref<1x256x128xf32, #tpu.memory_space<vmem>>, %arg3: memref<1x128xf32, #tpu.memory_space<vmem>>, %arg4: memref<1x128xf32, #tpu.memory_space<vmem>>, %arg5: memref<1x32x128xf32, #tpu.memory_space<vmem>>) attributes {dimension_semantics = [#tpu.dimension_semantics<arbitrary>], iteration_bounds = array<i64: 1>, scalar_prefetch = 0 : i64, scratch_operands = 0 : i64, tpu.core_type = #tpu.core_type<tc>, window_params = [{pipeline_mode = #tpu.pipeline_mode<synchronous>, transform_indices = @transform_0, window_bounds = array<i64: 1, 32, 256>}, {pipeline_mode = #tpu.pipeline_mode<synchronous>, transform_indices = @transform_1, window_bounds = array<i64: 1, 256, 128>}, {pipeline_mode = #tpu.pipeline_mode<synchronous>, transform_indices = @transform_2, window_bounds = array<i64: 1, 128>}, {pipeline_mode = #tpu.pipeline_mode<synchronous>, transform_indices = @transform_3, window_bounds = array<i64: 1, 128>}, {pipeline_mode = #tpu.pipeline_mode<synchronous>, transform_indices = @transform_4, window_bounds = array<i64: 1, 32, 128>}]} {
    %c0 = arith.constant 0 : index
    %c0_0 = arith.constant 0 : index
    %c0_1 = arith.constant 0 : index
    %0 = vector.load %arg1[%c0, %c0_0, %c0_1] : memref<1x32x256xf32, #tpu.memory_space<vmem>>, vector<1x32x256xf32>
    %1 = vector.shape_cast %0 : vector<1x32x256xf32> to vector<32x256xf32>
    %c0_2 = arith.constant 0 : index
    %c0_3 = arith.constant 0 : index
    %c0_4 = arith.constant 0 : index
    %2 = vector.load %arg2[%c0_2, %c0_3, %c0_4] : memref<1x256x128xf32, #tpu.memory_space<vmem>>, vector<1x256x128xf32>
    %3 = vector.shape_cast %2 : vector<1x256x128xf32> to vector<256x128xf32>
    %cst = arith.constant dense<0.000000e+00> : vector<32x128xf32>
    %4 = tpu.matmul %1, %3, %cst {dimension_numbers = #tpu.dot_dimension_numbers<[1], [0], [0], [1], [0, 0, 1, 1], [], []>} : vector<32x256xf32>, vector<256x128xf32>, vector<32x128xf32> -> vector<32x128xf32>
    %cst_5 = arith.constant dense<0.000000e+00> : vector<128xf32>
    %5 = vector.multi_reduction <add>, %4, %cst_5 [0] : vector<32x128xf32> to vector<128xf32>
    %6 = vector.shape_cast %5 : vector<128xf32> to vector<1x128xf32>
    %cst_6 = arith.constant 3.125000e-02 : f32
    %7 = vector.broadcast %cst_6 : f32 to vector<1x128xf32>
    %8 = arith.mulf %6, %7 : vector<1x128xf32>
    %9 = vector.broadcast %8 : vector<1x128xf32> to vector<32x128xf32>
    %10 = arith.subf %4, %9 : vector<32x128xf32>
    %11 = arith.mulf %10, %10 : vector<32x128xf32>
    %cst_7 = arith.constant dense<0.000000e+00> : vector<128xf32>
    %12 = vector.multi_reduction <add>, %11, %cst_7 [0] : vector<32x128xf32> to vector<128xf32>
    %13 = vector.shape_cast %12 : vector<128xf32> to vector<1x128xf32>
    %cst_8 = arith.constant 3.125000e-02 : f32
    %14 = vector.broadcast %cst_8 : f32 to vector<1x128xf32>
    %15 = arith.mulf %13, %14 : vector<1x128xf32>
    %c0_9 = arith.constant 0 : index
    %c0_10 = arith.constant 0 : index
    %16 = vector.load %arg3[%c0_9, %c0_10] : memref<1x128xf32, #tpu.memory_space<vmem>>, vector<1x128xf32>
    %cst_11 = arith.constant 9.99999974E-6 : f32
    %17 = vector.broadcast %cst_11 : f32 to vector<1x128xf32>
    %18 = arith.addf %15, %17 : vector<1x128xf32>
    %19 = math.rsqrt %18 : vector<1x128xf32>
    %20 = arith.mulf %16, %19 : vector<1x128xf32>
    %c0_12 = arith.constant 0 : index
    %c0_13 = arith.constant 0 : index
    %21 = vector.load %arg4[%c0_12, %c0_13] : memref<1x128xf32, #tpu.memory_space<vmem>>, vector<1x128xf32>
    %22 = arith.mulf %8, %20 : vector<1x128xf32>
    %23 = arith.subf %21, %22 : vector<1x128xf32>
    %24 = vector.broadcast %20 : vector<1x128xf32> to vector<32x128xf32>
    %25 = arith.mulf %4, %24 : vector<32x128xf32>
    %26 = vector.broadcast %23 : vector<1x128xf32> to vector<32x128xf32>
    %27 = arith.addf %25, %26 : vector<32x128xf32>
    %cst_14 = arith.constant 0.000000e+00 : f32
    %28 = vector.broadcast %cst_14 : f32 to vector<32x128xf32>
    %29 = arith.cmpf oge, %27, %28 : vector<32x128xf32>
    %cst_15 = arith.constant 0.00999999977 : f32
    %30 = vector.broadcast %cst_15 : f32 to vector<32x128xf32>
    %31 = arith.mulf %30, %27 : vector<32x128xf32>
    %32 = arith.select %29, %27, %31 : vector<32x128xi1>, vector<32x128xf32>
    %c0_16 = arith.constant 0 : index
    %c0_17 = arith.constant 0 : index
    %c0_18 = arith.constant 0 : index
    %33 = vector.load %arg5[%c0_16, %c0_17, %c0_18] : memref<1x32x128xf32, #tpu.memory_space<vmem>>, vector<1x32x128xf32>
    %34 = vector.shape_cast %33 : vector<1x32x128xf32> to vector<32x128xf32>
    %35 = vector.shape_cast %32 : vector<32x128xf32> to vector<1x32x128xf32>
    tpu.vector_store %arg5[%c0_16, %c0_17, %c0_18], %35 {strides = array<i32>} : memref<1x32x128xf32, #tpu.memory_space<vmem>>, vector<1x32x128xf32>,
    return
  }
  func.func @transform_0(%arg0: i32) -> (i32, i32, i32) {
    %c0_i32 = arith.constant 0 : i32
    %c0_i32_0 = arith.constant 0 : i32
    %c0_i32_1 = arith.constant 0 : i32
    %c0_i32_2 = arith.constant 0 : i32
    return %c0_i32, %c0_i32_0, %c0_i32_1 : i32, i32, i32
  }
  func.func @transform_1(%arg0: i32) -> (i32, i32, i32) {
    %c0_i32 = arith.constant 0 : i32
    %c0_i32_0 = arith.constant 0 : i32
    %c0_i32_1 = arith.constant 0 : i32
    %c0_i32_2 = arith.constant 0 : i32
    return %c0_i32, %c0_i32_0, %c0_i32_1 : i32, i32, i32
  }
  func.func @transform_2(%arg0: i32) -> (i32, i32) {
    %c0_i32 = arith.constant 0 : i32
    %c0_i32_0 = arith.constant 0 : i32
    %c0_i32_1 = arith.constant 0 : i32
    return %c0_i32, %c0_i32_0 : i32, i32
  }
  func.func @transform_3(%arg0: i32) -> (i32, i32) {
    %c0_i32 = arith.constant 0 : i32
    %c0_i32_0 = arith.constant 0 : i32
    %c0_i32_1 = arith.constant 0 : i32
    return %c0_i32, %c0_i32_0 : i32, i32
  }
  func.func @transform_4(%arg0: i32) -> (i32, i32, i32) {
    %c0_i32 = arith.constant 0 : i32
    %c0_i32_0 = arith.constant 0 : i32
    %c0_i32_1 = arith.constant 0 : i32
    %c0_i32_2 = arith.constant 0 : i32
    return %c0_i32, %c0_i32_0, %c0_i32_1 : i32, i32, i32
  }
}

module attributes {stable_mosaic.version = 11 : i64} {
  func.func @_fused_conv_bn_act_kernel(%arg0: i32, %arg1: memref<4x32x128xf32, #tpu.memory_space<vmem>>, %arg2: memref<4x128x128xf32, #tpu.memory_space<vmem>>, %arg3: memref<1x128xf32, #tpu.memory_space<vmem>>, %arg4: memref<1x128xf32, #tpu.memory_space<vmem>>, %arg5: memref<4x32x128xf32, #tpu.memory_space<vmem>>) attributes {dimension_semantics = [#tpu.dimension_semantics<arbitrary>], iteration_bounds = array<i64: 1>, scalar_prefetch = 0 : i64, scratch_operands = 0 : i64, tpu.core_type = #tpu.core_type<tc>, window_params = [{pipeline_mode = #tpu.pipeline_mode<synchronous>, transform_indices = @transform_0, window_bounds = array<i64: 4, 32, 128>}, {pipeline_mode = #tpu.pipeline_mode<synchronous>, transform_indices = @transform_1, window_bounds = array<i64: 4, 128, 128>}, {pipeline_mode = #tpu.pipeline_mode<synchronous>, transform_indices = @transform_2, window_bounds = array<i64: 1, 128>}, {pipeline_mode = #tpu.pipeline_mode<synchronous>, transform_indices = @transform_3, window_bounds = array<i64: 1, 128>}, {pipeline_mode = #tpu.pipeline_mode<synchronous>, transform_indices = @transform_4, window_bounds = array<i64: 4, 32, 128>}]} {
    %c0 = arith.constant 0 : index
    %c0_0 = arith.constant 0 : index
    %c0_1 = arith.constant 0 : index
    %0 = vector.load %arg1[%c0, %c0_0, %c0_1] : memref<4x32x128xf32, #tpu.memory_space<vmem>>, vector<1x32x128xf32>
    %1 = vector.shape_cast %0 : vector<1x32x128xf32> to vector<32x128xf32>
    %c0_2 = arith.constant 0 : index
    %c0_3 = arith.constant 0 : index
    %c0_4 = arith.constant 0 : index
    %2 = vector.load %arg2[%c0_2, %c0_3, %c0_4] : memref<4x128x128xf32, #tpu.memory_space<vmem>>, vector<1x128x128xf32>
    %3 = vector.shape_cast %2 : vector<1x128x128xf32> to vector<128x128xf32>
    %cst = arith.constant dense<0.000000e+00> : vector<32x128xf32>
    %4 = tpu.matmul %1, %3, %cst {dimension_numbers = #tpu.dot_dimension_numbers<[1], [0], [0], [1], [0, 0, 1, 1], [], []>} : vector<32x128xf32>, vector<128x128xf32>, vector<32x128xf32> -> vector<32x128xf32>
    %c1 = arith.constant 1 : index
    %c0_5 = arith.constant 0 : index
    %c0_6 = arith.constant 0 : index
    %5 = vector.load %arg1[%c1, %c0_5, %c0_6] : memref<4x32x128xf32, #tpu.memory_space<vmem>>, vector<1x32x128xf32>
    %6 = vector.shape_cast %5 : vector<1x32x128xf32> to vector<32x128xf32>
    %c1_7 = arith.constant 1 : index
    %c0_8 = arith.constant 0 : index
    %c0_9 = arith.constant 0 : index
    %7 = vector.load %arg2[%c1_7, %c0_8, %c0_9] : memref<4x128x128xf32, #tpu.memory_space<vmem>>, vector<1x128x128xf32>
    %8 = vector.shape_cast %7 : vector<1x128x128xf32> to vector<128x128xf32>
    %cst_10 = arith.constant dense<0.000000e+00> : vector<32x128xf32>
    %9 = tpu.matmul %6, %8, %cst_10 {dimension_numbers = #tpu.dot_dimension_numbers<[1], [0], [0], [1], [0, 0, 1, 1], [], []>} : vector<32x128xf32>, vector<128x128xf32>, vector<32x128xf32> -> vector<32x128xf32>
    %c2 = arith.constant 2 : index
    %c0_11 = arith.constant 0 : index
    %c0_12 = arith.constant 0 : index
    %10 = vector.load %arg1[%c2, %c0_11, %c0_12] : memref<4x32x128xf32, #tpu.memory_space<vmem>>, vector<1x32x128xf32>
    %11 = vector.shape_cast %10 : vector<1x32x128xf32> to vector<32x128xf32>
    %c2_13 = arith.constant 2 : index
    %c0_14 = arith.constant 0 : index
    %c0_15 = arith.constant 0 : index
    %12 = vector.load %arg2[%c2_13, %c0_14, %c0_15] : memref<4x128x128xf32, #tpu.memory_space<vmem>>, vector<1x128x128xf32>
    %13 = vector.shape_cast %12 : vector<1x128x128xf32> to vector<128x128xf32>
    %cst_16 = arith.constant dense<0.000000e+00> : vector<32x128xf32>
    %14 = tpu.matmul %11, %13, %cst_16 {dimension_numbers = #tpu.dot_dimension_numbers<[1], [0], [0], [1], [0, 0, 1, 1], [], []>} : vector<32x128xf32>, vector<128x128xf32>, vector<32x128xf32> -> vector<32x128xf32>
    %c3 = arith.constant 3 : index
    %c0_17 = arith.constant 0 : index
    %c0_18 = arith.constant 0 : index
    %15 = vector.load %arg1[%c3, %c0_17, %c0_18] : memref<4x32x128xf32, #tpu.memory_space<vmem>>, vector<1x32x128xf32>
    %16 = vector.shape_cast %15 : vector<1x32x128xf32> to vector<32x128xf32>
    %c3_19 = arith.constant 3 : index
    %c0_20 = arith.constant 0 : index
    %c0_21 = arith.constant 0 : index
    %17 = vector.load %arg2[%c3_19, %c0_20, %c0_21] : memref<4x128x128xf32, #tpu.memory_space<vmem>>, vector<1x128x128xf32>
    %18 = vector.shape_cast %17 : vector<1x128x128xf32> to vector<128x128xf32>
    %cst_22 = arith.constant dense<0.000000e+00> : vector<32x128xf32>
    %19 = tpu.matmul %16, %18, %cst_22 {dimension_numbers = #tpu.dot_dimension_numbers<[1], [0], [0], [1], [0, 0, 1, 1], [], []>} : vector<32x128xf32>, vector<128x128xf32>, vector<32x128xf32> -> vector<32x128xf32>
    %cst_23 = arith.constant dense<0.000000e+00> : vector<128xf32>
    %20 = vector.multi_reduction <add>, %4, %cst_23 [0] : vector<32x128xf32> to vector<128xf32>
    %21 = vector.shape_cast %20 : vector<128xf32> to vector<1x128xf32>
    %cst_24 = arith.constant dense<0.000000e+00> : vector<128xf32>
    %22 = vector.multi_reduction <add>, %9, %cst_24 [0] : vector<32x128xf32> to vector<128xf32>
    %23 = vector.shape_cast %22 : vector<128xf32> to vector<1x128xf32>
    %24 = arith.addf %21, %23 : vector<1x128xf32>
    %cst_25 = arith.constant dense<0.000000e+00> : vector<128xf32>
    %25 = vector.multi_reduction <add>, %14, %cst_25 [0] : vector<32x128xf32> to vector<128xf32>
    %26 = vector.shape_cast %25 : vector<128xf32> to vector<1x128xf32>
    %27 = arith.addf %24, %26 : vector<1x128xf32>
    %cst_26 = arith.constant dense<0.000000e+00> : vector<128xf32>
    %28 = vector.multi_reduction <add>, %19, %cst_26 [0] : vector<32x128xf32> to vector<128xf32>
    %29 = vector.shape_cast %28 : vector<128xf32> to vector<1x128xf32>
    %30 = arith.addf %27, %29 : vector<1x128xf32>
    %cst_27 = arith.constant 7.812500e-03 : f32
    %31 = vector.broadcast %cst_27 : f32 to vector<1x128xf32>
    %32 = arith.mulf %30, %31 : vector<1x128xf32>
    %33 = vector.broadcast %32 : vector<1x128xf32> to vector<32x128xf32>
    %34 = arith.subf %4, %33 : vector<32x128xf32>
    %35 = arith.mulf %34, %34 : vector<32x128xf32>
    %cst_28 = arith.constant dense<0.000000e+00> : vector<128xf32>
    %36 = vector.multi_reduction <add>, %35, %cst_28 [0] : vector<32x128xf32> to vector<128xf32>
    %37 = vector.shape_cast %36 : vector<128xf32> to vector<1x128xf32>
    %38 = vector.broadcast %32 : vector<1x128xf32> to vector<32x128xf32>
    %39 = arith.subf %9, %38 : vector<32x128xf32>
    %40 = arith.mulf %39, %39 : vector<32x128xf32>
    %cst_29 = arith.constant dense<0.000000e+00> : vector<128xf32>
    %41 = vector.multi_reduction <add>, %40, %cst_29 [0] : vector<32x128xf32> to vector<128xf32>
    %42 = vector.shape_cast %41 : vector<128xf32> to vector<1x128xf32>
    %43 = arith.addf %37, %42 : vector<1x128xf32>
    %44 = vector.broadcast %32 : vector<1x128xf32> to vector<32x128xf32>
    %45 = arith.subf %14, %44 : vector<32x128xf32>
    %46 = arith.mulf %45, %45 : vector<32x128xf32>
    %cst_30 = arith.constant dense<0.000000e+00> : vector<128xf32>
    %47 = vector.multi_reduction <add>, %46, %cst_30 [0] : vector<32x128xf32> to vector<128xf32>
    %48 = vector.shape_cast %47 : vector<128xf32> to vector<1x128xf32>
    %49 = arith.addf %43, %48 : vector<1x128xf32>
    %50 = vector.broadcast %32 : vector<1x128xf32> to vector<32x128xf32>
    %51 = arith.subf %19, %50 : vector<32x128xf32>
    %52 = arith.mulf %51, %51 : vector<32x128xf32>
    %cst_31 = arith.constant dense<0.000000e+00> : vector<128xf32>
    %53 = vector.multi_reduction <add>, %52, %cst_31 [0] : vector<32x128xf32> to vector<128xf32>
    %54 = vector.shape_cast %53 : vector<128xf32> to vector<1x128xf32>
    %55 = arith.addf %49, %54 : vector<1x128xf32>
    %cst_32 = arith.constant 7.812500e-03 : f32
    %56 = vector.broadcast %cst_32 : f32 to vector<1x128xf32>
    %57 = arith.mulf %55, %56 : vector<1x128xf32>
    %c0_33 = arith.constant 0 : index
    %c0_34 = arith.constant 0 : index
    %58 = vector.load %arg3[%c0_33, %c0_34] : memref<1x128xf32, #tpu.memory_space<vmem>>, vector<1x128xf32>
    %cst_35 = arith.constant 9.99999974E-6 : f32
    %59 = vector.broadcast %cst_35 : f32 to vector<1x128xf32>
    %60 = arith.addf %57, %59 : vector<1x128xf32>
    %61 = math.rsqrt %60 : vector<1x128xf32>
    %62 = arith.mulf %58, %61 : vector<1x128xf32>
    %c0_36 = arith.constant 0 : index
    %c0_37 = arith.constant 0 : index
    %63 = vector.load %arg4[%c0_36, %c0_37] : memref<1x128xf32, #tpu.memory_space<vmem>>, vector<1x128xf32>
    %64 = arith.mulf %32, %62 : vector<1x128xf32>
    %65 = arith.subf %63, %64 : vector<1x128xf32>
    %66 = vector.broadcast %62 : vector<1x128xf32> to vector<32x128xf32>
    %67 = arith.mulf %4, %66 : vector<32x128xf32>
    %68 = vector.broadcast %65 : vector<1x128xf32> to vector<32x128xf32>
    %69 = arith.addf %67, %68 : vector<32x128xf32>
    %cst_38 = arith.constant 0.000000e+00 : f32
    %70 = vector.broadcast %cst_38 : f32 to vector<32x128xf32>
    %71 = arith.maximumf %69, %70 : vector<32x128xf32>
    %c0_39 = arith.constant 0 : index
    %c0_40 = arith.constant 0 : index
    %c0_41 = arith.constant 0 : index
    %72 = vector.load %arg5[%c0_39, %c0_40, %c0_41] : memref<4x32x128xf32, #tpu.memory_space<vmem>>, vector<1x32x128xf32>
    %73 = vector.shape_cast %72 : vector<1x32x128xf32> to vector<32x128xf32>
    %74 = vector.shape_cast %71 : vector<32x128xf32> to vector<1x32x128xf32>
    tpu.vector_store %arg5[%c0_39, %c0_40, %c0_41], %74 {strides = array<i32>} : memref<4x32x128xf32, #tpu.memory_space<vmem>>, vector<1x32x128xf32>,
    %75 = vector.broadcast %62 : vector<1x128xf32> to vector<32x128xf32>
    %76 = arith.mulf %9, %75 : vector<32x128xf32>
    %77 = vector.broadcast %65 : vector<1x128xf32> to vector<32x128xf32>
    %78 = arith.addf %76, %77 : vector<32x128xf32>
    %cst_42 = arith.constant 0.000000e+00 : f32
    %79 = vector.broadcast %cst_42 : f32 to vector<32x128xf32>
    %80 = arith.maximumf %78, %79 : vector<32x128xf32>
    %c1_43 = arith.constant 1 : index
    %c0_44 = arith.constant 0 : index
    %c0_45 = arith.constant 0 : index
    %81 = vector.load %arg5[%c1_43, %c0_44, %c0_45] : memref<4x32x128xf32, #tpu.memory_space<vmem>>, vector<1x32x128xf32>
    %82 = vector.shape_cast %81 : vector<1x32x128xf32> to vector<32x128xf32>
    %83 = vector.shape_cast %80 : vector<32x128xf32> to vector<1x32x128xf32>
    tpu.vector_store %arg5[%c1_43, %c0_44, %c0_45], %83 {strides = array<i32>} : memref<4x32x128xf32, #tpu.memory_space<vmem>>, vector<1x32x128xf32>,
    %84 = vector.broadcast %62 : vector<1x128xf32> to vector<32x128xf32>
    %85 = arith.mulf %14, %84 : vector<32x128xf32>
    %86 = vector.broadcast %65 : vector<1x128xf32> to vector<32x128xf32>
    %87 = arith.addf %85, %86 : vector<32x128xf32>
    %cst_46 = arith.constant 0.000000e+00 : f32
    %88 = vector.broadcast %cst_46 : f32 to vector<32x128xf32>
    %89 = arith.maximumf %87, %88 : vector<32x128xf32>
    %c2_47 = arith.constant 2 : index
    %c0_48 = arith.constant 0 : index
    %c0_49 = arith.constant 0 : index
    %90 = vector.load %arg5[%c2_47, %c0_48, %c0_49] : memref<4x32x128xf32, #tpu.memory_space<vmem>>, vector<1x32x128xf32>
    %91 = vector.shape_cast %90 : vector<1x32x128xf32> to vector<32x128xf32>
    %92 = vector.shape_cast %89 : vector<32x128xf32> to vector<1x32x128xf32>
    tpu.vector_store %arg5[%c2_47, %c0_48, %c0_49], %92 {strides = array<i32>} : memref<4x32x128xf32, #tpu.memory_space<vmem>>, vector<1x32x128xf32>,
    %93 = vector.broadcast %62 : vector<1x128xf32> to vector<32x128xf32>
    %94 = arith.mulf %19, %93 : vector<32x128xf32>
    %95 = vector.broadcast %65 : vector<1x128xf32> to vector<32x128xf32>
    %96 = arith.addf %94, %95 : vector<32x128xf32>
    %cst_50 = arith.constant 0.000000e+00 : f32
    %97 = vector.broadcast %cst_50 : f32 to vector<32x128xf32>
    %98 = arith.maximumf %96, %97 : vector<32x128xf32>
    %c3_51 = arith.constant 3 : index
    %c0_52 = arith.constant 0 : index
    %c0_53 = arith.constant 0 : index
    %99 = vector.load %arg5[%c3_51, %c0_52, %c0_53] : memref<4x32x128xf32, #tpu.memory_space<vmem>>, vector<1x32x128xf32>
    %100 = vector.shape_cast %99 : vector<1x32x128xf32> to vector<32x128xf32>
    %101 = vector.shape_cast %98 : vector<32x128xf32> to vector<1x32x128xf32>
    tpu.vector_store %arg5[%c3_51, %c0_52, %c0_53], %101 {strides = array<i32>} : memref<4x32x128xf32, #tpu.memory_space<vmem>>, vector<1x32x128xf32>,
    return
  }
  func.func @transform_0(%arg0: i32) -> (i32, i32, i32) {
    %c0_i32 = arith.constant 0 : i32
    %c0_i32_0 = arith.constant 0 : i32
    %c0_i32_1 = arith.constant 0 : i32
    %c0_i32_2 = arith.constant 0 : i32
    return %c0_i32, %c0_i32_0, %c0_i32_1 : i32, i32, i32
  }
  func.func @transform_1(%arg0: i32) -> (i32, i32, i32) {
    %c0_i32 = arith.constant 0 : i32
    %c0_i32_0 = arith.constant 0 : i32
    %c0_i32_1 = arith.constant 0 : i32
    %c0_i32_2 = arith.constant 0 : i32
    return %c0_i32, %c0_i32_0, %c0_i32_1 : i32, i32, i32
  }
  func.func @transform_2(%arg0: i32) -> (i32, i32) {
    %c0_i32 = arith.constant 0 : i32
    %c0_i32_0 = arith.constant 0 : i32
    %c0_i32_1 = arith.constant 0 : i32
    return %c0_i32, %c0_i32_0 : i32, i32
  }
  func.func @transform_3(%arg0: i32) -> (i32, i32) {
    %c0_i32 = arith.constant 0 : i32
    %c0_i32_0 = arith.constant 0 : i32
    %c0_i32_1 = arith.constant 0 : i32
    return %c0_i32, %c0_i32_0 : i32, i32
  }
  func.func @transform_4(%arg0: i32) -> (i32, i32, i32) {
    %c0_i32 = arith.constant 0 : i32
    %c0_i32_0 = arith.constant 0 : i32
    %c0_i32_1 = arith.constant 0 : i32
    %c0_i32_2 = arith.constant 0 : i32
    return %c0_i32, %c0_i32_0, %c0_i32_1 : i32, i32, i32
  }
}

module attributes {stable_mosaic.version = 11 : i64} {
  func.func @_fused_conv_bn_act_kernel(%arg0: i32, %arg1: memref<4x128x192xf32, #tpu.memory_space<vmem>>, %arg2: memref<4x192x128xf32, #tpu.memory_space<vmem>>, %arg3: memref<1x128xf32, #tpu.memory_space<vmem>>, %arg4: memref<1x128xf32, #tpu.memory_space<vmem>>, %arg5: memref<4x128x128xf32, #tpu.memory_space<vmem>>) attributes {dimension_semantics = [#tpu.dimension_semantics<arbitrary>], iteration_bounds = array<i64: 1>, scalar_prefetch = 0 : i64, scratch_operands = 0 : i64, tpu.core_type = #tpu.core_type<tc>, window_params = [{pipeline_mode = #tpu.pipeline_mode<synchronous>, transform_indices = @transform_0, window_bounds = array<i64: 4, 128, 192>}, {pipeline_mode = #tpu.pipeline_mode<synchronous>, transform_indices = @transform_1, window_bounds = array<i64: 4, 192, 128>}, {pipeline_mode = #tpu.pipeline_mode<synchronous>, transform_indices = @transform_2, window_bounds = array<i64: 1, 128>}, {pipeline_mode = #tpu.pipeline_mode<synchronous>, transform_indices = @transform_3, window_bounds = array<i64: 1, 128>}, {pipeline_mode = #tpu.pipeline_mode<synchronous>, transform_indices = @transform_4, window_bounds = array<i64: 4, 128, 128>}]} {
    %c0 = arith.constant 0 : index
    %c0_0 = arith.constant 0 : index
    %c0_1 = arith.constant 0 : index
    %0 = vector.load %arg1[%c0, %c0_0, %c0_1] : memref<4x128x192xf32, #tpu.memory_space<vmem>>, vector<1x128x192xf32>
    %1 = vector.shape_cast %0 : vector<1x128x192xf32> to vector<128x192xf32>
    %c0_2 = arith.constant 0 : index
    %c0_3 = arith.constant 0 : index
    %c0_4 = arith.constant 0 : index
    %2 = vector.load %arg2[%c0_2, %c0_3, %c0_4] : memref<4x192x128xf32, #tpu.memory_space<vmem>>, vector<1x192x128xf32>
    %3 = vector.shape_cast %2 : vector<1x192x128xf32> to vector<192x128xf32>
    %cst = arith.constant dense<0.000000e+00> : vector<128x128xf32>
    %4 = tpu.matmul %1, %3, %cst {dimension_numbers = #tpu.dot_dimension_numbers<[1], [0], [0], [1], [0, 0, 1, 1], [], []>} : vector<128x192xf32>, vector<192x128xf32>, vector<128x128xf32> -> vector<128x128xf32>
    %c1 = arith.constant 1 : index
    %c0_5 = arith.constant 0 : index
    %c0_6 = arith.constant 0 : index
    %5 = vector.load %arg1[%c1, %c0_5, %c0_6] : memref<4x128x192xf32, #tpu.memory_space<vmem>>, vector<1x128x192xf32>
    %6 = vector.shape_cast %5 : vector<1x128x192xf32> to vector<128x192xf32>
    %c1_7 = arith.constant 1 : index
    %c0_8 = arith.constant 0 : index
    %c0_9 = arith.constant 0 : index
    %7 = vector.load %arg2[%c1_7, %c0_8, %c0_9] : memref<4x192x128xf32, #tpu.memory_space<vmem>>, vector<1x192x128xf32>
    %8 = vector.shape_cast %7 : vector<1x192x128xf32> to vector<192x128xf32>
    %cst_10 = arith.constant dense<0.000000e+00> : vector<128x128xf32>
    %9 = tpu.matmul %6, %8, %cst_10 {dimension_numbers = #tpu.dot_dimension_numbers<[1], [0], [0], [1], [0, 0, 1, 1], [], []>} : vector<128x192xf32>, vector<192x128xf32>, vector<128x128xf32> -> vector<128x128xf32>
    %c2 = arith.constant 2 : index
    %c0_11 = arith.constant 0 : index
    %c0_12 = arith.constant 0 : index
    %10 = vector.load %arg1[%c2, %c0_11, %c0_12] : memref<4x128x192xf32, #tpu.memory_space<vmem>>, vector<1x128x192xf32>
    %11 = vector.shape_cast %10 : vector<1x128x192xf32> to vector<128x192xf32>
    %c2_13 = arith.constant 2 : index
    %c0_14 = arith.constant 0 : index
    %c0_15 = arith.constant 0 : index
    %12 = vector.load %arg2[%c2_13, %c0_14, %c0_15] : memref<4x192x128xf32, #tpu.memory_space<vmem>>, vector<1x192x128xf32>
    %13 = vector.shape_cast %12 : vector<1x192x128xf32> to vector<192x128xf32>
    %cst_16 = arith.constant dense<0.000000e+00> : vector<128x128xf32>
    %14 = tpu.matmul %11, %13, %cst_16 {dimension_numbers = #tpu.dot_dimension_numbers<[1], [0], [0], [1], [0, 0, 1, 1], [], []>} : vector<128x192xf32>, vector<192x128xf32>, vector<128x128xf32> -> vector<128x128xf32>
    %c3 = arith.constant 3 : index
    %c0_17 = arith.constant 0 : index
    %c0_18 = arith.constant 0 : index
    %15 = vector.load %arg1[%c3, %c0_17, %c0_18] : memref<4x128x192xf32, #tpu.memory_space<vmem>>, vector<1x128x192xf32>
    %16 = vector.shape_cast %15 : vector<1x128x192xf32> to vector<128x192xf32>
    %c3_19 = arith.constant 3 : index
    %c0_20 = arith.constant 0 : index
    %c0_21 = arith.constant 0 : index
    %17 = vector.load %arg2[%c3_19, %c0_20, %c0_21] : memref<4x192x128xf32, #tpu.memory_space<vmem>>, vector<1x192x128xf32>
    %18 = vector.shape_cast %17 : vector<1x192x128xf32> to vector<192x128xf32>
    %cst_22 = arith.constant dense<0.000000e+00> : vector<128x128xf32>
    %19 = tpu.matmul %16, %18, %cst_22 {dimension_numbers = #tpu.dot_dimension_numbers<[1], [0], [0], [1], [0, 0, 1, 1], [], []>} : vector<128x192xf32>, vector<192x128xf32>, vector<128x128xf32> -> vector<128x128xf32>
    %cst_23 = arith.constant dense<0.000000e+00> : vector<128xf32>
    %20 = vector.multi_reduction <add>, %4, %cst_23 [0] : vector<128x128xf32> to vector<128xf32>
    %21 = vector.shape_cast %20 : vector<128xf32> to vector<1x128xf32>
    %cst_24 = arith.constant dense<0.000000e+00> : vector<128xf32>
    %22 = vector.multi_reduction <add>, %9, %cst_24 [0] : vector<128x128xf32> to vector<128xf32>
    %23 = vector.shape_cast %22 : vector<128xf32> to vector<1x128xf32>
    %24 = arith.addf %21, %23 : vector<1x128xf32>
    %cst_25 = arith.constant dense<0.000000e+00> : vector<128xf32>
    %25 = vector.multi_reduction <add>, %14, %cst_25 [0] : vector<128x128xf32> to vector<128xf32>
    %26 = vector.shape_cast %25 : vector<128xf32> to vector<1x128xf32>
    %27 = arith.addf %24, %26 : vector<1x128xf32>
    %cst_26 = arith.constant dense<0.000000e+00> : vector<128xf32>
    %28 = vector.multi_reduction <add>, %19, %cst_26 [0] : vector<128x128xf32> to vector<128xf32>
    %29 = vector.shape_cast %28 : vector<128xf32> to vector<1x128xf32>
    %30 = arith.addf %27, %29 : vector<1x128xf32>
    %cst_27 = arith.constant 0.001953125 : f32
    %31 = vector.broadcast %cst_27 : f32 to vector<1x128xf32>
    %32 = arith.mulf %30, %31 : vector<1x128xf32>
    %33 = vector.broadcast %32 : vector<1x128xf32> to vector<128x128xf32>
    %34 = arith.subf %4, %33 : vector<128x128xf32>
    %35 = arith.mulf %34, %34 : vector<128x128xf32>
    %cst_28 = arith.constant dense<0.000000e+00> : vector<128xf32>
    %36 = vector.multi_reduction <add>, %35, %cst_28 [0] : vector<128x128xf32> to vector<128xf32>
    %37 = vector.shape_cast %36 : vector<128xf32> to vector<1x128xf32>
    %38 = vector.broadcast %32 : vector<1x128xf32> to vector<128x128xf32>
    %39 = arith.subf %9, %38 : vector<128x128xf32>
    %40 = arith.mulf %39, %39 : vector<128x128xf32>
    %cst_29 = arith.constant dense<0.000000e+00> : vector<128xf32>
    %41 = vector.multi_reduction <add>, %40, %cst_29 [0] : vector<128x128xf32> to vector<128xf32>
    %42 = vector.shape_cast %41 : vector<128xf32> to vector<1x128xf32>
    %43 = arith.addf %37, %42 : vector<1x128xf32>
    %44 = vector.broadcast %32 : vector<1x128xf32> to vector<128x128xf32>
    %45 = arith.subf %14, %44 : vector<128x128xf32>
    %46 = arith.mulf %45, %45 : vector<128x128xf32>
    %cst_30 = arith.constant dense<0.000000e+00> : vector<128xf32>
    %47 = vector.multi_reduction <add>, %46, %cst_30 [0] : vector<128x128xf32> to vector<128xf32>
    %48 = vector.shape_cast %47 : vector<128xf32> to vector<1x128xf32>
    %49 = arith.addf %43, %48 : vector<1x128xf32>
    %50 = vector.broadcast %32 : vector<1x128xf32> to vector<128x128xf32>
    %51 = arith.subf %19, %50 : vector<128x128xf32>
    %52 = arith.mulf %51, %51 : vector<128x128xf32>
    %cst_31 = arith.constant dense<0.000000e+00> : vector<128xf32>
    %53 = vector.multi_reduction <add>, %52, %cst_31 [0] : vector<128x128xf32> to vector<128xf32>
    %54 = vector.shape_cast %53 : vector<128xf32> to vector<1x128xf32>
    %55 = arith.addf %49, %54 : vector<1x128xf32>
    %cst_32 = arith.constant 0.001953125 : f32
    %56 = vector.broadcast %cst_32 : f32 to vector<1x128xf32>
    %57 = arith.mulf %55, %56 : vector<1x128xf32>
    %c0_33 = arith.constant 0 : index
    %c0_34 = arith.constant 0 : index
    %58 = vector.load %arg3[%c0_33, %c0_34] : memref<1x128xf32, #tpu.memory_space<vmem>>, vector<1x128xf32>
    %cst_35 = arith.constant 9.99999974E-6 : f32
    %59 = vector.broadcast %cst_35 : f32 to vector<1x128xf32>
    %60 = arith.addf %57, %59 : vector<1x128xf32>
    %61 = math.rsqrt %60 : vector<1x128xf32>
    %62 = arith.mulf %58, %61 : vector<1x128xf32>
    %c0_36 = arith.constant 0 : index
    %c0_37 = arith.constant 0 : index
    %63 = vector.load %arg4[%c0_36, %c0_37] : memref<1x128xf32, #tpu.memory_space<vmem>>, vector<1x128xf32>
    %64 = arith.mulf %32, %62 : vector<1x128xf32>
    %65 = arith.subf %63, %64 : vector<1x128xf32>
    %66 = vector.broadcast %62 : vector<1x128xf32> to vector<128x128xf32>
    %67 = arith.mulf %4, %66 : vector<128x128xf32>
    %68 = vector.broadcast %65 : vector<1x128xf32> to vector<128x128xf32>
    %69 = arith.addf %67, %68 : vector<128x128xf32>
    %cst_38 = arith.constant 0.000000e+00 : f32
    %70 = vector.broadcast %cst_38 : f32 to vector<128x128xf32>
    %71 = arith.maximumf %69, %70 : vector<128x128xf32>
    %c0_39 = arith.constant 0 : index
    %c0_40 = arith.constant 0 : index
    %c0_41 = arith.constant 0 : index
    %72 = vector.load %arg5[%c0_39, %c0_40, %c0_41] : memref<4x128x128xf32, #tpu.memory_space<vmem>>, vector<1x128x128xf32>
    %73 = vector.shape_cast %72 : vector<1x128x128xf32> to vector<128x128xf32>
    %74 = vector.shape_cast %71 : vector<128x128xf32> to vector<1x128x128xf32>
    tpu.vector_store %arg5[%c0_39, %c0_40, %c0_41], %74 {strides = array<i32>} : memref<4x128x128xf32, #tpu.memory_space<vmem>>, vector<1x128x128xf32>,
    %75 = vector.broadcast %62 : vector<1x128xf32> to vector<128x128xf32>
    %76 = arith.mulf %9, %75 : vector<128x128xf32>
    %77 = vector.broadcast %65 : vector<1x128xf32> to vector<128x128xf32>
    %78 = arith.addf %76, %77 : vector<128x128xf32>
    %cst_42 = arith.constant 0.000000e+00 : f32
    %79 = vector.broadcast %cst_42 : f32 to vector<128x128xf32>
    %80 = arith.maximumf %78, %79 : vector<128x128xf32>
    %c1_43 = arith.constant 1 : index
    %c0_44 = arith.constant 0 : index
    %c0_45 = arith.constant 0 : index
    %81 = vector.load %arg5[%c1_43, %c0_44, %c0_45] : memref<4x128x128xf32, #tpu.memory_space<vmem>>, vector<1x128x128xf32>
    %82 = vector.shape_cast %81 : vector<1x128x128xf32> to vector<128x128xf32>
    %83 = vector.shape_cast %80 : vector<128x128xf32> to vector<1x128x128xf32>
    tpu.vector_store %arg5[%c1_43, %c0_44, %c0_45], %83 {strides = array<i32>} : memref<4x128x128xf32, #tpu.memory_space<vmem>>, vector<1x128x128xf32>,
    %84 = vector.broadcast %62 : vector<1x128xf32> to vector<128x128xf32>
    %85 = arith.mulf %14, %84 : vector<128x128xf32>
    %86 = vector.broadcast %65 : vector<1x128xf32> to vector<128x128xf32>
    %87 = arith.addf %85, %86 : vector<128x128xf32>
    %cst_46 = arith.constant 0.000000e+00 : f32
    %88 = vector.broadcast %cst_46 : f32 to vector<128x128xf32>
    %89 = arith.maximumf %87, %88 : vector<128x128xf32>
    %c2_47 = arith.constant 2 : index
    %c0_48 = arith.constant 0 : index
    %c0_49 = arith.constant 0 : index
    %90 = vector.load %arg5[%c2_47, %c0_48, %c0_49] : memref<4x128x128xf32, #tpu.memory_space<vmem>>, vector<1x128x128xf32>
    %91 = vector.shape_cast %90 : vector<1x128x128xf32> to vector<128x128xf32>
    %92 = vector.shape_cast %89 : vector<128x128xf32> to vector<1x128x128xf32>
    tpu.vector_store %arg5[%c2_47, %c0_48, %c0_49], %92 {strides = array<i32>} : memref<4x128x128xf32, #tpu.memory_space<vmem>>, vector<1x128x128xf32>,
    %93 = vector.broadcast %62 : vector<1x128xf32> to vector<128x128xf32>
    %94 = arith.mulf %19, %93 : vector<128x128xf32>
    %95 = vector.broadcast %65 : vector<1x128xf32> to vector<128x128xf32>
    %96 = arith.addf %94, %95 : vector<128x128xf32>
    %cst_50 = arith.constant 0.000000e+00 : f32
    %97 = vector.broadcast %cst_50 : f32 to vector<128x128xf32>
    %98 = arith.maximumf %96, %97 : vector<128x128xf32>
    %c3_51 = arith.constant 3 : index
    %c0_52 = arith.constant 0 : index
    %c0_53 = arith.constant 0 : index
    %99 = vector.load %arg5[%c3_51, %c0_52, %c0_53] : memref<4x128x128xf32, #tpu.memory_space<vmem>>, vector<1x128x128xf32>
    %100 = vector.shape_cast %99 : vector<1x128x128xf32> to vector<128x128xf32>
    %101 = vector.shape_cast %98 : vector<128x128xf32> to vector<1x128x128xf32>
    tpu.vector_store %arg5[%c3_51, %c0_52, %c0_53], %101 {strides = array<i32>} : memref<4x128x128xf32, #tpu.memory_space<vmem>>, vector<1x128x128xf32>,
    return
  }
  func.func @transform_0(%arg0: i32) -> (i32, i32, i32) {
    %c0_i32 = arith.constant 0 : i32
    %c0_i32_0 = arith.constant 0 : i32
    %c0_i32_1 = arith.constant 0 : i32
    %c0_i32_2 = arith.constant 0 : i32
    return %c0_i32, %c0_i32_0, %c0_i32_1 : i32, i32, i32
  }
  func.func @transform_1(%arg0: i32) -> (i32, i32, i32) {
    %c0_i32 = arith.constant 0 : i32
    %c0_i32_0 = arith.constant 0 : i32
    %c0_i32_1 = arith.constant 0 : i32
    %c0_i32_2 = arith.constant 0 : i32
    return %c0_i32, %c0_i32_0, %c0_i32_1 : i32, i32, i32
  }
  func.func @transform_2(%arg0: i32) -> (i32, i32) {
    %c0_i32 = arith.constant 0 : i32
    %c0_i32_0 = arith.constant 0 : i32
    %c0_i32_1 = arith.constant 0 : i32
    return %c0_i32, %c0_i32_0 : i32, i32
  }
  func.func @transform_3(%arg0: i32) -> (i32, i32) {
    %c0_i32 = arith.constant 0 : i32
    %c0_i32_0 = arith.constant 0 : i32
    %c0_i32_1 = arith.constant 0 : i32
    return %c0_i32, %c0_i32_0 : i32, i32
  }
  func.func @transform_4(%arg0: i32) -> (i32, i32, i32) {
    %c0_i32 = arith.constant 0 : i32
    %c0_i32_0 = arith.constant 0 : i32
    %c0_i32_1 = arith.constant 0 : i32
    %c0_i32_2 = arith.constant 0 : i32
    return %c0_i32, %c0_i32_0, %c0_i32_1 : i32, i32, i32
  }
}

module attributes {stable_mosaic.version = 11 : i64} {
  func.func @_convT_bias_tanh_kernel(%arg0: i32, %arg1: memref<1x512x64xf32, #tpu.memory_space<vmem>>, %arg2: memref<1x64x128xf32, #tpu.memory_space<vmem>>, %arg3: memref<1x128xf32, #tpu.memory_space<vmem>>, %arg4: memref<1x512x128xf32, #tpu.memory_space<vmem>>) attributes {dimension_semantics = [#tpu.dimension_semantics<parallel>], iteration_bounds = array<i64: 4>, scalar_prefetch = 0 : i64, scratch_operands = 0 : i64, tpu.core_type = #tpu.core_type<tc>, window_params = [{transform_indices = @transform_0, window_bounds = array<i64: 1, 512, 64>}, {transform_indices = @transform_1, window_bounds = array<i64: 1, 64, 128>}, {pipeline_mode = #tpu.pipeline_mode<synchronous>, transform_indices = @transform_2, window_bounds = array<i64: 1, 128>}, {transform_indices = @transform_3, window_bounds = array<i64: 1, 512, 128>}]} {
    %c0 = arith.constant 0 : index
    %c0_0 = arith.constant 0 : index
    %c0_1 = arith.constant 0 : index
    %0 = vector.load %arg1[%c0, %c0_0, %c0_1] : memref<1x512x64xf32, #tpu.memory_space<vmem>>, vector<1x512x64xf32>
    %1 = vector.shape_cast %0 : vector<1x512x64xf32> to vector<512x64xf32>
    %c0_2 = arith.constant 0 : index
    %c0_3 = arith.constant 0 : index
    %c0_4 = arith.constant 0 : index
    %2 = vector.load %arg2[%c0_2, %c0_3, %c0_4] : memref<1x64x128xf32, #tpu.memory_space<vmem>>, vector<1x64x128xf32>
    %3 = vector.shape_cast %2 : vector<1x64x128xf32> to vector<64x128xf32>
    %cst = arith.constant dense<0.000000e+00> : vector<512x128xf32>
    %4 = tpu.matmul %1, %3, %cst {dimension_numbers = #tpu.dot_dimension_numbers<[1], [0], [0], [1], [0, 0, 1, 1], [], []>} : vector<512x64xf32>, vector<64x128xf32>, vector<512x128xf32> -> vector<512x128xf32>
    %c0_5 = arith.constant 0 : index
    %c0_6 = arith.constant 0 : index
    %5 = vector.load %arg3[%c0_5, %c0_6] : memref<1x128xf32, #tpu.memory_space<vmem>>, vector<1x128xf32>
    %6 = vector.broadcast %5 : vector<1x128xf32> to vector<512x128xf32>
    %7 = arith.addf %4, %6 : vector<512x128xf32>
    %8 = math.tanh %7 : vector<512x128xf32>
    %c0_7 = arith.constant 0 : index
    %c0_8 = arith.constant 0 : index
    %c0_9 = arith.constant 0 : index
    %9 = vector.load %arg4[%c0_7, %c0_8, %c0_9] : memref<1x512x128xf32, #tpu.memory_space<vmem>>, vector<1x512x128xf32>
    %10 = vector.shape_cast %9 : vector<1x512x128xf32> to vector<512x128xf32>
    %11 = vector.shape_cast %8 : vector<512x128xf32> to vector<1x512x128xf32>
    tpu.vector_store %arg4[%c0_7, %c0_8, %c0_9], %11 {strides = array<i32>} : memref<1x512x128xf32, #tpu.memory_space<vmem>>, vector<1x512x128xf32>,
    return
  }
  func.func @transform_0(%arg0: i32) -> (i32, i32, i32) {
    %c0_i32 = arith.constant 0 : i32
    %c0_i32_0 = arith.constant 0 : i32
    %c0_i32_1 = arith.constant 0 : i32
    return %arg0, %c0_i32, %c0_i32_0 : i32, i32, i32
  }
  func.func @transform_1(%arg0: i32) -> (i32, i32, i32) {
    %c0_i32 = arith.constant 0 : i32
    %c0_i32_0 = arith.constant 0 : i32
    %c0_i32_1 = arith.constant 0 : i32
    return %arg0, %c0_i32, %c0_i32_0 : i32, i32, i32
  }
  func.func @transform_2(%arg0: i32) -> (i32, i32) {
    %c0_i32 = arith.constant 0 : i32
    %c0_i32_0 = arith.constant 0 : i32
    %c0_i32_1 = arith.constant 0 : i32
    return %c0_i32, %c0_i32_0 : i32, i32
  }
  func.func @transform_3(%arg0: i32) -> (i32, i32, i32) {
    %c0_i32 = arith.constant 0 : i32
    %c0_i32_0 = arith.constant 0 : i32
    %c0_i32_1 = arith.constant 0 : i32
    return %arg0, %c0_i32, %c0_i32_0 : i32, i32, i32
  }
}

</mosaic_0001>

<bundles_post_ra>
// kernel: generator_face_forward.6
= control target key start
LH: loop header
LB: loop body
LE: loop exit
PB: predicated region body
PF: predicated region fallthrough
CT: control target
= control target key end

     0   :  { %vm87_vm0 = vcmask 392192   ;;  %s3414_s1 = inlined_call_operand.vmem [shape: f32[1,48,128], index: 1, kind: input, shape index: {}]   ;;  %s3415_s0 = inlined_call_operand.vmem [shape: f32[1,512,48], index: 0, kind: input, shape index: {}]   ;;  %s3416_s2 = inlined_call_operand.vmem [shape: f32[1,128], index: 2, kind: input, shape index: {}]   ;;  %s3417_s3 = inlined_call_operand.vmem [shape: f32[1,128], index: 3, kind: input, shape index: {}]   ;;  %s3418_s4 = inlined_call_operand.vmem [shape: f32[1,512,128], index: 4, kind: output, shape index: {}]  }
   0x1   :  { %v86_v0 = vld [vmem:[%s3414_s1 + $0x28] sm:$0xff]  ;;  %v85_v1 = vld [vmem:[%s3414_s1 + $0x20] sm:$0xff]  ;;  %v84_v2 = vld [vmem:[%s3414_s1 + $0x18] sm:$0xff] }
   0x2   :  { %1474 = vmatprep.subr.mxu0 %v86_v0  ;;  %1582 = vmatprep.subr.mxu1 %v86_v0  ;;  %v17_v3 = vld [vmem:[%s3415_s0] sm:$0xff]  ;;  %v83_v4 = vld [vmem:[%s3414_s1 + $0x10] sm:$0xff]  ;;  %v82_v5 = vld [vmem:[%s3414_s1 + $0x8] sm:$0xff] }
   0x3   :  { %1475 = vmatpush3.msra.mxu0 %v86_v0  ;;  %1588 = vmatpush3.msra.mxu1 %v86_v0  ;;  %v81_v6 = vld [vmem:[%s3414_s1] sm:$0xff]  ;;  %v18_v7 = vld [vmem:[%s3415_s0 + $0x8] sm:$0xff]  ;;  %v19_v8 = vld [vmem:[%s3415_s0 + $0x10] sm:$0xff] }
   0x4   :  { %1476 = vmatprep.subr.mxu0 %v85_v1  ;;  %1486 = vmatprep.mubr.msk.f32.mxu0 %vm87_vm0, %v17_v3  ;;  %v49_v9 = vld [vmem:[%s3415_s0 + $0x100] sm:$0xff]  ;;  %v50_v10 = vld [vmem:[%s3415_s0 + $0x108] sm:$0xff]  ;;  %v51_v11 = vld [vmem:[%s3415_s0 + $0x110] sm:$0xff] }
   0x5   :  { %1477 = vmatpush3.msra.mxu0 %v85_v1  ;;  %1583 = vmatprep.subr.mxu1 %v85_v1  ;;  %v20_v12 = vld [vmem:[%s3415_s0 + $0x18] sm:$0xff]  ;;  %v21_v13 = vld [vmem:[%s3415_s0 + $0x20] sm:$0xff]  ;;  %v22_v16 = vld [vmem:[%s3415_s0 + $0x28] sm:$0xff] }
   0x6   :  { %1478 = vmatprep.subr.mxu0 %v84_v2  ;;  %1589 = vmatpush3.msra.mxu1 %v85_v1  ;;  %v52_v14 = vld [vmem:[%s3415_s0 + $0x118] sm:$0xff]  ;;  %v53_v15 = vld [vmem:[%s3415_s0 + $0x120] sm:$0xff]  ;;  %v23_v17 = vld [vmem:[%s3415_s0 + $0x30] sm:$0xff] }
   0x7   :  { %1479 = vmatpush3.msra.mxu0 %v84_v2  ;;  %1584 = vmatprep.subr.mxu1 %v84_v2  ;;  %v54_v18 = vld [vmem:[%s3415_s0 + $0x128] sm:$0xff]  ;;  %v55_v19 = vld [vmem:[%s3415_s0 + $0x130] sm:$0xff]  ;;  %v24_v20 = vld [vmem:[%s3415_s0 + $0x38] sm:$0xff] }
   0x8   :  { %1480 = vmatprep.subr.mxu0 %v83_v4  ;;  %1590 = vmatpush3.msra.mxu1 %v84_v2  ;;  %v25_v21 = vld [vmem:[%s3415_s0 + $0x40] sm:$0xff]  ;;  %v56_v22 = vld [vmem:[%s3415_s0 + $0x138] sm:$0xff]  ;;  %v26_v24 = vld [vmem:[%s3415_s0 + $0x48] sm:$0xff] }
   0x9   :  { %1481 = vmatpush3.msra.mxu0 %v83_v4  ;;  %1585 = vmatprep.subr.mxu1 %v83_v4  ;;  %v57_v23 = vld [vmem:[%s3415_s0 + $0x140] sm:$0xff]  ;;  %v27_v25 = vld [vmem:[%s3415_s0 + $0x50] sm:$0xff]  ;;  %v58_v26 = vld [vmem:[%s3415_s0 + $0x148] sm:$0xff] }
   0xa   :  { %1482 = vmatprep.subr.mxu0 %v82_v5  ;;  %1591 = vmatpush3.msra.mxu1 %v83_v4  ;;  %v59_v27 = vld [vmem:[%s3415_s0 + $0x150] sm:$0xff]  ;;  %v28_v28 = vld [vmem:[%s3415_s0 + $0x58] sm:$0xff]  ;;  %v29_v29 = vld [vmem:[%s3415_s0 + $0x60] sm:$0xff] }
   0xb   :  { %1483 = vmatpush3.msra.mxu0 %v82_v5  ;;  %1586 = vmatprep.subr.mxu1 %v82_v5  ;;  %v60_v30 = vld [vmem:[%s3415_s0 + $0x158] sm:$0xff]  ;;  %v61_v31 = vld [vmem:[%s3415_s0 + $0x160] sm:$0xff]  ;;  %v30_v32 = vld [vmem:[%s3415_s0 + $0x68] sm:$0xff] }
   0xc   :  { %1484 = vmatprep.subr.mxu0 %v81_v6  ;;  %1592 = vmatpush3.msra.mxu1 %v82_v5  ;;  %v31_v33 = vld [vmem:[%s3415_s0 + $0x70] sm:$0xff]  ;;  %v62_v34 = vld [vmem:[%s3415_s0 + $0x168] sm:$0xff]  ;;  %v32_v36 = vld [vmem:[%s3415_s0 + $0x78] sm:$0xff] }
   0xd   :  { %1485 = vmatpush3.msra.mxu0 %v81_v6  ;;  %1587 = vmatprep.subr.mxu1 %v81_v6  ;;  %v63_v35 = vld [vmem:[%s3415_s0 + $0x170] sm:$0xff]  ;;  %v33_v37 = vld [vmem:[%s3415_s0 + $0x80] sm:$0xff]  ;;  %v64_v38 = vld [vmem:[%s3415_s0 + $0x178] sm:$0xff] }
   0xe   :  { %1487 = vmatmul.mubr.msk.f32.vlgmr.msra.gmra.mxu0 %vm87_vm0, %v18_v7  ;;  %1593 = vmatpush3.msra.mxu1 %v81_v6  ;;  %v65_v39 = vld [vmem:[%s3415_s0 + $0x180] sm:$0xff]  ;;  %v34_v40 = vld [vmem:[%s3415_s0 + $0x88] sm:$0xff]  ;;  %v35_v41 = vld [vmem:[%s3415_s0 + $0x90] sm:$0xff] }
   0xf   :  { %1489 = vmatprep.mubr.msk.f32.mxu0 %vm87_vm0, %v19_v8  ;;  %1534 = vmatprep.mubr.msk.f32.mxu1 %vm87_vm0, %v49_v9  ;;  %v66_v42 = vld [vmem:[%s3415_s0 + $0x188] sm:$0xff]  ;;  %v67_v43 = vld [vmem:[%s3415_s0 + $0x190] sm:$0xff]  ;;  %v36_v44 = vld [vmem:[%s3415_s0 + $0x98] sm:$0xff] }
  0x10   :  { %1535 = vmatmul.mubr.msk.f32.vlgmr.msra.gmra.mxu1 %vm87_vm0, %v50_v10  ;;  %v37_v45 = vld [vmem:[%s3415_s0 + $0xa0] sm:$0xff]  ;;  %v68_v46 = vld [vmem:[%s3415_s0 + $0x198] sm:$0xff]  ;;  %v38_v48 = vld [vmem:[%s3415_s0 + $0xa8] sm:$0xff] }
  0x11   :  { %1537 = vmatprep.mubr.msk.f32.mxu1 %vm87_vm0, %v51_v11  ;;  %v69_v47 = vld [vmem:[%s3415_s0 + $0x1a0] sm:$0xff]  ;;  %v39_v49 = vld [vmem:[%s3415_s0 + $0xb0] sm:$0xff]  ;;  %v70_v50 = vld [vmem:[%s3415_s0 + $0x1a8] sm:$0xff] }
  0x12   :  { %1490 = vmatmul.mubr.msk.f32.gmra.mxu0 %vm87_vm0, %v20_v12  ;;  %v71_v51 = vld [vmem:[%s3415_s0 + $0x1b0] sm:$0xff]  ;;  %v40_v52 = vld [vmem:[%s3415_s0 + $0xb8] sm:$0xff]  ;;  %v41_v53 = vld [vmem:[%s3415_s0 + $0xc0] sm:$0xff] }
  0x13   :  { %1492 = vmatprep.mubr.msk.f32.mxu0 %vm87_vm0, %v21_v13  ;;  %v72_v54 = vld [vmem:[%s3415_s0 + $0x1b8] sm:$0xff]  ;;  %v73_v55 = vld [vmem:[%s3415_s0 + $0x1c0] sm:$0xff]  ;;  %v42_v56 = vld [vmem:[%s3415_s0 + $0xc8] sm:$0xff] }
  0x14   :  { %1538 = vmatmul.mubr.msk.f32.gmra.mxu1 %vm87_vm0, %v52_v14  ;;  %v43_v57 = vld [vmem:[%s3415_s0 + $0xd0] sm:$0xff]  ;;  %v74_v58 = vld [vmem:[%s3415_s0 + $0x1c8] sm:$0xff]  ;;  %v44_v60 = vld [vmem:[%s3415_s0 + $0xd8] sm:$0xff] }
  0x15   :  { %1540 = vmatprep.mubr.msk.f32.mxu1 %vm87_vm0, %v53_v15  ;;  %v75_v59 = vld [vmem:[%s3415_s0 + $0x1d0] sm:$0xff]  ;;  %v45_v61 = vld [vmem:[%s3415_s0 + $0xe0] sm:$0xff]  ;;  %v76_v62 = vld [vmem:[%s3415_s0 + $0x1d8] sm:$0xff] }
  0x16   :  { %1493 = vmatmul.mubr.msk.f32.gmra.mxu0 %vm87_vm0, %v22_v16  ;;  %v77_v63 = vld [vmem:[%s3415_s0 + $0x1e0] sm:$0xff]  ;;  %v46_v0 = vld [vmem:[%s3415_s0 + $0xe8] sm:$0xff]  ;;  %v47_v1 = vld [vmem:[%s3415_s0 + $0xf0] sm:$0xff] }
  0x17   :  { %1495 = vmatprep.mubr.msk.f32.mxu0 %vm87_vm0, %v23_v17  ;;  %v78_v2 = vld [vmem:[%s3415_s0 + $0x1e8] sm:$0xff]  ;;  %v79_v3 = vld [vmem:[%s3415_s0 + $0x1f0] sm:$0xff]  ;;  %v48_v4 = vld [vmem:[%s3415_s0 + $0xf8] sm:$0xff] }
  0x18   :  { %1541 = vmatmul.mubr.msk.f32.gmra.mxu1 %vm87_vm0, %v54_v18  ;;  %v80_v5 = vld [vmem:[%s3415_s0 + $0x1f8] sm:$0xff] }
  0x19   :  { %1543 = vmatprep.mubr.msk.f32.mxu1 %vm87_vm0, %v55_v19 }
  0x1a   :  { %1496 = vmatmul.mubr.msk.f32.gmra.mxu0 %vm87_vm0, %v24_v20 }
  0x1b   :  { %1498 = vmatprep.mubr.msk.f32.mxu0 %vm87_vm0, %v25_v21 }
  0x1c   :  { %1544 = vmatmul.mubr.msk.f32.gmra.mxu1 %vm87_vm0, %v56_v22 }
  0x1d   :  { %1546 = vmatprep.mubr.msk.f32.mxu1 %vm87_vm0, %v57_v23 }
  0x1e   :  { %1499 = vmatmul.mubr.msk.f32.gmra.mxu0 %vm87_vm0, %v26_v24 }
  0x1f   :  { %1501 = vmatprep.mubr.msk.f32.mxu0 %vm87_vm0, %v27_v25 }
  0x20   :  { %1547 = vmatmul.mubr.msk.f32.gmra.mxu1 %vm87_vm0, %v58_v26 }
  0x21   :  { %1549 = vmatprep.mubr.msk.f32.mxu1 %vm87_vm0, %v59_v27 }
  0x22   :  { %1502 = vmatmul.mubr.msk.f32.gmra.mxu0 %vm87_vm0, %v28_v28 }
  0x23   :  { %1504 = vmatprep.mubr.msk.f32.mxu0 %vm87_vm0, %v29_v29 }
  0x24   :  { %1550 = vmatmul.mubr.msk.f32.gmra.mxu1 %vm87_vm0, %v60_v30 }
  0x25   :  { %1552 = vmatprep.mubr.msk.f32.mxu1 %vm87_vm0, %v61_v31 }
  0x26   :  { %1505 = vmatmul.mubr.msk.f32.gmra.mxu0 %vm87_vm0, %v30_v32 }
  0x27   :  { %1507 = vmatprep.mubr.msk.f32.mxu0 %vm87_vm0, %v31_v33 }
  0x28   :  { %1553 = vmatmul.mubr.msk.f32.gmra.mxu1 %vm87_vm0, %v62_v34 }
  0x29   :  { %1555 = vmatprep.mubr.msk.f32.mxu1 %vm87_vm0, %v63_v35 }
  0x2a   :  { %1508 = vmatmul.mubr.msk.f32.gmra.mxu0 %vm87_vm0, %v32_v36 }
  0x2b   :  { %1510 = vmatprep.mubr.msk.f32.mxu0 %vm87_vm0, %v33_v37 }
  0x2c   :  { %1556 = vmatmul.mubr.msk.f32.gmra.mxu1 %vm87_vm0, %v64_v38 }
  0x2d   :  { %1558 = vmatprep.mubr.msk.f32.mxu1 %vm87_vm0, %v65_v39 }
  0x2e   :  { %1511 = vmatmul.mubr.msk.f32.gmra.mxu0 %vm87_vm0, %v34_v40 }
  0x2f   :  { %1513 = vmatprep.mubr.msk.f32.mxu0 %vm87_vm0, %v35_v41 }
  0x30   :  { %1559 = vmatmul.mubr.msk.f32.gmra.mxu1 %vm87_vm0, %v66_v42 }
  0x31   :  { %1561 = vmatprep.mubr.msk.f32.mxu1 %vm87_vm0, %v67_v43 }
  0x32   :  { %1514 = vmatmul.mubr.msk.f32.gmra.mxu0 %vm87_vm0, %v36_v44 }
  0x33   :  { %1516 = vmatprep.mubr.msk.f32.mxu0 %vm87_vm0, %v37_v45 }
  0x34   :  { %1562 = vmatmul.mubr.msk.f32.gmra.mxu1 %vm87_vm0, %v68_v46 }
  0x35   :  { %1564 = vmatprep.mubr.msk.f32.mxu1 %vm87_vm0, %v69_v47 }
  0x36   :  { %1517 = vmatmul.mubr.msk.f32.gmra.mxu0 %vm87_vm0, %v38_v48 }
  0x37   :  { %1519 = vmatprep.mubr.msk.f32.mxu0 %vm87_vm0, %v39_v49 }
  0x38   :  { %1565 = vmatmul.mubr.msk.f32.gmra.mxu1 %vm87_vm0, %v70_v50 }
  0x39   :  { %1567 = vmatprep.mubr.msk.f32.mxu1 %vm87_vm0, %v71_v51 }
  0x3a   :  { %1520 = vmatmul.mubr.msk.f32.gmra.mxu0 %vm87_vm0, %v40_v52 }
  0x3b   :  { %1522 = vmatprep.mubr.msk.f32.mxu0 %vm87_vm0, %v41_v53 }
  0x3c   :  { %1568 = vmatmul.mubr.msk.f32.gmra.mxu1 %vm87_vm0, %v72_v54 }
  0x3d   :  { %1570 = vmatprep.mubr.msk.f32.mxu1 %vm87_vm0, %v73_v55 }
  0x3e   :  { %1523 = vmatmul.mubr.msk.f32.gmra.mxu0 %vm87_vm0, %v42_v56 }
  0x3f   :  { %1525 = vmatprep.mubr.msk.f32.mxu0 %vm87_vm0, %v43_v57 }
  0x40   :  { %1571 = vmatmul.mubr.msk.f32.gmra.mxu1 %vm87_vm0, %v74_v58 }
  0x41   :  { %1573 = vmatprep.mubr.msk.f32.mxu1 %vm87_vm0, %v75_v59 }
  0x42   :  { %1526 = vmatmul.mubr.msk.f32.gmra.mxu0 %vm87_vm0, %v44_v60 }
  0x43   :  { %1528 = vmatprep.mubr.msk.f32.mxu0 %vm87_vm0, %v45_v61 }
  0x44   :  { %1574 = vmatmul.mubr.msk.f32.gmra.mxu1 %vm87_vm0, %v76_v62 }
  0x45   :  { %1576 = vmatprep.mubr.msk.f32.mxu1 %vm87_vm0, %v77_v63 }
  0x46   :  { %1529 = vmatmul.mubr.msk.f32.gmra.mxu0 %vm87_vm0, %v46_v0 }
  0x47   :  { %1531 = vmatprep.mubr.msk.f32.mxu0 %vm87_vm0, %v47_v1 }
  0x48   :  { %1577 = vmatmul.mubr.msk.f32.gmra.mxu1 %vm87_vm0, %v78_v2 }
  0x49   :  { %1579 = vmatprep.mubr.msk.f32.mxu1 %vm87_vm0, %v79_v3 }
  0x4a   :  { %1532 = vmatmul.mubr.msk.f32.gmra.mxu0 %vm87_vm0, %v48_v4 }
  0x4c   :  { %1580 = vmatmul.mubr.msk.f32.gmra.mxu1 %vm87_vm0, %v80_v5 }
  0xce   :  { %v1895_v6 = vpop.f32.mrf.mxu0 }
  0xcf   :  { %3482 = vst [vmem:[#allocation2_spill] sm:$0xff] %v1895_v6 }
  0xd0   :  { %v1897_v7 = vpop.f32.mrf.mxu0  ;;  %v1908_v13 = vpop.f32.mrf.mxu1 }
  0xd1   :  { %v665_v9 = vadd.f32 %v1895_v6, %v1897_v7 }
  0xd2   :  { %v1899_v8 = vpop.f32.mrf.mxu0  ;;  %v1916_v18 = vpop.f32.mrf.mxu1 }
  0xd3   :  { %3483 = vst [vmem:[#allocation3_spill] sm:$0xff] %v1899_v8 }
  0xd4   :  { %v1903_v10 = vpop.f32.mrf.mxu0  ;;  %v1924_v23 = vpop.f32.mrf.mxu1 }
  0xd5   :  { %3484 = vst [vmem:[#allocation4_spill] sm:$0xff] %v1903_v10  ;;  %v666_v11 = vadd.f32 %v665_v9, %v1903_v10 }
  0xd6   :  { %v1906_v12 = vpop.f32.mrf.mxu0  ;;  %v1932_v28 = vpop.f32.mrf.mxu1 }
  0xd7   :  { %v667_v14 = vadd.f32 %v1899_v8, %v666_v11 }
  0xd8   :  { %v1911_v15 = vpop.f32.mrf.mxu0  ;;  %v1940_v33 = vpop.f32.mrf.mxu1 }
  0xd9   :  { %3485 = vst [vmem:[#allocation5_spill] sm:$0xff] %v1911_v15  ;;  %v668_v16 = vadd.f32 %v667_v14, %v1911_v15 }
  0xda   :  { %v1914_v17 = vpop.f32.mrf.mxu0  ;;  %v1948_v38 = vpop.f32.mrf.mxu1 }
  0xdb   :  { %v669_v19 = vadd.f32 %v1906_v12, %v668_v16 }
  0xdc   :  { %v1919_v20 = vpop.f32.mrf.mxu0  ;;  %v1956_v43 = vpop.f32.mrf.mxu1 }
  0xdd   :  { %v670_v21 = vadd.f32 %v669_v19, %v1919_v20  ;;  %3486 = vst [vmem:[#allocation6_spill] sm:$0xff] %v1956_v43 }
  0xde   :  { %v1922_v22 = vpop.f32.mrf.mxu0  ;;  %v1964_v48 = vpop.f32.mrf.mxu1 }
  0xdf   :  { %v671_v24 = vadd.f32 %v1914_v17, %v670_v21 }
  0xe0   :  { %v1927_v25 = vpop.f32.mrf.mxu0  ;;  %v1972_v53 = vpop.f32.mrf.mxu1 }
  0xe1   :  { %v672_v26 = vadd.f32 %v671_v24, %v1927_v25  ;;  %3487 = vst [vmem:[#allocation7_spill] sm:$0xff] %v1972_v53 }
  0xe2   :  { %v1930_v27 = vpop.f32.mrf.mxu0  ;;  %v1980_v58 = vpop.f32.mrf.mxu1 }
  0xe3   :  { %v673_v29 = vadd.f32 %v1922_v22, %v672_v26 }
  0xe4   :  { %v1935_v30 = vpop.f32.mrf.mxu0  ;;  %v1988_v63 = vpop.f32.mrf.mxu1 }
  0xe5   :  { %v674_v31 = vadd.f32 %v673_v29, %v1935_v30  ;;  %3488 = vst [vmem:[#allocation8_spill] sm:$0xff] %v1988_v63 }
  0xe6   :  { %v1938_v32 = vpop.f32.mrf.mxu0  ;;  %v1996_v4 = vpop.f32.mrf.mxu1 }
  0xe7   :  { %v675_v34 = vadd.f32 %v1930_v27, %v674_v31 }
  0xe8   :  { %v1943_v35 = vpop.f32.mrf.mxu0  ;;  %v2004_v16 = vpop.f32.mrf.mxu1 }
  0xe9   :  { %v676_v36 = vadd.f32 %v675_v34, %v1943_v35  ;;  %3489 = vst [vmem:[#allocation9_spill] sm:$0xff] %v2004_v16 }
  0xea   :  { %v1946_v37 = vpop.f32.mrf.mxu0  ;;  %v2012_v29 = vpop.f32.mrf.mxu1 }
  0xeb   :  { %v677_v39 = vadd.f32 %v1938_v32, %v676_v36 }
  0xec   :  { %v1951_v40 = vpop.f32.mrf.mxu0 }
  0xed   :  { %v678_v41 = vadd.f32 %v677_v39, %v1951_v40  ;;  %v2018_v39 = vpop.f32.mrf.mxu1 }
  0xee   :  { %v1954_v42 = vpop.f32.mrf.mxu0  ;;  %3490 = vst [vmem:[#allocation10_spill] sm:$0xff] %v2018_v39 }
  0xef   :  { %v679_v44 = vadd.f32 %v1946_v37, %v678_v41 }
  0xf0   :  { %v1959_v45 = vpop.f32.mrf.mxu0 }
  0xf1   :  { %v680_v46 = vadd.f32 %v679_v44, %v1959_v45 }
  0xf2   :  { %v1962_v47 = vpop.f32.mrf.mxu0 }
  0xf3   :  { %v681_v49 = vadd.f32 %v1954_v42, %v680_v46  ;;  %v2022_v46 = vpop.f32.mrf.mxu1 }
  0xf4   :  { %v1967_v50 = vpop.f32.mrf.mxu0 }
  0xf5   :  { %v682_v51 = vadd.f32 %v681_v49, %v1967_v50 }
  0xf6   :  { %v1970_v52 = vpop.f32.mrf.mxu0 }
  0xf7   :  { %v683_v54 = vadd.f32 %v1962_v47, %v682_v51 }
  0xf8   :  { %v1975_v55 = vpop.f32.mrf.mxu0 }
  0xf9   :  { %v684_v56 = vadd.f32 %v683_v54, %v1975_v55  ;;  %v2026_v54 = vpop.f32.mrf.mxu1 }
  0xfa   :  { %v1978_v57 = vpop.f32.mrf.mxu0  ;;  %3491 = vst [vmem:[#allocation11_spill] sm:$0xff] %v2026_v54 }
  0xfb   :  { %v685_v59 = vadd.f32 %v1970_v52, %v684_v56 }
  0xfc   :  { %v1983_v60 = vpop.f32.mrf.mxu0 }
  0xfd   :  { %v686_v61 = vadd.f32 %v685_v59, %v1983_v60 }
  0xfe   :  { %v1986_v62 = vpop.f32.mrf.mxu0 }
  0xff   :  { %v687_v0 = vadd.f32 %v1978_v57, %v686_v61  ;;  %v2030_v61 = vpop.f32.mrf.mxu1 }
 0x100   :  { %v1991_v1 = vpop.f32.mrf.mxu0  ;;  %3492 = vst [vmem:[#allocation12_spill] sm:$0xff] %v2030_v61 }
 0x101   :  { %v688_v2 = vadd.f32 %v687_v0, %v1991_v1 }
 0x102   :  { %v1994_v3 = vpop.f32.mrf.mxu0 }
 0x103   :  { %v689_v5 = vadd.f32 %v1986_v62, %v688_v2 }
 0x104   :  { %v1999_v9 = vpop.f32.mrf.mxu0 }
 0x105   :  { %v690_v11 = vadd.f32 %v689_v5, %v1999_v9  ;;  %v2034_v5 = vpop.f32.mrf.mxu1 }
 0x106   :  { %v2002_v14 = vpop.f32.mrf.mxu0  ;;  %3493 = vst [vmem:[#allocation13_spill] sm:$0xff] %v2034_v5 }
 0x107   :  { %v691_v19 = vadd.f32 %v1994_v3, %v690_v11 }
 0x108   :  { %v2007_v21 = vpop.f32.mrf.mxu0 }
 0x109   :  { %v692_v24 = vadd.f32 %v691_v19, %v2007_v21 }
 0x10a   :  { %v2010_v26 = vpop.f32.mrf.mxu0 }
 0x10b   :  { %v693_v31 = vadd.f32 %v2002_v14, %v692_v24  ;;  %v2038_v24 = vpop.f32.mrf.mxu1 }
 0x10c   :  { %v2015_v34 = vpop.f32.mrf.mxu0  ;;  %3494 = vst [vmem:[#allocation14_spill] sm:$0xff] %v2038_v24 }
 0x10d   :  { %v694_v36 = vadd.f32 %v693_v31, %v2015_v34 }
 0x10f   :  { %v695_v41 = vadd.f32 %v2010_v26, %v694_v36 }
 0x111   :  { %v696_v44 = vadd.f32 %v695_v41, %v1916_v18  ;;  %v2042_v41 = vpop.f32.mrf.mxu1 }
 0x112   :  { %3495 = vst [vmem:[#allocation15_spill] sm:$0xff] %v2042_v41 }
 0x113   :  { %v697_v49 = vadd.f32 %v1908_v13, %v696_v44 }
 0x115   :  { %v698_v51 = vadd.f32 %v697_v49, %v1932_v28 }
 0x117   :  { %v699_v56 = vadd.f32 %v1924_v23, %v698_v51  ;;  %v2046_v51 = vpop.f32.mrf.mxu1 }
 0x118   :  { %3496 = vst [vmem:[#allocation16_spill] sm:$0xff] %v2046_v51 }
 0x119   :  { %v700_v59 = vadd.f32 %v699_v56, %v1948_v38 }
 0x11b   :  { %v701_v0 = vadd.f32 %v1940_v33, %v700_v59 }
 0x11d   :  { %v702_v2 = vadd.f32 %v701_v0, %v1964_v48  ;;  %v2050_v0 = vpop.f32.mrf.mxu1 }
 0x11e   :  { %3497 = vst [vmem:[#allocation17_spill] sm:$0xff] %v2050_v0 }
 0x11f   :  { %v703_v11 = vadd.f32 %v1956_v43, %v702_v2 }
 0x121   :  { %v704_v19 = vadd.f32 %v703_v11, %v1980_v58 }
 0x123   :  { %v705_v31 = vadd.f32 %v1972_v53, %v704_v19  ;;  %v2054_v19 = vpop.f32.mrf.mxu1 }
 0x124   :  { %3498 = vst [vmem:[#allocation18_spill] sm:$0xff] %v2054_v19 }
 0x125   :  { %v706_v36 = vadd.f32 %v705_v31, %v1996_v4 }
 0x127   :  { %v707_v44 = vadd.f32 %v1988_v63, %v706_v36  ;;  %v2058_v63 = vpop.f32.mrf.mxu1 }
 0x128   :  { %3499 = vst [vmem:[#allocation19_spill] sm:$0xff] %v2058_v63 }
 0x129   :  { %v708_v49 = vadd.f32 %v707_v44, %v2012_v29 }
 0x12b   :  { %v709_v56 = vadd.f32 %v2004_v16, %v708_v49  ;;  %v2062_v16 = vpop.f32.mrf.mxu1 }
 0x12c   :  { %3500 = vst [vmem:[#allocation20_spill] sm:$0xff] %v2062_v16 }
 0x12d   :  { %v710_v59 = vadd.f32 %v709_v56, %v2022_v46 }
 0x12f   :  { %v711_v2 = vadd.f32 %v2018_v39, %v710_v59  ;;  %v2066_v39 = vpop.f32.mrf.mxu1 }
 0x130   :  { %3501 = vst [vmem:[#allocation21_spill] sm:$0xff] %v2066_v39 }
 0x131   :  { %v712_v11 = vadd.f32 %v711_v2, %v2030_v61 }
 0x133   :  { %v713_v31 = vadd.f32 %v2026_v54, %v712_v11  ;;  %v2070_v54 = vpop.f32.mrf.mxu1 }
 0x134   :  { %3502 = vst [vmem:[#allocation22_spill] sm:$0xff] %v2070_v54 }
 0x135   :  { %v714_v36 = vadd.f32 %v713_v31, %v2038_v24 }
 0x137   :  { %v715_v44 = vadd.f32 %v2034_v5, %v714_v36  ;;  %v2074_v5 = vpop.f32.mrf.mxu1 }
 0x138   :  { %3503 = vst [vmem:[#allocation23_spill] sm:$0xff] %v2074_v5 }
 0x139   :  { %v716_v49 = vadd.f32 %v715_v44, %v2046_v51  ;;  %v2077_v51 = vpop.f32.mrf.mxu1 }
 0x13a   :  { %3504 = vst [vmem:[#allocation24_spill] sm:$0xff] %v2077_v51 }
 0x13b   :  { %v717_v56 = vadd.f32 %v2042_v41, %v716_v49 }
 0x13d   :  { %v718_v59 = vadd.f32 %v717_v56, %v2054_v19  ;;  %v2080_v56 = vpop.f32.mrf.mxu1 }
 0x13f   :  { %v719_v2 = vadd.f32 %v2050_v0, %v718_v59  ;;  %v2083_v0 = vpop.f32.mrf.mxu1 }
 0x140   :  { %3505 = vst [vmem:[#allocation25_spill] sm:$0xff] %v2083_v0 }
 0x141   :  { %v720_v11 = vadd.f32 %v719_v2, %v2062_v16 }
 0x143   :  { %v721_v31 = vadd.f32 %v2058_v63, %v720_v11 }
 0x145   :  { %v722_v36 = vadd.f32 %v721_v31, %v2070_v54 }
 0x147   :  { %v723_v44 = vadd.f32 %v2066_v39, %v722_v36 }
 0x149   :  { %v724_v49 = vadd.f32 %v723_v44, %v2077_v51 }
 0x14b   :  { %v725_v59 = vadd.f32 %v2074_v5, %v724_v49 }
 0x14d   :  { %v726_v2 = vadd.f32 %v725_v59, %v2083_v0 }
 0x14f   :  { %v727_v11 = vadd.f32 %v2080_v56, %v726_v2 }
 0x151   :  { %v728_v63 = vrot.slane %v727_v11, 4 }
 0x153   :  { %v729_v31 = vadd.f32 %v728_v63, %v727_v11 }
 0x155   :  { %v730_v54 = vrot.slane %v729_v31, 2 }
 0x157   :  { %v731_v16 = vadd.f32 %v730_v54, %v729_v31 }
 0x159   :  { %v732_v19 = vrot.slane %v731_v16, 1 }
 0x15b   :  { %v733_v36 = vadd.f32 %v732_v19, %v731_v16 }
 0x15d   :  { %v2087_v39 = vmul.f32 0.001953125, %v733_v36 }
 0x15f   :  { %v735_v44 = vsub.f32 %v1897_v7, %v2087_v39  ;;  %v736_v49 = vsub.f32 %v1895_v6, %v2087_v39  ;;  %v737_v5 = vsub.f32 %v1903_v10, %v2087_v39  ;;  %v738_v63 = vsub.f32 %v1899_v8, %v2087_v39 }
 0x160   :  { %v739_v54 = vsub.f32 %v1911_v15, %v2087_v39  ;;  %v740_v2 = vsub.f32 %v1906_v12, %v2087_v39  ;;  %v741_v36 = vsub.f32 %v1919_v20, %v2087_v39  ;;  %v743_v15 = vsub.f32 %v1927_v25, %v2087_v39 }
 0x161   :  { %v799_v59 = vmul.f32 %v735_v44, %v735_v44  ;;  %v800_v0 = vmul.f32 %v736_v49, %v736_v49  ;;  %v801_v16 = vmul.f32 %v737_v5, %v737_v5  ;;  %v802_v11 = vmul.f32 %v738_v63, %v738_v63 }
 0x162   :  { %v803_v6 = vmul.f32 %v739_v54, %v739_v54  ;;  %v742_v44 = vsub.f32 %v1914_v17, %v2087_v39  ;;  %v804_v49 = vmul.f32 %v740_v2, %v740_v2  ;;  %v805_v5 = vmul.f32 %v741_v36, %v741_v36 }
 0x163   :  { %v863_v19 = vadd.f32 %v800_v0, %v799_v59  ;;  %v744_v59 = vsub.f32 %v1922_v22, %v2087_v39  ;;  %v807_v54 = vmul.f32 %v743_v15, %v743_v15 }
 0x164   :  { %v806_v63 = vmul.f32 %v742_v44, %v742_v44 }
 0x165   :  { %v864_v31 = vadd.f32 %v863_v19, %v801_v16  ;;  %v745_v19 = vsub.f32 %v1935_v30, %v2087_v39  ;;  %v808_v2 = vmul.f32 %v744_v59, %v744_v59 }
 0x167   :  { %v865_v10 = vadd.f32 %v864_v31, %v802_v11  ;;  %v746_v31 = vsub.f32 %v1930_v27, %v2087_v39  ;;  %v809_v36 = vmul.f32 %v745_v19, %v745_v19 }
 0x169   :  { %v866_v8 = vadd.f32 %v865_v10, %v803_v6  ;;  %v747_v10 = vsub.f32 %v1943_v35, %v2087_v39  ;;  %v810_v44 = vmul.f32 %v746_v31, %v746_v31 }
 0x16b   :  { %v867_v0 = vadd.f32 %v866_v8, %v804_v49  ;;  %v748_v49 = vsub.f32 %v1938_v32, %v2087_v39  ;;  %v811_v15 = vmul.f32 %v747_v10, %v747_v10 }
 0x16d   :  { %v868_v16 = vadd.f32 %v867_v0, %v805_v5  ;;  %v749_v0 = vsub.f32 %v1951_v40, %v2087_v39  ;;  %v812_v59 = vmul.f32 %v748_v49, %v748_v49 }
 0x16f   :  { %v869_v11 = vadd.f32 %v868_v16, %v806_v63  ;;  %v750_v16 = vsub.f32 %v1946_v37, %v2087_v39  ;;  %v813_v19 = vmul.f32 %v749_v0, %v749_v0 }
 0x171   :  { %v870_v6 = vadd.f32 %v869_v11, %v807_v54  ;;  %v751_v11 = vsub.f32 %v1959_v45, %v2087_v39  ;;  %v814_v31 = vmul.f32 %v750_v16, %v750_v16 }
 0x173   :  { %v871_v8 = vadd.f32 %v870_v6, %v808_v2  ;;  %v752_v6 = vsub.f32 %v1954_v42, %v2087_v39  ;;  %v815_v10 = vmul.f32 %v751_v11, %v751_v11 }
 0x175   :  { %v872_v5 = vadd.f32 %v871_v8, %v809_v36  ;;  %v753_v8 = vsub.f32 %v1967_v50, %v2087_v39  ;;  %v816_v49 = vmul.f32 %v752_v6, %v752_v6 }
 0x177   :  { %v873_v63 = vadd.f32 %v872_v5, %v810_v44  ;;  %v754_v5 = vsub.f32 %v1962_v47, %v2087_v39  ;;  %v817_v0 = vmul.f32 %v753_v8, %v753_v8 }
 0x179   :  { %v874_v54 = vadd.f32 %v873_v63, %v811_v15  ;;  %v755_v63 = vsub.f32 %v1975_v55, %v2087_v39  ;;  %v818_v16 = vmul.f32 %v754_v5, %v754_v5 }
 0x17b   :  { %v875_v2 = vadd.f32 %v874_v54, %v812_v59  ;;  %v756_v54 = vsub.f32 %v1970_v52, %v2087_v39  ;;  %v819_v11 = vmul.f32 %v755_v63, %v755_v63 }
 0x17d   :  { %v876_v36 = vadd.f32 %v875_v2, %v813_v19  ;;  %v757_v2 = vsub.f32 %v1983_v60, %v2087_v39  ;;  %v820_v6 = vmul.f32 %v756_v54, %v756_v54 }
 0x17f   :  { %v877_v44 = vadd.f32 %v876_v36, %v814_v31  ;;  %v758_v36 = vsub.f32 %v1978_v57, %v2087_v39  ;;  %v821_v8 = vmul.f32 %v757_v2, %v757_v2 }
 0x181   :  { %v878_v15 = vadd.f32 %v877_v44, %v815_v10  ;;  %v759_v44 = vsub.f32 %v1991_v1, %v2087_v39  ;;  %v822_v5 = vmul.f32 %v758_v36, %v758_v36 }
 0x183   :  { %v879_v59 = vadd.f32 %v878_v15, %v816_v49  ;;  %v760_v15 = vsub.f32 %v1986_v62, %v2087_v39  ;;  %v823_v63 = vmul.f32 %v759_v44, %v759_v44 }
 0x185   :  { %v880_v19 = vadd.f32 %v879_v59, %v817_v0  ;;  %v761_v59 = vsub.f32 %v1999_v9, %v2087_v39  ;;  %v824_v54 = vmul.f32 %v760_v15, %v760_v15 }
 0x187   :  { %v881_v31 = vadd.f32 %v880_v19, %v818_v16  ;;  %v762_v19 = vsub.f32 %v1994_v3, %v2087_v39  ;;  %v825_v2 = vmul.f32 %v761_v59, %v761_v59 }
 0x189   :  { %v882_v10 = vadd.f32 %v881_v31, %v819_v11  ;;  %v763_v31 = vsub.f32 %v2007_v21, %v2087_v39  ;;  %v826_v36 = vmul.f32 %v762_v19, %v762_v19 }
 0x18b   :  { %v883_v49 = vadd.f32 %v882_v10, %v820_v6  ;;  %v764_v10 = vsub.f32 %v2002_v14, %v2087_v39  ;;  %v827_v44 = vmul.f32 %v763_v31, %v763_v31 }
 0x18d   :  { %v884_v0 = vadd.f32 %v883_v49, %v821_v8  ;;  %v765_v49 = vsub.f32 %v2015_v34, %v2087_v39  ;;  %v828_v15 = vmul.f32 %v764_v10, %v764_v10 }
 0x18f   :  { %v885_v16 = vadd.f32 %v884_v0, %v822_v5  ;;  %v766_v0 = vsub.f32 %v2010_v26, %v2087_v39  ;;  %v829_v59 = vmul.f32 %v765_v49, %v765_v49 }
 0x191   :  { %v886_v11 = vadd.f32 %v885_v16, %v823_v63  ;;  %v767_v16 = vsub.f32 %v1916_v18, %v2087_v39  ;;  %v830_v19 = vmul.f32 %v766_v0, %v766_v0 }
 0x193   :  { %v887_v6 = vadd.f32 %v886_v11, %v824_v54  ;;  %v768_v11 = vsub.f32 %v1908_v13, %v2087_v39  ;;  %v831_v31 = vmul.f32 %v767_v16, %v767_v16 }
 0x195   :  { %v888_v8 = vadd.f32 %v887_v6, %v825_v2  ;;  %v769_v6 = vsub.f32 %v1932_v28, %v2087_v39  ;;  %v832_v10 = vmul.f32 %v768_v11, %v768_v11 }
 0x197   :  { %v889_v5 = vadd.f32 %v888_v8, %v826_v36  ;;  %v770_v8 = vsub.f32 %v1924_v23, %v2087_v39  ;;  %v833_v49 = vmul.f32 %v769_v6, %v769_v6 }
 0x199   :  { %v890_v63 = vadd.f32 %v889_v5, %v827_v44  ;;  %v771_v5 = vsub.f32 %v1948_v38, %v2087_v39  ;;  %v834_v0 = vmul.f32 %v770_v8, %v770_v8 }
 0x19b   :  { %v891_v54 = vadd.f32 %v890_v63, %v828_v15  ;;  %v772_v63 = vsub.f32 %v1940_v33, %v2087_v39  ;;  %v835_v16 = vmul.f32 %v771_v5, %v771_v5 }
 0x19d   :  { %v892_v2 = vadd.f32 %v891_v54, %v829_v59  ;;  %v773_v54 = vsub.f32 %v1964_v48, %v2087_v39  ;;  %v836_v11 = vmul.f32 %v772_v63, %v772_v63 }
 0x19f   :  { %v893_v36 = vadd.f32 %v892_v2, %v830_v19  ;;  %v774_v2 = vsub.f32 %v1956_v43, %v2087_v39  ;;  %v837_v6 = vmul.f32 %v773_v54, %v773_v54 }
 0x1a1   :  { %v894_v44 = vadd.f32 %v893_v36, %v831_v31  ;;  %v775_v36 = vsub.f32 %v1980_v58, %v2087_v39  ;;  %v838_v8 = vmul.f32 %v774_v2, %v774_v2 }
 0x1a3   :  { %v895_v15 = vadd.f32 %v894_v44, %v832_v10  ;;  %v776_v44 = vsub.f32 %v1972_v53, %v2087_v39  ;;  %v839_v5 = vmul.f32 %v775_v36, %v775_v36 }
 0x1a5   :  { %v896_v59 = vadd.f32 %v895_v15, %v833_v49  ;;  %v777_v15 = vsub.f32 %v1996_v4, %v2087_v39  ;;  %v840_v63 = vmul.f32 %v776_v44, %v776_v44 }
 0x1a7   :  { %v897_v19 = vadd.f32 %v896_v59, %v834_v0  ;;  %v3506_v59 = vld [vmem:[#allocation8_spill] sm:$0xff]  ;;  %v841_v54 = vmul.f32 %v777_v15, %v777_v15 }
 0x1a8   :  { %v778_v43 = vsub.f32 %v3506_v59, %v2087_v39 }
 0x1a9   :  { %v898_v31 = vadd.f32 %v897_v19, %v835_v16  ;;  %v779_v19 = vsub.f32 %v2012_v29, %v2087_v39 }
 0x1aa   :  { %v842_v2 = vmul.f32 %v778_v43, %v778_v43 }
 0x1ab   :  { %v899_v10 = vadd.f32 %v898_v31, %v836_v11  ;;  %v3507_v31 = vld [vmem:[#allocation9_spill] sm:$0xff]  ;;  %v843_v36 = vmul.f32 %v779_v19, %v779_v19 }
 0x1ac   :  { %v780_v53 = vsub.f32 %v3507_v31, %v2087_v39 }
 0x1ad   :  { %v900_v49 = vadd.f32 %v899_v10, %v837_v6  ;;  %v781_v10 = vsub.f32 %v2022_v46, %v2087_v39 }
 0x1ae   :  { %v844_v44 = vmul.f32 %v780_v53, %v780_v53 }
 0x1af   :  { %v901_v0 = vadd.f32 %v900_v49, %v838_v8  ;;  %v3508_v49 = vld [vmem:[#allocation10_spill] sm:$0xff]  ;;  %v845_v15 = vmul.f32 %v781_v10, %v781_v10 }
 0x1b0   :  { %v782_v59 = vsub.f32 %v3508_v49, %v2087_v39 }
 0x1b1   :  { %v902_v16 = vadd.f32 %v901_v0, %v839_v5  ;;  %v783_v0 = vsub.f32 %v2030_v61, %v2087_v39 }
 0x1b2   :  { %v846_v43 = vmul.f32 %v782_v59, %v782_v59 }
 0x1b3   :  { %v903_v11 = vadd.f32 %v902_v16, %v840_v63  ;;  %v3509_v16 = vld [vmem:[#allocation11_spill] sm:$0xff]  ;;  %v847_v19 = vmul.f32 %v783_v0, %v783_v0 }
 0x1b4   :  { %v784_v31 = vsub.f32 %v3509_v16, %v2087_v39 }
 0x1b5   :  { %v904_v6 = vadd.f32 %v903_v11, %v841_v54  ;;  %v785_v11 = vsub.f32 %v2038_v24, %v2087_v39 }
 0x1b6   :  { %v848_v53 = vmul.f32 %v784_v31, %v784_v31 }
 0x1b7   :  { %v905_v8 = vadd.f32 %v904_v6, %v842_v2  ;;  %v3510_v6 = vld [vmem:[#allocation13_spill] sm:$0xff]  ;;  %v849_v10 = vmul.f32 %v785_v11, %v785_v11 }
 0x1b8   :  { %v786_v49 = vsub.f32 %v3510_v6, %v2087_v39 }
 0x1b9   :  { %v906_v5 = vadd.f32 %v905_v8, %v843_v36  ;;  %v3511_v8 = vld [vmem:[#allocation16_spill] sm:$0xff] }
 0x1ba   :  { %v787_v61 = vsub.f32 %v3511_v8, %v2087_v39  ;;  %v850_v59 = vmul.f32 %v786_v49, %v786_v49 }
 0x1bb   :  { %v907_v63 = vadd.f32 %v906_v5, %v844_v44  ;;  %v788_v5 = vsub.f32 %v2042_v41, %v2087_v39 }
 0x1bc   :  { %v851_v0 = vmul.f32 %v787_v61, %v787_v61 }
 0x1bd   :  { %v908_v54 = vadd.f32 %v907_v63, %v845_v15  ;;  %v3512_v63 = vld [vmem:[#allocation18_spill] sm:$0xff]  ;;  %v852_v31 = vmul.f32 %v788_v5, %v788_v5 }
 0x1be   :  { %v789_v24 = vsub.f32 %v3512_v63, %v2087_v39 }
 0x1bf   :  { %v909_v2 = vadd.f32 %v908_v54, %v846_v43  ;;  %v3513_v54 = vld [vmem:[#allocation17_spill] sm:$0xff] }
 0x1c0   :  { %v790_v6 = vsub.f32 %v3513_v54, %v2087_v39  ;;  %v853_v11 = vmul.f32 %v789_v24, %v789_v24 }
 0x1c1   :  { %v910_v36 = vadd.f32 %v909_v2, %v847_v19  ;;  %v3514_v2 = vld [vmem:[#allocation20_spill] sm:$0xff] }
 0x1c2   :  { %v791_v8 = vsub.f32 %v3514_v2, %v2087_v39  ;;  %v854_v49 = vmul.f32 %v790_v6, %v790_v6 }
 0x1c3   :  { %v911_v44 = vadd.f32 %v910_v36, %v848_v53  ;;  %v3515_v36 = vld [vmem:[#allocation19_spill] sm:$0xff] }
 0x1c4   :  { %v792_v41 = vsub.f32 %v3515_v36, %v2087_v39  ;;  %v855_v61 = vmul.f32 %v791_v8, %v791_v8 }
 0x1c5   :  { %v912_v15 = vadd.f32 %v911_v44, %v849_v10  ;;  %v3516_v44 = vld [vmem:[#allocation22_spill] sm:$0xff] }
 0x1c6   :  { %v793_v63 = vsub.f32 %v3516_v44, %v2087_v39  ;;  %v856_v5 = vmul.f32 %v792_v41, %v792_v41 }
 0x1c7   :  { %v913_v43 = vadd.f32 %v912_v15, %v850_v59  ;;  %v3517_v15 = vld [vmem:[#allocation21_spill] sm:$0xff] }
 0x1c8   :  { %v794_v54 = vsub.f32 %v3517_v15, %v2087_v39  ;;  %v857_v24 = vmul.f32 %v793_v63, %v793_v63 }
 0x1c9   :  { %v914_v19 = vadd.f32 %v913_v43, %v851_v0  ;;  %v795_v43 = vsub.f32 %v2077_v51, %v2087_v39 }
 0x1ca   :  { %v858_v6 = vmul.f32 %v794_v54, %v794_v54 }
 0x1cb   :  { %v915_v53 = vadd.f32 %v914_v19, %v852_v31  ;;  %v3518_v19 = vld [vmem:[#allocation23_spill] sm:$0xff]  ;;  %v859_v8 = vmul.f32 %v795_v43, %v795_v43  ;;  %v941_v43 = vlaneseq }
 0x1cc   :  { %v796_v36 = vsub.f32 %v3518_v19, %v2087_v39 }
 0x1cd   :  { %v916_v10 = vadd.f32 %v915_v53, %v853_v11  ;;  %v3519_v53 = vld [vmem:[#allocation25_spill] sm:$0xff] }
 0x1ce   :  { %v797_v44 = vsub.f32 %v3519_v53, %v2087_v39  ;;  %v860_v41 = vmul.f32 %v796_v36, %v796_v36  ;;  %v933_v36 = vld [vmem:[%s3416_s2] sm:$0x1] }
 0x1cf   :  { %v917_v59 = vadd.f32 %v916_v10, %v854_v49  ;;  %v798_v10 = vsub.f32 %v2080_v56, %v2087_v39 }
 0x1d1   :  { %v918_v0 = vadd.f32 %v917_v59, %v855_v61  ;;  %v861_v59 = vmul.f32 %v797_v44, %v797_v44  ;;  %v862_v51 = vmul.f32 %v798_v10, %v798_v10  ;;  %v942_v44 = vshrl.u32 %v941_v43, 7  ;;  %v3521_v10 = vld [vmem:[#allocation4_spill] sm:$0xff]  ;;  %v3525_v43 = vld [vmem:[#allocation7_spill] sm:$0xff] }
 0x1d3   :  { %v919_v31 = vadd.f32 %v918_v0, %v856_v5 }
 0x1d5   :  { %v920_v11 = vadd.f32 %v919_v31, %v857_v24 }
 0x1d7   :  { %v921_v49 = vadd.f32 %v920_v11, %v858_v6 }
 0x1d9   :  { %v922_v61 = vadd.f32 %v921_v49, %v859_v8  ;;  %v943_v8 = vsub.s32 0, %v942_v44  ;;  %v3527_v44 = vld [vmem:[#allocation9_spill] sm:$0xff] }
 0x1db   :  { %v923_v15 = vadd.f32 %v922_v61, %v860_v41 }
 0x1dd   :  { %v924_v63 = vadd.f32 %v923_v15, %v861_v59  ;;  %v3523_v59 = vld [vmem:[#allocation5_spill] sm:$0xff] }
 0x1df   :  { %v925_v5 = vadd.f32 %v924_v63, %v862_v51 }
 0x1e1   :  { %v926_v0 = vrot.slane %v925_v5, 4 }
 0x1e3   :  { %v927_v2 = vadd.f32 %v926_v0, %v925_v5 }
 0x1e5   :  { %v928_v19 = vrot.slane %v927_v2, 2 }
 0x1e7   :  { %v929_v54 = vadd.f32 %v928_v19, %v927_v2  ;;  %v937_v2 = vld [vmem:[%s3417_s3] sm:$0x1] }
 0x1e9   :  { %v930_v24 = vrot.slane %v929_v54, 1 }
 0x1eb   :  { %v931_v31 = vadd.f32 %v930_v24, %v929_v54 }
 0x1ed   :  { %v932_v16 = vmul.f32 0.001953125, %v931_v31  ;;  %v3524_v31 = vld [vmem:[#allocation6_spill] sm:$0xff] }
 0x1ef   :  { %v934_v53 = vadd.f32 1e-05, %v932_v16 }
 0x1f1   :  { %1594 = vrsqrt.f32 %v934_v53  ;;  %v3520_v53 = vld [vmem:[#allocation2_spill] sm:$0xff] }
 0x1fe   :  { %v1595_v6 = vpop.eup %1594 }
 0x1ff   :  { %v936_v11 = vmul.f32 %v1595_v6, %v933_v36  ;;  %v3526_v6 = vld [vmem:[#allocation8_spill] sm:$0xff] }
 0x201   :  { %v938_v51 = vmul.f32 %v936_v11, %v2087_v39  ;;  %v2224_v15 = vrot.slane %v936_v11, %v943_v8  ;;  %v3522_v39 = vld [vmem:[#allocation3_spill] sm:$0xff] }
 0x203   :  { %v939_v19 = vsub.f32 %v937_v2, %v938_v51  ;;  %v2228_v16 = vmul.f32 %v2224_v15, %v1897_v7  ;;  %v2232_v49 = vmul.f32 %v3520_v53, %v2224_v15  ;;  %v2236_v41 = vmul.f32 %v2224_v15, %v3521_v10  ;;  %v3528_v51 = vld [vmem:[#allocation10_spill] sm:$0xff]  ;;  %v3529_v2 = vld [vmem:[#allocation12_spill] sm:$0xff]  ;;  %v3530_v10 = vld [vmem:[#allocation11_spill] sm:$0xff] }
 0x204   :  { %v2240_v61 = vmul.f32 %v3522_v39, %v2224_v15  ;;  %v2244_v63 = vmul.f32 %v2224_v15, %v3523_v59  ;;  %v2248_v7 = vmul.f32 %v1906_v12, %v2224_v15  ;;  %v2252_v5 = vmul.f32 %v2224_v15, %v1919_v20  ;;  %v3532_v39 = vld [vmem:[#allocation14_spill] sm:$0xff] }
 0x205   :  { %v2256_v0 = vmul.f32 %v1914_v17, %v2224_v15  ;;  %v2260_v54 = vmul.f32 %v2224_v15, %v1927_v25  ;;  %v2264_v24 = vmul.f32 %v1922_v22, %v2224_v15  ;;  %v2268_v12 = vmul.f32 %v2224_v15, %v1935_v30 }
 0x206   :  { %v2272_v20 = vmul.f32 %v1930_v27, %v2224_v15  ;;  %v2276_v17 = vmul.f32 %v2224_v15, %v1943_v35  ;;  %v2280_v25 = vmul.f32 %v1938_v32, %v2224_v15  ;;  %v2284_v22 = vmul.f32 %v2224_v15, %v1951_v40 }
 0x207   :  { %v2288_v30 = vmul.f32 %v1946_v37, %v2224_v15  ;;  %v2292_v27 = vmul.f32 %v2224_v15, %v1959_v45  ;;  %v2296_v35 = vmul.f32 %v1954_v42, %v2224_v15  ;;  %v2300_v32 = vmul.f32 %v2224_v15, %v1967_v50 }
 0x208   :  { %v2304_v40 = vmul.f32 %v1962_v47, %v2224_v15  ;;  %v2308_v37 = vmul.f32 %v2224_v15, %v1975_v55  ;;  %v2312_v45 = vmul.f32 %v1970_v52, %v2224_v15  ;;  %v2316_v42 = vmul.f32 %v2224_v15, %v1983_v60 }
 0x209   :  { %v2320_v50 = vmul.f32 %v1978_v57, %v2224_v15  ;;  %v2324_v47 = vmul.f32 %v2224_v15, %v1991_v1  ;;  %v2328_v55 = vmul.f32 %v1986_v62, %v2224_v15  ;;  %v2332_v52 = vmul.f32 %v2224_v15, %v1999_v9 }
 0x20a   :  { %v2336_v60 = vmul.f32 %v1994_v3, %v2224_v15  ;;  %v2340_v57 = vmul.f32 %v2224_v15, %v2007_v21  ;;  %v2344_v1 = vmul.f32 %v2002_v14, %v2224_v15  ;;  %v2348_v62 = vmul.f32 %v2224_v15, %v2015_v34 }
 0x20b   :  { %v2352_v9 = vmul.f32 %v2010_v26, %v2224_v15  ;;  %v2356_v3 = vmul.f32 %v2224_v15, %v1916_v18  ;;  %v2360_v21 = vmul.f32 %v1908_v13, %v2224_v15  ;;  %v2364_v14 = vmul.f32 %v2224_v15, %v1932_v28 }
 0x20c   :  { %v2368_v34 = vmul.f32 %v1924_v23, %v2224_v15  ;;  %v2372_v26 = vmul.f32 %v2224_v15, %v1948_v38  ;;  %v2376_v18 = vmul.f32 %v1940_v33, %v2224_v15  ;;  %v2380_v13 = vmul.f32 %v2224_v15, %v1964_v48 }
 0x20d   :  { %v2384_v28 = vmul.f32 %v3524_v31, %v2224_v15  ;;  %v2388_v23 = vmul.f32 %v2224_v15, %v1980_v58  ;;  %v2392_v38 = vmul.f32 %v3525_v43, %v2224_v15  ;;  %v2396_v33 = vmul.f32 %v2224_v15, %v1996_v4 }
 0x20e   :  { %v2400_v48 = vmul.f32 %v3526_v6, %v2224_v15  ;;  %v2404_v36 = vmul.f32 %v2224_v15, %v2012_v29  ;;  %v2408_v58 = vmul.f32 %v3527_v44, %v2224_v15  ;;  %v2412_v11 = vmul.f32 %v2224_v15, %v2022_v46  ;;  %v3533_v46 = vld [vmem:[#allocation13_spill] sm:$0xff]  ;;  %v3535_v6 = vld [vmem:[#allocation16_spill] sm:$0xff] }
 0x20f   :  { %v2416_v4 = vmul.f32 %v3528_v51, %v2224_v15  ;;  %v2420_v53 = vmul.f32 %v2224_v15, %v3529_v2  ;;  %v2424_v29 = vmul.f32 %v3530_v10, %v2224_v15  ;;  %v2428_v59 = vmul.f32 %v2224_v15, %v3532_v39  ;;  %v3537_v51 = vld [vmem:[#allocation15_spill] sm:$0xff]  ;;  %v3539_v10 = vld [vmem:[#allocation18_spill] sm:$0xff]  ;;  %v3541_v39 = vld [vmem:[#allocation17_spill] sm:$0xff] }
 0x210   :  { %v2430_v31 = vrot.slane %v939_v19, %v943_v8  ;;  %v2434_v43 = vmul.f32 %v3533_v46, %v2224_v15  ;;  %v2438_v44 = vmul.f32 %v2224_v15, %v3535_v6  ;;  %v2442_v2 = vmul.f32 %v3537_v51, %v2224_v15  ;;  %v3543_v19 = vld [vmem:[#allocation20_spill] sm:$0xff] }
 0x211   :  { %3531 = vst [vmem:[#allocation2_spill] sm:$0xff] %v2424_v29  ;;  %v2446_v29 = vmul.f32 %v2224_v15, %v3539_v10  ;;  %v2450_v8 = vmul.f32 %v3541_v39, %v2224_v15  ;;  %v2454_v46 = vmul.f32 %v2224_v15, %v3543_v19 }
 0x212   :  { %3534 = vst [vmem:[#allocation4_spill] sm:$0xff] %v2434_v43  ;;  %3536 = vst [vmem:[#allocation3_spill] sm:$0xff] %v2438_v44  ;;  %v3545_v43 = vld [vmem:[#allocation19_spill] sm:$0xff]  ;;  %v3546_v44 = vld [vmem:[#allocation22_spill] sm:$0xff] }
 0x213   :  { %3538 = vst [vmem:[#allocation5_spill] sm:$0xff] %v2442_v2  ;;  %3540 = vst [vmem:[#allocation6_spill] sm:$0xff] %v2446_v29  ;;  %v2458_v6 = vmul.f32 %v3545_v43, %v2224_v15  ;;  %v2462_v51 = vmul.f32 %v2224_v15, %v3546_v44  ;;  %v3547_v2 = vld [vmem:[#allocation21_spill] sm:$0xff]  ;;  %v3548_v29 = vld [vmem:[#allocation24_spill] sm:$0xff]  ;;  %v2482_v44 = vmul.f32 %v2080_v56, %v2224_v15 }
 0x214   :  { %3542 = vst [vmem:[#allocation7_spill] sm:$0xff] %v2450_v8  ;;  %3544 = vst [vmem:[#allocation8_spill] sm:$0xff] %v2454_v46  ;;  %v2466_v10 = vmul.f32 %v3547_v2, %v2224_v15  ;;  %v2470_v39 = vmul.f32 %v2224_v15, %v3548_v29  ;;  %v3549_v8 = vld [vmem:[#allocation23_spill] sm:$0xff]  ;;  %v3550_v46 = vld [vmem:[#allocation25_spill] sm:$0xff]  ;;  %v2486_v2 = vadd.f32 %v2430_v31, %v2228_v16 }
 0x215   :  { %v2474_v19 = vmul.f32 %v3549_v8, %v2224_v15  ;;  %v2478_v43 = vmul.f32 %v2224_v15, %v3550_v46  ;;  %v2490_v29 = vadd.f32 %v2430_v31, %v2232_v49  ;;  %v2494_v8 = vadd.f32 %v2430_v31, %v2236_v41 }
 0x216   :  { %v2498_v46 = vadd.f32 %v2430_v31, %v2240_v61  ;;  %v2502_v56 = vadd.f32 %v2430_v31, %v2244_v63  ;;  %v2506_v15 = vadd.f32 %v2430_v31, %v2248_v7  ;;  %v2510_v16 = vadd.f32 %v2430_v31, %v2252_v5 }
 0x217   :  { %v2514_v49 = vadd.f32 %v2430_v31, %v2256_v0  ;;  %v2518_v41 = vadd.f32 %v2430_v31, %v2260_v54  ;;  %v2522_v61 = vadd.f32 %v2430_v31, %v2264_v24  ;;  %v2526_v63 = vadd.f32 %v2430_v31, %v2268_v12 }
 0x218   :  { %v2530_v7 = vadd.f32 %v2430_v31, %v2272_v20  ;;  %v2534_v5 = vadd.f32 %v2430_v31, %v2276_v17  ;;  %v2538_v0 = vadd.f32 %v2430_v31, %v2280_v25  ;;  %v2542_v54 = vadd.f32 %v2430_v31, %v2284_v22 }
 0x219   :  { %v2546_v24 = vadd.f32 %v2430_v31, %v2288_v30  ;;  %v2550_v12 = vadd.f32 %v2430_v31, %v2292_v27  ;;  %v2554_v20 = vadd.f32 %v2430_v31, %v2296_v35  ;;  %v2558_v17 = vadd.f32 %v2430_v31, %v2300_v32 }
 0x21a   :  { %v2562_v25 = vadd.f32 %v2430_v31, %v2304_v40  ;;  %v2566_v22 = vadd.f32 %v2430_v31, %v2308_v37  ;;  %v2570_v30 = vadd.f32 %v2430_v31, %v2312_v45  ;;  %v2574_v27 = vadd.f32 %v2430_v31, %v2316_v42 }
 0x21b   :  { %v2578_v35 = vadd.f32 %v2430_v31, %v2320_v50  ;;  %v2582_v32 = vadd.f32 %v2430_v31, %v2324_v47  ;;  %v2586_v40 = vadd.f32 %v2430_v31, %v2328_v55  ;;  %v2590_v37 = vadd.f32 %v2430_v31, %v2332_v52 }
 0x21c   :  { %v2594_v45 = vadd.f32 %v2430_v31, %v2336_v60  ;;  %v2598_v42 = vadd.f32 %v2430_v31, %v2340_v57  ;;  %v2602_v50 = vadd.f32 %v2430_v31, %v2344_v1  ;;  %v2606_v47 = vadd.f32 %v2430_v31, %v2348_v62 }
 0x21d   :  { %v2610_v55 = vadd.f32 %v2430_v31, %v2352_v9  ;;  %v2614_v52 = vadd.f32 %v2430_v31, %v2356_v3  ;;  %v2618_v60 = vadd.f32 %v2430_v31, %v2360_v21  ;;  %v2622_v57 = vadd.f32 %v2430_v31, %v2364_v14 }
 0x21e   :  { %v2626_v1 = vadd.f32 %v2430_v31, %v2368_v34  ;;  %v2630_v62 = vadd.f32 %v2430_v31, %v2372_v26  ;;  %v2634_v9 = vadd.f32 %v2430_v31, %v2376_v18  ;;  %v2638_v3 = vadd.f32 %v2430_v31, %v2380_v13 }
 0x21f   :  { %v2642_v21 = vadd.f32 %v2430_v31, %v2384_v28  ;;  %v2646_v14 = vadd.f32 %v2430_v31, %v2388_v23  ;;  %v2650_v34 = vadd.f32 %v2430_v31, %v2392_v38  ;;  %v2654_v26 = vadd.f32 %v2430_v31, %v2396_v33 }
 0x220   :  { %v2658_v18 = vadd.f32 %v2430_v31, %v2400_v48  ;;  %v2662_v13 = vadd.f32 %v2430_v31, %v2404_v36  ;;  %v2666_v28 = vadd.f32 %v2430_v31, %v2408_v58  ;;  %v2670_v23 = vadd.f32 %v2430_v31, %v2412_v11  ;;  %v3556_v48 = vld [vmem:[#allocation2_spill] sm:$0xff] }
 0x221   :  { %3551 = vst [vmem:[#allocation9_spill] sm:$0xff] %v2650_v34  ;;  %v2674_v38 = vadd.f32 %v2430_v31, %v2416_v4  ;;  %v2678_v33 = vadd.f32 %v2430_v31, %v2420_v53  ;;  %v2682_v36 = vadd.f32 %v2430_v31, %v3556_v48  ;;  %v2686_v58 = vadd.f32 %v2430_v31, %v2428_v59 }
 0x222   :  { %3552 = vst [vmem:[#allocation10_spill] sm:$0xff] %v2666_v28  ;;  %3553 = vst [vmem:[#allocation12_spill] sm:$0xff] %v2670_v23  ;;  %v3559_v28 = vld [vmem:[#allocation4_spill] sm:$0xff]  ;;  %v3560_v23 = vld [vmem:[#allocation3_spill] sm:$0xff]  ;;  %vm1080_vm1 = vcmp.ge.f32.partialorder %v2486_v2, 0.0  ;;  %vm1081_vm2 = vcmp.ge.f32.partialorder %v2490_v29, 0.0 }
 0x223   :  { %3554 = vst [vmem:[#allocation11_spill] sm:$0xff] %v2674_v38  ;;  %3555 = vst [vmem:[#allocation14_spill] sm:$0xff] %v2678_v33  ;;  %v2690_v11 = vadd.f32 %v2430_v31, %v3559_v28  ;;  %v2694_v4 = vadd.f32 %v2430_v31, %v3560_v23  ;;  %v3561_v38 = vld [vmem:[#allocation5_spill] sm:$0xff]  ;;  %v3563_v33 = vld [vmem:[#allocation6_spill] sm:$0xff]  ;;  %v2714_v23 = vadd.f32 %v2430_v31, %v2458_v6  ;;  %vm1082_vm3 = vcmp.ge.f32.partialorder %v2494_v8, 0.0 }
 0x224   :  { %3557 = vst [vmem:[#allocation13_spill] sm:$0xff] %v2682_v36  ;;  %3558 = vst [vmem:[#allocation16_spill] sm:$0xff] %v2686_v58  ;;  %v2698_v53 = vadd.f32 %v2430_v31, %v3561_v38  ;;  %v2702_v48 = vadd.f32 %v2430_v31, %v3563_v33  ;;  %v3565_v36 = vld [vmem:[#allocation7_spill] sm:$0xff]  ;;  %v3567_v58 = vld [vmem:[#allocation8_spill] sm:$0xff]  ;;  %v2718_v38 = vadd.f32 %v2430_v31, %v2462_v51  ;;  %vm1083_vm4 = vcmp.ge.f32.partialorder %v2498_v46, 0.0 }
 0x225   :  { %v2706_v59 = vadd.f32 %v2430_v31, %v3565_v36  ;;  %v2710_v28 = vadd.f32 %v2430_v31, %v3567_v58  ;;  %3569 = vst [vmem:[#allocation19_spill] sm:$0xff] %v2714_v23  ;;  %v2722_v33 = vadd.f32 %v2430_v31, %v2466_v10  ;;  %v2726_v36 = vadd.f32 %v2430_v31, %v2470_v39 }
 0x226   :  { %3562 = vst [vmem:[#allocation15_spill] sm:$0xff] %v2698_v53  ;;  %3564 = vst [vmem:[#allocation18_spill] sm:$0xff] %v2702_v48  ;;  %v2730_v58 = vadd.f32 %v2430_v31, %v2474_v19  ;;  %vm1084_vm5 = vcmp.ge.f32.partialorder %v2502_v56, 0.0  ;;  %vm1085_vm6 = vcmp.ge.f32.partialorder %v2506_v15, 0.0  ;;  %vm1086_vm7 = vcmp.ge.f32.partialorder %v2510_v16, 0.0 }
 0x227   :  { %3566 = vst [vmem:[#allocation17_spill] sm:$0xff] %v2706_v59  ;;  %3568 = vst [vmem:[#allocation20_spill] sm:$0xff] %v2710_v28  ;;  %vm1087_vm8 = vcmp.ge.f32.partialorder %v2514_v49, 0.0  ;;  %vm1088_vm9 = vcmp.ge.f32.partialorder %v2518_v41, 0.0  ;;  %v2743_v6 = vadd.f32 %v2430_v31, %v2478_v43  ;;  %vm1089_vm10 = vcmp.ge.f32.partialorder %v2522_v61, 0.0 }
 0x228   :  { %3570 = vst [vmem:[#allocation22_spill] sm:$0xff] %v2718_v38  ;;  %3571 = vst [vmem:[#allocation21_spill] sm:$0xff] %v2722_v33  ;;  %v1144_v51 = vmul.f32 0.01, %v2486_v2  ;;  %v1145_v10 = vmul.f32 0.01, %v2490_v29  ;;  %v2751_v19 = vadd.f32 %v2430_v31, %v2482_v44 }
 0x229   :  { %3572 = vst [vmem:[#allocation24_spill] sm:$0xff] %v2726_v36  ;;  %3573 = vst [vmem:[#allocation23_spill] sm:$0xff] %v2730_v58  ;;  %v1146_v39 = vmul.f32 0.01, %v2494_v8  ;;  %vm1090_vm11 = vcmp.ge.f32.partialorder %v2526_v63, 0.0  ;;  %vm1091_vm12 = vcmp.ge.f32.partialorder %v2530_v7, 0.0 }
 0x22a   :  { %3574 = vst [vmem:[#allocation25_spill] sm:$0xff] %v2743_v6  ;;  %3575 = vst [vmem:[#allocation2_spill] sm:$0xff] %v2751_v19  ;;  %v1147_v58 = vmul.f32 0.01, %v2498_v46  ;;  %v1148_v36 = vmul.f32 0.01, %v2502_v56  ;;  %v1208_v31 = vsel %vm1080_vm1, %v2486_v2, %v1144_v51  ;;  %v1209_v28 = vsel %vm1081_vm2, %v2490_v29, %v1145_v10 }
 0x22b   :  { %v1149_v43 = vmul.f32 0.01, %v2506_v15  ;;  %v1150_v6 = vmul.f32 0.01, %v2510_v16  ;;  %v1151_v33 = vmul.f32 0.01, %v2514_v49  ;;  %1272 = vst [vmem:[%s3418_s4] sm:$0xff] %v1208_v31  ;;  %v1210_v48 = vsel %vm1082_vm3, %v2494_v8, %v1146_v39 }
 0x22c   :  { %v1152_v38 = vmul.f32 0.01, %v2518_v41  ;;  %vm1092_vm13 = vcmp.ge.f32.partialorder %v2534_v5, 0.0  ;;  %v1153_v44 = vmul.f32 0.01, %v2522_v61  ;;  %vm1093_vm14 = vcmp.ge.f32.partialorder %v2538_v0, 0.0 }
 0x22d   :  { %v2767_v19 = vmul.f32 0.01, %v2526_v63  ;;  %v2770_v23 = vmul.f32 0.01, %v2530_v7  ;;  %v2780_v2 = vmul.f32 0.01, %v2534_v5  ;;  %v1211_v53 = vsel %vm1083_vm4, %v2498_v46, %v1147_v58 }
 0x22e   :  { %v2783_v51 = vmul.f32 0.01, %v2538_v0  ;;  %v2786_v59 = vmul.f32 0.01, %v2542_v54  ;;  %1273 = vst [vmem:[%s3418_s4 + $0x8] sm:$0xff] %v1209_v28  ;;  %vm1094_vm15 = vcmp.ge.f32.partialorder %v2542_v54, 0.0 }
 0x22f   :  { %v2796_v29 = vmul.f32 0.01, %v2546_v24  ;;  %v2799_v10 = vmul.f32 0.01, %v2550_v12  ;;  %v2802_v31 = vmul.f32 0.01, %v2554_v20 }
 0x230   :  { %1274 = vst [vmem:[%s3418_s4 + $0x10] sm:$0xff] %v1210_v48  ;;  %vm1095_vm0 = vcmp.ge.f32.partialorder %v2546_v24, 0.0  ;;  %v2812_v8 = vmul.f32 0.01, %v2558_v17  ;;  %v2815_v28 = vmul.f32 0.01, %v2562_v25 }
 0x231   :  { %3576 = vst [vmem:[#allocation4_spill] sm:$0xff] %v2802_v31  ;;  %v2818_v39 = vmul.f32 0.01, %v2566_v22  ;;  %v1212_v31 = vsel %vm1084_vm5, %v2502_v56, %v1148_v36  ;;  %1275 = vst [vmem:[%s3418_s4 + $0x18] sm:$0xff] %v1211_v53  ;;  %vm1096_vm1 = vcmp.ge.f32.partialorder %v2550_v12, 0.0  ;;  %vm1097_vm2 = vcmp.ge.f32.partialorder %v2554_v20, 0.0 }
 0x232   :  { %v2828_v46 = vmul.f32 0.01, %v2570_v30  ;;  %v2831_v48 = vmul.f32 0.01, %v2574_v27  ;;  %v2834_v58 = vmul.f32 0.01, %v2578_v35 }
 0x233   :  { %3577 = vst [vmem:[#allocation3_spill] sm:$0xff] %v2818_v39  ;;  %v1213_v39 = vsel %vm1085_vm6, %v2506_v15, %v1149_v43  ;;  %1276 = vst [vmem:[%s3418_s4 + $0x20] sm:$0xff] %v1212_v31  ;;  %v2844_v56 = vmul.f32 0.01, %v2582_v32  ;;  %v2847_v53 = vmul.f32 0.01, %v2586_v40 }
 0x234   :  { %3578 = vst [vmem:[#allocation5_spill] sm:$0xff] %v2834_v58  ;;  %v2850_v36 = vmul.f32 0.01, %v2590_v37  ;;  %v1214_v58 = vsel %vm1086_vm7, %v2510_v16, %v1150_v6  ;;  %1277 = vst [vmem:[%s3418_s4 + $0x28] sm:$0xff] %v1213_v39  ;;  %vm1098_vm3 = vcmp.ge.f32.partialorder %v2558_v17, 0.0  ;;  %vm1099_vm4 = vcmp.ge.f32.partialorder %v2562_v25, 0.0 }
 0x235   :  { %v2860_v15 = vmul.f32 0.01, %v2594_v45  ;;  %v2863_v43 = vmul.f32 0.01, %v2598_v42  ;;  %v2866_v31 = vmul.f32 0.01, %v2602_v50 }
 0x236   :  { %3579 = vst [vmem:[#allocation6_spill] sm:$0xff] %v2850_v36  ;;  %v1215_v36 = vsel %vm1087_vm8, %v2514_v49, %v1151_v33  ;;  %1278 = vst [vmem:[%s3418_s4 + $0x30] sm:$0xff] %v1214_v58  ;;  %v2878_v16 = vmul.f32 0.01, %v2606_v47  ;;  %v2881_v6 = vmul.f32 0.01, %v2610_v55  ;;  %v1216_v49 = vsel %vm1088_vm9, %v2518_v41, %v1152_v38 }
 0x237   :  { %v2884_v39 = vmul.f32 0.01, %v2614_v52  ;;  %1279 = vst [vmem:[%s3418_s4 + $0x38] sm:$0xff] %v1215_v36  ;;  %vm1102_vm7 = vcmp.ge.f32.partialorder %v2574_v27, 0.0  ;;  %v2897_v33 = vmul.f32 0.01, %v2618_v60  ;;  %v1217_v38 = vsel %vm1089_vm10, %v2522_v61, %v1153_v44 }
 0x238   :  { %v2900_v58 = vmul.f32 0.01, %v2622_v57  ;;  %v2903_v41 = vmul.f32 0.01, %v2626_v1  ;;  %1280 = vst [vmem:[%s3418_s4 + $0x40] sm:$0xff] %v1216_v49  ;;  %vm1106_vm9 = vcmp.ge.f32.partialorder %v2590_v37, 0.0  ;;  %v1218_v44 = vsel %vm1090_vm11, %v2526_v63, %v2767_v19 }
 0x239   :  { %v2916_v36 = vmul.f32 0.01, %v2630_v62  ;;  %v2922_v61 = vmul.f32 0.01, %v2638_v3  ;;  %1281 = vst [vmem:[%s3418_s4 + $0x48] sm:$0xff] %v1217_v38  ;;  %vm1110_vm10 = vcmp.ge.f32.partialorder %v2606_v47, 0.0  ;;  %v1219_v19 = vsel %vm1091_vm12, %v2530_v7, %v2770_v23 }
 0x23a   :  { %3580 = vst [vmem:[#allocation7_spill] sm:$0xff] %v2903_v41  ;;  %v2919_v41 = vmul.f32 0.01, %v2634_v9  ;;  %v2936_v49 = vmul.f32 0.01, %v2642_v21  ;;  %1282 = vst [vmem:[%s3418_s4 + $0x50] sm:$0xff] %v1218_v44  ;;  %v1220_v23 = vsel %vm1092_vm13, %v2534_v5, %v2780_v2  ;;  %v1221_v2 = vsel %vm1093_vm14, %v2538_v0, %v2783_v51 }
 0x23b   :  { %3581 = vst [vmem:[#allocation8_spill] sm:$0xff] %v2922_v61  ;;  %v2939_v61 = vmul.f32 0.01, %v2646_v14  ;;  %v2942_v63 = vmul.f32 0.01, %v2650_v34  ;;  %vm1114_vm11 = vcmp.ge.f32.partialorder %v2622_v57, 0.0  ;;  %v1222_v51 = vsel %vm1094_vm15, %v2542_v54, %v2786_v59 }
 0x23c   :  { %v2956_v38 = vmul.f32 0.01, %v2654_v26  ;;  %v2962_v7 = vmul.f32 0.01, %v2662_v13  ;;  %1283 = vst [vmem:[%s3418_s4 + $0x58] sm:$0xff] %v1219_v19  ;;  %vm1118_vm12 = vcmp.ge.f32.partialorder %v2638_v3, 0.0  ;;  %v1223_v59 = vsel %vm1095_vm0, %v2546_v24, %v2796_v29 }
 0x23d   :  { %3582 = vst [vmem:[#allocation26_spill] sm:$0xff] %v2939_v61  ;;  %3583 = vst [vmem:[#allocation27_spill] sm:$0xff] %v2942_v63  ;;  %v2959_v63 = vmul.f32 0.01, %v2658_v18  ;;  %v3587_v44 = vld [vmem:[#allocation10_spill] sm:$0xff]  ;;  %v3591_v61 = vld [vmem:[#allocation11_spill] sm:$0xff]  ;;  %v1224_v29 = vsel %vm1096_vm1, %v2550_v12, %v2799_v10 }
 0x23e   :  { %3584 = vst [vmem:[#allocation28_spill] sm:$0xff] %v2956_v38  ;;  %3586 = vst [vmem:[#allocation30_spill] sm:$0xff] %v2962_v7  ;;  %v3589_v7 = vld [vmem:[#allocation12_spill] sm:$0xff]  ;;  %v2982_v5 = vmul.f32 0.01, %v3591_v61  ;;  %vm1122_vm13 = vcmp.ge.f32.partialorder %v2654_v26, 0.0 }
 0x23f   :  { %3585 = vst [vmem:[#allocation29_spill] sm:$0xff] %v2959_v63  ;;  %v2976_v63 = vmul.f32 0.01, %v3587_v44  ;;  %v2979_v38 = vmul.f32 0.01, %v3589_v7  ;;  %1284 = vst [vmem:[%s3418_s4 + $0x60] sm:$0xff] %v1220_v23 }
 0x240   :  { %3592 = vst [vmem:[#allocation11_spill] sm:$0xff] %v2982_v5  ;;  %v3593_v19 = vld [vmem:[#allocation14_spill] sm:$0xff]  ;;  %v3594_v5 = vld [vmem:[#allocation13_spill] sm:$0xff]  ;;  %v3596_v34 = vld [vmem:[#allocation16_spill] sm:$0xff]  ;;  %vm1126_vm14 = vcmp.ge.f32.partialorder %v3589_v7, 0.0  ;;  %vm3622_vm6 = vcmp.ge.f32.partialorder %v2570_v30, 0.0 }
 0x241   :  { %3588 = vst [vmem:[#allocation10_spill] sm:$0xff] %v2976_v63  ;;  %3590 = vst [vmem:[#allocation12_spill] sm:$0xff] %v2979_v38  ;;  %v2996_v38 = vmul.f32 0.01, %v3593_v19  ;;  %v2999_v63 = vmul.f32 0.01, %v3594_v5 }
 0x242   :  { %v3002_v0 = vmul.f32 0.01, %v3596_v34  ;;  %1285 = vst [vmem:[%s3418_s4 + $0x68] sm:$0xff] %v1221_v2  ;;  %v3016_v23 = vmul.f32 0.01, %v2690_v11  ;;  %1286 = vst [vmem:[%s3418_s4 + $0x70] sm:$0xff] %v1222_v51 }
 0x243   :  { %3595 = vst [vmem:[#allocation14_spill] sm:$0xff] %v2999_v63  ;;  %v3600_v63 = vld [vmem:[#allocation15_spill] sm:$0xff]  ;;  %vm1130_vm15 = vcmp.ge.f32.partialorder %v3596_v34, 0.0  ;;  %v3602_v2 = vld [vmem:[#allocation18_spill] sm:$0xff]  ;;  %v3606_v5 = vld [vmem:[#allocation20_spill] sm:$0xff] }
 0x244   :  { %3597 = vst [vmem:[#allocation16_spill] sm:$0xff] %v3002_v0  ;;  %3598 = vst [vmem:[#allocation31_spill] sm:$0xff] %v3016_v23  ;;  %v3019_v0 = vmul.f32 0.01, %v2694_v4  ;;  %v3022_v54 = vmul.f32 0.01, %v3600_v63 }
 0x245   :  { %v3042_v24 = vmul.f32 0.01, %v3606_v5  ;;  %1287 = vst [vmem:[%s3418_s4 + $0x78] sm:$0xff] %v1223_v59  ;;  %vm1134_vm0 = vcmp.ge.f32.partialorder %v3602_v2, 0.0  ;;  %v3608_v51 = vld [vmem:[#allocation19_spill] sm:$0xff]  ;;  %v3612_v63 = vld [vmem:[#allocation21_spill] sm:$0xff] }
 0x246   :  { %3599 = vst [vmem:[#allocation32_spill] sm:$0xff] %v3019_v0  ;;  %3601 = vst [vmem:[#allocation33_spill] sm:$0xff] %v3022_v54  ;;  %v3036_v0 = vmul.f32 0.01, %v3602_v2  ;;  %v3604_v54 = vld [vmem:[#allocation17_spill] sm:$0xff]  ;;  %v3614_v10 = vld [vmem:[#allocation4_spill] sm:$0xff] }
 0x247   :  { %v3039_v23 = vmul.f32 0.01, %v3604_v54  ;;  %3607 = vst [vmem:[#allocation34_spill] sm:$0xff] %v3042_v24  ;;  %v3610_v24 = vld [vmem:[#allocation22_spill] sm:$0xff]  ;;  %v3062_v12 = vmul.f32 0.01, %v3612_v63  ;;  %v1225_v59 = vsel %vm1097_vm2, %v2554_v20, %v3614_v10 }
 0x248   :  { %3603 = vst [vmem:[#allocation18_spill] sm:$0xff] %v3036_v0  ;;  %v3059_v0 = vmul.f32 0.01, %v3610_v24  ;;  %1288 = vst [vmem:[%s3418_s4 + $0x80] sm:$0xff] %v1224_v29  ;;  %vm1138_vm1 = vcmp.ge.f32.partialorder %v3610_v24, 0.0  ;;  %vm1139_vm5 = vcmp.ge.f32.partialorder %v3612_v63, 0.0  ;;  %v1226_v29 = vsel %vm1098_vm3, %v2558_v17, %v2812_v8 }
 0x249   :  { %3605 = vst [vmem:[#allocation17_spill] sm:$0xff] %v3039_v23  ;;  %v3056_v23 = vmul.f32 0.01, %v3608_v51  ;;  %3613 = vst [vmem:[#allocation21_spill] sm:$0xff] %v3062_v12  ;;  %v3615_v51 = vld [vmem:[#allocation24_spill] sm:$0xff]  ;;  %v3617_v5 = vld [vmem:[#allocation25_spill] sm:$0xff]  ;;  %v1229_v8 = vsel %vm3622_vm6, %v2570_v30, %v2828_v46 }
 0x24a   :  { %3611 = vst [vmem:[#allocation22_spill] sm:$0xff] %v3059_v0  ;;  %v3076_v0 = vmul.f32 0.01, %v3615_v51  ;;  %v3082_v20 = vmul.f32 0.01, %v3617_v5  ;;  %1289 = vst [vmem:[%s3418_s4 + $0x88] sm:$0xff] %v1225_v59  ;;  %v1230_v59 = vsel %vm1102_vm7, %v2574_v27, %v2831_v48 }
 0x24b   :  { %3609 = vst [vmem:[#allocation35_spill] sm:$0xff] %v3056_v23  ;;  %v3616_v23 = vld [vmem:[#allocation23_spill] sm:$0xff]  ;;  %vm1142_vm2 = vcmp.ge.f32.partialorder %v3617_v5, 0.0  ;;  %v3619_v10 = vld [vmem:[#allocation2_spill] sm:$0xff]  ;;  %vm3621_vm3 = vcmp.ge.f32.partialorder %v2566_v22, 0.0  ;;  %1290 = vst [vmem:[%s3418_s4 + $0x90] sm:$0xff] %v1226_v29 }
 0x24c   :  { %v3079_v12 = vmul.f32 0.01, %v3616_v23  ;;  %3618 = vst [vmem:[#allocation4_spill] sm:$0xff] %v3082_v20  ;;  %vm1143_vm8 = vcmp.ge.f32.partialorder %v3619_v10, 0.0  ;;  %v3094_v51 = vmul.f32 0.01, %v3619_v10  ;;  %v1227_v20 = vsel %vm1099_vm4, %v2562_v25, %v2815_v28 }
 0x24d   :  { %v3620_v23 = vld [vmem:[#allocation3_spill] sm:$0xff]  ;;  %v3623_v25 = vld [vmem:[#allocation5_spill] sm:$0xff]  ;;  %vm3624_vm4 = vcmp.ge.f32.partialorder %v2578_v35, 0.0  ;;  %vm3626_vm6 = vcmp.ge.f32.partialorder %v2586_v40, 0.0  ;;  %1291 = vst [vmem:[%s3418_s4 + $0x98] sm:$0xff] %v1227_v20  ;;  %1293 = vst [vmem:[%s3418_s4 + $0xa8] sm:$0xff] %v1229_v8 }
 0x24e   :  { %v1228_v17 = vsel %vm3621_vm3, %v2566_v22, %v3620_v23  ;;  %v1231_v28 = vsel %vm3624_vm4, %v2578_v35, %v3623_v25  ;;  %vm3625_vm3 = vcmp.ge.f32.partialorder %v2582_v32, 0.0  ;;  %v1233_v30 = vsel %vm3626_vm6, %v2586_v40, %v2847_v53  ;;  %v3627_v27 = vld [vmem:[#allocation6_spill] sm:$0xff]  ;;  %1294 = vst [vmem:[%s3418_s4 + $0xb0] sm:$0xff] %v1230_v59  ;;  %v3642_v53 = vld [vmem:[#allocation27_spill] sm:$0xff]  ;;  %v3662_v23 = vld [vmem:[#allocation32_spill] sm:$0xff] }
 0x24f   :  { %v1232_v22 = vsel %vm3625_vm3, %v2582_v32, %v2844_v56  ;;  %1292 = vst [vmem:[%s3418_s4 + $0xa0] sm:$0xff] %v1228_v17  ;;  %v1234_v35 = vsel %vm1106_vm9, %v2590_v37, %v3627_v27  ;;  %vm3628_vm7 = vcmp.ge.f32.partialorder %v2594_v45, 0.0  ;;  %vm3629_vm4 = vcmp.ge.f32.partialorder %v2598_v42, 0.0  ;;  %1295 = vst [vmem:[%s3418_s4 + $0xb8] sm:$0xff] %v1231_v28  ;;  %v3664_v29 = vld [vmem:[#allocation33_spill] sm:$0xff]  ;;  %v3665_v17 = vld [vmem:[#allocation15_spill] sm:$0xff] }
 0x250   :  { %v1235_v32 = vsel %vm3628_vm7, %v2594_v45, %v2860_v15  ;;  %v1236_v40 = vsel %vm3629_vm4, %v2598_v42, %v2863_v43  ;;  %vm3630_vm3 = vcmp.ge.f32.partialorder %v2602_v50, 0.0  ;;  %1296 = vst [vmem:[%s3418_s4 + $0xc0] sm:$0xff] %v1232_v22  ;;  %1297 = vst [vmem:[%s3418_s4 + $0xc8] sm:$0xff] %v1233_v30  ;;  %v1238_v37 = vsel %vm1110_vm10, %v2606_v47, %v2878_v16  ;;  %v3643_v15 = vld [vmem:[#allocation9_spill] sm:$0xff]  ;;  %v3648_v16 = vld [vmem:[#allocation30_spill] sm:$0xff] }
 0x251   :  { %v1237_v46 = vsel %vm3630_vm3, %v2602_v50, %v2866_v31  ;;  %vm3631_vm9 = vcmp.ge.f32.partialorder %v2610_v55, 0.0  ;;  %vm3632_vm6 = vcmp.ge.f32.partialorder %v2614_v52, 0.0  ;;  %vm3633_vm7 = vcmp.ge.f32.partialorder %v2618_v60, 0.0  ;;  %1298 = vst [vmem:[%s3418_s4 + $0xd0] sm:$0xff] %v1234_v35  ;;  %1299 = vst [vmem:[%s3418_s4 + $0xd8] sm:$0xff] %v1235_v32  ;;  %v3670_v25 = vld [vmem:[#allocation34_spill] sm:$0xff] }
 0x252   :  { %v1239_v45 = vsel %vm3631_vm9, %v2610_v55, %v2881_v6  ;;  %v1240_v42 = vsel %vm3632_vm6, %v2614_v52, %v2884_v39  ;;  %v1241_v50 = vsel %vm3633_vm7, %v2618_v60, %v2897_v33  ;;  %1300 = vst [vmem:[%s3418_s4 + $0xe0] sm:$0xff] %v1236_v40  ;;  %1301 = vst [vmem:[%s3418_s4 + $0xe8] sm:$0xff] %v1237_v46  ;;  %v3634_v55 = vld [vmem:[#allocation7_spill] sm:$0xff]  ;;  %vm3635_vm10 = vcmp.ge.f32.partialorder %v2626_v1, 0.0  ;;  %v3650_v39 = vld [vmem:[#allocation10_spill] sm:$0xff] }
 0x253   :  { %v1242_v47 = vsel %vm1114_vm11, %v2622_v57, %v2900_v58  ;;  %v1243_v52 = vsel %vm3635_vm10, %v2626_v1, %v3634_v55  ;;  %vm3636_vm4 = vcmp.ge.f32.partialorder %v2630_v62, 0.0  ;;  %vm3637_vm3 = vcmp.ge.f32.partialorder %v2634_v9, 0.0  ;;  %1302 = vst [vmem:[%s3418_s4 + $0xf0] sm:$0xff] %v1238_v37  ;;  %1303 = vst [vmem:[%s3418_s4 + $0xf8] sm:$0xff] %v1239_v45  ;;  %v3638_v57 = vld [vmem:[#allocation8_spill] sm:$0xff]  ;;  %v3673_v30 = vld [vmem:[#allocation35_spill] sm:$0xff] }
 0x254   :  { %v1244_v60 = vsel %vm3636_vm4, %v2630_v62, %v2916_v36  ;;  %v1245_v48 = vsel %vm3637_vm3, %v2634_v9, %v2919_v41  ;;  %1304 = vst [vmem:[%s3418_s4 + $0x100] sm:$0xff] %v1240_v42  ;;  %1305 = vst [vmem:[%s3418_s4 + $0x108] sm:$0xff] %v1241_v50  ;;  %v1246_v1 = vsel %vm1118_vm12, %v2638_v3, %v3638_v57  ;;  %vm3639_vm11 = vcmp.ge.f32.partialorder %v2642_v21, 0.0  ;;  %v3640_v9 = vld [vmem:[#allocation26_spill] sm:$0xff]  ;;  %v3645_v3 = vld [vmem:[#allocation28_spill] sm:$0xff] }
 0x255   :  { %v1247_v62 = vsel %vm3639_vm11, %v2642_v21, %v2936_v49  ;;  %vm3641_vm9 = vcmp.ge.f32.partialorder %v2646_v14, 0.0  ;;  %vm3644_vm6 = vcmp.ge.f32.partialorder %v3643_v15, 0.0  ;;  %1306 = vst [vmem:[%s3418_s4 + $0x110] sm:$0xff] %v1242_v47  ;;  %1307 = vst [vmem:[%s3418_s4 + $0x118] sm:$0xff] %v1243_v52  ;;  %v1250_v21 = vsel %vm1122_vm13, %v2654_v26, %v3645_v3  ;;  %v3652_v26 = vld [vmem:[#allocation12_spill] sm:$0xff]  ;;  %v3656_v36 = vld [vmem:[#allocation14_spill] sm:$0xff] }
 0x256   :  { %v1248_v56 = vsel %vm3641_vm9, %v2646_v14, %v3640_v9  ;;  %v1249_v43 = vsel %vm3644_vm6, %v3643_v15, %v3642_v53  ;;  %1308 = vst [vmem:[%s3418_s4 + $0x120] sm:$0xff] %v1244_v60  ;;  %1309 = vst [vmem:[%s3418_s4 + $0x128] sm:$0xff] %v1245_v48  ;;  %v3646_v14 = vld [vmem:[#allocation29_spill] sm:$0xff]  ;;  %vm3647_vm12 = vcmp.ge.f32.partialorder %v2658_v18, 0.0  ;;  %vm3649_vm7 = vcmp.ge.f32.partialorder %v2662_v13, 0.0  ;;  %v3671_v28 = vld [vmem:[#allocation20_spill] sm:$0xff] }
 0x257   :  { %v1251_v31 = vsel %vm3647_vm12, %v2658_v18, %v3646_v14  ;;  %v1252_v6 = vsel %vm3649_vm7, %v2662_v13, %v3648_v16  ;;  %vm3651_vm10 = vcmp.ge.f32.partialorder %v3587_v44, 0.0  ;;  %1310 = vst [vmem:[%s3418_s4 + $0x130] sm:$0xff] %v1246_v1  ;;  %1311 = vst [vmem:[%s3418_s4 + $0x138] sm:$0xff] %v1247_v62  ;;  %v1254_v18 = vsel %vm1126_vm14, %v3589_v7, %v3652_v26  ;;  %v3653_v13 = vld [vmem:[#allocation11_spill] sm:$0xff]  ;;  %v3657_v49 = vld [vmem:[#allocation13_spill] sm:$0xff] }
 0x258   :  { %v1253_v33 = vsel %vm3651_vm10, %v3587_v44, %v3650_v39  ;;  %1312 = vst [vmem:[%s3418_s4 + $0x140] sm:$0xff] %v1248_v56  ;;  %1313 = vst [vmem:[%s3418_s4 + $0x148] sm:$0xff] %v1249_v43  ;;  %vm3654_vm13 = vcmp.ge.f32.partialorder %v3591_v61, 0.0  ;;  %vm3655_vm4 = vcmp.ge.f32.partialorder %v3593_v19, 0.0  ;;  %vm3658_vm3 = vcmp.ge.f32.partialorder %v3657_v49, 0.0  ;;  %v3660_v7 = vld [vmem:[#allocation31_spill] sm:$0xff] }
 0x259   :  { %v1255_v58 = vsel %vm3654_vm13, %v3591_v61, %v3653_v13  ;;  %v1256_v41 = vsel %vm3655_vm4, %v3593_v19, %v2996_v38  ;;  %v1257_v44 = vsel %vm3658_vm3, %v3657_v49, %v3656_v36  ;;  %1314 = vst [vmem:[%s3418_s4 + $0x150] sm:$0xff] %v1250_v21  ;;  %1315 = vst [vmem:[%s3418_s4 + $0x158] sm:$0xff] %v1251_v31  ;;  %v3659_v61 = vld [vmem:[#allocation16_spill] sm:$0xff]  ;;  %vm3661_vm14 = vcmp.ge.f32.partialorder %v2690_v11, 0.0  ;;  %v3674_v27 = vld [vmem:[#allocation19_spill] sm:$0xff] }
 0x25a   :  { %1316 = vst [vmem:[%s3418_s4 + $0x160] sm:$0xff] %v1252_v6  ;;  %1317 = vst [vmem:[%s3418_s4 + $0x168] sm:$0xff] %v1253_v33  ;;  %v1258_v38 = vsel %vm1130_vm15, %v3596_v34, %v3659_v61  ;;  %v1259_v19 = vsel %vm3661_vm14, %v2690_v11, %v3660_v7  ;;  %vm3663_vm11 = vcmp.ge.f32.partialorder %v2694_v4, 0.0  ;;  %vm3666_vm9 = vcmp.ge.f32.partialorder %v3665_v17, 0.0  ;;  %v3667_v34 = vld [vmem:[#allocation18_spill] sm:$0xff]  ;;  %v3677_v32 = vld [vmem:[#allocation21_spill] sm:$0xff] }
 0x25b   :  { %v1260_v20 = vsel %vm3663_vm11, %v2694_v4, %v3662_v23  ;;  %v1261_v8 = vsel %vm3666_vm9, %v3665_v17, %v3664_v29  ;;  %1318 = vst [vmem:[%s3418_s4 + $0x170] sm:$0xff] %v1254_v18  ;;  %1319 = vst [vmem:[%s3418_s4 + $0x178] sm:$0xff] %v1255_v58  ;;  %v1262_v11 = vsel %vm1134_vm0, %v3602_v2, %v3667_v34  ;;  %v3668_v4 = vld [vmem:[#allocation17_spill] sm:$0xff]  ;;  %vm3669_vm15 = vcmp.ge.f32.partialorder %v3604_v54, 0.0  ;;  %v3678_v46 = vld [vmem:[#allocation24_spill] sm:$0xff] }
 0x25c   :  { %1320 = vst [vmem:[%s3418_s4 + $0x180] sm:$0xff] %v1256_v41  ;;  %1321 = vst [vmem:[%s3418_s4 + $0x188] sm:$0xff] %v1257_v44  ;;  %v1263_v59 = vsel %vm3669_vm15, %v3604_v54, %v3668_v4  ;;  %vm3672_vm6 = vcmp.ge.f32.partialorder %v3671_v28, 0.0  ;;  %vm3675_vm12 = vcmp.ge.f32.partialorder %v3674_v27, 0.0  ;;  %v3676_v54 = vld [vmem:[#allocation22_spill] sm:$0xff]  ;;  %v1267_v40 = vsel %vm1139_vm5, %v3612_v63, %v3677_v32  ;;  %v3680_v45 = vld [vmem:[#allocation23_spill] sm:$0xff] }
 0x25d   :  { %v1264_v22 = vsel %vm3672_vm6, %v3671_v28, %v3670_v25  ;;  %v1265_v35 = vsel %vm3675_vm12, %v3674_v27, %v3673_v30  ;;  %1322 = vst [vmem:[%s3418_s4 + $0x190] sm:$0xff] %v1258_v38  ;;  %1323 = vst [vmem:[%s3418_s4 + $0x198] sm:$0xff] %v1259_v19  ;;  %v1266_v2 = vsel %vm1138_vm1, %v3610_v24, %v3676_v54  ;;  %vm3679_vm0 = vcmp.ge.f32.partialorder %v3678_v46, 0.0  ;;  %v3682_v63 = vld [vmem:[#allocation4_spill] sm:$0xff] }
 0x25e   :  { %1324 = vst [vmem:[%s3418_s4 + $0x1a0] sm:$0xff] %v1260_v20  ;;  %1325 = vst [vmem:[%s3418_s4 + $0x1a8] sm:$0xff] %v1261_v8  ;;  %v1268_v37 = vsel %vm3679_vm0, %v3678_v46, %v3076_v0  ;;  %vm3681_vm7 = vcmp.ge.f32.partialorder %v3680_v45, 0.0  ;;  %v1270_v0 = vsel %vm1142_vm2, %v3617_v5, %v3682_v63  ;;  %v1271_v24 = vsel %vm1143_vm8, %v3619_v10, %v3094_v51 }
 0x25f   :  { %v1269_v42 = vsel %vm3681_vm7, %v3680_v45, %v3079_v12  ;;  %1326 = vst [vmem:[%s3418_s4 + $0x1b0] sm:$0xff] %v1262_v11  ;;  %1327 = vst [vmem:[%s3418_s4 + $0x1b8] sm:$0xff] %v1263_v59 }
 0x260   :  { %1328 = vst [vmem:[%s3418_s4 + $0x1c0] sm:$0xff] %v1264_v22  ;;  %1329 = vst [vmem:[%s3418_s4 + $0x1c8] sm:$0xff] %v1265_v35 }
 0x261   :  { %1330 = vst [vmem:[%s3418_s4 + $0x1d0] sm:$0xff] %v1266_v2  ;;  %1331 = vst [vmem:[%s3418_s4 + $0x1d8] sm:$0xff] %v1267_v40 }
 0x262   :  { %1332 = vst [vmem:[%s3418_s4 + $0x1e0] sm:$0xff] %v1268_v37  ;;  %1333 = vst [vmem:[%s3418_s4 + $0x1e8] sm:$0xff] %v1269_v42 }
 0x263   :  { %1334 = vst [vmem:[%s3418_s4 + $0x1f0] sm:$0xff] %v1270_v0  ;;  %1335 = vst [vmem:[%s3418_s4 + $0x1f8] sm:$0xff] %v1271_v24 }

// kernel: generator_face_forward.7
= control target key start
LH: loop header
LB: loop body
LE: loop exit
PB: predicated region body
PF: predicated region fallthrough
CT: control target
= control target key end

     0   :  { %s801_s1 = inlined_call_operand.vmem [shape: f32[1,128,128], index: 1, kind: input, shape index: {}]   ;;  %s802_s0 = inlined_call_operand.vmem [shape: f32[1,128,128], index: 0, kind: input, shape index: {}]   ;;  %s803_s2 = inlined_call_operand.vmem [shape: f32[1,128], index: 2, kind: input, shape index: {}]   ;;  %s804_s3 = inlined_call_operand.vmem [shape: f32[1,128], index: 3, kind: input, shape index: {}]   ;;  %s805_s4 = inlined_call_operand.vmem [shape: f32[1,128,128], index: 4, kind: output, shape index: {}]  }
   0x1   :  { %v48_v0 = vld [vmem:[%s801_s1 + $0x78] sm:$0xff]  ;;  %v47_v1 = vld [vmem:[%s801_s1 + $0x70] sm:$0xff]  ;;  %v46_v2 = vld [vmem:[%s801_s1 + $0x68] sm:$0xff] }
   0x2   :  { %421 = vmatprep.subr.mxu0 %v48_v0  ;;  %477 = vmatprep.subr.mxu1 %v48_v0  ;;  %v45_v3 = vld [vmem:[%s801_s1 + $0x60] sm:$0xff]  ;;  %v44_v4 = vld [vmem:[%s801_s1 + $0x58] sm:$0xff]  ;;  %v43_v5 = vld [vmem:[%s801_s1 + $0x50] sm:$0xff] }
   0x3   :  { %422 = vmatpush3.msra.mxu0 %v48_v0  ;;  %493 = vmatpush3.msra.mxu1 %v48_v0  ;;  %v42_v6 = vld [vmem:[%s801_s1 + $0x48] sm:$0xff]  ;;  %v41_v7 = vld [vmem:[%s801_s1 + $0x40] sm:$0xff]  ;;  %v40_v8 = vld [vmem:[%s801_s1 + $0x38] sm:$0xff] }
   0x4   :  { %423 = vmatprep.subr.mxu0 %v47_v1  ;;  %478 = vmatprep.subr.mxu1 %v47_v1  ;;  %v39_v9 = vld [vmem:[%s801_s1 + $0x30] sm:$0xff]  ;;  %v17_v10 = vld [vmem:[%s802_s0] sm:$0xff]  ;;  %v38_v11 = vld [vmem:[%s801_s1 + $0x28] sm:$0xff] }
   0x5   :  { %424 = vmatpush3.msra.mxu0 %v47_v1  ;;  %494 = vmatpush3.msra.mxu1 %v47_v1  ;;  %v37_v12 = vld [vmem:[%s801_s1 + $0x20] sm:$0xff]  ;;  %v36_v13 = vld [vmem:[%s801_s1 + $0x18] sm:$0xff]  ;;  %v35_v14 = vld [vmem:[%s801_s1 + $0x10] sm:$0xff] }
   0x6   :  { %425 = vmatprep.subr.mxu0 %v46_v2  ;;  %479 = vmatprep.subr.mxu1 %v46_v2  ;;  %v34_v15 = vld [vmem:[%s801_s1 + $0x8] sm:$0xff]  ;;  %v33_v16 = vld [vmem:[%s801_s1] sm:$0xff]  ;;  %v19_v18 = vld [vmem:[%s802_s0 + $0x10] sm:$0xff] }
   0x7   :  { %426 = vmatpush3.msra.mxu0 %v46_v2  ;;  %495 = vmatpush3.msra.mxu1 %v46_v2  ;;  %v18_v17 = vld [vmem:[%s802_s0 + $0x8] sm:$0xff]  ;;  %v25_v19 = vld [vmem:[%s802_s0 + $0x40] sm:$0xff]  ;;  %v27_v21 = vld [vmem:[%s802_s0 + $0x50] sm:$0xff] }
   0x8   :  { %427 = vmatprep.subr.mxu0 %v45_v3  ;;  %480 = vmatprep.subr.mxu1 %v45_v3  ;;  %v26_v20 = vld [vmem:[%s802_s0 + $0x48] sm:$0xff]  ;;  %v20_v22 = vld [vmem:[%s802_s0 + $0x18] sm:$0xff]  ;;  %v21_v23 = vld [vmem:[%s802_s0 + $0x20] sm:$0xff] }
   0x9   :  { %428 = vmatpush3.msra.mxu0 %v45_v3  ;;  %496 = vmatpush3.msra.mxu1 %v45_v3  ;;  %v28_v24 = vld [vmem:[%s802_s0 + $0x58] sm:$0xff]  ;;  %v29_v25 = vld [vmem:[%s802_s0 + $0x60] sm:$0xff]  ;;  %v22_v26 = vld [vmem:[%s802_s0 + $0x28] sm:$0xff] }
   0xa   :  { %429 = vmatprep.subr.mxu0 %v44_v4  ;;  %481 = vmatprep.subr.mxu1 %v44_v4  ;;  %v23_v27 = vld [vmem:[%s802_s0 + $0x30] sm:$0xff]  ;;  %v30_v28 = vld [vmem:[%s802_s0 + $0x68] sm:$0xff]  ;;  %v24_v30 = vld [vmem:[%s802_s0 + $0x38] sm:$0xff] }
   0xb   :  { %430 = vmatpush3.msra.mxu0 %v44_v4  ;;  %497 = vmatpush3.msra.mxu1 %v44_v4  ;;  %v31_v29 = vld [vmem:[%s802_s0 + $0x70] sm:$0xff]  ;;  %v32_v31 = vld [vmem:[%s802_s0 + $0x78] sm:$0xff] }
   0xc   :  { %431 = vmatprep.subr.mxu0 %v43_v5  ;;  %482 = vmatprep.subr.mxu1 %v43_v5 }
   0xd   :  { %432 = vmatpush3.msra.mxu0 %v43_v5  ;;  %498 = vmatpush3.msra.mxu1 %v43_v5 }
   0xe   :  { %433 = vmatprep.subr.mxu0 %v42_v6  ;;  %483 = vmatprep.subr.mxu1 %v42_v6 }
   0xf   :  { %434 = vmatpush3.msra.mxu0 %v42_v6  ;;  %499 = vmatpush3.msra.mxu1 %v42_v6 }
  0x10   :  { %435 = vmatprep.subr.mxu0 %v41_v7  ;;  %484 = vmatprep.subr.mxu1 %v41_v7 }
  0x11   :  { %436 = vmatpush3.msra.mxu0 %v41_v7  ;;  %500 = vmatpush3.msra.mxu1 %v41_v7 }
  0x12   :  { %437 = vmatprep.subr.mxu0 %v40_v8  ;;  %485 = vmatprep.subr.mxu1 %v40_v8 }
  0x13   :  { %438 = vmatpush3.msra.mxu0 %v40_v8  ;;  %501 = vmatpush3.msra.mxu1 %v40_v8 }
  0x14   :  { %439 = vmatprep.subr.mxu0 %v39_v9  ;;  %453 = vmatprep.mubr.f32.mxu0 %v17_v10 }
  0x15   :  { %440 = vmatpush3.msra.mxu0 %v39_v9  ;;  %486 = vmatprep.subr.mxu1 %v39_v9 }
  0x16   :  { %441 = vmatprep.subr.mxu0 %v38_v11  ;;  %502 = vmatpush3.msra.mxu1 %v39_v9 }
  0x17   :  { %442 = vmatpush3.msra.mxu0 %v38_v11  ;;  %487 = vmatprep.subr.mxu1 %v38_v11 }
  0x18   :  { %443 = vmatprep.subr.mxu0 %v37_v12  ;;  %503 = vmatpush3.msra.mxu1 %v38_v11 }
  0x19   :  { %444 = vmatpush3.msra.mxu0 %v37_v12  ;;  %488 = vmatprep.subr.mxu1 %v37_v12 }
  0x1a   :  { %445 = vmatprep.subr.mxu0 %v36_v13  ;;  %504 = vmatpush3.msra.mxu1 %v37_v12 }
  0x1b   :  { %446 = vmatpush3.msra.mxu0 %v36_v13  ;;  %489 = vmatprep.subr.mxu1 %v36_v13 }
  0x1c   :  { %447 = vmatprep.subr.mxu0 %v35_v14  ;;  %505 = vmatpush3.msra.mxu1 %v36_v13 }
  0x1d   :  { %448 = vmatpush3.msra.mxu0 %v35_v14  ;;  %490 = vmatprep.subr.mxu1 %v35_v14 }
  0x1e   :  { %449 = vmatprep.subr.mxu0 %v34_v15  ;;  %506 = vmatpush3.msra.mxu1 %v35_v14 }
  0x1f   :  { %450 = vmatpush3.msra.mxu0 %v34_v15  ;;  %491 = vmatprep.subr.mxu1 %v34_v15 }
  0x20   :  { %451 = vmatprep.subr.mxu0 %v33_v16  ;;  %507 = vmatpush3.msra.mxu1 %v34_v15 }
  0x21   :  { %452 = vmatpush3.msra.mxu0 %v33_v16  ;;  %492 = vmatprep.subr.mxu1 %v33_v16 }
  0x22   :  { %454 = vmatmul.mubr.f32.vlgmr.msra.gmra.mxu0 %v18_v17  ;;  %508 = vmatpush3.msra.mxu1 %v33_v16 }
  0x23   :  { %456 = vmatprep.mubr.f32.mxu0 %v19_v18  ;;  %465 = vmatprep.mubr.f32.mxu1 %v25_v19 }
  0x24   :  { %466 = vmatmul.mubr.f32.vlgmr.msra.gmra.mxu1 %v26_v20 }
  0x25   :  { %468 = vmatprep.mubr.f32.mxu1 %v27_v21 }
  0x26   :  { %457 = vmatmul.mubr.f32.gmra.mxu0 %v20_v22 }
  0x27   :  { %459 = vmatprep.mubr.f32.mxu0 %v21_v23 }
  0x28   :  { %469 = vmatmul.mubr.f32.gmra.mxu1 %v28_v24 }
  0x29   :  { %471 = vmatprep.mubr.f32.mxu1 %v29_v25 }
  0x2a   :  { %460 = vmatmul.mubr.f32.gmra.mxu0 %v22_v26 }
  0x2b   :  { %462 = vmatprep.mubr.f32.mxu0 %v23_v27 }
  0x2c   :  { %472 = vmatmul.mubr.f32.gmra.mxu1 %v30_v28 }
  0x2d   :  { %474 = vmatprep.mubr.f32.mxu1 %v31_v29 }
  0x2e   :  { %463 = vmatmul.mubr.f32.gmra.mxu0 %v24_v30 }
  0x30   :  { %475 = vmatmul.mubr.f32.gmra.mxu1 %v32_v31 }
  0xe2   :  { %v632_v32 = vpop.f32.mrf.mxu0 }
  0xe4   :  { %v634_v33 = vpop.f32.mrf.mxu0  ;;  %v636_v34 = vpop.f32.mrf.mxu1 }
  0xe5   :  { %v194_v36 = vadd.f32 %v632_v32, %v634_v33 }
  0xe6   :  { %v638_v35 = vpop.f32.mrf.mxu0  ;;  %v644_v38 = vpop.f32.mrf.mxu1 }
  0xe8   :  { %v642_v37 = vpop.f32.mrf.mxu0  ;;  %v652_v43 = vpop.f32.mrf.mxu1 }
  0xe9   :  { %v195_v39 = vadd.f32 %v194_v36, %v642_v37 }
  0xea   :  { %v647_v40 = vpop.f32.mrf.mxu0  ;;  %v660_v48 = vpop.f32.mrf.mxu1 }
  0xeb   :  { %v196_v41 = vadd.f32 %v638_v35, %v195_v39 }
  0xec   :  { %v650_v42 = vpop.f32.mrf.mxu0  ;;  %v664_v51 = vpop.f32.mrf.mxu1 }
  0xed   :  { %v197_v44 = vadd.f32 %v196_v41, %v650_v42 }
  0xee   :  { %v655_v45 = vpop.f32.mrf.mxu0  ;;  %v668_v54 = vpop.f32.mrf.mxu1 }
  0xef   :  { %v198_v46 = vadd.f32 %v647_v40, %v197_v44 }
  0xf0   :  { %v658_v47 = vpop.f32.mrf.mxu0  ;;  %v672_v57 = vpop.f32.mrf.mxu1 }
  0xf1   :  { %v199_v49 = vadd.f32 %v198_v46, %v658_v47 }
  0xf2   :  { %v676_v60 = vpop.f32.mrf.mxu1 }
  0xf3   :  { %v200_v50 = vadd.f32 %v655_v45, %v199_v49 }
  0xf5   :  { %v201_v52 = vadd.f32 %v200_v50, %v644_v38 }
  0xf7   :  { %v202_v53 = vadd.f32 %v636_v34, %v201_v52 }
  0xf9   :  { %v203_v55 = vadd.f32 %v202_v53, %v660_v48 }
  0xfb   :  { %v204_v56 = vadd.f32 %v652_v43, %v203_v55 }
  0xfd   :  { %v205_v58 = vadd.f32 %v204_v56, %v668_v54 }
  0xff   :  { %v206_v59 = vadd.f32 %v664_v51, %v205_v58 }
 0x101   :  { %v207_v61 = vadd.f32 %v206_v59, %v676_v60 }
 0x103   :  { %v208_v62 = vadd.f32 %v672_v57, %v207_v61 }
 0x105   :  { %v209_v63 = vrot.slane %v208_v62, 4 }
 0x107   :  { %v210_v0 = vadd.f32 %v209_v63, %v208_v62 }
 0x109   :  { %v211_v1 = vrot.slane %v210_v0, 2 }
 0x10b   :  { %v212_v2 = vadd.f32 %v211_v1, %v210_v0 }
 0x10d   :  { %v213_v3 = vrot.slane %v212_v2, 1 }
 0x10f   :  { %v214_v4 = vadd.f32 %v213_v3, %v212_v2 }
 0x111   :  { %v680_v5 = vmul.f32 0.0078125, %v214_v4 }
 0x113   :  { %v216_v6 = vsub.f32 %v634_v33, %v680_v5  ;;  %v217_v7 = vsub.f32 %v632_v32, %v680_v5  ;;  %v218_v8 = vsub.f32 %v642_v37, %v680_v5  ;;  %v219_v11 = vsub.f32 %v638_v35, %v680_v5 }
 0x114   :  { %v220_v12 = vsub.f32 %v650_v42, %v680_v5  ;;  %v221_v15 = vsub.f32 %v647_v40, %v680_v5  ;;  %v222_v18 = vsub.f32 %v658_v47, %v680_v5  ;;  %v223_v21 = vsub.f32 %v655_v45, %v680_v5 }
 0x115   :  { %v232_v9 = vmul.f32 %v216_v6, %v216_v6  ;;  %v233_v10 = vmul.f32 %v217_v7, %v217_v7  ;;  %v234_v13 = vmul.f32 %v218_v8, %v218_v8  ;;  %v235_v16 = vmul.f32 %v219_v11, %v219_v11 }
 0x116   :  { %v236_v19 = vmul.f32 %v220_v12, %v220_v12  ;;  %v237_v22 = vmul.f32 %v221_v15, %v221_v15  ;;  %v224_v24 = vsub.f32 %v644_v38, %v680_v5  ;;  %v238_v25 = vmul.f32 %v222_v18, %v222_v18 }
 0x117   :  { %v248_v14 = vadd.f32 %v233_v10, %v232_v9  ;;  %v225_v27 = vsub.f32 %v636_v34, %v680_v5  ;;  %v239_v28 = vmul.f32 %v223_v21, %v223_v21  ;;  %v226_v30 = vsub.f32 %v660_v48, %v680_v5 }
 0x118   :  { %v240_v31 = vmul.f32 %v224_v24, %v224_v24  ;;  %v227_v39 = vsub.f32 %v652_v43, %v680_v5  ;;  %v228_v46 = vsub.f32 %v668_v54, %v680_v5  ;;  %v229_v52 = vsub.f32 %v664_v51, %v680_v5 }
 0x119   :  { %v249_v17 = vadd.f32 %v248_v14, %v234_v13  ;;  %v241_v41 = vmul.f32 %v225_v27, %v225_v27  ;;  %v242_v49 = vmul.f32 %v226_v30, %v226_v30  ;;  %v230_v56 = vsub.f32 %v676_v60, %v680_v5 }
 0x11a   :  { %v243_v53 = vmul.f32 %v227_v39, %v227_v39  ;;  %v244_v58 = vmul.f32 %v228_v46, %v228_v46  ;;  %v231_v61 = vsub.f32 %v672_v57, %v680_v5  ;;  %v245_v62 = vmul.f32 %v229_v52, %v229_v52 }
 0x11b   :  { %v250_v20 = vadd.f32 %v249_v17, %v235_v16  ;;  %v246_v0 = vmul.f32 %v230_v56, %v230_v56  ;;  %v278_v14 = vlaneseq  ;;  %v270_v16 = vld [vmem:[%s803_s2] sm:$0x1] }
 0x11c   :  { %v247_v2 = vmul.f32 %v231_v61, %v231_v61 }
 0x11d   :  { %v251_v23 = vadd.f32 %v250_v20, %v236_v19  ;;  %v279_v15 = vshrl.u32 %v278_v14, 7  ;;  %v274_v20 = vld [vmem:[%s804_s3] sm:$0x1] }
 0x11f   :  { %v252_v26 = vadd.f32 %v251_v23, %v237_v22  ;;  %v280_v17 = vsub.s32 0, %v279_v15 }
 0x121   :  { %v253_v29 = vadd.f32 %v252_v26, %v238_v25 }
 0x123   :  { %v254_v36 = vadd.f32 %v253_v29, %v239_v28 }
 0x125   :  { %v255_v44 = vadd.f32 %v254_v36, %v240_v31 }
 0x127   :  { %v256_v50 = vadd.f32 %v255_v44, %v241_v41 }
 0x129   :  { %v257_v55 = vadd.f32 %v256_v50, %v242_v49 }
 0x12b   :  { %v258_v59 = vadd.f32 %v257_v55, %v243_v53 }
 0x12d   :  { %v259_v63 = vadd.f32 %v258_v59, %v244_v58 }
 0x12f   :  { %v260_v1 = vadd.f32 %v259_v63, %v245_v62 }
 0x131   :  { %v261_v3 = vadd.f32 %v260_v1, %v246_v0 }
 0x133   :  { %v262_v4 = vadd.f32 %v261_v3, %v247_v2 }
 0x135   :  { %v263_v6 = vrot.slane %v262_v4, 4 }
 0x137   :  { %v264_v7 = vadd.f32 %v263_v6, %v262_v4 }
 0x139   :  { %v265_v8 = vrot.slane %v264_v7, 2 }
 0x13b   :  { %v266_v9 = vadd.f32 %v265_v8, %v264_v7 }
 0x13d   :  { %v267_v10 = vrot.slane %v266_v9, 1 }
 0x13f   :  { %v268_v11 = vadd.f32 %v267_v10, %v266_v9 }
 0x141   :  { %v269_v12 = vmul.f32 0.0078125, %v268_v11 }
 0x143   :  { %v271_v13 = vadd.f32 1e-05, %v269_v12 }
 0x145   :  { %509 = vrsqrt.f32 %v271_v13 }
 0x152   :  { %v510_v18 = vpop.eup %509 }
 0x153   :  { %v273_v19 = vmul.f32 %v510_v18, %v270_v16 }
 0x155   :  { %v275_v21 = vmul.f32 %v273_v19, %v680_v5  ;;  %v281_v22 = vrot.slane %v273_v19, %v280_v17 }
 0x157   :  { %v276_v23 = vsub.f32 %v274_v20, %v275_v21  ;;  %v283_v24 = vmul.f32 %v281_v22, %v634_v33  ;;  %v284_v25 = vmul.f32 %v632_v32, %v281_v22  ;;  %v285_v26 = vmul.f32 %v281_v22, %v642_v37 }
 0x158   :  { %v286_v27 = vmul.f32 %v638_v35, %v281_v22  ;;  %v287_v28 = vmul.f32 %v281_v22, %v650_v42  ;;  %v288_v29 = vmul.f32 %v647_v40, %v281_v22  ;;  %v289_v30 = vmul.f32 %v281_v22, %v658_v47 }
 0x159   :  { %v290_v31 = vmul.f32 %v655_v45, %v281_v22  ;;  %v291_v5 = vmul.f32 %v281_v22, %v644_v38  ;;  %v292_v36 = vmul.f32 %v636_v34, %v281_v22  ;;  %v293_v33 = vmul.f32 %v281_v22, %v660_v48 }
 0x15a   :  { %v294_v32 = vmul.f32 %v652_v43, %v281_v22  ;;  %v303_v39 = vrot.slane %v276_v23, %v280_v17  ;;  %v295_v37 = vmul.f32 %v281_v22, %v668_v54  ;;  %v296_v35 = vmul.f32 %v664_v51, %v281_v22 }
 0x15b   :  { %v297_v42 = vmul.f32 %v281_v22, %v676_v60  ;;  %v298_v40 = vmul.f32 %v672_v57, %v281_v22 }
 0x15c   :  { %v305_v47 = vadd.f32 %v303_v39, %v283_v24  ;;  %v306_v41 = vadd.f32 %v303_v39, %v284_v25  ;;  %v307_v45 = vadd.f32 %v303_v39, %v285_v26  ;;  %v308_v44 = vadd.f32 %v303_v39, %v286_v27 }
 0x15d   :  { %v309_v38 = vadd.f32 %v303_v39, %v287_v28  ;;  %v310_v46 = vadd.f32 %v303_v39, %v288_v29  ;;  %v311_v34 = vadd.f32 %v303_v39, %v289_v30  ;;  %v312_v49 = vadd.f32 %v303_v39, %v290_v31 }
 0x15e   :  { %v313_v48 = vadd.f32 %v303_v39, %v291_v5  ;;  %v314_v50 = vadd.f32 %v303_v39, %v292_v36  ;;  %v315_v43 = vadd.f32 %v303_v39, %v293_v33  ;;  %v316_v52 = vadd.f32 %v303_v39, %v294_v32 }
 0x15f   :  { %v317_v53 = vadd.f32 %v303_v39, %v295_v37  ;;  %v318_v54 = vadd.f32 %v303_v39, %v296_v35  ;;  %v319_v55 = vadd.f32 %v303_v39, %v297_v42  ;;  %v320_v51 = vadd.f32 %v303_v39, %v298_v40 }
 0x160   :  { %vm321_vm0 = vcmp.ge.f32.partialorder %v305_v47, 0.0  ;;  %vm322_vm1 = vcmp.ge.f32.partialorder %v306_v41, 0.0  ;;  %vm323_vm2 = vcmp.ge.f32.partialorder %v307_v45, 0.0  ;;  %vm324_vm3 = vcmp.ge.f32.partialorder %v308_v44, 0.0 }
 0x161   :  { %vm325_vm4 = vcmp.ge.f32.partialorder %v309_v38, 0.0  ;;  %vm326_vm5 = vcmp.ge.f32.partialorder %v310_v46, 0.0  ;;  %vm327_vm6 = vcmp.ge.f32.partialorder %v311_v34, 0.0  ;;  %vm328_vm7 = vcmp.ge.f32.partialorder %v312_v49, 0.0 }
 0x162   :  { %vm329_vm8 = vcmp.ge.f32.partialorder %v313_v48, 0.0  ;;  %vm330_vm9 = vcmp.ge.f32.partialorder %v314_v50, 0.0  ;;  %vm331_vm10 = vcmp.ge.f32.partialorder %v315_v43, 0.0  ;;  %vm332_vm11 = vcmp.ge.f32.partialorder %v316_v52, 0.0 }
 0x163   :  { %vm333_vm12 = vcmp.ge.f32.partialorder %v317_v53, 0.0  ;;  %vm334_vm13 = vcmp.ge.f32.partialorder %v318_v54, 0.0  ;;  %vm335_vm14 = vcmp.ge.f32.partialorder %v319_v55, 0.0  ;;  %vm336_vm15 = vcmp.ge.f32.partialorder %v320_v51, 0.0 }
 0x164   :  { %v337_v57 = vmul.f32 0.01, %v305_v47  ;;  %v338_v60 = vmul.f32 0.01, %v306_v41  ;;  %v339_v56 = vmul.f32 0.01, %v307_v45 }
 0x165   :  { %v340_v58 = vmul.f32 0.01, %v308_v44  ;;  %v341_v59 = vmul.f32 0.01, %v309_v38  ;;  %v342_v61 = vmul.f32 0.01, %v310_v46 }
 0x166   :  { %v343_v62 = vmul.f32 0.01, %v311_v34  ;;  %v344_v63 = vmul.f32 0.01, %v312_v49  ;;  %v345_v0 = vmul.f32 0.01, %v313_v48  ;;  %v353_v1 = vsel %vm321_vm0, %v305_v47, %v337_v57 }
 0x167   :  { %v346_v2 = vmul.f32 0.01, %v314_v50  ;;  %v347_v3 = vmul.f32 0.01, %v315_v43  ;;  %v348_v4 = vmul.f32 0.01, %v316_v52  ;;  %v354_v6 = vsel %vm322_vm1, %v306_v41, %v338_v60  ;;  %369 = vst [vmem:[%s805_s4] sm:$0xff] %v353_v1 }
 0x168   :  { %v349_v7 = vmul.f32 0.01, %v317_v53  ;;  %v350_v8 = vmul.f32 0.01, %v318_v54  ;;  %v351_v9 = vmul.f32 0.01, %v319_v55  ;;  %v355_v10 = vsel %vm323_vm2, %v307_v45, %v339_v56 }
 0x169   :  { %370 = vst [vmem:[%s805_s4 + $0x8] sm:$0xff] %v354_v6  ;;  %v352_v11 = vmul.f32 0.01, %v320_v51  ;;  %v356_v12 = vsel %vm324_vm3, %v308_v44, %v340_v58  ;;  %v357_v13 = vsel %vm325_vm4, %v309_v38, %v341_v59  ;;  %v358_v14 = vsel %vm326_vm5, %v310_v46, %v342_v61  ;;  %371 = vst [vmem:[%s805_s4 + $0x10] sm:$0xff] %v355_v10 }
 0x16a   :  { %v359_v15 = vsel %vm327_vm6, %v311_v34, %v343_v62  ;;  %v360_v16 = vsel %vm328_vm7, %v312_v49, %v344_v63  ;;  %v361_v17 = vsel %vm329_vm8, %v313_v48, %v345_v0  ;;  %v362_v18 = vsel %vm330_vm9, %v314_v50, %v346_v2  ;;  %372 = vst [vmem:[%s805_s4 + $0x18] sm:$0xff] %v356_v12 }
 0x16b   :  { %373 = vst [vmem:[%s805_s4 + $0x20] sm:$0xff] %v357_v13  ;;  %374 = vst [vmem:[%s805_s4 + $0x28] sm:$0xff] %v358_v14  ;;  %v363_v19 = vsel %vm331_vm10, %v315_v43, %v347_v3  ;;  %v364_v20 = vsel %vm332_vm11, %v316_v52, %v348_v4  ;;  %v365_v21 = vsel %vm333_vm12, %v317_v53, %v349_v7 }
 0x16c   :  { %v366_v22 = vsel %vm334_vm13, %v318_v54, %v350_v8  ;;  %375 = vst [vmem:[%s805_s4 + $0x30] sm:$0xff] %v359_v15  ;;  %376 = vst [vmem:[%s805_s4 + $0x38] sm:$0xff] %v360_v16  ;;  %v367_v23 = vsel %vm335_vm14, %v319_v55, %v351_v9  ;;  %v368_v24 = vsel %vm336_vm15, %v320_v51, %v352_v11 }
 0x16d   :  { %377 = vst [vmem:[%s805_s4 + $0x40] sm:$0xff] %v361_v17  ;;  %378 = vst [vmem:[%s805_s4 + $0x48] sm:$0xff] %v362_v18 }
 0x16e   :  { %379 = vst [vmem:[%s805_s4 + $0x50] sm:$0xff] %v363_v19  ;;  %380 = vst [vmem:[%s805_s4 + $0x58] sm:$0xff] %v364_v20 }
 0x16f   :  { %381 = vst [vmem:[%s805_s4 + $0x60] sm:$0xff] %v365_v21  ;;  %382 = vst [vmem:[%s805_s4 + $0x68] sm:$0xff] %v366_v22 }
 0x170   :  { %383 = vst [vmem:[%s805_s4 + $0x70] sm:$0xff] %v367_v23  ;;  %384 = vst [vmem:[%s805_s4 + $0x78] sm:$0xff] %v368_v24 }

// kernel: generator_face_forward.8
= control target key start
LH: loop header
LB: loop body
LE: loop exit
PB: predicated region body
PF: predicated region fallthrough
CT: control target
= control target key end

     0   :  { %s458_s1 = inlined_call_operand.vmem [shape: f32[1,256,128], index: 1, kind: input, shape index: {}]   ;;  %s459_s0 = inlined_call_operand.vmem [shape: f32[1,32,256], index: 0, kind: input, shape index: {}]   ;;  %s460_s2 = inlined_call_operand.vmem [shape: f32[1,128], index: 2, kind: input, shape index: {}]   ;;  %s461_s3 = inlined_call_operand.vmem [shape: f32[1,128], index: 3, kind: input, shape index: {}]   ;;  %s462_s4 = inlined_call_operand.vmem [shape: f32[1,32,128], index: 4, kind: output, shape index: {}]  }
   0x1   :  { %v56_v0 = vld [vmem:[%s458_s1 + $0xf8] sm:$0xff]  ;;  %v55_v2 = vld [vmem:[%s458_s1 + $0xf0] sm:$0xff]  ;;  %v54_v4 = vld [vmem:[%s458_s1 + $0xe8] sm:$0xff] }
   0x2   :  { %v40_v1 = vld [vmem:[%s458_s1 + $0x78] sm:$0xff]  ;;  %217 = vmatprep.subr.mxu0 %v56_v0  ;;  %261 = vmatprep.subr.mxu1 %v56_v0  ;;  %v39_v3 = vld [vmem:[%s458_s1 + $0x70] sm:$0xff]  ;;  %v38_v5 = vld [vmem:[%s458_s1 + $0x68] sm:$0xff] }
   0x3   :  { %218 = vmatpush3.msra.mxu0 %v40_v1  ;;  %277 = vmatpush3.msra.mxu1 %v40_v1  ;;  %v53_v6 = vld [vmem:[%s458_s1 + $0xe0] sm:$0xff]  ;;  %v52_v8 = vld [vmem:[%s458_s1 + $0xd8] sm:$0xff]  ;;  %v51_v10 = vld [vmem:[%s458_s1 + $0xd0] sm:$0xff] }
   0x4   :  { %219 = vmatprep.subr.mxu0 %v55_v2  ;;  %262 = vmatprep.subr.mxu1 %v55_v2  ;;  %v37_v7 = vld [vmem:[%s458_s1 + $0x60] sm:$0xff]  ;;  %v36_v9 = vld [vmem:[%s458_s1 + $0x58] sm:$0xff]  ;;  %v35_v11 = vld [vmem:[%s458_s1 + $0x50] sm:$0xff] }
   0x5   :  { %220 = vmatpush3.msra.mxu0 %v39_v3  ;;  %278 = vmatpush3.msra.mxu1 %v39_v3  ;;  %v50_v12 = vld [vmem:[%s458_s1 + $0xc8] sm:$0xff]  ;;  %v49_v14 = vld [vmem:[%s458_s1 + $0xc0] sm:$0xff]  ;;  %v48_v16 = vld [vmem:[%s458_s1 + $0xb8] sm:$0xff] }
   0x6   :  { %221 = vmatprep.subr.mxu0 %v54_v4  ;;  %263 = vmatprep.subr.mxu1 %v54_v4  ;;  %v34_v13 = vld [vmem:[%s458_s1 + $0x48] sm:$0xff]  ;;  %v33_v15 = vld [vmem:[%s458_s1 + $0x40] sm:$0xff]  ;;  %v32_v17 = vld [vmem:[%s458_s1 + $0x38] sm:$0xff] }
   0x7   :  { %222 = vmatpush3.msra.mxu0 %v38_v5  ;;  %279 = vmatpush3.msra.mxu1 %v38_v5  ;;  %v47_v18 = vld [vmem:[%s458_s1 + $0xb0] sm:$0xff]  ;;  %v46_v20 = vld [vmem:[%s458_s1 + $0xa8] sm:$0xff]  ;;  %v45_v22 = vld [vmem:[%s458_s1 + $0xa0] sm:$0xff] }
   0x8   :  { %223 = vmatprep.subr.mxu0 %v53_v6  ;;  %264 = vmatprep.subr.mxu1 %v53_v6  ;;  %v31_v19 = vld [vmem:[%s458_s1 + $0x30] sm:$0xff]  ;;  %v30_v21 = vld [vmem:[%s458_s1 + $0x28] sm:$0xff]  ;;  %v29_v23 = vld [vmem:[%s458_s1 + $0x20] sm:$0xff] }
   0x9   :  { %224 = vmatpush3.msra.mxu0 %v37_v7  ;;  %280 = vmatpush3.msra.mxu1 %v37_v7  ;;  %v44_v24 = vld [vmem:[%s458_s1 + $0x98] sm:$0xff]  ;;  %v43_v26 = vld [vmem:[%s458_s1 + $0x90] sm:$0xff]  ;;  %v42_v28 = vld [vmem:[%s458_s1 + $0x88] sm:$0xff] }
   0xa   :  { %225 = vmatprep.subr.mxu0 %v52_v8  ;;  %265 = vmatprep.subr.mxu1 %v52_v8  ;;  %v28_v25 = vld [vmem:[%s458_s1 + $0x18] sm:$0xff]  ;;  %v27_v27 = vld [vmem:[%s458_s1 + $0x10] sm:$0xff]  ;;  %v26_v29 = vld [vmem:[%s458_s1 + $0x8] sm:$0xff] }
   0xb   :  { %226 = vmatpush3.msra.mxu0 %v36_v9  ;;  %281 = vmatpush3.msra.mxu1 %v36_v9  ;;  %v41_v30 = vld [vmem:[%s458_s1 + $0x80] sm:$0xff]  ;;  %v18_v31 = vld [vmem:[%s459_s0 + $0x8] sm:$0xff]  ;;  %v20_v35 = vld [vmem:[%s459_s0 + $0x18] sm:$0xff] }
   0xc   :  { %227 = vmatprep.subr.mxu0 %v51_v10  ;;  %266 = vmatprep.subr.mxu1 %v51_v10  ;;  %v25_v32 = vld [vmem:[%s458_s1] sm:$0xff]  ;;  %v22_v34 = vld [vmem:[%s459_s0 + $0x28] sm:$0xff]  ;;  %v24_v37 = vld [vmem:[%s459_s0 + $0x38] sm:$0xff] }
   0xd   :  { %228 = vmatpush3.msra.mxu0 %v35_v11  ;;  %282 = vmatpush3.msra.mxu1 %v35_v11  ;;  %v17_v33 = vld [vmem:[%s459_s0] sm:$0xff]  ;;  %v19_v38 = vld [vmem:[%s459_s0 + $0x10] sm:$0xff] }
   0xe   :  { %229 = vmatprep.subr.mxu0 %v50_v12  ;;  %267 = vmatprep.subr.mxu1 %v50_v12  ;;  %v21_v36 = vld [vmem:[%s459_s0 + $0x20] sm:$0xff]  ;;  %v23_v39 = vld [vmem:[%s459_s0 + $0x30] sm:$0xff] }
   0xf   :  { %230 = vmatpush3.msra.mxu0 %v34_v13  ;;  %283 = vmatpush3.msra.mxu1 %v34_v13 }
  0x10   :  { %231 = vmatprep.subr.mxu0 %v49_v14  ;;  %268 = vmatprep.subr.mxu1 %v49_v14 }
  0x11   :  { %232 = vmatpush3.msra.mxu0 %v33_v15  ;;  %284 = vmatpush3.msra.mxu1 %v33_v15 }
  0x12   :  { %233 = vmatprep.subr.mxu0 %v48_v16  ;;  %269 = vmatprep.subr.mxu1 %v48_v16 }
  0x13   :  { %234 = vmatpush3.msra.mxu0 %v32_v17  ;;  %285 = vmatpush3.msra.mxu1 %v32_v17  ;;  %v178_v17 = vlaneseq }
  0x14   :  { %235 = vmatprep.subr.mxu0 %v47_v18  ;;  %270 = vmatprep.subr.mxu1 %v47_v18 }
  0x15   :  { %236 = vmatpush3.msra.mxu0 %v31_v19  ;;  %286 = vmatpush3.msra.mxu1 %v31_v19  ;;  %v179_v18 = vshrl.u32 %v178_v17, 7  ;;  %v170_v19 = vld [vmem:[%s460_s2] sm:$0x1] }
  0x16   :  { %237 = vmatprep.subr.mxu0 %v46_v20  ;;  %271 = vmatprep.subr.mxu1 %v46_v20 }
  0x17   :  { %238 = vmatpush3.msra.mxu0 %v30_v21  ;;  %287 = vmatpush3.msra.mxu1 %v30_v21  ;;  %v180_v20 = vsub.s32 0, %v179_v18 }
  0x18   :  { %239 = vmatprep.subr.mxu0 %v45_v22  ;;  %272 = vmatprep.subr.mxu1 %v45_v22 }
  0x19   :  { %240 = vmatpush3.msra.mxu0 %v29_v23  ;;  %288 = vmatpush3.msra.mxu1 %v29_v23  ;;  %v174_v23 = vld [vmem:[%s461_s3] sm:$0x1] }
  0x1a   :  { %241 = vmatprep.subr.mxu0 %v44_v24  ;;  %273 = vmatprep.subr.mxu1 %v44_v24 }
  0x1b   :  { %242 = vmatpush3.msra.mxu0 %v28_v25  ;;  %289 = vmatpush3.msra.mxu1 %v28_v25 }
  0x1c   :  { %243 = vmatprep.subr.mxu0 %v43_v26  ;;  %274 = vmatprep.subr.mxu1 %v43_v26 }
  0x1d   :  { %244 = vmatpush3.msra.mxu0 %v27_v27  ;;  %290 = vmatpush3.msra.mxu1 %v27_v27 }
  0x1e   :  { %245 = vmatprep.subr.mxu0 %v42_v28  ;;  %275 = vmatprep.subr.mxu1 %v42_v28 }
  0x1f   :  { %246 = vmatpush3.msra.mxu0 %v26_v29  ;;  %291 = vmatpush3.msra.mxu1 %v26_v29 }
  0x20   :  { %247 = vmatprep.subr.mxu0 %v41_v30  ;;  %121 = vmatprep.mubr.f32.mxu0 %v18_v31 }
  0x21   :  { %248 = vmatpush3.msra.mxu0 %v25_v32  ;;  %276 = vmatprep.subr.mxu1 %v41_v30 }
  0x22   :  { %122 = vmatmul.mubr.f32.vlgmr.msra.gmra.mxu0 %v17_v33  ;;  %292 = vmatpush3.msra.mxu1 %v25_v32 }
  0x23   :  { %131 = vmatprep.mubr.f32.mxu1 %v22_v34  ;;  %126 = vmatprep.mubr.f32.mxu0 %v20_v35 }
  0x24   :  { %132 = vmatmul.mubr.f32.vlgmr.msra.gmra.mxu1 %v21_v36 }
  0x25   :  { %136 = vmatprep.mubr.f32.mxu1 %v24_v37 }
  0x26   :  { %127 = vmatmul.mubr.f32.gmra.mxu0 %v19_v38 }
  0x28   :  { %137 = vmatmul.mubr.f32.gmra.mxu1 %v23_v39 }
  0xe2   :  { %v249_v40 = vpop.f32.mrf.mxu0 }
  0xe4   :  { %v250_v41 = vpop.f32.mrf.mxu0  ;;  %v255_v42 = vpop.f32.mrf.mxu1 }
  0xe5   :  { %v251_v47 = vadd.f32 %v250_v41, %v249_v40 }
  0xe6   :  { %v252_v43 = vpop.f32.mrf.mxu0  ;;  %v256_v44 = vpop.f32.mrf.mxu1 }
  0xe7   :  { %v257_v50 = vadd.f32 %v256_v44, %v255_v42 }
  0xe8   :  { %v253_v45 = vpop.f32.mrf.mxu0  ;;  %v258_v46 = vpop.f32.mrf.mxu1 }
  0xe9   :  { %v254_v48 = vadd.f32 %v253_v45, %v252_v43 }
  0xea   :  { %v259_v49 = vpop.f32.mrf.mxu1 }
  0xeb   :  { %v142_v51 = vadd.f32 %v254_v48, %v251_v47  ;;  %v260_v52 = vadd.f32 %v259_v49, %v258_v46 }
  0xed   :  { %v143_v53 = vadd.f32 %v257_v50, %v142_v51 }
  0xef   :  { %v144_v54 = vadd.f32 %v260_v52, %v143_v53 }
  0xf1   :  { %v145_v55 = vrot.slane %v144_v54, 4 }
  0xf3   :  { %v146_v56 = vadd.f32 %v145_v55, %v144_v54 }
  0xf5   :  { %v147_v57 = vrot.slane %v146_v56, 2 }
  0xf7   :  { %v148_v58 = vadd.f32 %v147_v57, %v146_v56 }
  0xf9   :  { %v149_v59 = vrot.slane %v148_v58, 1 }
  0xfb   :  { %v150_v60 = vadd.f32 %v149_v59, %v148_v58 }
  0xfd   :  { %v151_v61 = vmul.f32 0.03125, %v150_v60 }
  0xff   :  { %v152_v62 = vsub.f32 %v251_v47, %v151_v61  ;;  %v153_v63 = vsub.f32 %v254_v48, %v151_v61  ;;  %v154_v0 = vsub.f32 %v257_v50, %v151_v61  ;;  %v155_v1 = vsub.f32 %v260_v52, %v151_v61 }
 0x101   :  { %v156_v2 = vmul.f32 %v152_v62, %v152_v62  ;;  %v157_v3 = vmul.f32 %v153_v63, %v153_v63  ;;  %v158_v4 = vmul.f32 %v154_v0, %v154_v0  ;;  %v159_v6 = vmul.f32 %v155_v1, %v155_v1 }
 0x103   :  { %v160_v5 = vadd.f32 %v157_v3, %v156_v2 }
 0x105   :  { %v161_v7 = vadd.f32 %v160_v5, %v158_v4 }
 0x107   :  { %v162_v8 = vadd.f32 %v161_v7, %v159_v6 }
 0x109   :  { %v163_v9 = vrot.slane %v162_v8, 4 }
 0x10b   :  { %v164_v10 = vadd.f32 %v163_v9, %v162_v8 }
 0x10d   :  { %v165_v11 = vrot.slane %v164_v10, 2 }
 0x10f   :  { %v166_v12 = vadd.f32 %v165_v11, %v164_v10 }
 0x111   :  { %v167_v13 = vrot.slane %v166_v12, 1 }
 0x113   :  { %v168_v14 = vadd.f32 %v167_v13, %v166_v12 }
 0x115   :  { %v169_v15 = vmul.f32 0.03125, %v168_v14 }
 0x117   :  { %v171_v16 = vadd.f32 1e-05, %v169_v15 }
 0x119   :  { %293 = vrsqrt.f32 %v171_v16 }
 0x126   :  { %v294_v21 = vpop.eup %293 }
 0x127   :  { %v173_v22 = vmul.f32 %v294_v21, %v170_v19 }
 0x129   :  { %v175_v24 = vmul.f32 %v173_v22, %v151_v61  ;;  %v181_v25 = vrot.slane %v173_v22, %v180_v20 }
 0x12b   :  { %v176_v26 = vsub.f32 %v174_v23, %v175_v24  ;;  %v183_v27 = vmul.f32 %v251_v47, %v181_v25  ;;  %v184_v28 = vmul.f32 %v254_v48, %v181_v25  ;;  %v185_v29 = vmul.f32 %v257_v50, %v181_v25 }
 0x12c   :  { %v186_v30 = vmul.f32 %v260_v52, %v181_v25 }
 0x12d   :  { %v191_v31 = vrot.slane %v176_v26, %v180_v20 }
 0x12f   :  { %v193_v32 = vadd.f32 %v191_v31, %v183_v27  ;;  %v194_v33 = vadd.f32 %v191_v31, %v184_v28  ;;  %v195_v34 = vadd.f32 %v191_v31, %v185_v29  ;;  %v196_v35 = vadd.f32 %v191_v31, %v186_v30 }
 0x131   :  { %vm197_vm0 = vcmp.ge.f32.partialorder %v193_v32, 0.0  ;;  %vm198_vm1 = vcmp.ge.f32.partialorder %v194_v33, 0.0  ;;  %vm199_vm2 = vcmp.ge.f32.partialorder %v195_v34, 0.0  ;;  %vm200_vm3 = vcmp.ge.f32.partialorder %v196_v35, 0.0 }
 0x132   :  { %v201_v36 = vmul.f32 0.01, %v193_v32  ;;  %v202_v37 = vmul.f32 0.01, %v194_v33  ;;  %v203_v38 = vmul.f32 0.01, %v195_v34 }
 0x133   :  { %v204_v39 = vmul.f32 0.01, %v196_v35 }
 0x134   :  { %v205_v40 = vsel %vm197_vm0, %v193_v32, %v201_v36  ;;  %v206_v41 = vsel %vm198_vm1, %v194_v33, %v202_v37  ;;  %v207_v42 = vsel %vm199_vm2, %v195_v34, %v203_v38 }
 0x135   :  { %v208_v43 = vsel %vm200_vm3, %v196_v35, %v204_v39  ;;  %209 = vst [vmem:[%s462_s4] sm:$0xff] %v205_v40  ;;  %210 = vst [vmem:[%s462_s4 + $0x8] sm:$0xff] %v206_v41 }
 0x136   :  { %211 = vst [vmem:[%s462_s4 + $0x10] sm:$0xff] %v207_v42  ;;  %212 = vst [vmem:[%s462_s4 + $0x18] sm:$0xff] %v208_v43 }

// kernel: generator_face_forward.9
= control target key start
LH: loop header
LB: loop body
LE: loop exit
PB: predicated region body
PF: predicated region fallthrough
CT: control target
= control target key end

     0   :  { %s1369_s1 = inlined_call_operand.vmem [shape: f32[4,128,128], index: 1, kind: input, shape index: {}]   ;;  %s1370_s0 = inlined_call_operand.vmem [shape: f32[4,32,128], index: 0, kind: input, shape index: {}]   ;;  %s1371_s2 = inlined_call_operand.vmem [shape: f32[1,128], index: 2, kind: input, shape index: {}]   ;;  %s1372_s3 = inlined_call_operand.vmem [shape: f32[1,128], index: 3, kind: input, shape index: {}]   ;;  %s1373_s4 = inlined_call_operand.vmem [shape: f32[4,32,128], index: 4, kind: output, shape index: {}]  }
   0x1   :  { %v36_v0 = vld [vmem:[%s1369_s1 + $0x78] sm:$0xff]  ;;  %v35_v2 = vld [vmem:[%s1369_s1 + $0x70] sm:$0xff]  ;;  %v34_v4 = vld [vmem:[%s1369_s1 + $0x68] sm:$0xff] }
   0x2   :  { %v664_v1 = vld [vmem:[%s1369_s1 + $0xf8] sm:$0xff]  ;;  %797 = vmatprep.subr.mxu0 %v36_v0  ;;  %v663_v3 = vld [vmem:[%s1369_s1 + $0xf0] sm:$0xff]  ;;  %v662_v5 = vld [vmem:[%s1369_s1 + $0xe8] sm:$0xff] }
   0x3   :  { %835 = vmatprep.subr.mxu1 %v664_v1  ;;  %798 = vmatpush3.msra.mxu0 %v36_v0  ;;  %v33_v6 = vld [vmem:[%s1369_s1 + $0x60] sm:$0xff]  ;;  %v32_v8 = vld [vmem:[%s1369_s1 + $0x58] sm:$0xff]  ;;  %v31_v10 = vld [vmem:[%s1369_s1 + $0x50] sm:$0xff] }
   0x4   :  { %836 = vmatpush3.msra.mxu1 %v664_v1  ;;  %799 = vmatprep.subr.mxu0 %v35_v2  ;;  %v661_v7 = vld [vmem:[%s1369_s1 + $0xe0] sm:$0xff]  ;;  %v660_v9 = vld [vmem:[%s1369_s1 + $0xd8] sm:$0xff]  ;;  %v659_v11 = vld [vmem:[%s1369_s1 + $0xd0] sm:$0xff] }
   0x5   :  { %837 = vmatprep.subr.mxu1 %v663_v3  ;;  %800 = vmatpush3.msra.mxu0 %v35_v2  ;;  %v30_v12 = vld [vmem:[%s1369_s1 + $0x48] sm:$0xff]  ;;  %v29_v14 = vld [vmem:[%s1369_s1 + $0x40] sm:$0xff]  ;;  %v28_v16 = vld [vmem:[%s1369_s1 + $0x38] sm:$0xff] }
   0x6   :  { %838 = vmatpush3.msra.mxu1 %v663_v3  ;;  %801 = vmatprep.subr.mxu0 %v34_v4  ;;  %v658_v13 = vld [vmem:[%s1369_s1 + $0xc8] sm:$0xff]  ;;  %v657_v15 = vld [vmem:[%s1369_s1 + $0xc0] sm:$0xff]  ;;  %v656_v17 = vld [vmem:[%s1369_s1 + $0xb8] sm:$0xff] }
   0x7   :  { %839 = vmatprep.subr.mxu1 %v662_v5  ;;  %802 = vmatpush3.msra.mxu0 %v34_v4  ;;  %v27_v18 = vld [vmem:[%s1369_s1 + $0x30] sm:$0xff]  ;;  %v26_v20 = vld [vmem:[%s1369_s1 + $0x28] sm:$0xff]  ;;  %v25_v22 = vld [vmem:[%s1369_s1 + $0x20] sm:$0xff] }
   0x8   :  { %840 = vmatpush3.msra.mxu1 %v662_v5  ;;  %803 = vmatprep.subr.mxu0 %v33_v6  ;;  %v655_v19 = vld [vmem:[%s1369_s1 + $0xb0] sm:$0xff]  ;;  %v654_v21 = vld [vmem:[%s1369_s1 + $0xa8] sm:$0xff]  ;;  %v653_v23 = vld [vmem:[%s1369_s1 + $0xa0] sm:$0xff] }
   0x9   :  { %841 = vmatprep.subr.mxu1 %v661_v7  ;;  %804 = vmatpush3.msra.mxu0 %v33_v6  ;;  %v24_v24 = vld [vmem:[%s1369_s1 + $0x18] sm:$0xff]  ;;  %v23_v26 = vld [vmem:[%s1369_s1 + $0x10] sm:$0xff]  ;;  %v22_v28 = vld [vmem:[%s1369_s1 + $0x8] sm:$0xff] }
   0xa   :  { %842 = vmatpush3.msra.mxu1 %v661_v7  ;;  %805 = vmatprep.subr.mxu0 %v32_v8  ;;  %v652_v25 = vld [vmem:[%s1369_s1 + $0x98] sm:$0xff]  ;;  %v651_v27 = vld [vmem:[%s1369_s1 + $0x90] sm:$0xff]  ;;  %v650_v29 = vld [vmem:[%s1369_s1 + $0x88] sm:$0xff] }
   0xb   :  { %843 = vmatprep.subr.mxu1 %v660_v9  ;;  %806 = vmatpush3.msra.mxu0 %v32_v8  ;;  %v21_v30 = vld [vmem:[%s1369_s1] sm:$0xff]  ;;  %v18_v34 = vld [vmem:[%s1370_s0 + $0x8] sm:$0xff]  ;;  %v684_v36 = vld [vmem:[%s1369_s1 + $0x178] sm:$0xff] }
   0xc   :  { %844 = vmatpush3.msra.mxu1 %v660_v9  ;;  %807 = vmatprep.subr.mxu0 %v31_v10  ;;  %v649_v31 = vld [vmem:[%s1369_s1 + $0x80] sm:$0xff]  ;;  %v646_v35 = vld [vmem:[%s1370_s0 + $0x28] sm:$0xff]  ;;  %v704_v37 = vld [vmem:[%s1369_s1 + $0x1f8] sm:$0xff] }
   0xd   :  { %845 = vmatprep.subr.mxu1 %v659_v11  ;;  %808 = vmatpush3.msra.mxu0 %v31_v10  ;;  %v17_v32 = vld [vmem:[%s1370_s0] sm:$0xff]  ;;  %v683_v38 = vld [vmem:[%s1369_s1 + $0x170] sm:$0xff]  ;;  %v20_v42 = vld [vmem:[%s1370_s0 + $0x18] sm:$0xff] }
   0xe   :  { %846 = vmatpush3.msra.mxu1 %v659_v11  ;;  %809 = vmatprep.subr.mxu0 %v30_v12  ;;  %v645_v33 = vld [vmem:[%s1370_s0 + $0x20] sm:$0xff]  ;;  %v703_v39 = vld [vmem:[%s1369_s1 + $0x1f0] sm:$0xff]  ;;  %v648_v43 = vld [vmem:[%s1370_s0 + $0x38] sm:$0xff] }
   0xf   :  { %847 = vmatprep.subr.mxu1 %v658_v13  ;;  %810 = vmatpush3.msra.mxu0 %v30_v12  ;;  %v19_v40 = vld [vmem:[%s1370_s0 + $0x10] sm:$0xff]  ;;  %v682_v44 = vld [vmem:[%s1369_s1 + $0x168] sm:$0xff]  ;;  %v681_v46 = vld [vmem:[%s1369_s1 + $0x160] sm:$0xff] }
  0x10   :  { %848 = vmatpush3.msra.mxu1 %v658_v13  ;;  %811 = vmatprep.subr.mxu0 %v29_v14  ;;  %v647_v41 = vld [vmem:[%s1370_s0 + $0x30] sm:$0xff]  ;;  %v702_v45 = vld [vmem:[%s1369_s1 + $0x1e8] sm:$0xff]  ;;  %v701_v47 = vld [vmem:[%s1369_s1 + $0x1e0] sm:$0xff] }
  0x11   :  { %849 = vmatprep.subr.mxu1 %v657_v15  ;;  %812 = vmatpush3.msra.mxu0 %v29_v14  ;;  %v680_v48 = vld [vmem:[%s1369_s1 + $0x158] sm:$0xff]  ;;  %v679_v50 = vld [vmem:[%s1369_s1 + $0x150] sm:$0xff]  ;;  %v678_v52 = vld [vmem:[%s1369_s1 + $0x148] sm:$0xff] }
  0x12   :  { %850 = vmatpush3.msra.mxu1 %v657_v15  ;;  %813 = vmatprep.subr.mxu0 %v28_v16  ;;  %v700_v49 = vld [vmem:[%s1369_s1 + $0x1d8] sm:$0xff]  ;;  %v699_v51 = vld [vmem:[%s1369_s1 + $0x1d0] sm:$0xff]  ;;  %v698_v53 = vld [vmem:[%s1369_s1 + $0x1c8] sm:$0xff] }
  0x13   :  { %851 = vmatprep.subr.mxu1 %v656_v17  ;;  %814 = vmatpush3.msra.mxu0 %v28_v16  ;;  %v677_v54 = vld [vmem:[%s1369_s1 + $0x140] sm:$0xff]  ;;  %v676_v56 = vld [vmem:[%s1369_s1 + $0x138] sm:$0xff]  ;;  %v675_v58 = vld [vmem:[%s1369_s1 + $0x130] sm:$0xff] }
  0x14   :  { %852 = vmatpush3.msra.mxu1 %v656_v17  ;;  %815 = vmatprep.subr.mxu0 %v27_v18  ;;  %v697_v55 = vld [vmem:[%s1369_s1 + $0x1c0] sm:$0xff]  ;;  %v696_v57 = vld [vmem:[%s1369_s1 + $0x1b8] sm:$0xff]  ;;  %v695_v59 = vld [vmem:[%s1369_s1 + $0x1b0] sm:$0xff] }
  0x15   :  { %853 = vmatprep.subr.mxu1 %v655_v19  ;;  %816 = vmatpush3.msra.mxu0 %v27_v18  ;;  %v674_v60 = vld [vmem:[%s1369_s1 + $0x128] sm:$0xff]  ;;  %v673_v62 = vld [vmem:[%s1369_s1 + $0x120] sm:$0xff]  ;;  %v672_v0 = vld [vmem:[%s1369_s1 + $0x118] sm:$0xff] }
  0x16   :  { %854 = vmatpush3.msra.mxu1 %v655_v19  ;;  %817 = vmatprep.subr.mxu0 %v26_v20  ;;  %v694_v61 = vld [vmem:[%s1369_s1 + $0x1a8] sm:$0xff]  ;;  %v693_v63 = vld [vmem:[%s1369_s1 + $0x1a0] sm:$0xff]  ;;  %v692_v1 = vld [vmem:[%s1369_s1 + $0x198] sm:$0xff] }
  0x17   :  { %855 = vmatprep.subr.mxu1 %v654_v21  ;;  %818 = vmatpush3.msra.mxu0 %v26_v20  ;;  %v671_v2 = vld [vmem:[%s1369_s1 + $0x110] sm:$0xff]  ;;  %v670_v4 = vld [vmem:[%s1369_s1 + $0x108] sm:$0xff]  ;;  %v669_v6 = vld [vmem:[%s1369_s1 + $0x100] sm:$0xff] }
  0x18   :  { %856 = vmatpush3.msra.mxu1 %v654_v21  ;;  %819 = vmatprep.subr.mxu0 %v25_v22  ;;  %v691_v3 = vld [vmem:[%s1369_s1 + $0x190] sm:$0xff]  ;;  %v690_v5 = vld [vmem:[%s1369_s1 + $0x188] sm:$0xff]  ;;  %v689_v7 = vld [vmem:[%s1369_s1 + $0x180] sm:$0xff] }
  0x19   :  { %857 = vmatprep.subr.mxu1 %v653_v23  ;;  %820 = vmatpush3.msra.mxu0 %v25_v22  ;;  %v665_v8 = vld [vmem:[%s1370_s0 + $0x40] sm:$0xff]  ;;  %v666_v10 = vld [vmem:[%s1370_s0 + $0x48] sm:$0xff]  ;;  %v667_v12 = vld [vmem:[%s1370_s0 + $0x50] sm:$0xff] }
  0x1a   :  { %858 = vmatpush3.msra.mxu1 %v653_v23  ;;  %821 = vmatprep.subr.mxu0 %v24_v24  ;;  %v685_v9 = vld [vmem:[%s1370_s0 + $0x60] sm:$0xff]  ;;  %v686_v11 = vld [vmem:[%s1370_s0 + $0x68] sm:$0xff]  ;;  %v687_v13 = vld [vmem:[%s1370_s0 + $0x70] sm:$0xff] }
  0x1b   :  { %859 = vmatprep.subr.mxu1 %v652_v25  ;;  %822 = vmatpush3.msra.mxu0 %v24_v24  ;;  %v668_v14 = vld [vmem:[%s1370_s0 + $0x58] sm:$0xff] }
  0x1c   :  { %860 = vmatpush3.msra.mxu1 %v652_v25  ;;  %823 = vmatprep.subr.mxu0 %v23_v26  ;;  %v688_v15 = vld [vmem:[%s1370_s0 + $0x78] sm:$0xff] }
  0x1d   :  { %861 = vmatprep.subr.mxu1 %v651_v27  ;;  %824 = vmatpush3.msra.mxu0 %v23_v26 }
  0x1e   :  { %862 = vmatpush3.msra.mxu1 %v651_v27  ;;  %825 = vmatprep.subr.mxu0 %v22_v28 }
  0x1f   :  { %863 = vmatprep.subr.mxu1 %v650_v29  ;;  %826 = vmatpush3.msra.mxu0 %v22_v28 }
  0x20   :  { %864 = vmatpush3.msra.mxu1 %v650_v29  ;;  %827 = vmatprep.subr.mxu0 %v21_v30 }
  0x21   :  { %865 = vmatprep.subr.mxu1 %v649_v31  ;;  %828 = vmatpush3.msra.mxu0 %v21_v30 }
  0x22   :  { %829 = vmatprep.mubr.f32.mxu0 %v17_v32  ;;  %866 = vmatpush3.msra.mxu1 %v649_v31 }
  0x23   :  { %867 = vmatprep.mubr.f32.mxu1 %v645_v33  ;;  %830 = vmatmul.mubr.f32.vlgmr.msra.gmra.mxu0 %v18_v34 }
  0x24   :  { %868 = vmatmul.mubr.f32.vlgmr.msra.gmra.mxu1 %v646_v35  ;;  %873 = vmatprep.subr.mxu0 %v684_v36 }
  0x25   :  { %911 = vmatprep.subr.mxu1 %v704_v37  ;;  %874 = vmatpush3.msra.mxu0 %v684_v36 }
  0x26   :  { %912 = vmatpush3.msra.mxu1 %v704_v37  ;;  %875 = vmatprep.subr.mxu0 %v683_v38 }
  0x27   :  { %913 = vmatprep.subr.mxu1 %v703_v39  ;;  %832 = vmatprep.mubr.f32.mxu0 %v19_v40 }
  0x28   :  { %870 = vmatprep.mubr.f32.mxu1 %v647_v41  ;;  %876 = vmatpush3.msra.mxu0 %v683_v38 }
  0x29   :  { %914 = vmatpush3.msra.mxu1 %v703_v39  ;;  %833 = vmatmul.mubr.f32.gmra.mxu0 %v20_v42 }
  0x2a   :  { %871 = vmatmul.mubr.f32.gmra.mxu1 %v648_v43  ;;  %877 = vmatprep.subr.mxu0 %v682_v44 }
  0x2b   :  { %915 = vmatprep.subr.mxu1 %v702_v45  ;;  %878 = vmatpush3.msra.mxu0 %v682_v44 }
  0x2c   :  { %916 = vmatpush3.msra.mxu1 %v702_v45  ;;  %879 = vmatprep.subr.mxu0 %v681_v46 }
  0x2d   :  { %917 = vmatprep.subr.mxu1 %v701_v47  ;;  %880 = vmatpush3.msra.mxu0 %v681_v46 }
  0x2e   :  { %918 = vmatpush3.msra.mxu1 %v701_v47  ;;  %881 = vmatprep.subr.mxu0 %v680_v48 }
  0x2f   :  { %919 = vmatprep.subr.mxu1 %v700_v49  ;;  %882 = vmatpush3.msra.mxu0 %v680_v48 }
  0x30   :  { %920 = vmatpush3.msra.mxu1 %v700_v49  ;;  %883 = vmatprep.subr.mxu0 %v679_v50 }
  0x31   :  { %921 = vmatprep.subr.mxu1 %v699_v51  ;;  %884 = vmatpush3.msra.mxu0 %v679_v50 }
  0x32   :  { %922 = vmatpush3.msra.mxu1 %v699_v51  ;;  %885 = vmatprep.subr.mxu0 %v678_v52 }
  0x33   :  { %923 = vmatprep.subr.mxu1 %v698_v53  ;;  %886 = vmatpush3.msra.mxu0 %v678_v52 }
  0x34   :  { %924 = vmatpush3.msra.mxu1 %v698_v53  ;;  %887 = vmatprep.subr.mxu0 %v677_v54 }
  0x35   :  { %925 = vmatprep.subr.mxu1 %v697_v55  ;;  %888 = vmatpush3.msra.mxu0 %v677_v54 }
  0x36   :  { %926 = vmatpush3.msra.mxu1 %v697_v55  ;;  %889 = vmatprep.subr.mxu0 %v676_v56 }
  0x37   :  { %927 = vmatprep.subr.mxu1 %v696_v57  ;;  %890 = vmatpush3.msra.mxu0 %v676_v56 }
  0x38   :  { %928 = vmatpush3.msra.mxu1 %v696_v57  ;;  %891 = vmatprep.subr.mxu0 %v675_v58 }
  0x39   :  { %929 = vmatprep.subr.mxu1 %v695_v59  ;;  %892 = vmatpush3.msra.mxu0 %v675_v58 }
  0x3a   :  { %930 = vmatpush3.msra.mxu1 %v695_v59  ;;  %893 = vmatprep.subr.mxu0 %v674_v60 }
  0x3b   :  { %931 = vmatprep.subr.mxu1 %v694_v61  ;;  %894 = vmatpush3.msra.mxu0 %v674_v60 }
  0x3c   :  { %932 = vmatpush3.msra.mxu1 %v694_v61  ;;  %895 = vmatprep.subr.mxu0 %v673_v62 }
  0x3d   :  { %933 = vmatprep.subr.mxu1 %v693_v63  ;;  %896 = vmatpush3.msra.mxu0 %v673_v62 }
  0x3e   :  { %934 = vmatpush3.msra.mxu1 %v693_v63  ;;  %897 = vmatprep.subr.mxu0 %v672_v0 }
  0x3f   :  { %935 = vmatprep.subr.mxu1 %v692_v1  ;;  %898 = vmatpush3.msra.mxu0 %v672_v0 }
  0x40   :  { %936 = vmatpush3.msra.mxu1 %v692_v1  ;;  %899 = vmatprep.subr.mxu0 %v671_v2 }
  0x41   :  { %937 = vmatprep.subr.mxu1 %v691_v3  ;;  %900 = vmatpush3.msra.mxu0 %v671_v2 }
  0x42   :  { %938 = vmatpush3.msra.mxu1 %v691_v3  ;;  %901 = vmatprep.subr.mxu0 %v670_v4 }
  0x43   :  { %939 = vmatprep.subr.mxu1 %v690_v5  ;;  %902 = vmatpush3.msra.mxu0 %v670_v4 }
  0x44   :  { %940 = vmatpush3.msra.mxu1 %v690_v5  ;;  %903 = vmatprep.subr.mxu0 %v669_v6 }
  0x45   :  { %941 = vmatprep.subr.mxu1 %v689_v7  ;;  %904 = vmatpush3.msra.mxu0 %v669_v6 }
  0x46   :  { %905 = vmatprep.mubr.f32.mxu0 %v665_v8  ;;  %942 = vmatpush3.msra.mxu1 %v689_v7 }
  0x47   :  { %943 = vmatprep.mubr.f32.mxu1 %v685_v9  ;;  %906 = vmatmul.mubr.f32.vlgmr.msra.gmra.mxu0 %v666_v10 }
  0x48   :  { %944 = vmatmul.mubr.f32.vlgmr.msra.gmra.mxu1 %v686_v11  ;;  %908 = vmatprep.mubr.f32.mxu0 %v667_v12 }
  0x49   :  { %946 = vmatprep.mubr.f32.mxu1 %v687_v13 }
  0x4b   :  { %909 = vmatmul.mubr.f32.gmra.mxu0 %v668_v14 }
  0x4c   :  { %947 = vmatmul.mubr.f32.gmra.mxu1 %v688_v15 }
  0xe3   :  { %v1216_v16 = vpop.f32.mrf.mxu0 }
  0xe4   :  { %v1218_v17 = vpop.f32.mrf.mxu1 }
  0xe5   :  { %v1220_v18 = vpop.f32.mrf.mxu0 }
  0xe6   :  { %v1222_v19 = vpop.f32.mrf.mxu1  ;;  %v443_v25 = vadd.f32 %v1216_v16, %v1220_v18 }
  0xe7   :  { %v452_v22 = vadd.f32 %v1218_v17, %v1222_v19 }
  0xe9   :  { %v1224_v20 = vpop.f32.mrf.mxu0 }
  0xea   :  { %v1226_v21 = vpop.f32.mrf.mxu1 }
  0xeb   :  { %v1230_v23 = vpop.f32.mrf.mxu0 }
  0xec   :  { %v1232_v24 = vpop.f32.mrf.mxu1  ;;  %v444_v26 = vadd.f32 %v443_v25, %v1230_v23 }
  0xed   :  { %v453_v27 = vadd.f32 %v452_v22, %v1232_v24 }
  0xee   :  { %v445_v28 = vadd.f32 %v1224_v20, %v444_v26 }
  0xef   :  { %v454_v29 = vadd.f32 %v1226_v21, %v453_v27 }
  0xf0   :  { %v446_v30 = vrot.slane %v445_v28, 4 }
  0xf1   :  { %v455_v31 = vrot.slane %v454_v29, 4 }
  0xf2   :  { %v447_v34 = vadd.f32 %v446_v30, %v445_v28 }
  0xf3   :  { %v456_v35 = vadd.f32 %v455_v31, %v454_v29 }
  0xf4   :  { %v448_v40 = vrot.slane %v447_v34, 2 }
  0xf5   :  { %v457_v41 = vrot.slane %v456_v35, 2 }
  0xf6   :  { %v449_v48 = vadd.f32 %v448_v40, %v447_v34 }
  0xf7   :  { %v458_v49 = vadd.f32 %v457_v41, %v456_v35 }
  0xf8   :  { %v450_v54 = vrot.slane %v449_v48, 1 }
  0xf9   :  { %v459_v55 = vrot.slane %v458_v49, 1 }
  0xfa   :  { %v451_v60 = vadd.f32 %v450_v54, %v449_v48 }
  0xfb   :  { %v460_v61 = vadd.f32 %v459_v55, %v458_v49 }
  0xfd   :  { %v461_v2 = vadd.f32 %v460_v61, %v451_v60 }
 0x107   :  { %v1240_v32 = vpop.f32.mrf.mxu0 }
 0x108   :  { %v1242_v33 = vpop.f32.mrf.mxu1 }
 0x109   :  { %v1244_v36 = vpop.f32.mrf.mxu0 }
 0x10a   :  { %v1246_v37 = vpop.f32.mrf.mxu1  ;;  %v462_v42 = vadd.f32 %v1240_v32, %v1244_v36 }
 0x10b   :  { %v1248_v38 = vpop.f32.mrf.mxu0  ;;  %v472_v43 = vadd.f32 %v1242_v33, %v1246_v37 }
 0x10c   :  { %v1250_v39 = vpop.f32.mrf.mxu1 }
 0x10d   :  { %v1256_v44 = vpop.f32.mrf.mxu0 }
 0x10e   :  { %v1258_v45 = vpop.f32.mrf.mxu1  ;;  %v463_v46 = vadd.f32 %v462_v42, %v1256_v44 }
 0x10f   :  { %v473_v47 = vadd.f32 %v472_v43, %v1258_v45 }
 0x110   :  { %v464_v50 = vadd.f32 %v1248_v38, %v463_v46 }
 0x111   :  { %v474_v51 = vadd.f32 %v1250_v39, %v473_v47 }
 0x112   :  { %v465_v52 = vrot.slane %v464_v50, 4 }
 0x113   :  { %v475_v53 = vrot.slane %v474_v51, 4 }
 0x114   :  { %v466_v56 = vadd.f32 %v465_v52, %v464_v50 }
 0x115   :  { %v476_v57 = vadd.f32 %v475_v53, %v474_v51 }
 0x116   :  { %v467_v58 = vrot.slane %v466_v56, 2 }
 0x117   :  { %v477_v59 = vrot.slane %v476_v57, 2 }
 0x118   :  { %v468_v62 = vadd.f32 %v467_v58, %v466_v56 }
 0x119   :  { %v478_v63 = vadd.f32 %v477_v59, %v476_v57 }
 0x11a   :  { %v469_v0 = vrot.slane %v468_v62, 1 }
 0x11b   :  { %v479_v1 = vrot.slane %v478_v63, 1 }
 0x11c   :  { %v470_v3 = vadd.f32 %v469_v0, %v468_v62 }
 0x11d   :  { %v480_v5 = vadd.f32 %v479_v1, %v478_v63 }
 0x11e   :  { %v471_v4 = vadd.f32 %v470_v3, %v461_v2 }
 0x120   :  { %v481_v6 = vadd.f32 %v480_v5, %v471_v4 }
 0x122   :  { %v1264_v7 = vmul.f32 0.0078125, %v481_v6 }
 0x124   :  { %v483_v8 = vsub.f32 %v1220_v18, %v1264_v7  ;;  %v484_v9 = vsub.f32 %v1216_v16, %v1264_v7  ;;  %v485_v10 = vsub.f32 %v1230_v23, %v1264_v7  ;;  %v486_v11 = vsub.f32 %v1224_v20, %v1264_v7 }
 0x125   :  { %v500_v12 = vsub.f32 %v1222_v19, %v1264_v7  ;;  %v501_v13 = vsub.f32 %v1218_v17, %v1264_v7  ;;  %v502_v14 = vsub.f32 %v1232_v24, %v1264_v7  ;;  %v503_v26 = vsub.f32 %v1226_v21, %v1264_v7 }
 0x126   :  { %v487_v15 = vmul.f32 %v483_v8, %v483_v8  ;;  %v488_v22 = vmul.f32 %v484_v9, %v484_v9  ;;  %v489_v25 = vmul.f32 %v485_v10, %v485_v10  ;;  %v490_v27 = vmul.f32 %v486_v11, %v486_v11 }
 0x127   :  { %v504_v28 = vmul.f32 %v500_v12, %v500_v12  ;;  %v505_v29 = vmul.f32 %v501_v13, %v501_v13  ;;  %v506_v30 = vmul.f32 %v502_v14, %v502_v14  ;;  %v518_v34 = vsub.f32 %v1244_v36, %v1264_v7 }
 0x128   :  { %v491_v31 = vadd.f32 %v488_v22, %v487_v15  ;;  %v519_v35 = vsub.f32 %v1240_v32, %v1264_v7  ;;  %v520_v40 = vsub.f32 %v1256_v44, %v1264_v7  ;;  %v521_v42 = vsub.f32 %v1248_v38, %v1264_v7 }
 0x129   :  { %v508_v41 = vadd.f32 %v505_v29, %v504_v28  ;;  %v536_v43 = vsub.f32 %v1246_v37, %v1264_v7  ;;  %v537_v46 = vsub.f32 %v1242_v33, %v1264_v7  ;;  %v507_v48 = vmul.f32 %v503_v26, %v503_v26 }
 0x12a   :  { %v492_v47 = vadd.f32 %v491_v31, %v489_v25  ;;  %v522_v49 = vmul.f32 %v518_v34, %v518_v34  ;;  %v523_v50 = vmul.f32 %v519_v35, %v519_v35  ;;  %v524_v52 = vmul.f32 %v520_v40, %v520_v40 }
 0x12b   :  { %v509_v51 = vadd.f32 %v508_v41, %v506_v30  ;;  %v538_v53 = vsub.f32 %v1258_v45, %v1264_v7  ;;  %v539_v54 = vsub.f32 %v1250_v39, %v1264_v7  ;;  %v540_v57 = vmul.f32 %v536_v43, %v536_v43 }
 0x12c   :  { %v493_v55 = vadd.f32 %v492_v47, %v490_v27  ;;  %v526_v56 = vadd.f32 %v523_v50, %v522_v49  ;;  %v541_v58 = vmul.f32 %v537_v46, %v537_v46  ;;  %v525_v60 = vmul.f32 %v521_v42, %v521_v42 }
 0x12d   :  { %v510_v59 = vadd.f32 %v509_v51, %v507_v48  ;;  %v542_v63 = vmul.f32 %v538_v53, %v538_v53  ;;  %v543_v4 = vmul.f32 %v539_v54, %v539_v54  ;;  %v563_v50 = vlaneseq }
 0x12e   :  { %v494_v61 = vrot.slane %v493_v55, 4  ;;  %v527_v62 = vadd.f32 %v526_v56, %v524_v52  ;;  %v544_v0 = vadd.f32 %v541_v58, %v540_v57  ;;  %v555_v52 = vld [vmem:[%s1371_s2] sm:$0x1] }
 0x12f   :  { %v511_v1 = vrot.slane %v510_v59, 4  ;;  %v564_v51 = vshrl.u32 %v563_v50, 7  ;;  %v559_v56 = vld [vmem:[%s1372_s3] sm:$0x1] }
 0x130   :  { %v495_v2 = vadd.f32 %v494_v61, %v493_v55  ;;  %v528_v3 = vadd.f32 %v527_v62, %v525_v60  ;;  %v545_v5 = vadd.f32 %v544_v0, %v542_v63 }
 0x131   :  { %v512_v6 = vadd.f32 %v511_v1, %v510_v59  ;;  %v565_v53 = vsub.s32 0, %v564_v51 }
 0x132   :  { %v496_v8 = vrot.slane %v495_v2, 2  ;;  %v529_v9 = vrot.slane %v528_v3, 4  ;;  %v546_v10 = vadd.f32 %v545_v5, %v543_v4 }
 0x133   :  { %v513_v11 = vrot.slane %v512_v6, 2 }
 0x134   :  { %v497_v12 = vadd.f32 %v496_v8, %v495_v2  ;;  %v530_v13 = vadd.f32 %v529_v9, %v528_v3  ;;  %v547_v14 = vrot.slane %v546_v10, 4 }
 0x135   :  { %v514_v15 = vadd.f32 %v513_v11, %v512_v6 }
 0x136   :  { %v498_v22 = vrot.slane %v497_v12, 1  ;;  %v531_v25 = vrot.slane %v530_v13, 2  ;;  %v548_v26 = vadd.f32 %v547_v14, %v546_v10 }
 0x137   :  { %v515_v27 = vrot.slane %v514_v15, 1 }
 0x138   :  { %v499_v28 = vadd.f32 %v498_v22, %v497_v12  ;;  %v532_v29 = vadd.f32 %v531_v25, %v530_v13  ;;  %v549_v30 = vrot.slane %v548_v26, 2 }
 0x139   :  { %v516_v31 = vadd.f32 %v515_v27, %v514_v15 }
 0x13a   :  { %v533_v34 = vrot.slane %v532_v29, 1  ;;  %v550_v35 = vadd.f32 %v549_v30, %v548_v26 }
 0x13b   :  { %v517_v40 = vadd.f32 %v516_v31, %v499_v28 }
 0x13c   :  { %v534_v41 = vadd.f32 %v533_v34, %v532_v29  ;;  %v551_v42 = vrot.slane %v550_v35, 1 }
 0x13e   :  { %v535_v43 = vadd.f32 %v534_v41, %v517_v40  ;;  %v552_v46 = vadd.f32 %v551_v42, %v550_v35 }
 0x140   :  { %v553_v47 = vadd.f32 %v552_v46, %v535_v43 }
 0x142   :  { %v554_v48 = vmul.f32 0.0078125, %v553_v47 }
 0x144   :  { %v556_v49 = vadd.f32 1e-05, %v554_v48 }
 0x146   :  { %949 = vrsqrt.f32 %v556_v49 }
 0x153   :  { %v950_v54 = vpop.eup %949 }
 0x154   :  { %v558_v55 = vmul.f32 %v950_v54, %v555_v52 }
 0x156   :  { %v560_v57 = vmul.f32 %v558_v55, %v1264_v7  ;;  %v566_v58 = vrot.slane %v558_v55, %v565_v53 }
 0x158   :  { %v561_v59 = vsub.f32 %v559_v56, %v560_v57  ;;  %v568_v60 = vmul.f32 %v566_v58, %v1220_v18  ;;  %v569_v61 = vmul.f32 %v1216_v16, %v566_v58  ;;  %v570_v62 = vmul.f32 %v566_v58, %v1230_v23 }
 0x159   :  { %v571_v63 = vmul.f32 %v1224_v20, %v566_v58  ;;  %v590_v0 = vmul.f32 %v566_v58, %v1222_v19  ;;  %v591_v1 = vmul.f32 %v1218_v17, %v566_v58  ;;  %v592_v2 = vmul.f32 %v566_v58, %v1232_v24 }
 0x15a   :  { %v576_v3 = vrot.slane %v561_v59, %v565_v53  ;;  %v593_v4 = vmul.f32 %v1226_v21, %v566_v58  ;;  %v607_v7 = vmul.f32 %v566_v58, %v1244_v36  ;;  %v608_v5 = vmul.f32 %v1240_v32, %v566_v58 }
 0x15b   :  { %v609_v18 = vmul.f32 %v566_v58, %v1256_v44  ;;  %v610_v16 = vmul.f32 %v1248_v38, %v566_v58  ;;  %v624_v23 = vmul.f32 %v566_v58, %v1246_v37  ;;  %v625_v20 = vmul.f32 %v1242_v33, %v566_v58 }
 0x15c   :  { %v578_v19 = vadd.f32 %v576_v3, %v568_v60  ;;  %v579_v6 = vadd.f32 %v576_v3, %v569_v61  ;;  %v580_v17 = vadd.f32 %v576_v3, %v570_v62  ;;  %v581_v8 = vadd.f32 %v576_v3, %v571_v63 }
 0x15d   :  { %v594_v24 = vadd.f32 %v590_v0, %v576_v3  ;;  %v595_v9 = vadd.f32 %v591_v1, %v576_v3  ;;  %v596_v10 = vadd.f32 %v592_v2, %v576_v3  ;;  %v597_v21 = vadd.f32 %v593_v4, %v576_v3 }
 0x15e   :  { %v582_v11 = vmax.f32 %v578_v19, 0.0  ;;  %v583_v36 = vmax.f32 %v579_v6, 0.0  ;;  %v584_v12 = vmax.f32 %v580_v17, 0.0  ;;  %v585_v32 = vmax.f32 %v581_v8, 0.0 }
 0x15f   :  { %v598_v13 = vmax.f32 %v594_v24, 0.0  ;;  %v599_v44 = vmax.f32 %v595_v9, 0.0  ;;  %v600_v14 = vmax.f32 %v596_v10, 0.0  ;;  %v601_v38 = vmax.f32 %v597_v21, 0.0 }
 0x160   :  { %586 = vst [vmem:[%s1373_s4] sm:$0xff] %v582_v11  ;;  %587 = vst [vmem:[%s1373_s4 + $0x8] sm:$0xff] %v583_v36  ;;  %v611_v33 = vadd.f32 %v607_v7, %v576_v3  ;;  %v612_v37 = vadd.f32 %v608_v5, %v576_v3  ;;  %v613_v15 = vadd.f32 %v609_v18, %v576_v3 }
 0x161   :  { %588 = vst [vmem:[%s1373_s4 + $0x10] sm:$0xff] %v584_v12  ;;  %589 = vst [vmem:[%s1373_s4 + $0x18] sm:$0xff] %v585_v32  ;;  %v614_v22 = vadd.f32 %v610_v16, %v576_v3  ;;  %v626_v25 = vmul.f32 %v566_v58, %v1258_v45  ;;  %v627_v26 = vmul.f32 %v1250_v39, %v566_v58 }
 0x162   :  { %705 = vst [vmem:[%s1373_s4 + $0x20] sm:$0xff] %v598_v13  ;;  %706 = vst [vmem:[%s1373_s4 + $0x28] sm:$0xff] %v599_v44  ;;  %v628_v27 = vadd.f32 %v624_v23, %v576_v3  ;;  %v629_v28 = vadd.f32 %v625_v20, %v576_v3  ;;  %v615_v29 = vmax.f32 %v611_v33, 0.0  ;;  %v616_v30 = vmax.f32 %v612_v37, 0.0 }
 0x163   :  { %707 = vst [vmem:[%s1373_s4 + $0x30] sm:$0xff] %v600_v14  ;;  %708 = vst [vmem:[%s1373_s4 + $0x38] sm:$0xff] %v601_v38  ;;  %v617_v31 = vmax.f32 %v613_v15, 0.0  ;;  %v618_v34 = vmax.f32 %v614_v22, 0.0  ;;  %v630_v35 = vadd.f32 %v626_v25, %v576_v3  ;;  %v631_v40 = vadd.f32 %v627_v26, %v576_v3 }
 0x164   :  { %v632_v41 = vmax.f32 %v628_v27, 0.0  ;;  %v633_v42 = vmax.f32 %v629_v28, 0.0  ;;  %709 = vst [vmem:[%s1373_s4 + $0x40] sm:$0xff] %v615_v29  ;;  %710 = vst [vmem:[%s1373_s4 + $0x48] sm:$0xff] %v616_v30 }
 0x165   :  { %711 = vst [vmem:[%s1373_s4 + $0x50] sm:$0xff] %v617_v31  ;;  %712 = vst [vmem:[%s1373_s4 + $0x58] sm:$0xff] %v618_v34  ;;  %v634_v39 = vmax.f32 %v630_v35, 0.0  ;;  %v635_v45 = vmax.f32 %v631_v40, 0.0 }
 0x166   :  { %713 = vst [vmem:[%s1373_s4 + $0x60] sm:$0xff] %v632_v41  ;;  %714 = vst [vmem:[%s1373_s4 + $0x68] sm:$0xff] %v633_v42 }
 0x167   :  { %715 = vst [vmem:[%s1373_s4 + $0x70] sm:$0xff] %v634_v39  ;;  %716 = vst [vmem:[%s1373_s4 + $0x78] sm:$0xff] %v635_v45 }

// kernel: generator_face_forward.10
= control target key start
LH: loop header
LB: loop body
LE: loop exit
PB: predicated region body
PF: predicated region fallthrough
CT: control target
= control target key end

     0   :  { %v1889_v0 = vmov 0.0   ;;  %vm73_vm0 = vcmask 523264   ;;  %s3486_s1 = inlined_call_operand.vmem [shape: f32[4,192,128], index: 1, kind: input, shape index: {}]   ;;  %s3487_s0 = inlined_call_operand.vmem [shape: f32[4,128,192], index: 0, kind: input, shape index: {}]   ;;  %s3488_s2 = inlined_call_operand.vmem [shape: f32[1,128], index: 2, kind: input, shape index: {}]   ;;  %s3489_s3 = inlined_call_operand.vmem [shape: f32[1,128], index: 3, kind: input, shape index: {}]   ;;  %s3490_s4 = inlined_call_operand.vmem [shape: f32[4,128,128], index: 4, kind: output, shape index: {}]  }
   0x1   :  { %122 = vmatprep.subr.mxu0 %v1889_v0  ;;  %373 = vmatprep.subr.mxu1 %v1889_v0  ;;  %v64_v1 = vld [vmem:[%s3486_s1 + $0x78] sm:$0xff]  ;;  %v63_v3 = vld [vmem:[%s3486_s1 + $0x70] sm:$0xff]  ;;  %v62_v5 = vld [vmem:[%s3486_s1 + $0x68] sm:$0xff] }
   0x2   :  { %v1669_v2 = vld [vmem:[%s3486_s1 + $0x138] sm:$0xff]  ;;  %123 = vmatpush1.msra.mxu0 %v64_v1  ;;  %v1668_v4 = vld [vmem:[%s3486_s1 + $0x130] sm:$0xff]  ;;  %v1667_v6 = vld [vmem:[%s3486_s1 + $0x128] sm:$0xff] }
   0x3   :  { %374 = vmatpush1.msra.mxu1 %v1669_v2  ;;  %124 = vmatprep.subr.mxu0 %v1889_v0  ;;  %v61_v7 = vld [vmem:[%s3486_s1 + $0x60] sm:$0xff]  ;;  %v60_v9 = vld [vmem:[%s3486_s1 + $0x58] sm:$0xff]  ;;  %v59_v11 = vld [vmem:[%s3486_s1 + $0x50] sm:$0xff] }
   0x4   :  { %375 = vmatprep.subr.mxu1 %v1889_v0  ;;  %125 = vmatpush1.msra.mxu0 %v63_v3  ;;  %v1666_v8 = vld [vmem:[%s3486_s1 + $0x120] sm:$0xff]  ;;  %v1665_v10 = vld [vmem:[%s3486_s1 + $0x118] sm:$0xff]  ;;  %v1664_v12 = vld [vmem:[%s3486_s1 + $0x110] sm:$0xff] }
   0x5   :  { %376 = vmatpush1.msra.mxu1 %v1668_v4  ;;  %126 = vmatprep.subr.mxu0 %v1889_v0  ;;  %v58_v13 = vld [vmem:[%s3486_s1 + $0x48] sm:$0xff]  ;;  %v57_v15 = vld [vmem:[%s3486_s1 + $0x40] sm:$0xff]  ;;  %v56_v17 = vld [vmem:[%s3486_s1 + $0x38] sm:$0xff] }
   0x6   :  { %377 = vmatprep.subr.mxu1 %v1889_v0  ;;  %127 = vmatpush1.msra.mxu0 %v62_v5  ;;  %v1663_v14 = vld [vmem:[%s3486_s1 + $0x108] sm:$0xff]  ;;  %v1662_v16 = vld [vmem:[%s3486_s1 + $0x100] sm:$0xff]  ;;  %v1661_v18 = vld [vmem:[%s3486_s1 + $0xf8] sm:$0xff] }
   0x7   :  { %378 = vmatpush1.msra.mxu1 %v1667_v6  ;;  %128 = vmatprep.subr.mxu0 %v1889_v0  ;;  %v55_v19 = vld [vmem:[%s3486_s1 + $0x30] sm:$0xff]  ;;  %v54_v21 = vld [vmem:[%s3486_s1 + $0x28] sm:$0xff]  ;;  %v53_v23 = vld [vmem:[%s3486_s1 + $0x20] sm:$0xff] }
   0x8   :  { %379 = vmatprep.subr.mxu1 %v1889_v0  ;;  %129 = vmatpush1.msra.mxu0 %v61_v7  ;;  %v1660_v20 = vld [vmem:[%s3486_s1 + $0xf0] sm:$0xff]  ;;  %v1659_v22 = vld [vmem:[%s3486_s1 + $0xe8] sm:$0xff]  ;;  %v1658_v24 = vld [vmem:[%s3486_s1 + $0xe0] sm:$0xff] }
   0x9   :  { %380 = vmatpush1.msra.mxu1 %v1666_v8  ;;  %130 = vmatprep.subr.mxu0 %v1889_v0  ;;  %v52_v25 = vld [vmem:[%s3486_s1 + $0x18] sm:$0xff]  ;;  %v51_v27 = vld [vmem:[%s3486_s1 + $0x10] sm:$0xff]  ;;  %v50_v29 = vld [vmem:[%s3486_s1 + $0x8] sm:$0xff] }
   0xa   :  { %381 = vmatprep.subr.mxu1 %v1889_v0  ;;  %131 = vmatpush1.msra.mxu0 %v60_v9  ;;  %v1657_v26 = vld [vmem:[%s3486_s1 + $0xd8] sm:$0xff]  ;;  %v1656_v28 = vld [vmem:[%s3486_s1 + $0xd0] sm:$0xff]  ;;  %v1655_v30 = vld [vmem:[%s3486_s1 + $0xc8] sm:$0xff] }
   0xb   :  { %382 = vmatpush1.msra.mxu1 %v1665_v10  ;;  %132 = vmatprep.subr.mxu0 %v1889_v0  ;;  %v49_v31 = vld [vmem:[%s3486_s1] sm:$0xff]  ;;  %v72_v33 = vld [vmem:[%s3486_s1 + $0xb8] sm:$0xff]  ;;  %v71_v35 = vld [vmem:[%s3486_s1 + $0xb0] sm:$0xff] }
   0xc   :  { %383 = vmatprep.subr.mxu1 %v1889_v0  ;;  %133 = vmatpush1.msra.mxu0 %v59_v11  ;;  %v1654_v32 = vld [vmem:[%s3486_s1 + $0xc0] sm:$0xff]  ;;  %v1677_v34 = vld [vmem:[%s3486_s1 + $0x178] sm:$0xff]  ;;  %v1676_v36 = vld [vmem:[%s3486_s1 + $0x170] sm:$0xff] }
   0xd   :  { %384 = vmatpush1.msra.mxu1 %v1664_v12  ;;  %134 = vmatprep.subr.mxu0 %v1889_v0  ;;  %v70_v37 = vld [vmem:[%s3486_s1 + $0xa8] sm:$0xff]  ;;  %v69_v39 = vld [vmem:[%s3486_s1 + $0xa0] sm:$0xff]  ;;  %v68_v41 = vld [vmem:[%s3486_s1 + $0x98] sm:$0xff] }
   0xe   :  { %385 = vmatprep.subr.mxu1 %v1889_v0  ;;  %135 = vmatpush1.msra.mxu0 %v58_v13  ;;  %v1675_v38 = vld [vmem:[%s3486_s1 + $0x168] sm:$0xff]  ;;  %v1674_v40 = vld [vmem:[%s3486_s1 + $0x160] sm:$0xff]  ;;  %v1673_v42 = vld [vmem:[%s3486_s1 + $0x158] sm:$0xff] }
   0xf   :  { %386 = vmatpush1.msra.mxu1 %v1663_v14  ;;  %136 = vmatprep.subr.mxu0 %v1889_v0  ;;  %v67_v43 = vld [vmem:[%s3486_s1 + $0x90] sm:$0xff]  ;;  %v66_v45 = vld [vmem:[%s3486_s1 + $0x88] sm:$0xff]  ;;  %v65_v47 = vld [vmem:[%s3486_s1 + $0x80] sm:$0xff] }
  0x10   :  { %387 = vmatprep.subr.mxu1 %v1889_v0  ;;  %137 = vmatpush1.msra.mxu0 %v57_v15  ;;  %v1672_v44 = vld [vmem:[%s3486_s1 + $0x150] sm:$0xff]  ;;  %v1671_v46 = vld [vmem:[%s3486_s1 + $0x148] sm:$0xff]  ;;  %v1670_v49 = vld [vmem:[%s3486_s1 + $0x140] sm:$0xff] }
  0x11   :  { %388 = vmatpush1.msra.mxu1 %v1662_v16  ;;  %138 = vmatprep.subr.mxu0 %v1889_v0  ;;  %v18_v48 = vld [vmem:[%s3487_s0 + $0x8] sm:$0xff]  ;;  %v17_v51 = vld [vmem:[%s3487_s0] sm:$0xff]  ;;  %v1741_v53 = vld [vmem:[%s3486_s1 + $0x1f8] sm:$0xff] }
  0x12   :  { %389 = vmatprep.subr.mxu1 %v1889_v0  ;;  %139 = vmatpush1.msra.mxu0 %v56_v17  ;;  %v1623_v50 = vld [vmem:[%s3487_s0 + $0x108] sm:$0xff]  ;;  %v1622_v52 = vld [vmem:[%s3487_s0 + $0x100] sm:$0xff]  ;;  %v20_v54 = vld [vmem:[%s3487_s0 + $0x18] sm:$0xff] }
  0x13   :  { %390 = vmatpush1.msra.mxu1 %v1661_v18  ;;  %140 = vmatprep.subr.mxu0 %v1889_v0  ;;  %v1625_v55 = vld [vmem:[%s3487_s0 + $0x118] sm:$0xff]  ;;  %v19_v57 = vld [vmem:[%s3487_s0 + $0x10] sm:$0xff]  ;;  %v22_v61 = vld [vmem:[%s3487_s0 + $0x28] sm:$0xff] }
  0x14   :  { %391 = vmatprep.subr.mxu1 %v1889_v0  ;;  %141 = vmatpush1.msra.mxu0 %v55_v19  ;;  %v1813_v56 = vld [vmem:[%s3486_s1 + $0x2b8] sm:$0xff]  ;;  %v1624_v58 = vld [vmem:[%s3487_s0 + $0x110] sm:$0xff]  ;;  %v1627_v62 = vld [vmem:[%s3487_s0 + $0x128] sm:$0xff] }
  0x15   :  { %392 = vmatpush1.msra.mxu1 %v1660_v20  ;;  %142 = vmatprep.subr.mxu0 %v1889_v0  ;;  %v1740_v59 = vld [vmem:[%s3486_s1 + $0x1f0] sm:$0xff]  ;;  %v1739_v63 = vld [vmem:[%s3486_s1 + $0x1e8] sm:$0xff]  ;;  %v21_v1 = vld [vmem:[%s3487_s0 + $0x20] sm:$0xff] }
  0x16   :  { %393 = vmatprep.subr.mxu1 %v1889_v0  ;;  %143 = vmatpush1.msra.mxu0 %v54_v21  ;;  %v1812_v60 = vld [vmem:[%s3486_s1 + $0x2b0] sm:$0xff]  ;;  %v1626_v2 = vld [vmem:[%s3487_s0 + $0x120] sm:$0xff]  ;;  %v1811_v4 = vld [vmem:[%s3486_s1 + $0x2a8] sm:$0xff] }
  0x17   :  { %394 = vmatpush1.msra.mxu1 %v1659_v22  ;;  %144 = vmatprep.subr.mxu0 %v1889_v0  ;;  %v1738_v3 = vld [vmem:[%s3486_s1 + $0x1e0] sm:$0xff]  ;;  %v24_v5 = vld [vmem:[%s3487_s0 + $0x38] sm:$0xff]  ;;  %v23_v8 = vld [vmem:[%s3487_s0 + $0x30] sm:$0xff] }
  0x18   :  { %395 = vmatprep.subr.mxu1 %v1889_v0  ;;  %145 = vmatpush1.msra.mxu0 %v53_v23  ;;  %v1629_v6 = vld [vmem:[%s3487_s0 + $0x138] sm:$0xff]  ;;  %v1810_v7 = vld [vmem:[%s3486_s1 + $0x2a0] sm:$0xff]  ;;  %v1628_v9 = vld [vmem:[%s3487_s0 + $0x130] sm:$0xff] }
  0x19   :  { %396 = vmatpush1.msra.mxu1 %v1658_v24  ;;  %146 = vmatprep.subr.mxu0 %v1889_v0  ;;  %v1737_v10 = vld [vmem:[%s3486_s1 + $0x1d8] sm:$0xff]  ;;  %v26_v12 = vld [vmem:[%s3487_s0 + $0x48] sm:$0xff]  ;;  %v1736_v14 = vld [vmem:[%s3486_s1 + $0x1d0] sm:$0xff] }
  0x1a   :  { %397 = vmatprep.subr.mxu1 %v1889_v0  ;;  %147 = vmatpush1.msra.mxu0 %v52_v25  ;;  %v1809_v11 = vld [vmem:[%s3486_s1 + $0x298] sm:$0xff]  ;;  %v1631_v13 = vld [vmem:[%s3487_s0 + $0x148] sm:$0xff]  ;;  %v25_v15 = vld [vmem:[%s3487_s0 + $0x40] sm:$0xff] }
  0x1b   :  { %398 = vmatpush1.msra.mxu1 %v1657_v26  ;;  %148 = vmatprep.subr.mxu0 %v1889_v0  ;;  %v1630_v16 = vld [vmem:[%s3487_s0 + $0x140] sm:$0xff]  ;;  %v1735_v17 = vld [vmem:[%s3486_s1 + $0x1c8] sm:$0xff]  ;;  %v1808_v18 = vld [vmem:[%s3486_s1 + $0x290] sm:$0xff] }
  0x1c   :  { %399 = vmatprep.subr.mxu1 %v1889_v0  ;;  %149 = vmatpush1.msra.mxu0 %v51_v27  ;;  %v28_v19 = vld [vmem:[%s3487_s0 + $0x58] sm:$0xff]  ;;  %v1807_v21 = vld [vmem:[%s3486_s1 + $0x288] sm:$0xff]  ;;  %v27_v22 = vld [vmem:[%s3487_s0 + $0x50] sm:$0xff] }
  0x1d   :  { %400 = vmatpush1.msra.mxu1 %v1656_v28  ;;  %150 = vmatprep.subr.mxu0 %v1889_v0  ;;  %v1633_v20 = vld [vmem:[%s3487_s0 + $0x158] sm:$0xff]  ;;  %v1632_v23 = vld [vmem:[%s3487_s0 + $0x150] sm:$0xff]  ;;  %v1734_v24 = vld [vmem:[%s3486_s1 + $0x1c0] sm:$0xff] }
  0x1e   :  { %401 = vmatprep.subr.mxu1 %v1889_v0  ;;  %151 = vmatpush1.msra.mxu0 %v50_v29  ;;  %v1806_v25 = vld [vmem:[%s3486_s1 + $0x280] sm:$0xff]  ;;  %v30_v26 = vld [vmem:[%s3487_s0 + $0x68] sm:$0xff]  ;;  %v1733_v28 = vld [vmem:[%s3486_s1 + $0x1b8] sm:$0xff] }
  0x1f   :  { %402 = vmatpush1.msra.mxu1 %v1655_v30  ;;  %152 = vmatprep.subr.mxu0 %v1889_v0  ;;  %v1635_v27 = vld [vmem:[%s3487_s0 + $0x168] sm:$0xff]  ;;  %v29_v29 = vld [vmem:[%s3487_s0 + $0x60] sm:$0xff] }
  0x20   :  { %403 = vmatprep.subr.mxu1 %v1889_v0  ;;  %153 = vmatpush1.msra.mxu0 %v49_v31  ;;  %v1634_v30 = vld [vmem:[%s3487_s0 + $0x160] sm:$0xff]  ;;  %v1732_v31 = vld [vmem:[%s3486_s1 + $0x1b0] sm:$0xff] }
  0x21   :  { %404 = vmatpush1.msra.mxu1 %v1654_v32  ;;  %170 = vmatprep.subr.mxu0 %v1889_v0  ;;  %v1805_v32 = vld [vmem:[%s3486_s1 + $0x278] sm:$0xff] }
  0x22   :  { %421 = vmatprep.subr.mxu1 %v1889_v0  ;;  %171 = vmatpush2.msra.mxu0 %v72_v33  ;;  %v32_v33 = vld [vmem:[%s3487_s0 + $0x78] sm:$0xff] }
  0x23   :  { %422 = vmatpush2.msra.mxu1 %v1677_v34  ;;  %172 = vmatprep.subr.mxu0 %v1889_v0  ;;  %v1637_v34 = vld [vmem:[%s3487_s0 + $0x178] sm:$0xff] }
  0x24   :  { %423 = vmatprep.subr.mxu1 %v1889_v0  ;;  %173 = vmatpush2.msra.mxu0 %v71_v35  ;;  %v1804_v35 = vld [vmem:[%s3486_s1 + $0x270] sm:$0xff] }
  0x25   :  { %424 = vmatpush2.msra.mxu1 %v1676_v36  ;;  %174 = vmatprep.subr.mxu0 %v1889_v0  ;;  %v31_v36 = vld [vmem:[%s3487_s0 + $0x70] sm:$0xff] }
  0x26   :  { %425 = vmatprep.subr.mxu1 %v1889_v0  ;;  %175 = vmatpush2.msra.mxu0 %v70_v37  ;;  %v1636_v37 = vld [vmem:[%s3487_s0 + $0x170] sm:$0xff] }
  0x27   :  { %426 = vmatpush2.msra.mxu1 %v1675_v38  ;;  %176 = vmatprep.subr.mxu0 %v1889_v0  ;;  %v1731_v38 = vld [vmem:[%s3486_s1 + $0x1a8] sm:$0xff] }
  0x28   :  { %427 = vmatprep.subr.mxu1 %v1889_v0  ;;  %177 = vmatpush2.msra.mxu0 %v69_v39  ;;  %v1803_v39 = vld [vmem:[%s3486_s1 + $0x268] sm:$0xff] }
  0x29   :  { %428 = vmatpush2.msra.mxu1 %v1674_v40  ;;  %178 = vmatprep.subr.mxu0 %v1889_v0  ;;  %v34_v40 = vld [vmem:[%s3487_s0 + $0x88] sm:$0xff] }
  0x2a   :  { %429 = vmatprep.subr.mxu1 %v1889_v0  ;;  %179 = vmatpush2.msra.mxu0 %v68_v41  ;;  %v1639_v41 = vld [vmem:[%s3487_s0 + $0x188] sm:$0xff] }
  0x2b   :  { %430 = vmatpush2.msra.mxu1 %v1673_v42  ;;  %180 = vmatprep.subr.mxu0 %v1889_v0  ;;  %v1730_v42 = vld [vmem:[%s3486_s1 + $0x1a0] sm:$0xff] }
  0x2c   :  { %431 = vmatprep.subr.mxu1 %v1889_v0  ;;  %181 = vmatpush2.msra.mxu0 %v67_v43  ;;  %v33_v43 = vld [vmem:[%s3487_s0 + $0x80] sm:$0xff] }
  0x2d   :  { %432 = vmatpush2.msra.mxu1 %v1672_v44  ;;  %182 = vmatprep.subr.mxu0 %v1889_v0  ;;  %v1638_v44 = vld [vmem:[%s3487_s0 + $0x180] sm:$0xff] }
  0x2e   :  { %433 = vmatprep.subr.mxu1 %v1889_v0  ;;  %183 = vmatpush2.msra.mxu0 %v66_v45  ;;  %v1729_v45 = vld [vmem:[%s3486_s1 + $0x198] sm:$0xff] }
  0x2f   :  { %434 = vmatpush2.msra.mxu1 %v1671_v46  ;;  %184 = vmatprep.subr.mxu0 %v1889_v0  ;;  %v1802_v46 = vld [vmem:[%s3486_s1 + $0x260] sm:$0xff] }
  0x30   :  { %435 = vmatprep.subr.mxu1 %v1889_v0  ;;  %185 = vmatpush2.msra.mxu0 %v65_v47  ;;  %v36_v47 = vld [vmem:[%s3487_s0 + $0x98] sm:$0xff] }
  0x31   :  { %1606 = vmatprep.mubr.msk.f32.mxu0 %vm73_vm0, %v18_v48  ;;  %436 = vmatpush2.msra.mxu1 %v1670_v49  ;;  %v1641_v48 = vld [vmem:[%s3487_s0 + $0x198] sm:$0xff] }
  0x32   :  { %1678 = vmatprep.mubr.msk.f32.mxu1 %vm73_vm0, %v1623_v50  ;;  %187 = vmatmul.mubr.f32.vlgmr.msra.gmra.mxu0 %v17_v51  ;;  %v1801_v49 = vld [vmem:[%s3486_s1 + $0x258] sm:$0xff]  ;;  %v35_v50 = vld [vmem:[%s3487_s0 + $0x90] sm:$0xff] }
  0x33   :  { %438 = vmatmul.mubr.f32.vlgmr.msra.gmra.mxu1 %v1622_v52  ;;  %624 = vmatprep.subr.mxu0 %v1889_v0  ;;  %v1640_v51 = vld [vmem:[%s3487_s0 + $0x190] sm:$0xff] }
  0x34   :  { %875 = vmatprep.subr.mxu1 %v1889_v0  ;;  %625 = vmatpush1.msra.mxu0 %v1741_v53  ;;  %v1728_v52 = vld [vmem:[%s3486_s1 + $0x190] sm:$0xff] }
  0x35   :  { %1607 = vmatprep.mubr.msk.f32.mxu0 %vm73_vm0, %v20_v54  ;;  %1679 = vmatprep.mubr.msk.f32.mxu1 %vm73_vm0, %v1625_v55  ;;  %v1800_v53 = vld [vmem:[%s3486_s1 + $0x250] sm:$0xff]  ;;  %v38_v54 = vld [vmem:[%s3487_s0 + $0xa8] sm:$0xff] }
  0x36   :  { %626 = vmatprep.subr.mxu0 %v1889_v0  ;;  %876 = vmatpush1.msra.mxu1 %v1813_v56  ;;  %v1643_v55 = vld [vmem:[%s3487_s0 + $0x1a8] sm:$0xff] }
  0x37   :  { %192 = vmatmul.mubr.f32.gmra.mxu0 %v19_v57  ;;  %443 = vmatmul.mubr.f32.gmra.mxu1 %v1624_v58  ;;  %v1727_v56 = vld [vmem:[%s3486_s1 + $0x188] sm:$0xff]  ;;  %v37_v57 = vld [vmem:[%s3487_s0 + $0xa0] sm:$0xff] }
  0x38   :  { %627 = vmatpush1.msra.mxu0 %v1740_v59  ;;  %877 = vmatprep.subr.mxu1 %v1889_v0  ;;  %v1642_v58 = vld [vmem:[%s3487_s0 + $0x1a0] sm:$0xff] }
  0x39   :  { %628 = vmatprep.subr.mxu0 %v1889_v0  ;;  %878 = vmatpush1.msra.mxu1 %v1812_v60  ;;  %v1726_v59 = vld [vmem:[%s3486_s1 + $0x180] sm:$0xff]  ;;  %v1799_v60 = vld [vmem:[%s3486_s1 + $0x248] sm:$0xff] }
  0x3a   :  { %1608 = vmatprep.mubr.msk.f32.mxu0 %vm73_vm0, %v22_v61  ;;  %1680 = vmatprep.mubr.msk.f32.mxu1 %vm73_vm0, %v1627_v62  ;;  %v40_v61 = vld [vmem:[%s3487_s0 + $0xb8] sm:$0xff] }
  0x3b   :  { %629 = vmatpush1.msra.mxu0 %v1739_v63  ;;  %448 = vmatmul.mubr.f32.gmra.mxu1 %v1626_v2  ;;  %v1645_v62 = vld [vmem:[%s3487_s0 + $0x1b8] sm:$0xff]  ;;  %v1798_v63 = vld [vmem:[%s3486_s1 + $0x240] sm:$0xff]  ;;  %v1644_v2 = vld [vmem:[%s3487_s0 + $0x1b0] sm:$0xff] }
  0x3c   :  { %197 = vmatmul.mubr.f32.gmra.mxu0 %v21_v1  ;;  %630 = vmatprep.subr.mxu0 %v1889_v0  ;;  %v39_v1 = vld [vmem:[%s3487_s0 + $0xb0] sm:$0xff] }
  0x3d   :  { %879 = vmatprep.subr.mxu1 %v1889_v0  ;;  %631 = vmatpush1.msra.mxu0 %v1738_v3  ;;  %v1749_v3 = vld [vmem:[%s3486_s1 + $0x238] sm:$0xff] }
  0x3e   :  { %880 = vmatpush1.msra.mxu1 %v1811_v4  ;;  %1609 = vmatprep.mubr.msk.f32.mxu0 %vm73_vm0, %v24_v5  ;;  %v1821_v4 = vld [vmem:[%s3486_s1 + $0x2f8] sm:$0xff]  ;;  %v42_v5 = vld [vmem:[%s3487_s0 + $0xc8] sm:$0xff] }
  0x3f   :  { %881 = vmatprep.subr.mxu1 %v1889_v0  ;;  %1681 = vmatprep.mubr.msk.f32.mxu1 %vm73_vm0, %v1629_v6  ;;  %v1647_v6 = vld [vmem:[%s3487_s0 + $0x1c8] sm:$0xff] }
  0x40   :  { %632 = vmatprep.subr.mxu0 %v1889_v0  ;;  %882 = vmatpush1.msra.mxu1 %v1810_v7  ;;  %v1748_v7 = vld [vmem:[%s3486_s1 + $0x230] sm:$0xff] }
  0x41   :  { %202 = vmatmul.mubr.f32.gmra.mxu0 %v23_v8  ;;  %453 = vmatmul.mubr.f32.gmra.mxu1 %v1628_v9  ;;  %v41_v8 = vld [vmem:[%s3487_s0 + $0xc0] sm:$0xff] }
  0x42   :  { %633 = vmatpush1.msra.mxu0 %v1737_v10  ;;  %883 = vmatprep.subr.mxu1 %v1889_v0  ;;  %v1646_v9 = vld [vmem:[%s3487_s0 + $0x1c0] sm:$0xff]  ;;  %v1747_v10 = vld [vmem:[%s3486_s1 + $0x228] sm:$0xff] }
  0x43   :  { %634 = vmatprep.subr.mxu0 %v1889_v0  ;;  %884 = vmatpush1.msra.mxu1 %v1809_v11  ;;  %v1820_v11 = vld [vmem:[%s3486_s1 + $0x2f0] sm:$0xff] }
  0x44   :  { %1610 = vmatprep.mubr.msk.f32.mxu0 %vm73_vm0, %v26_v12  ;;  %1682 = vmatprep.mubr.msk.f32.mxu1 %vm73_vm0, %v1631_v13  ;;  %v44_v12 = vld [vmem:[%s3487_s0 + $0xd8] sm:$0xff] }
  0x45   :  { %635 = vmatpush1.msra.mxu0 %v1736_v14  ;;  %458 = vmatmul.mubr.f32.gmra.mxu1 %v1630_v16  ;;  %v1649_v13 = vld [vmem:[%s3487_s0 + $0x1d8] sm:$0xff]  ;;  %v1819_v14 = vld [vmem:[%s3486_s1 + $0x2e8] sm:$0xff]  ;;  %v1648_v16 = vld [vmem:[%s3487_s0 + $0x1d0] sm:$0xff] }
  0x46   :  { %207 = vmatmul.mubr.f32.gmra.mxu0 %v25_v15  ;;  %636 = vmatprep.subr.mxu0 %v1889_v0  ;;  %v43_v15 = vld [vmem:[%s3487_s0 + $0xd0] sm:$0xff] }
  0x47   :  { %885 = vmatprep.subr.mxu1 %v1889_v0  ;;  %637 = vmatpush1.msra.mxu0 %v1735_v17  ;;  %v1746_v17 = vld [vmem:[%s3486_s1 + $0x220] sm:$0xff] }
  0x48   :  { %886 = vmatpush1.msra.mxu1 %v1808_v18  ;;  %1611 = vmatprep.mubr.msk.f32.mxu0 %vm73_vm0, %v28_v19  ;;  %v1818_v18 = vld [vmem:[%s3486_s1 + $0x2e0] sm:$0xff]  ;;  %v46_v19 = vld [vmem:[%s3487_s0 + $0xe8] sm:$0xff] }
  0x49   :  { %887 = vmatprep.subr.mxu1 %v1889_v0  ;;  %1683 = vmatprep.mubr.msk.f32.mxu1 %vm73_vm0, %v1633_v20  ;;  %v1651_v20 = vld [vmem:[%s3487_s0 + $0x1e8] sm:$0xff] }
  0x4a   :  { %638 = vmatprep.subr.mxu0 %v1889_v0  ;;  %888 = vmatpush1.msra.mxu1 %v1807_v21  ;;  %v1745_v21 = vld [vmem:[%s3486_s1 + $0x218] sm:$0xff] }
  0x4b   :  { %212 = vmatmul.mubr.f32.gmra.mxu0 %v27_v22  ;;  %463 = vmatmul.mubr.f32.gmra.mxu1 %v1632_v23  ;;  %v45_v22 = vld [vmem:[%s3487_s0 + $0xe0] sm:$0xff] }
  0x4c   :  { %639 = vmatpush1.msra.mxu0 %v1734_v24  ;;  %889 = vmatprep.subr.mxu1 %v1889_v0  ;;  %v1650_v23 = vld [vmem:[%s3487_s0 + $0x1e0] sm:$0xff]  ;;  %v1744_v24 = vld [vmem:[%s3486_s1 + $0x210] sm:$0xff] }
  0x4d   :  { %640 = vmatprep.subr.mxu0 %v1889_v0  ;;  %890 = vmatpush1.msra.mxu1 %v1806_v25  ;;  %v1817_v25 = vld [vmem:[%s3486_s1 + $0x2d8] sm:$0xff] }
  0x4e   :  { %1612 = vmatprep.mubr.msk.f32.mxu0 %vm73_vm0, %v30_v26  ;;  %1684 = vmatprep.mubr.msk.f32.mxu1 %vm73_vm0, %v1635_v27  ;;  %v48_v26 = vld [vmem:[%s3487_s0 + $0xf8] sm:$0xff] }
  0x4f   :  { %641 = vmatpush1.msra.mxu0 %v1733_v28  ;;  %468 = vmatmul.mubr.f32.gmra.mxu1 %v1634_v30  ;;  %v1653_v27 = vld [vmem:[%s3487_s0 + $0x1f8] sm:$0xff]  ;;  %v1816_v28 = vld [vmem:[%s3486_s1 + $0x2d0] sm:$0xff] }
  0x50   :  { %217 = vmatmul.mubr.f32.gmra.mxu0 %v29_v29  ;;  %642 = vmatprep.subr.mxu0 %v1889_v0  ;;  %v47_v29 = vld [vmem:[%s3487_s0 + $0xf0] sm:$0xff] }
  0x51   :  { %891 = vmatprep.subr.mxu1 %v1889_v0  ;;  %643 = vmatpush1.msra.mxu0 %v1732_v31  ;;  %v1652_v30 = vld [vmem:[%s3487_s0 + $0x1f0] sm:$0xff]  ;;  %v1743_v31 = vld [vmem:[%s3486_s1 + $0x208] sm:$0xff] }
  0x52   :  { %892 = vmatpush1.msra.mxu1 %v1805_v32  ;;  %1613 = vmatprep.mubr.msk.f32.mxu0 %vm73_vm0, %v32_v33  ;;  %v1815_v32 = vld [vmem:[%s3486_s1 + $0x2c8] sm:$0xff]  ;;  %v1742_v33 = vld [vmem:[%s3486_s1 + $0x200] sm:$0xff] }
  0x53   :  { %893 = vmatprep.subr.mxu1 %v1889_v0  ;;  %1685 = vmatprep.mubr.msk.f32.mxu1 %vm73_vm0, %v1637_v34  ;;  %v1695_v34 = vld [vmem:[%s3487_s0 + $0x208] sm:$0xff] }
  0x54   :  { %644 = vmatprep.subr.mxu0 %v1889_v0  ;;  %894 = vmatpush1.msra.mxu1 %v1804_v35  ;;  %v1814_v35 = vld [vmem:[%s3486_s1 + $0x2c0] sm:$0xff] }
  0x55   :  { %222 = vmatmul.mubr.f32.gmra.mxu0 %v31_v36  ;;  %473 = vmatmul.mubr.f32.gmra.mxu1 %v1636_v37  ;;  %v1767_v36 = vld [vmem:[%s3487_s0 + $0x308] sm:$0xff]  ;;  %v1694_v37 = vld [vmem:[%s3487_s0 + $0x200] sm:$0xff] }
  0x56   :  { %645 = vmatpush1.msra.mxu0 %v1731_v38  ;;  %895 = vmatprep.subr.mxu1 %v1889_v0  ;;  %v1766_v38 = vld [vmem:[%s3487_s0 + $0x300] sm:$0xff] }
  0x57   :  { %646 = vmatprep.subr.mxu0 %v1889_v0  ;;  %896 = vmatpush1.msra.mxu1 %v1803_v39  ;;  %v1697_v39 = vld [vmem:[%s3487_s0 + $0x218] sm:$0xff] }
  0x58   :  { %1614 = vmatprep.mubr.msk.f32.mxu0 %vm73_vm0, %v34_v40  ;;  %1686 = vmatprep.mubr.msk.f32.mxu1 %vm73_vm0, %v1639_v41  ;;  %v1769_v40 = vld [vmem:[%s3487_s0 + $0x318] sm:$0xff]  ;;  %v1768_v41 = vld [vmem:[%s3487_s0 + $0x310] sm:$0xff] }
  0x59   :  { %647 = vmatpush1.msra.mxu0 %v1730_v42  ;;  %478 = vmatmul.mubr.f32.gmra.mxu1 %v1638_v44  ;;  %v1699_v42 = vld [vmem:[%s3487_s0 + $0x228] sm:$0xff]  ;;  %v1698_v44 = vld [vmem:[%s3487_s0 + $0x220] sm:$0xff] }
  0x5a   :  { %227 = vmatmul.mubr.f32.gmra.mxu0 %v33_v43  ;;  %648 = vmatprep.subr.mxu0 %v1889_v0  ;;  %v1771_v43 = vld [vmem:[%s3487_s0 + $0x328] sm:$0xff] }
  0x5b   :  { %897 = vmatprep.subr.mxu1 %v1889_v0  ;;  %649 = vmatpush1.msra.mxu0 %v1729_v45  ;;  %v1770_v45 = vld [vmem:[%s3487_s0 + $0x320] sm:$0xff] }
  0x5c   :  { %898 = vmatpush1.msra.mxu1 %v1802_v46  ;;  %1615 = vmatprep.mubr.msk.f32.mxu0 %vm73_vm0, %v36_v47  ;;  %v1701_v46 = vld [vmem:[%s3487_s0 + $0x238] sm:$0xff] }
  0x5d   :  { %899 = vmatprep.subr.mxu1 %v1889_v0  ;;  %1687 = vmatprep.mubr.msk.f32.mxu1 %vm73_vm0, %v1641_v48  ;;  %v1773_v47 = vld [vmem:[%s3487_s0 + $0x338] sm:$0xff]  ;;  %v1700_v48 = vld [vmem:[%s3487_s0 + $0x230] sm:$0xff] }
  0x5e   :  { %650 = vmatprep.subr.mxu0 %v1889_v0  ;;  %900 = vmatpush1.msra.mxu1 %v1801_v49  ;;  %v1772_v49 = vld [vmem:[%s3487_s0 + $0x330] sm:$0xff] }
  0x5f   :  { %232 = vmatmul.mubr.f32.gmra.mxu0 %v35_v50  ;;  %483 = vmatmul.mubr.f32.gmra.mxu1 %v1640_v51  ;;  %v1703_v50 = vld [vmem:[%s3487_s0 + $0x248] sm:$0xff] }
  0x60   :  { %651 = vmatpush1.msra.mxu0 %v1728_v52  ;;  %901 = vmatprep.subr.mxu1 %v1889_v0  ;;  %v1775_v51 = vld [vmem:[%s3487_s0 + $0x348] sm:$0xff]  ;;  %v1702_v52 = vld [vmem:[%s3487_s0 + $0x240] sm:$0xff] }
  0x61   :  { %652 = vmatprep.subr.mxu0 %v1889_v0  ;;  %902 = vmatpush1.msra.mxu1 %v1800_v53  ;;  %v1774_v53 = vld [vmem:[%s3487_s0 + $0x340] sm:$0xff] }
  0x62   :  { %1616 = vmatprep.mubr.msk.f32.mxu0 %vm73_vm0, %v38_v54  ;;  %1688 = vmatprep.mubr.msk.f32.mxu1 %vm73_vm0, %v1643_v55  ;;  %v1705_v54 = vld [vmem:[%s3487_s0 + $0x258] sm:$0xff] }
  0x63   :  { %653 = vmatpush1.msra.mxu0 %v1727_v56  ;;  %488 = vmatmul.mubr.f32.gmra.mxu1 %v1642_v58  ;;  %v1777_v55 = vld [vmem:[%s3487_s0 + $0x358] sm:$0xff]  ;;  %v1704_v56 = vld [vmem:[%s3487_s0 + $0x250] sm:$0xff]  ;;  %v1707_v58 = vld [vmem:[%s3487_s0 + $0x268] sm:$0xff] }
  0x64   :  { %237 = vmatmul.mubr.f32.gmra.mxu0 %v37_v57  ;;  %654 = vmatprep.subr.mxu0 %v1889_v0  ;;  %v1776_v57 = vld [vmem:[%s3487_s0 + $0x350] sm:$0xff] }
  0x65   :  { %903 = vmatprep.subr.mxu1 %v1889_v0  ;;  %655 = vmatpush1.msra.mxu0 %v1726_v59  ;;  %v1779_v59 = vld [vmem:[%s3487_s0 + $0x368] sm:$0xff] }
  0x66   :  { %904 = vmatpush1.msra.mxu1 %v1799_v60  ;;  %1617 = vmatprep.mubr.msk.f32.mxu0 %vm73_vm0, %v40_v61  ;;  %v1706_v60 = vld [vmem:[%s3487_s0 + $0x260] sm:$0xff] }
  0x67   :  { %905 = vmatprep.subr.mxu1 %v1889_v0  ;;  %1689 = vmatprep.mubr.msk.f32.mxu1 %vm73_vm0, %v1645_v62  ;;  %v1778_v61 = vld [vmem:[%s3487_s0 + $0x360] sm:$0xff]  ;;  %v1709_v62 = vld [vmem:[%s3487_s0 + $0x278] sm:$0xff] }
  0x68   :  { %672 = vmatprep.subr.mxu0 %v1889_v0  ;;  %906 = vmatpush1.msra.mxu1 %v1798_v63  ;;  %v1781_v63 = vld [vmem:[%s3487_s0 + $0x378] sm:$0xff] }
  0x69   :  { %242 = vmatmul.mubr.f32.gmra.mxu0 %v39_v1  ;;  %493 = vmatmul.mubr.f32.gmra.mxu1 %v1644_v2  ;;  %v1708_v1 = vld [vmem:[%s3487_s0 + $0x270] sm:$0xff] }
  0x6a   :  { %673 = vmatpush2.msra.mxu0 %v1749_v3  ;;  %923 = vmatprep.subr.mxu1 %v1889_v0  ;;  %v1780_v2 = vld [vmem:[%s3487_s0 + $0x370] sm:$0xff]  ;;  %v1711_v3 = vld [vmem:[%s3487_s0 + $0x288] sm:$0xff] }
  0x6b   :  { %674 = vmatprep.subr.mxu0 %v1889_v0  ;;  %924 = vmatpush2.msra.mxu1 %v1821_v4  ;;  %v1783_v4 = vld [vmem:[%s3487_s0 + $0x388] sm:$0xff] }
  0x6c   :  { %1618 = vmatprep.mubr.msk.f32.mxu0 %vm73_vm0, %v42_v5  ;;  %1690 = vmatprep.mubr.msk.f32.mxu1 %vm73_vm0, %v1647_v6  ;;  %v1710_v5 = vld [vmem:[%s3487_s0 + $0x280] sm:$0xff] }
  0x6d   :  { %675 = vmatpush2.msra.mxu0 %v1748_v7  ;;  %498 = vmatmul.mubr.f32.gmra.mxu1 %v1646_v9  ;;  %v1782_v6 = vld [vmem:[%s3487_s0 + $0x380] sm:$0xff]  ;;  %v1713_v7 = vld [vmem:[%s3487_s0 + $0x298] sm:$0xff]  ;;  %v1712_v9 = vld [vmem:[%s3487_s0 + $0x290] sm:$0xff] }
  0x6e   :  { %247 = vmatmul.mubr.f32.gmra.mxu0 %v41_v8  ;;  %676 = vmatprep.subr.mxu0 %v1889_v0  ;;  %v1785_v8 = vld [vmem:[%s3487_s0 + $0x398] sm:$0xff] }
  0x6f   :  { %925 = vmatprep.subr.mxu1 %v1889_v0  ;;  %677 = vmatpush2.msra.mxu0 %v1747_v10  ;;  %v1784_v10 = vld [vmem:[%s3487_s0 + $0x390] sm:$0xff] }
  0x70   :  { %926 = vmatpush2.msra.mxu1 %v1820_v11  ;;  %1619 = vmatprep.mubr.msk.f32.mxu0 %vm73_vm0, %v44_v12  ;;  %v1715_v11 = vld [vmem:[%s3487_s0 + $0x2a8] sm:$0xff] }
  0x71   :  { %927 = vmatprep.subr.mxu1 %v1889_v0  ;;  %1691 = vmatprep.mubr.msk.f32.mxu1 %vm73_vm0, %v1649_v13  ;;  %v1787_v12 = vld [vmem:[%s3487_s0 + $0x3a8] sm:$0xff]  ;;  %v1714_v13 = vld [vmem:[%s3487_s0 + $0x2a0] sm:$0xff] }
  0x72   :  { %678 = vmatprep.subr.mxu0 %v1889_v0  ;;  %928 = vmatpush2.msra.mxu1 %v1819_v14  ;;  %v1786_v14 = vld [vmem:[%s3487_s0 + $0x3a0] sm:$0xff] }
  0x73   :  { %252 = vmatmul.mubr.f32.gmra.mxu0 %v43_v15  ;;  %503 = vmatmul.mubr.f32.gmra.mxu1 %v1648_v16  ;;  %v1717_v15 = vld [vmem:[%s3487_s0 + $0x2b8] sm:$0xff] }
  0x74   :  { %679 = vmatpush2.msra.mxu0 %v1746_v17  ;;  %929 = vmatprep.subr.mxu1 %v1889_v0  ;;  %v1789_v16 = vld [vmem:[%s3487_s0 + $0x3b8] sm:$0xff]  ;;  %v1716_v17 = vld [vmem:[%s3487_s0 + $0x2b0] sm:$0xff] }
  0x75   :  { %680 = vmatprep.subr.mxu0 %v1889_v0  ;;  %930 = vmatpush2.msra.mxu1 %v1818_v18  ;;  %v1788_v18 = vld [vmem:[%s3487_s0 + $0x3b0] sm:$0xff] }
  0x76   :  { %1620 = vmatprep.mubr.msk.f32.mxu0 %vm73_vm0, %v46_v19  ;;  %1692 = vmatprep.mubr.msk.f32.mxu1 %vm73_vm0, %v1651_v20  ;;  %v1719_v19 = vld [vmem:[%s3487_s0 + $0x2c8] sm:$0xff] }
  0x77   :  { %681 = vmatpush2.msra.mxu0 %v1745_v21  ;;  %508 = vmatmul.mubr.f32.gmra.mxu1 %v1650_v23  ;;  %v1791_v20 = vld [vmem:[%s3487_s0 + $0x3c8] sm:$0xff]  ;;  %v1718_v21 = vld [vmem:[%s3487_s0 + $0x2c0] sm:$0xff]  ;;  %v1721_v23 = vld [vmem:[%s3487_s0 + $0x2d8] sm:$0xff] }
  0x78   :  { %257 = vmatmul.mubr.f32.gmra.mxu0 %v45_v22  ;;  %682 = vmatprep.subr.mxu0 %v1889_v0  ;;  %v1790_v22 = vld [vmem:[%s3487_s0 + $0x3c0] sm:$0xff] }
  0x79   :  { %931 = vmatprep.subr.mxu1 %v1889_v0  ;;  %683 = vmatpush2.msra.mxu0 %v1744_v24  ;;  %v1793_v24 = vld [vmem:[%s3487_s0 + $0x3d8] sm:$0xff] }
  0x7a   :  { %932 = vmatpush2.msra.mxu1 %v1817_v25  ;;  %1621 = vmatprep.mubr.msk.f32.mxu0 %vm73_vm0, %v48_v26  ;;  %v1720_v25 = vld [vmem:[%s3487_s0 + $0x2d0] sm:$0xff] }
  0x7b   :  { %933 = vmatprep.subr.mxu1 %v1889_v0  ;;  %1693 = vmatprep.mubr.msk.f32.mxu1 %vm73_vm0, %v1653_v27  ;;  %v1792_v26 = vld [vmem:[%s3487_s0 + $0x3d0] sm:$0xff]  ;;  %v1723_v27 = vld [vmem:[%s3487_s0 + $0x2e8] sm:$0xff] }
  0x7c   :  { %684 = vmatprep.subr.mxu0 %v1889_v0  ;;  %934 = vmatpush2.msra.mxu1 %v1816_v28  ;;  %v1795_v28 = vld [vmem:[%s3487_s0 + $0x3e8] sm:$0xff] }
  0x7d   :  { %262 = vmatmul.mubr.f32.gmra.mxu0 %v47_v29  ;;  %513 = vmatmul.mubr.f32.gmra.mxu1 %v1652_v30  ;;  %v1722_v29 = vld [vmem:[%s3487_s0 + $0x2e0] sm:$0xff] }
  0x7e   :  { %685 = vmatpush2.msra.mxu0 %v1743_v31  ;;  %935 = vmatprep.subr.mxu1 %v1889_v0  ;;  %v1794_v30 = vld [vmem:[%s3487_s0 + $0x3e0] sm:$0xff]  ;;  %v1725_v31 = vld [vmem:[%s3487_s0 + $0x2f8] sm:$0xff] }
  0x7f   :  { %686 = vmatprep.subr.mxu0 %v1889_v0  ;;  %936 = vmatpush2.msra.mxu1 %v1815_v32  ;;  %v1797_v32 = vld [vmem:[%s3487_s0 + $0x3f8] sm:$0xff] }
  0x80   :  { %687 = vmatpush2.msra.mxu0 %v1742_v33  ;;  %937 = vmatprep.subr.mxu1 %v1889_v0  ;;  %v1696_v0 = vld [vmem:[%s3487_s0 + $0x210] sm:$0xff] }
  0x81   :  { %1750 = vmatprep.mubr.msk.f32.mxu0 %vm73_vm0, %v1695_v34  ;;  %938 = vmatpush2.msra.mxu1 %v1814_v35  ;;  %v1724_v33 = vld [vmem:[%s3487_s0 + $0x2f0] sm:$0xff] }
  0x82   :  { %1822 = vmatprep.mubr.msk.f32.mxu1 %vm73_vm0, %v1767_v36  ;;  %689 = vmatmul.mubr.f32.vlgmr.msra.gmra.mxu0 %v1694_v37  ;;  %v1796_v34 = vld [vmem:[%s3487_s0 + $0x3f0] sm:$0xff] }
  0x83   :  { %940 = vmatmul.mubr.f32.vlgmr.msra.gmra.mxu1 %v1766_v38  ;;  %1751 = vmatprep.mubr.msk.f32.mxu0 %vm73_vm0, %v1697_v39 }
  0x84   :  { %1823 = vmatprep.mubr.msk.f32.mxu1 %vm73_vm0, %v1769_v40 }
  0x86   :  { %694 = vmatmul.mubr.f32.gmra.mxu0 %v1696_v0 }
  0x87   :  { %945 = vmatmul.mubr.f32.gmra.mxu1 %v1768_v41  ;;  %1752 = vmatprep.mubr.msk.f32.mxu0 %vm73_vm0, %v1699_v42 }
  0x88   :  { %1824 = vmatprep.mubr.msk.f32.mxu1 %vm73_vm0, %v1771_v43 }
  0x8a   :  { %699 = vmatmul.mubr.f32.gmra.mxu0 %v1698_v44 }
  0x8b   :  { %950 = vmatmul.mubr.f32.gmra.mxu1 %v1770_v45  ;;  %1753 = vmatprep.mubr.msk.f32.mxu0 %vm73_vm0, %v1701_v46 }
  0x8c   :  { %1825 = vmatprep.mubr.msk.f32.mxu1 %vm73_vm0, %v1773_v47 }
  0x8e   :  { %704 = vmatmul.mubr.f32.gmra.mxu0 %v1700_v48 }
  0x8f   :  { %955 = vmatmul.mubr.f32.gmra.mxu1 %v1772_v49  ;;  %1754 = vmatprep.mubr.msk.f32.mxu0 %vm73_vm0, %v1703_v50 }
  0x90   :  { %1826 = vmatprep.mubr.msk.f32.mxu1 %vm73_vm0, %v1775_v51 }
  0x92   :  { %709 = vmatmul.mubr.f32.gmra.mxu0 %v1702_v52 }
  0x93   :  { %960 = vmatmul.mubr.f32.gmra.mxu1 %v1774_v53  ;;  %1755 = vmatprep.mubr.msk.f32.mxu0 %vm73_vm0, %v1705_v54 }
  0x94   :  { %1827 = vmatprep.mubr.msk.f32.mxu1 %vm73_vm0, %v1777_v55 }
  0x96   :  { %714 = vmatmul.mubr.f32.gmra.mxu0 %v1704_v56 }
  0x97   :  { %965 = vmatmul.mubr.f32.gmra.mxu1 %v1776_v57  ;;  %1756 = vmatprep.mubr.msk.f32.mxu0 %vm73_vm0, %v1707_v58 }
  0x98   :  { %1828 = vmatprep.mubr.msk.f32.mxu1 %vm73_vm0, %v1779_v59 }
  0x9a   :  { %719 = vmatmul.mubr.f32.gmra.mxu0 %v1706_v60 }
  0x9b   :  { %970 = vmatmul.mubr.f32.gmra.mxu1 %v1778_v61  ;;  %1757 = vmatprep.mubr.msk.f32.mxu0 %vm73_vm0, %v1709_v62 }
  0x9c   :  { %1829 = vmatprep.mubr.msk.f32.mxu1 %vm73_vm0, %v1781_v63 }
  0x9e   :  { %724 = vmatmul.mubr.f32.gmra.mxu0 %v1708_v1 }
  0x9f   :  { %975 = vmatmul.mubr.f32.gmra.mxu1 %v1780_v2  ;;  %1758 = vmatprep.mubr.msk.f32.mxu0 %vm73_vm0, %v1711_v3 }
  0xa0   :  { %1830 = vmatprep.mubr.msk.f32.mxu1 %vm73_vm0, %v1783_v4 }
  0xa2   :  { %729 = vmatmul.mubr.f32.gmra.mxu0 %v1710_v5 }
  0xa3   :  { %980 = vmatmul.mubr.f32.gmra.mxu1 %v1782_v6  ;;  %1759 = vmatprep.mubr.msk.f32.mxu0 %vm73_vm0, %v1713_v7 }
  0xa4   :  { %1831 = vmatprep.mubr.msk.f32.mxu1 %vm73_vm0, %v1785_v8 }
  0xa6   :  { %734 = vmatmul.mubr.f32.gmra.mxu0 %v1712_v9 }
  0xa7   :  { %985 = vmatmul.mubr.f32.gmra.mxu1 %v1784_v10  ;;  %1760 = vmatprep.mubr.msk.f32.mxu0 %vm73_vm0, %v1715_v11 }
  0xa8   :  { %1832 = vmatprep.mubr.msk.f32.mxu1 %vm73_vm0, %v1787_v12 }
  0xaa   :  { %739 = vmatmul.mubr.f32.gmra.mxu0 %v1714_v13 }
  0xab   :  { %990 = vmatmul.mubr.f32.gmra.mxu1 %v1786_v14  ;;  %1761 = vmatprep.mubr.msk.f32.mxu0 %vm73_vm0, %v1717_v15 }
  0xac   :  { %1833 = vmatprep.mubr.msk.f32.mxu1 %vm73_vm0, %v1789_v16 }
  0xae   :  { %744 = vmatmul.mubr.f32.gmra.mxu0 %v1716_v17 }
  0xaf   :  { %995 = vmatmul.mubr.f32.gmra.mxu1 %v1788_v18  ;;  %1762 = vmatprep.mubr.msk.f32.mxu0 %vm73_vm0, %v1719_v19 }
  0xb0   :  { %1834 = vmatprep.mubr.msk.f32.mxu1 %vm73_vm0, %v1791_v20 }
  0xb2   :  { %749 = vmatmul.mubr.f32.gmra.mxu0 %v1718_v21 }
  0xb3   :  { %1000 = vmatmul.mubr.f32.gmra.mxu1 %v1790_v22  ;;  %1763 = vmatprep.mubr.msk.f32.mxu0 %vm73_vm0, %v1721_v23 }
  0xb4   :  { %1835 = vmatprep.mubr.msk.f32.mxu1 %vm73_vm0, %v1793_v24 }
  0xb6   :  { %754 = vmatmul.mubr.f32.gmra.mxu0 %v1720_v25 }
  0xb7   :  { %1005 = vmatmul.mubr.f32.gmra.mxu1 %v1792_v26  ;;  %1764 = vmatprep.mubr.msk.f32.mxu0 %vm73_vm0, %v1723_v27 }
  0xb8   :  { %1836 = vmatprep.mubr.msk.f32.mxu1 %vm73_vm0, %v1795_v28 }
  0xba   :  { %759 = vmatmul.mubr.f32.gmra.mxu0 %v1722_v29 }
  0xbb   :  { %1010 = vmatmul.mubr.f32.gmra.mxu1 %v1794_v30  ;;  %1765 = vmatprep.mubr.msk.f32.mxu0 %vm73_vm0, %v1725_v31 }
  0xbc   :  { %1837 = vmatprep.mubr.msk.f32.mxu1 %vm73_vm0, %v1797_v32 }
  0xbe   :  { %764 = vmatmul.mubr.f32.gmra.mxu0 %v1724_v33 }
  0xbf   :  { %1015 = vmatmul.mubr.f32.gmra.mxu1 %v1796_v34 }
  0xf2   :  { %v2747_v35 = vpop.f32.mrf.mxu0 }
  0xf3   :  { %v2749_v36 = vpop.f32.mrf.mxu1 }
  0xf4   :  { %v190_v37 = vpop.f32.mrf.mxu0 }
  0xf5   :  { %v441_v38 = vpop.f32.mrf.mxu1 }
  0xf7   :  { %v2751_v39 = vpop.f32.mrf.mxu0  ;;  %v2753_v40 = vpop.f32.mrf.mxu1 }
  0xf9   :  { %v195_v0 = vpop.f32.mrf.mxu0  ;;  %v446_v41 = vpop.f32.mrf.mxu1 }
  0xfb   :  { %v2757_v43 = vpop.f32.mrf.mxu1 }
  0xfc   :  { %v2755_v42 = vpop.f32.mrf.mxu0 }
  0xfd   :  { %v451_v45 = vpop.f32.mrf.mxu1 }
  0xfe   :  { %v200_v44 = vpop.f32.mrf.mxu0 }
 0x101   :  { %v2759_v46 = vpop.f32.mrf.mxu0  ;;  %v2761_v47 = vpop.f32.mrf.mxu1 }
 0x103   :  { %v205_v48 = vpop.f32.mrf.mxu0  ;;  %v456_v49 = vpop.f32.mrf.mxu1 }
 0x105   :  { %v2765_v51 = vpop.f32.mrf.mxu1 }
 0x106   :  { %v2763_v50 = vpop.f32.mrf.mxu0 }
 0x107   :  { %v461_v53 = vpop.f32.mrf.mxu1 }
 0x108   :  { %v210_v52 = vpop.f32.mrf.mxu0 }
 0x10b   :  { %v2767_v54 = vpop.f32.mrf.mxu0  ;;  %v2769_v55 = vpop.f32.mrf.mxu1 }
 0x10d   :  { %v215_v56 = vpop.f32.mrf.mxu0  ;;  %v466_v57 = vpop.f32.mrf.mxu1 }
 0x10f   :  { %v2773_v59 = vpop.f32.mrf.mxu1 }
 0x110   :  { %v2771_v58 = vpop.f32.mrf.mxu0 }
 0x111   :  { %v471_v61 = vpop.f32.mrf.mxu1 }
 0x112   :  { %v220_v60 = vpop.f32.mrf.mxu0 }
 0x115   :  { %v2775_v62 = vpop.f32.mrf.mxu0  ;;  %v2777_v63 = vpop.f32.mrf.mxu1 }
 0x116   :  { %3554 = vst [vmem:[#allocation2_spill] sm:$0xff] %v2777_v63 }
 0x117   :  { %v225_v1 = vpop.f32.mrf.mxu0  ;;  %v476_v2 = vpop.f32.mrf.mxu1 }
 0x119   :  { %v2781_v4 = vpop.f32.mrf.mxu1 }
 0x11a   :  { %v2779_v3 = vpop.f32.mrf.mxu0  ;;  %3555 = vst [vmem:[#allocation3_spill] sm:$0xff] %v2781_v4 }
 0x11b   :  { %v481_v6 = vpop.f32.mrf.mxu1 }
 0x11c   :  { %v230_v5 = vpop.f32.mrf.mxu0 }
 0x11f   :  { %v2783_v7 = vpop.f32.mrf.mxu0  ;;  %v2785_v8 = vpop.f32.mrf.mxu1 }
 0x121   :  { %v235_v9 = vpop.f32.mrf.mxu0  ;;  %v486_v10 = vpop.f32.mrf.mxu1 }
 0x122   :  { %v1020_v9 = vadd.f32 %v2751_v39, %v2747_v35  ;;  %v1041_v10 = vadd.f32 %v2753_v40, %v2749_v36 }
 0x123   :  { %v2789_v12 = vpop.f32.mrf.mxu1 }
 0x124   :  { %v2787_v11 = vpop.f32.mrf.mxu0  ;;  %3556 = vst [vmem:[#allocation4_spill] sm:$0xff] %v2789_v12 }
 0x125   :  { %v491_v14 = vpop.f32.mrf.mxu1 }
 0x126   :  { %v240_v13 = vpop.f32.mrf.mxu0 }
 0x129   :  { %v2791_v15 = vpop.f32.mrf.mxu0  ;;  %v2793_v16 = vpop.f32.mrf.mxu1 }
 0x12b   :  { %v245_v17 = vpop.f32.mrf.mxu0  ;;  %v496_v18 = vpop.f32.mrf.mxu1 }
 0x12c   :  { %v1021_v17 = vadd.f32 %v1020_v9, %v2755_v42  ;;  %v1042_v18 = vadd.f32 %v1041_v10, %v2757_v43 }
 0x12d   :  { %v2797_v20 = vpop.f32.mrf.mxu1 }
 0x12e   :  { %v2795_v19 = vpop.f32.mrf.mxu0 }
 0x12f   :  { %v501_v22 = vpop.f32.mrf.mxu1 }
 0x130   :  { %v250_v21 = vpop.f32.mrf.mxu0 }
 0x133   :  { %v2799_v23 = vpop.f32.mrf.mxu0  ;;  %v2801_v24 = vpop.f32.mrf.mxu1 }
 0x134   :  { %3557 = vst [vmem:[#allocation5_spill] sm:$0xff] %v2801_v24 }
 0x135   :  { %v255_v25 = vpop.f32.mrf.mxu0  ;;  %v506_v26 = vpop.f32.mrf.mxu1 }
 0x136   :  { %v1022_v25 = vadd.f32 %v1021_v17, %v2759_v46  ;;  %v1043_v26 = vadd.f32 %v1042_v18, %v2761_v47 }
 0x137   :  { %v2805_v28 = vpop.f32.mrf.mxu1 }
 0x138   :  { %v2803_v27 = vpop.f32.mrf.mxu0  ;;  %3558 = vst [vmem:[#allocation6_spill] sm:$0xff] %v2805_v28 }
 0x139   :  { %v511_v30 = vpop.f32.mrf.mxu1 }
 0x13a   :  { %v260_v29 = vpop.f32.mrf.mxu0 }
 0x13d   :  { %v2807_v31 = vpop.f32.mrf.mxu0  ;;  %v2809_v32 = vpop.f32.mrf.mxu1 }
 0x13e   :  { %3559 = vst [vmem:[#allocation7_spill] sm:$0xff] %v2809_v32 }
 0x13f   :  { %v265_v33 = vpop.f32.mrf.mxu0  ;;  %v516_v34 = vpop.f32.mrf.mxu1 }
 0x140   :  { %v1023_v33 = vadd.f32 %v1022_v25, %v2763_v50  ;;  %v1044_v34 = vadd.f32 %v1043_v26, %v2765_v51 }
 0x142   :  { %v2811_v37 = vpop.f32.mrf.mxu0 }
 0x143   :  { %3560 = vst [vmem:[#allocation8_spill] sm:$0xff] %v2811_v37  ;;  %v2813_v38 = vpop.f32.mrf.mxu1 }
 0x144   :  { %3561 = vst [vmem:[#allocation9_spill] sm:$0xff] %v2813_v38  ;;  %v692_v0 = vpop.f32.mrf.mxu0 }
 0x145   :  { %v943_v41 = vpop.f32.mrf.mxu1 }
 0x146   :  { %v2815_v44 = vpop.f32.mrf.mxu0 }
 0x147   :  { %3562 = vst [vmem:[#allocation10_spill] sm:$0xff] %v2815_v44  ;;  %v2817_v45 = vpop.f32.mrf.mxu1 }
 0x148   :  { %3563 = vst [vmem:[#allocation11_spill] sm:$0xff] %v2817_v45  ;;  %v697_v48 = vpop.f32.mrf.mxu0 }
 0x149   :  { %v948_v49 = vpop.f32.mrf.mxu1  ;;  %v1024_v48 = vadd.f32 %v1023_v33, %v2767_v54 }
 0x14a   :  { %v2819_v52 = vpop.f32.mrf.mxu0  ;;  %v1045_v49 = vadd.f32 %v1044_v34, %v2769_v55 }
 0x14b   :  { %3564 = vst [vmem:[#allocation12_spill] sm:$0xff] %v2819_v52  ;;  %v2821_v53 = vpop.f32.mrf.mxu1 }
 0x14c   :  { %3565 = vst [vmem:[#allocation13_spill] sm:$0xff] %v2821_v53  ;;  %v702_v56 = vpop.f32.mrf.mxu0 }
 0x14d   :  { %v953_v57 = vpop.f32.mrf.mxu1 }
 0x14e   :  { %v2823_v60 = vpop.f32.mrf.mxu0 }
 0x14f   :  { %3566 = vst [vmem:[#allocation14_spill] sm:$0xff] %v2823_v60  ;;  %v2825_v61 = vpop.f32.mrf.mxu1 }
 0x150   :  { %3567 = vst [vmem:[#allocation15_spill] sm:$0xff] %v2825_v61  ;;  %v707_v1 = vpop.f32.mrf.mxu0 }
 0x151   :  { %v958_v2 = vpop.f32.mrf.mxu1  ;;  %v1025_v1 = vadd.f32 %v1024_v48, %v2771_v58  ;;  %v1063_v48 = vadd.f32 %v2815_v44, %v2811_v37 }
 0x152   :  { %v2827_v5 = vpop.f32.mrf.mxu0  ;;  %v1046_v2 = vadd.f32 %v1045_v49, %v2773_v59  ;;  %v1085_v49 = vadd.f32 %v2817_v45, %v2813_v38 }
 0x153   :  { %3568 = vst [vmem:[#allocation16_spill] sm:$0xff] %v2827_v5  ;;  %v2829_v6 = vpop.f32.mrf.mxu1 }
 0x154   :  { %3569 = vst [vmem:[#allocation17_spill] sm:$0xff] %v2829_v6  ;;  %v712_v13 = vpop.f32.mrf.mxu0 }
 0x155   :  { %v963_v14 = vpop.f32.mrf.mxu1  ;;  %v1026_v13 = vadd.f32 %v1025_v1, %v2775_v62 }
 0x156   :  { %v2837_v21 = vpop.f32.mrf.mxu0  ;;  %v1047_v14 = vadd.f32 %v1046_v2, %v2777_v63 }
 0x157   :  { %3570 = vst [vmem:[#allocation18_spill] sm:$0xff] %v2837_v21  ;;  %v2839_v22 = vpop.f32.mrf.mxu1  ;;  %v1027_v25 = vadd.f32 %v1026_v13, %v2779_v3  ;;  %v1064_v13 = vadd.f32 %v1063_v48, %v2819_v52 }
 0x158   :  { %3571 = vst [vmem:[#allocation19_spill] sm:$0xff] %v2839_v22  ;;  %v717_v29 = vpop.f32.mrf.mxu0  ;;  %v1048_v26 = vadd.f32 %v1047_v14, %v2781_v4  ;;  %v1086_v14 = vadd.f32 %v1085_v49, %v2821_v53 }
 0x159   :  { %v968_v30 = vpop.f32.mrf.mxu1  ;;  %v1028_v33 = vadd.f32 %v1027_v25, %v2783_v7  ;;  %v1065_v45 = vadd.f32 %v1064_v13, %v2823_v60 }
 0x15a   :  { %v2845_v0 = vpop.f32.mrf.mxu0  ;;  %v1049_v34 = vadd.f32 %v1048_v26, %v2785_v8 }
 0x15b   :  { %3572 = vst [vmem:[#allocation20_spill] sm:$0xff] %v2845_v0  ;;  %v2847_v41 = vpop.f32.mrf.mxu1  ;;  %v1029_v1 = vadd.f32 %v1028_v33, %v2787_v11  ;;  %v1066_v49 = vadd.f32 %v1065_v45, %v2827_v5 }
 0x15c   :  { %3573 = vst [vmem:[#allocation21_spill] sm:$0xff] %v2847_v41  ;;  %v722_v56 = vpop.f32.mrf.mxu0  ;;  %v1050_v2 = vadd.f32 %v1049_v34, %v2789_v12 }
 0x15d   :  { %v973_v57 = vpop.f32.mrf.mxu1  ;;  %v1030_v25 = vadd.f32 %v1029_v1, %v2791_v15  ;;  %v1067_v13 = vadd.f32 %v1066_v49, %v2837_v21 }
 0x15e   :  { %v2853_v9 = vpop.f32.mrf.mxu0  ;;  %v1051_v26 = vadd.f32 %v1050_v2, %v2793_v16 }
 0x15f   :  { %3574 = vst [vmem:[#allocation22_spill] sm:$0xff] %v2853_v9  ;;  %v2855_v10 = vpop.f32.mrf.mxu1  ;;  %v1031_v34 = vadd.f32 %v1030_v25, %v2795_v19 }
 0x160   :  { %3575 = vst [vmem:[#allocation23_spill] sm:$0xff] %v2855_v10  ;;  %v727_v17 = vpop.f32.mrf.mxu0  ;;  %v1052_v48 = vadd.f32 %v1051_v26, %v2797_v20 }
 0x161   :  { %v978_v18 = vpop.f32.mrf.mxu1  ;;  %v1032_v1 = vadd.f32 %v1031_v34, %v2799_v23 }
 0x162   :  { %v2861_v29 = vpop.f32.mrf.mxu0  ;;  %v1053_v2 = vadd.f32 %v1052_v48, %v2801_v24 }
 0x163   :  { %3576 = vst [vmem:[#allocation24_spill] sm:$0xff] %v2861_v29  ;;  %v2863_v30 = vpop.f32.mrf.mxu1  ;;  %v1033_v26 = vadd.f32 %v1032_v1, %v2803_v27 }
 0x164   :  { %3577 = vst [vmem:[#allocation25_spill] sm:$0xff] %v2863_v30  ;;  %v732_v56 = vpop.f32.mrf.mxu0  ;;  %v1054_v45 = vadd.f32 %v1053_v2, %v2805_v28 }
 0x165   :  { %v983_v57 = vpop.f32.mrf.mxu1  ;;  %v1087_v56 = vadd.f32 %v1086_v14, %v2825_v61  ;;  %v1034_v34 = vadd.f32 %v1033_v26, %v2807_v31 }
 0x166   :  { %v2875_v17 = vpop.f32.mrf.mxu0  ;;  %v1055_v48 = vadd.f32 %v1054_v45, %v2809_v32 }
 0x167   :  { %3578 = vst [vmem:[#allocation26_spill] sm:$0xff] %v2875_v17  ;;  %v2877_v18 = vpop.f32.mrf.mxu1  ;;  %v1088_v53 = vadd.f32 %v1087_v56, %v2829_v6  ;;  %v1068_v56 = vadd.f32 %v1067_v13, %v2845_v0 }
 0x168   :  { %3579 = vst [vmem:[#allocation27_spill] sm:$0xff] %v2877_v18  ;;  %v737_v57 = vpop.f32.mrf.mxu0 }
 0x169   :  { %v988_v33 = vpop.f32.mrf.mxu1  ;;  %v1089_v14 = vadd.f32 %v1088_v53, %v2839_v22  ;;  %v1069_v53 = vadd.f32 %v1068_v56, %v2853_v9  ;;  %v1056_v22 = vrot.slane %v1055_v48, 4 }
 0x16a   :  { %v2887_v38 = vpop.f32.mrf.mxu0 }
 0x16b   :  { %3580 = vst [vmem:[#allocation28_spill] sm:$0xff] %v2887_v38  ;;  %v2889_v12 = vpop.f32.mrf.mxu1  ;;  %v1090_v33 = vadd.f32 %v1089_v14, %v2847_v41  ;;  %v1070_v2 = vadd.f32 %v1069_v53, %v2861_v29  ;;  %v1035_v41 = vrot.slane %v1034_v34, 4 }
 0x16c   :  { %3581 = vst [vmem:[#allocation29_spill] sm:$0xff] %v2889_v12  ;;  %v742_v57 = vpop.f32.mrf.mxu0 }
 0x16d   :  { %v993_v25 = vpop.f32.mrf.mxu1  ;;  %v1091_v49 = vadd.f32 %v1090_v33, %v2855_v10  ;;  %v1071_v26 = vadd.f32 %v1070_v2, %v2875_v17 }
 0x16e   :  { %v2899_v6 = vpop.f32.mrf.mxu0 }
 0x16f   :  { %3582 = vst [vmem:[#allocation30_spill] sm:$0xff] %v2899_v6  ;;  %v2901_v61 = vpop.f32.mrf.mxu1  ;;  %v1092_v13 = vadd.f32 %v1091_v49, %v2863_v30  ;;  %v1072_v33 = vadd.f32 %v1071_v26, %v2887_v38  ;;  %v1036_v49 = vadd.f32 %v1035_v41, %v1034_v34  ;;  %v1057_v30 = vadd.f32 %v1056_v22, %v1055_v48 }
 0x170   :  { %3583 = vst [vmem:[#allocation31_spill] sm:$0xff] %v2901_v61  ;;  %v747_v57 = vpop.f32.mrf.mxu0 }
 0x171   :  { %v998_v1 = vpop.f32.mrf.mxu1  ;;  %v1093_v45 = vadd.f32 %v1092_v13, %v2877_v18  ;;  %v1073_v10 = vadd.f32 %v1072_v33, %v2899_v6 }
 0x172   :  { %v2909_v25 = vpop.f32.mrf.mxu0 }
 0x173   :  { %3584 = vst [vmem:[#allocation32_spill] sm:$0xff] %v2909_v25  ;;  %v2911_v14 = vpop.f32.mrf.mxu1  ;;  %v1094_v57 = vadd.f32 %v1093_v45, %v2889_v12  ;;  %v1074_v13 = vadd.f32 %v1073_v10, %v2909_v25  ;;  %v1037_v45 = vrot.slane %v1036_v49, 2  ;;  %v1058_v12 = vrot.slane %v1057_v30, 2 }
 0x174   :  { %3585 = vst [vmem:[#allocation33_spill] sm:$0xff] %v2911_v14  ;;  %v752_v32 = vpop.f32.mrf.mxu0 }
 0x175   :  { %v1003_v56 = vpop.f32.mrf.mxu1  ;;  %v1095_v29 = vadd.f32 %v1094_v57, %v2901_v61  ;;  %v1059_v57 = vadd.f32 %v1058_v12, %v1057_v30 }
 0x176   :  { %v2917_v1 = vpop.f32.mrf.mxu0 }
 0x177   :  { %3586 = vst [vmem:[#allocation34_spill] sm:$0xff] %v2917_v1  ;;  %v2919_v53 = vpop.f32.mrf.mxu1  ;;  %v1096_v32 = vadd.f32 %v1095_v29, %v2911_v14  ;;  %v1075_v18 = vadd.f32 %v1074_v13, %v2917_v1  ;;  %v1038_v29 = vadd.f32 %v1037_v45, %v1036_v49 }
 0x178   :  { %3587 = vst [vmem:[#allocation35_spill] sm:$0xff] %v2919_v53  ;;  %v757_v28 = vpop.f32.mrf.mxu0 }
 0x179   :  { %v1008_v2 = vpop.f32.mrf.mxu1  ;;  %v1097_v22 = vadd.f32 %v1096_v32, %v2919_v53 }
 0x17a   :  { %v2925_v56 = vpop.f32.mrf.mxu0 }
 0x17b   :  { %3588 = vst [vmem:[#allocation36_spill] sm:$0xff] %v2925_v56  ;;  %v2927_v26 = vpop.f32.mrf.mxu1  ;;  %v1076_v48 = vadd.f32 %v1075_v18, %v2925_v56 }
 0x17c   :  { %3589 = vst [vmem:[#allocation37_spill] sm:$0xff] %v2927_v26  ;;  %v762_v41 = vpop.f32.mrf.mxu0  ;;  %v1098_v28 = vadd.f32 %v1097_v22, %v2927_v26 }
 0x17d   :  { %v1013_v34 = vpop.f32.mrf.mxu1  ;;  %v1039_v41 = vrot.slane %v1038_v29, 1 }
 0x17e   :  { %v2933_v33 = vpop.f32.mrf.mxu0  ;;  %v1060_v34 = vrot.slane %v1059_v57, 1 }
 0x17f   :  { %3590 = vst [vmem:[#allocation38_spill] sm:$0xff] %v2933_v33  ;;  %v2935_v10 = vpop.f32.mrf.mxu1  ;;  %v1077_v2 = vadd.f32 %v1076_v48, %v2933_v33  ;;  %v1040_v26 = vadd.f32 %v1039_v41, %v1038_v29 }
 0x180   :  { %3591 = vst [vmem:[#allocation39_spill] sm:$0xff] %v2935_v10  ;;  %v1099_v14 = vadd.f32 %v1098_v28, %v2935_v10  ;;  %v767_v61 = vpop.f32.mrf.mxu0  ;;  %v1061_v25 = vadd.f32 %v1060_v34, %v1059_v57 }
 0x181   :  { %v1018_v13 = vpop.f32.mrf.mxu1  ;;  %v1078_v1 = vrot.slane %v1077_v2, 4 }
 0x182   :  { %v1100_v32 = vrot.slane %v1099_v14, 4  ;;  %v1062_v30 = vadd.f32 %v1061_v25, %v1040_v26 }
 0x183   :  { %v1079_v53 = vadd.f32 %v1078_v1, %v1077_v2 }
 0x184   :  { %v1101_v18 = vadd.f32 %v1100_v32, %v1099_v14 }
 0x185   :  { %v1080_v56 = vrot.slane %v1079_v53, 2 }
 0x186   :  { %v1102_v22 = vrot.slane %v1101_v18, 2 }
 0x187   :  { %v1081_v6 = vadd.f32 %v1080_v56, %v1079_v53 }
 0x188   :  { %v1103_v38 = vadd.f32 %v1102_v22, %v1101_v18 }
 0x189   :  { %v1082_v49 = vrot.slane %v1081_v6, 1 }
 0x18a   :  { %v1104_v12 = vrot.slane %v1103_v38, 1 }
 0x18b   :  { %v1083_v45 = vadd.f32 %v1082_v49, %v1081_v6 }
 0x18c   :  { %v1105_v28 = vadd.f32 %v1104_v12, %v1103_v38 }
 0x18d   :  { %v1084_v48 = vadd.f32 %v1083_v45, %v1062_v30 }
 0x18f   :  { %v1106_v61 = vadd.f32 %v1105_v28, %v1084_v48 }
 0x191   :  { %v2939_v13 = vmul.f32 0.001953125, %v1106_v61 }
 0x193   :  { %v1108_v10 = vsub.f32 %v2747_v35, %v2939_v13  ;;  %v1109_v14 = vsub.f32 %v2751_v39, %v2939_v13  ;;  %v1110_v1 = vsub.f32 %v2755_v42, %v2939_v13  ;;  %v1111_v25 = vsub.f32 %v2759_v46, %v2939_v13 }
 0x194   :  { %v1112_v38 = vsub.f32 %v2763_v50, %v2939_v13  ;;  %v1161_v29 = vsub.f32 %v2749_v36, %v2939_v13  ;;  %v1162_v57 = vsub.f32 %v2753_v40, %v2939_v13  ;;  %v1113_v2 = vsub.f32 %v2767_v54, %v2939_v13 }
 0x195   :  { %v1124_v53 = vmul.f32 %v1108_v10, %v1108_v10  ;;  %v1125_v56 = vmul.f32 %v1109_v14, %v1109_v14  ;;  %v1126_v6 = vmul.f32 %v1110_v1, %v1110_v1  ;;  %v1127_v32 = vmul.f32 %v1111_v25, %v1111_v25 }
 0x196   :  { %v1114_v41 = vsub.f32 %v2771_v58, %v2939_v13  ;;  %v1128_v34 = vmul.f32 %v1112_v38, %v1112_v38  ;;  %v1163_v22 = vsub.f32 %v2757_v43, %v2939_v13  ;;  %v1177_v49 = vmul.f32 %v1161_v29, %v1161_v29 }
 0x197   :  { %v1140_v26 = vadd.f32 %v1125_v56, %v1124_v53  ;;  %v1178_v12 = vmul.f32 %v1162_v57, %v1162_v57  ;;  %v1115_v30 = vsub.f32 %v2775_v62, %v2939_v13  ;;  %v1129_v45 = vmul.f32 %v1113_v2, %v1113_v2 }
 0x198   :  { %v1164_v28 = vsub.f32 %v2761_v47, %v2939_v13  ;;  %v1116_v61 = vsub.f32 %v2779_v3, %v2939_v13  ;;  %v1130_v14 = vmul.f32 %v1114_v41, %v1114_v41  ;;  %v1165_v53 = vsub.f32 %v2765_v51, %v2939_v13 }
 0x199   :  { %v1141_v10 = vadd.f32 %v1140_v26, %v1126_v6  ;;  %v1179_v56 = vmul.f32 %v1163_v22, %v1163_v22  ;;  %v1193_v25 = vadd.f32 %v1178_v12, %v1177_v49  ;;  %v1117_v38 = vsub.f32 %v2783_v7, %v2939_v13 }
 0x19a   :  { %v1131_v6 = vmul.f32 %v1115_v30, %v1115_v30  ;;  %v1166_v29 = vsub.f32 %v2769_v55, %v2939_v13  ;;  %v1180_v57 = vmul.f32 %v1164_v28, %v1164_v28  ;;  %v1215_v41 = vsub.f32 %v2811_v37, %v2939_v13 }
 0x19b   :  { %v1142_v18 = vadd.f32 %v1141_v10, %v1127_v32  ;;  %v1194_v2 = vadd.f32 %v1193_v25, %v1179_v56  ;;  %v1132_v32 = vmul.f32 %v1116_v61, %v1116_v61  ;;  %v1167_v22 = vsub.f32 %v2773_v59, %v2939_v13 }
 0x19c   :  { %v1181_v49 = vmul.f32 %v1165_v53, %v1165_v53  ;;  %v1119_v30 = vsub.f32 %v2791_v15, %v2939_v13  ;;  %v1121_v61 = vsub.f32 %v2799_v23, %v2939_v13  ;;  %v1217_v53 = vsub.f32 %v2819_v52, %v2939_v13  ;;  %v3592_v52 = vld [vmem:[#allocation4_spill] sm:$0xff] }
 0x19d   :  { %v1143_v48 = vadd.f32 %v1142_v18, %v1128_v34  ;;  %v1216_v34 = vsub.f32 %v2815_v44, %v2939_v13  ;;  %v1118_v18 = vsub.f32 %v2787_v11, %v2939_v13  ;;  %v1195_v12 = vadd.f32 %v1194_v2, %v1180_v57 }
 0x19e   :  { %v1169_v2 = vsub.f32 %v2781_v4, %v2939_v13  ;;  %v2997_v44 = vsub.f32 %v2807_v31, %v2939_v13  ;;  %v1171_v37 = vsub.f32 %v3592_v52, %v2939_v13 }
 0x19f   :  { %v1144_v1 = vadd.f32 %v1143_v48, %v1129_v45  ;;  %v1120_v45 = vsub.f32 %v2795_v19, %v2939_v13  ;;  %v1133_v48 = vmul.f32 %v1117_v38, %v1117_v38  ;;  %v1196_v56 = vadd.f32 %v1195_v12, %v1181_v49 }
 0x1a0   :  { %v1134_v57 = vmul.f32 %v1118_v18, %v1118_v18  ;;  %v1183_v38 = vmul.f32 %v1167_v22, %v1167_v22  ;;  %v1218_v49 = vsub.f32 %v2823_v60, %v2939_v13  ;;  %v1219_v22 = vsub.f32 %v2827_v5, %v2939_v13 }
 0x1a1   :  { %v1145_v26 = vadd.f32 %v1144_v1, %v1130_v14  ;;  %v1168_v14 = vsub.f32 %v2777_v63, %v2939_v13  ;;  %v1182_v1 = vmul.f32 %v1166_v29, %v1166_v29  ;;  %v1135_v29 = vmul.f32 %v1119_v30, %v1119_v30 }
 0x1a2   :  { %v1185_v30 = vmul.f32 %v1169_v2, %v1169_v2  ;;  %v1187_v2 = vmul.f32 %v1171_v37, %v1171_v37 }
 0x1a3   :  { %v1146_v10 = vadd.f32 %v1145_v26, %v1131_v6  ;;  %v1231_v6 = vmul.f32 %v1215_v41, %v1215_v41  ;;  %v1232_v26 = vmul.f32 %v1216_v34, %v1216_v34  ;;  %v1170_v41 = vsub.f32 %v2785_v8, %v2939_v13 }
 0x1a4   :  { %v1184_v34 = vmul.f32 %v1168_v14, %v1168_v14 }
 0x1a5   :  { %v1147_v28 = vadd.f32 %v1146_v10, %v1132_v32  ;;  %v1197_v32 = vadd.f32 %v1196_v56, %v1182_v1  ;;  %v1122_v10 = vsub.f32 %v2803_v27, %v2939_v13  ;;  %v1247_v1 = vadd.f32 %v1232_v26, %v1231_v6 }
 0x1a6   :  { %v1137_v56 = vmul.f32 %v1121_v61, %v1121_v61  ;;  %v1173_v61 = vsub.f32 %v2797_v20, %v2939_v13  ;;  %v1235_v6 = vmul.f32 %v1219_v22, %v1219_v22  ;;  %v3595_v22 = vld [vmem:[#allocation6_spill] sm:$0xff] }
 0x1a7   :  { %v1148_v25 = vadd.f32 %v1147_v28, %v1133_v48  ;;  %v1198_v18 = vadd.f32 %v1197_v32, %v1183_v38  ;;  %v1136_v48 = vmul.f32 %v1120_v45, %v1120_v45  ;;  %v1233_v28 = vmul.f32 %v1217_v53, %v1217_v53 }
 0x1a8   :  { %v1138_v63 = vmul.f32 %v1122_v10, %v1122_v10  ;;  %v1172_v45 = vsub.f32 %v2793_v16, %v2939_v13  ;;  %v1186_v38 = vmul.f32 %v1170_v41, %v1170_v41  ;;  %v1221_v53 = vsub.f32 %v2845_v0, %v2939_v13 }
 0x1a9   :  { %v1149_v12 = vadd.f32 %v1148_v25, %v1134_v57  ;;  %v1199_v4 = vadd.f32 %v1198_v18, %v1184_v34  ;;  %v1220_v25 = vsub.f32 %v2837_v21, %v2939_v13  ;;  %v1234_v57 = vmul.f32 %v1218_v49, %v1218_v49  ;;  %v3593_v34 = vld [vmem:[#allocation9_spill] sm:$0xff] }
 0x1aa   :  { %v1248_v60 = vadd.f32 %v1247_v1, %v1233_v28  ;;  %v1269_v49 = vsub.f32 %v3593_v34, %v2939_v13  ;;  %v1174_v41 = vsub.f32 %v2801_v24, %v2939_v13  ;;  %v1188_v37 = vmul.f32 %v1172_v45, %v1172_v45  ;;  %v3597_v21 = vld [vmem:[#allocation13_spill] sm:$0xff] }
 0x1ab   :  { %v1150_v14 = vadd.f32 %v1149_v12, %v1135_v29  ;;  %v1200_v32 = vadd.f32 %v1199_v4, %v1185_v30  ;;  %v3594_v29 = vld [vmem:[#allocation11_spill] sm:$0xff]  ;;  %v1222_v4 = vsub.f32 %v2853_v9, %v2939_v13  ;;  %v1236_v18 = vmul.f32 %v1220_v25, %v1220_v25 }
 0x1ac   :  { %v1249_v26 = vadd.f32 %v1248_v60, %v1234_v57  ;;  %v1270_v12 = vsub.f32 %v3594_v29, %v2939_v13  ;;  %v1175_v60 = vsub.f32 %v3595_v22, %v2939_v13  ;;  %v1189_v57 = vmul.f32 %v1173_v61, %v1173_v61  ;;  %v3598_v25 = vld [vmem:[#allocation7_spill] sm:$0xff] }
 0x1ad   :  { %v1201_v10 = vadd.f32 %v1200_v32, %v1186_v38  ;;  %v1151_v1 = vadd.f32 %v1150_v14, %v1136_v48  ;;  %v3596_v38 = vld [vmem:[#allocation24_spill] sm:$0xff]  ;;  %v1237_v34 = vmul.f32 %v1221_v53, %v1221_v53  ;;  %v1271_v5 = vsub.f32 %v3597_v21, %v2939_v13  ;;  %v3599_v53 = vld [vmem:[#allocation15_spill] sm:$0xff]  ;;  %v3601_v21 = vld [vmem:[#allocation17_spill] sm:$0xff] }
 0x1ae   :  { %v1250_v28 = vadd.f32 %v1249_v26, %v1235_v6  ;;  %v1223_v32 = vsub.f32 %v3596_v38, %v2939_v13  ;;  %v1285_v24 = vmul.f32 %v1269_v49, %v1269_v49  ;;  %v1286_v9 = vmul.f32 %v1270_v12, %v1270_v12 }
 0x1af   :  { %v1202_v30 = vadd.f32 %v1201_v10, %v1187_v2  ;;  %v1176_v48 = vsub.f32 %v3598_v25, %v2939_v13  ;;  %v1224_v14 = vsub.f32 %v2875_v17, %v2939_v13  ;;  %v1238_v45 = vmul.f32 %v1222_v4, %v1222_v4 }
 0x1b0   :  { %v1251_v29 = vadd.f32 %v1250_v28, %v1236_v18  ;;  %v1152_v61 = vadd.f32 %v1151_v1, %v1137_v56  ;;  %v1190_v26 = vmul.f32 %v1174_v41, %v1174_v41  ;;  %v1272_v10 = vsub.f32 %v3599_v53, %v2939_v13  ;;  %v3600_v28 = vld [vmem:[#allocation28_spill] sm:$0xff]  ;;  %v3603_v41 = vld [vmem:[#allocation19_spill] sm:$0xff] }
 0x1b1   :  { %v1203_v0 = vadd.f32 %v1202_v30, %v1188_v37  ;;  %v1191_v18 = vmul.f32 %v1175_v60, %v1175_v60  ;;  %v1225_v37 = vsub.f32 %v3600_v28, %v2939_v13  ;;  %v1239_v49 = vmul.f32 %v1223_v32, %v1223_v32 }
 0x1b2   :  { %v1252_v6 = vadd.f32 %v1251_v29, %v1237_v34  ;;  %v1273_v38 = vsub.f32 %v3601_v21, %v2939_v13  ;;  %v1287_v25 = vmul.f32 %v1271_v5, %v1271_v5  ;;  %v1301_v17 = vadd.f32 %v1286_v9, %v1285_v24  ;;  %v3602_v34 = vld [vmem:[#allocation30_spill] sm:$0xff] }
 0x1b3   :  { %v1204_v2 = vadd.f32 %v1203_v0, %v1189_v57  ;;  %v1226_v56 = vsub.f32 %v3602_v34, %v2939_v13  ;;  %v1240_v29 = vmul.f32 %v1224_v14, %v1224_v14  ;;  %v1274_v4 = vsub.f32 %v3603_v41, %v2939_v13 }
 0x1b4   :  { %v1253_v12 = vadd.f32 %v1252_v6, %v1238_v45  ;;  %v1153_v1 = vadd.f32 %v1152_v61, %v1138_v63  ;;  %v1288_v57 = vmul.f32 %v1272_v10, %v1272_v10  ;;  %v1302_v53 = vadd.f32 %v1301_v17, %v1287_v25  ;;  %v3604_v45 = vld [vmem:[#allocation32_spill] sm:$0xff]  ;;  %v3607_v17 = vld [vmem:[#allocation23_spill] sm:$0xff] }
 0x1b5   :  { %v1205_v30 = vadd.f32 %v1204_v2, %v1190_v26  ;;  %v1139_v32 = vmul.f32 %v2997_v44, %v2997_v44  ;;  %v1227_v6 = vsub.f32 %v3604_v45, %v2939_v13  ;;  %v1241_v5 = vmul.f32 %v1225_v37, %v1225_v37  ;;  %v3605_v26 = vld [vmem:[#allocation21_spill] sm:$0xff]  ;;  %v3608_v37 = vld [vmem:[#allocation36_spill] sm:$0xff] }
 0x1b6   :  { %v1254_v0 = vadd.f32 %v1253_v12, %v1239_v49  ;;  %v1192_v9 = vmul.f32 %v1176_v48, %v1176_v48  ;;  %v1275_v14 = vsub.f32 %v3605_v26, %v2939_v13  ;;  %v1289_v2 = vmul.f32 %v1273_v38, %v1273_v38  ;;  %v3606_v12 = vld [vmem:[#allocation34_spill] sm:$0xff]  ;;  %v3609_v38 = vld [vmem:[#allocation25_spill] sm:$0xff] }
 0x1b7   :  { %v1206_v60 = vadd.f32 %v1205_v30, %v1191_v18  ;;  %v1303_v49 = vadd.f32 %v1302_v53, %v1288_v57  ;;  %v1228_v63 = vsub.f32 %v3606_v12, %v2939_v13  ;;  %v1242_v61 = vmul.f32 %v1226_v56, %v1226_v56 }
 0x1b8   :  { %v1255_v24 = vadd.f32 %v1254_v0, %v1240_v29  ;;  %v1276_v25 = vsub.f32 %v3607_v17, %v2939_v13  ;;  %v1154_v44 = vadd.f32 %v1153_v1, %v1139_v32  ;;  %v1290_v30 = vmul.f32 %v1274_v4, %v1274_v4  ;;  %v3610_v1 = vld [vmem:[#allocation27_spill] sm:$0xff] }
 0x1b9   :  { %v1207_v18 = vadd.f32 %v1206_v60, %v1192_v9  ;;  %v1304_v41 = vadd.f32 %v1303_v49, %v1289_v2  ;;  %v1229_v48 = vsub.f32 %v3608_v37, %v2939_v13  ;;  %v1243_v29 = vmul.f32 %v1227_v6, %v1227_v6  ;;  %v3612_v17 = vld [vmem:[#allocation31_spill] sm:$0xff] }
 0x1ba   :  { %v1256_v10 = vadd.f32 %v1255_v24, %v1241_v5  ;;  %v1277_v53 = vsub.f32 %v3609_v38, %v2939_v13  ;;  %v1291_v57 = vmul.f32 %v1275_v14, %v1275_v14  ;;  %v1230_v56 = vsub.f32 %v2933_v33, %v2939_v13 }
 0x1bb   :  { %v1305_v26 = vadd.f32 %v1304_v41, %v1290_v30  ;;  %v1244_v5 = vmul.f32 %v1228_v63, %v1228_v63  ;;  %v1278_v60 = vsub.f32 %v3610_v1, %v2939_v13  ;;  %v1155_v4 = vrot.slane %v1154_v44, 4 }
 0x1bc   :  { %v1257_v0 = vadd.f32 %v1256_v10, %v1242_v61  ;;  %v1208_v32 = vrot.slane %v1207_v18, 4  ;;  %v1292_v9 = vmul.f32 %v1276_v25, %v1276_v25  ;;  %v1245_v49 = vmul.f32 %v1229_v48, %v1229_v48  ;;  %v3611_v61 = vld [vmem:[#allocation29_spill] sm:$0xff] }
 0x1bd   :  { %v1306_v2 = vadd.f32 %v1305_v26, %v1291_v57  ;;  %v1279_v10 = vsub.f32 %v3611_v61, %v2939_v13  ;;  %v1293_v38 = vmul.f32 %v1277_v53, %v1277_v53  ;;  %v1246_v41 = vmul.f32 %v1230_v56, %v1230_v56  ;;  %v3613_v25 = vld [vmem:[#allocation33_spill] sm:$0xff] }
 0x1be   :  { %v1258_v24 = vadd.f32 %v1257_v0, %v1243_v29  ;;  %v1280_v63 = vsub.f32 %v3612_v17, %v2939_v13  ;;  %v1156_v29 = vadd.f32 %v1155_v4, %v1154_v44  ;;  %v1209_v0 = vadd.f32 %v1208_v32, %v1207_v18  ;;  %v3615_v44 = vld [vmem:[#allocation37_spill] sm:$0xff]  ;;  %v3616_v4 = vld [vmem:[#allocation39_spill] sm:$0xff] }
 0x1bf   :  { %v1307_v14 = vadd.f32 %v1306_v2, %v1292_v9  ;;  %v1294_v21 = vmul.f32 %v1278_v60, %v1278_v60  ;;  %v1281_v26 = vsub.f32 %v3613_v25, %v2939_v13  ;;  %v1295_v48 = vmul.f32 %v1279_v10, %v1279_v10 }
 0x1c0   :  { %v1259_v6 = vadd.f32 %v1258_v24, %v1244_v5  ;;  %v3614_v24 = vld [vmem:[#allocation35_spill] sm:$0xff]  ;;  %v1157_v9 = vrot.slane %v1156_v29, 2  ;;  %v1210_v56 = vrot.slane %v1209_v0, 2  ;;  %v1296_v2 = vmul.f32 %v1280_v63, %v1280_v63 }
 0x1c1   :  { %v1308_v1 = vadd.f32 %v1307_v14, %v1293_v38  ;;  %v1282_v53 = vsub.f32 %v3614_v24, %v2939_v13  ;;  %v1283_v18 = vsub.f32 %v3615_v44, %v2939_v13  ;;  %v1297_v60 = vmul.f32 %v1281_v26, %v1281_v26 }
 0x1c2   :  { %v1260_v30 = vadd.f32 %v1259_v6, %v1245_v49  ;;  %v1284_v32 = vsub.f32 %v3616_v4, %v2939_v13  ;;  %v1158_v14 = vadd.f32 %v1157_v9, %v1156_v29  ;;  %v1211_v10 = vadd.f32 %v1210_v56, %v1209_v0 }
 0x1c3   :  { %v1309_v57 = vadd.f32 %v1308_v1, %v1294_v21  ;;  %v1298_v21 = vmul.f32 %v1282_v53, %v1282_v53 }
 0x1c4   :  { %v1261_v33 = vadd.f32 %v1260_v30, %v1246_v41  ;;  %v1299_v30 = vmul.f32 %v1283_v18, %v1283_v18  ;;  %v1159_v25 = vrot.slane %v1158_v14, 1  ;;  %v1212_v17 = vrot.slane %v1211_v10, 1 }
 0x1c5   :  { %v1310_v49 = vadd.f32 %v1309_v57, %v1295_v48  ;;  %v1300_v63 = vmul.f32 %v1284_v32, %v1284_v32  ;;  %v1332_v32 = vlaneseq }
 0x1c6   :  { %v1262_v5 = vrot.slane %v1261_v33, 4  ;;  %v1213_v44 = vadd.f32 %v1212_v17, %v1211_v10  ;;  %v1324_v17 = vld [vmem:[%s3488_s2] sm:$0x1] }
 0x1c7   :  { %v1311_v38 = vadd.f32 %v1310_v49, %v1296_v2 }
 0x1c8   :  { %v1263_v6 = vadd.f32 %v1262_v5, %v1261_v33  ;;  %v1160_v5 = vadd.f32 %v1159_v25, %v1158_v14 }
 0x1c9   :  { %v1312_v1 = vadd.f32 %v1311_v38, %v1297_v60 }
 0x1ca   :  { %v1264_v41 = vrot.slane %v1263_v6, 2  ;;  %v1214_v61 = vadd.f32 %v1213_v44, %v1160_v5  ;;  %v1328_v44 = vld [vmem:[%s3489_s3] sm:$0x1] }
 0x1cb   :  { %v1313_v24 = vadd.f32 %v1312_v1, %v1298_v21 }
 0x1cc   :  { %v1265_v33 = vadd.f32 %v1264_v41, %v1263_v6 }
 0x1cd   :  { %v1314_v48 = vadd.f32 %v1313_v24, %v1299_v30  ;;  %v1333_v24 = vshrl.u32 %v1332_v32, 7 }
 0x1ce   :  { %v1266_v2 = vrot.slane %v1265_v33, 1 }
 0x1cf   :  { %v1315_v57 = vadd.f32 %v1314_v48, %v1300_v63  ;;  %v1334_v25 = vsub.s32 0, %v1333_v24 }
 0x1d0   :  { %v1267_v29 = vadd.f32 %v1266_v2, %v1265_v33 }
 0x1d1   :  { %v1316_v26 = vrot.slane %v1315_v57, 4 }
 0x1d2   :  { %v1268_v53 = vadd.f32 %v1267_v29, %v1214_v61 }
 0x1d3   :  { %v1317_v49 = vadd.f32 %v1316_v26, %v1315_v57 }
 0x1d5   :  { %v1318_v4 = vrot.slane %v1317_v49, 2 }
 0x1d7   :  { %v1319_v0 = vadd.f32 %v1318_v4, %v1317_v49 }
 0x1d9   :  { %v1320_v9 = vrot.slane %v1319_v0, 1 }
 0x1db   :  { %v1321_v56 = vadd.f32 %v1320_v9, %v1319_v0 }
 0x1dd   :  { %v1322_v18 = vadd.f32 %v1321_v56, %v1268_v53 }
 0x1df   :  { %v1323_v60 = vmul.f32 0.001953125, %v1322_v18 }
 0x1e1   :  { %v1325_v38 = vadd.f32 1e-05, %v1323_v60 }
 0x1e3   :  { %1887 = vrsqrt.f32 %v1325_v38 }
 0x1f0   :  { %v1888_v6 = vpop.eup %1887 }
 0x1f1   :  { %v1327_v14 = vmul.f32 %v1888_v6, %v1324_v17 }
 0x1f3   :  { %v1329_v61 = vmul.f32 %v1327_v14, %v2939_v13  ;;  %v3080_v4 = vrot.slane %v1327_v14, %v1334_v25 }
 0x1f5   :  { %v1330_v10 = vsub.f32 %v1328_v44, %v1329_v61  ;;  %v1337_v21 = vmul.f32 %v3080_v4, %v2747_v35  ;;  %v1338_v1 = vmul.f32 %v3080_v4, %v2751_v39  ;;  %v1339_v41 = vmul.f32 %v3080_v4, %v2755_v42 }
 0x1f6   :  { %v1340_v30 = vmul.f32 %v3080_v4, %v2759_v46  ;;  %v1341_v63 = vmul.f32 %v3080_v4, %v2763_v50  ;;  %v1342_v13 = vmul.f32 %v3080_v4, %v2767_v54  ;;  %v1343_v48 = vmul.f32 %v3080_v4, %v2771_v58 }
 0x1f7   :  { %v1344_v35 = vmul.f32 %v3080_v4, %v2775_v62  ;;  %v1345_v39 = vmul.f32 %v3080_v4, %v2779_v3  ;;  %v1346_v42 = vmul.f32 %v3080_v4, %v2783_v7  ;;  %v1347_v46 = vmul.f32 %v3080_v4, %v2787_v11 }
 0x1f8   :  { %v1348_v50 = vmul.f32 %v3080_v4, %v2791_v15  ;;  %v1349_v54 = vmul.f32 %v3080_v4, %v2795_v19  ;;  %v1350_v58 = vmul.f32 %v3080_v4, %v2799_v23  ;;  %v1351_v62 = vmul.f32 %v3080_v4, %v2803_v27 }
 0x1f9   :  { %v1352_v3 = vmul.f32 %v3080_v4, %v2807_v31  ;;  %v3114_v33 = vrot.slane %v1330_v10, %v1334_v25  ;;  %v3118_v7 = vmul.f32 %v3080_v4, %v2749_v36  ;;  %v3122_v11 = vmul.f32 %v3080_v4, %v2753_v40 }
 0x1fa   :  { %v3126_v15 = vmul.f32 %v3080_v4, %v2757_v43  ;;  %v3130_v19 = vmul.f32 %v3080_v4, %v2761_v47  ;;  %v3134_v23 = vmul.f32 %v3080_v4, %v2765_v51  ;;  %v3138_v36 = vmul.f32 %v3080_v4, %v2769_v55 }
 0x1fb   :  { %v1359_v27 = vadd.f32 %v3114_v33, %v1337_v21  ;;  %v1360_v40 = vadd.f32 %v3114_v33, %v1338_v1  ;;  %v1361_v31 = vadd.f32 %v3114_v33, %v1339_v41  ;;  %v1362_v43 = vadd.f32 %v3114_v33, %v1340_v30 }
 0x1fc   :  { %v1363_v57 = vadd.f32 %v3114_v33, %v1341_v63  ;;  %v1364_v47 = vadd.f32 %v3114_v33, %v1342_v13  ;;  %v1365_v5 = vadd.f32 %v3114_v33, %v1343_v48  ;;  %v1366_v51 = vadd.f32 %v3114_v33, %v1344_v35  ;;  %v3617_v63 = vld [vmem:[#allocation2_spill] sm:$0xff]  ;;  %v3618_v48 = vld [vmem:[#allocation3_spill] sm:$0xff] }
 0x1fd   :  { %v1367_v26 = vadd.f32 %v3114_v33, %v1345_v39  ;;  %v1368_v55 = vadd.f32 %v3114_v33, %v1346_v42  ;;  %v1369_v2 = vadd.f32 %v3114_v33, %v1347_v46  ;;  %v1370_v49 = vadd.f32 %v3114_v33, %v1348_v50  ;;  %v3619_v46 = vld [vmem:[#allocation5_spill] sm:$0xff] }
 0x1fe   :  { %v1371_v29 = vadd.f32 %v3114_v33, %v1349_v54  ;;  %v1372_v0 = vadd.f32 %v3114_v33, %v1350_v58  ;;  %v1373_v53 = vadd.f32 %v3114_v33, %v1351_v62  ;;  %v1374_v9 = vadd.f32 %v3114_v33, %v1352_v3  ;;  %v3620_v58 = vld [vmem:[#allocation7_spill] sm:$0xff] }
 0x1ff   :  { %v1375_v56 = vmax.f32 %v1359_v27, 0.0  ;;  %v1376_v18 = vmax.f32 %v1360_v40, 0.0  ;;  %v1377_v60 = vmax.f32 %v1361_v31, 0.0  ;;  %v1378_v38 = vmax.f32 %v1362_v43, 0.0 }
 0x200   :  { %v1379_v32 = vmax.f32 %v1363_v57, 0.0  ;;  %v1380_v24 = vmax.f32 %v1364_v47, 0.0  ;;  %v1381_v17 = vmax.f32 %v1365_v5, 0.0  ;;  %v1382_v25 = vmax.f32 %v1366_v51, 0.0 }
 0x201   :  { %v1383_v6 = vmax.f32 %v1367_v26, 0.0  ;;  %v1384_v14 = vmax.f32 %v1368_v55, 0.0  ;;  %v1385_v44 = vmax.f32 %v1369_v2, 0.0  ;;  %v1386_v61 = vmax.f32 %v1370_v49, 0.0  ;;  %1391 = vst [vmem:[%s3490_s4] sm:$0xff] %v1375_v56  ;;  %1392 = vst [vmem:[%s3490_s4 + $0x8] sm:$0xff] %v1376_v18 }
 0x202   :  { %1393 = vst [vmem:[%s3490_s4 + $0x10] sm:$0xff] %v1377_v60  ;;  %1394 = vst [vmem:[%s3490_s4 + $0x18] sm:$0xff] %v1378_v38  ;;  %v1387_v10 = vmax.f32 %v1371_v29, 0.0  ;;  %v1388_v21 = vmax.f32 %v1372_v0, 0.0  ;;  %v1389_v1 = vmax.f32 %v1373_v53, 0.0  ;;  %v1390_v41 = vmax.f32 %v1374_v9, 0.0 }
 0x203   :  { %1395 = vst [vmem:[%s3490_s4 + $0x20] sm:$0xff] %v1379_v32  ;;  %1396 = vst [vmem:[%s3490_s4 + $0x28] sm:$0xff] %v1380_v24  ;;  %v1413_v30 = vmul.f32 %v3080_v4, %v2773_v59  ;;  %v1414_v13 = vmul.f32 %v3080_v4, %v3617_v63  ;;  %v1415_v35 = vmul.f32 %v3080_v4, %v3618_v48  ;;  %v3621_v24 = vld [vmem:[#allocation8_spill] sm:$0xff]  ;;  %v3628_v48 = vld [vmem:[#allocation22_spill] sm:$0xff] }
 0x204   :  { %1397 = vst [vmem:[%s3490_s4 + $0x30] sm:$0xff] %v1381_v17  ;;  %1398 = vst [vmem:[%s3490_s4 + $0x38] sm:$0xff] %v1382_v25  ;;  %v1416_v39 = vmul.f32 %v3080_v4, %v2785_v8  ;;  %v1417_v59 = vmul.f32 %v3080_v4, %v3592_v52  ;;  %v1418_v8 = vmul.f32 %v3080_v4, %v2793_v16  ;;  %v3622_v25 = vld [vmem:[#allocation10_spill] sm:$0xff]  ;;  %v3627_v63 = vld [vmem:[#allocation20_spill] sm:$0xff] }
 0x205   :  { %1399 = vst [vmem:[%s3490_s4 + $0x40] sm:$0xff] %v1383_v6  ;;  %1400 = vst [vmem:[%s3490_s4 + $0x48] sm:$0xff] %v1384_v14  ;;  %v1419_v42 = vmul.f32 %v3080_v4, %v2797_v20  ;;  %v1420_v50 = vmul.f32 %v3080_v4, %v3619_v46  ;;  %v1421_v54 = vmul.f32 %v3080_v4, %v3595_v22  ;;  %v3623_v14 = vld [vmem:[#allocation12_spill] sm:$0xff] }
 0x206   :  { %1401 = vst [vmem:[%s3490_s4 + $0x50] sm:$0xff] %v1385_v44  ;;  %1402 = vst [vmem:[%s3490_s4 + $0x58] sm:$0xff] %v1386_v61  ;;  %v1422_v62 = vmul.f32 %v3080_v4, %v3620_v58  ;;  %v1423_v3 = vadd.f32 %v3118_v7, %v3114_v33  ;;  %v1424_v52 = vadd.f32 %v3122_v11, %v3114_v33  ;;  %v3624_v61 = vld [vmem:[#allocation14_spill] sm:$0xff] }
 0x207   :  { %1403 = vst [vmem:[%s3490_s4 + $0x60] sm:$0xff] %v1387_v10  ;;  %1404 = vst [vmem:[%s3490_s4 + $0x68] sm:$0xff] %v1388_v21  ;;  %v1425_v16 = vadd.f32 %v3126_v15, %v3114_v33  ;;  %v1426_v20 = vadd.f32 %v3130_v19, %v3114_v33  ;;  %v1427_v27 = vadd.f32 %v3134_v23, %v3114_v33  ;;  %v3625_v21 = vld [vmem:[#allocation16_spill] sm:$0xff] }
 0x208   :  { %1405 = vst [vmem:[%s3490_s4 + $0x70] sm:$0xff] %v1389_v1  ;;  %1406 = vst [vmem:[%s3490_s4 + $0x78] sm:$0xff] %v1390_v41  ;;  %v1428_v22 = vadd.f32 %v3138_v36, %v3114_v33  ;;  %v1429_v40 = vadd.f32 %v1413_v30, %v3114_v33  ;;  %v1430_v31 = vadd.f32 %v1414_v13, %v3114_v33  ;;  %v1439_v47 = vmax.f32 %v1423_v3, 0.0  ;;  %v3626_v41 = vld [vmem:[#allocation18_spill] sm:$0xff] }
 0x209   :  { %v1431_v7 = vadd.f32 %v1415_v35, %v3114_v33  ;;  %v1432_v11 = vadd.f32 %v1416_v39, %v3114_v33  ;;  %v1433_v43 = vadd.f32 %v1417_v59, %v3114_v33  ;;  %v1434_v15 = vadd.f32 %v1418_v8, %v3114_v33  ;;  %v3629_v39 = vld [vmem:[#allocation24_spill] sm:$0xff]  ;;  %v3630_v8 = vld [vmem:[#allocation26_spill] sm:$0xff] }
 0x20a   :  { %v1435_v19 = vadd.f32 %v1419_v42, %v3114_v33  ;;  %v1436_v57 = vadd.f32 %v1420_v50, %v3114_v33  ;;  %v1437_v23 = vadd.f32 %v1421_v54, %v3114_v33  ;;  %v1438_v36 = vadd.f32 %v1422_v62, %v3114_v33  ;;  %1838 = vst [vmem:[%s3490_s4 + $0x80] sm:$0xff] %v1439_v47  ;;  %v3631_v3 = vld [vmem:[#allocation38_spill] sm:$0xff] }
 0x20b   :  { %v1440_v5 = vmax.f32 %v1424_v52, 0.0  ;;  %v1441_v51 = vmax.f32 %v1425_v16, 0.0  ;;  %v1442_v26 = vmax.f32 %v1426_v20, 0.0  ;;  %v1443_v55 = vmax.f32 %v1427_v27, 0.0 }
 0x20c   :  { %v1444_v2 = vmax.f32 %v1428_v22, 0.0  ;;  %v1445_v49 = vmax.f32 %v1429_v40, 0.0  ;;  %v1446_v29 = vmax.f32 %v1430_v31, 0.0  ;;  %v1447_v0 = vmax.f32 %v1431_v7, 0.0 }
 0x20d   :  { %v1448_v53 = vmax.f32 %v1432_v11, 0.0  ;;  %1839 = vst [vmem:[%s3490_s4 + $0x88] sm:$0xff] %v1440_v5  ;;  %v1449_v9 = vmax.f32 %v1433_v43, 0.0  ;;  %v1450_v56 = vmax.f32 %v1434_v15, 0.0  ;;  %v1451_v18 = vmax.f32 %v1435_v19, 0.0  ;;  %1840 = vst [vmem:[%s3490_s4 + $0x90] sm:$0xff] %v1441_v51 }
 0x20e   :  { %v1452_v60 = vmax.f32 %v1436_v57, 0.0  ;;  %1841 = vst [vmem:[%s3490_s4 + $0x98] sm:$0xff] %v1442_v26  ;;  %1842 = vst [vmem:[%s3490_s4 + $0xa0] sm:$0xff] %v1443_v55  ;;  %v1453_v38 = vmax.f32 %v1437_v23, 0.0  ;;  %v1454_v32 = vmax.f32 %v1438_v36, 0.0  ;;  %v1472_v17 = vmul.f32 %v3080_v4, %v3621_v24 }
 0x20f   :  { %1843 = vst [vmem:[%s3490_s4 + $0xa8] sm:$0xff] %v1444_v2  ;;  %1844 = vst [vmem:[%s3490_s4 + $0xb0] sm:$0xff] %v1445_v49  ;;  %v1473_v6 = vmul.f32 %v3080_v4, %v3622_v25  ;;  %v1474_v44 = vmul.f32 %v3080_v4, %v3623_v14  ;;  %v1475_v10 = vmul.f32 %v3080_v4, %v3624_v61 }
 0x210   :  { %1845 = vst [vmem:[%s3490_s4 + $0xb8] sm:$0xff] %v1446_v29  ;;  %1846 = vst [vmem:[%s3490_s4 + $0xc0] sm:$0xff] %v1447_v0  ;;  %v1476_v1 = vmul.f32 %v3080_v4, %v3625_v21  ;;  %v1477_v30 = vmul.f32 %v3080_v4, %v3626_v41  ;;  %v1478_v13 = vmul.f32 %v3080_v4, %v3627_v63 }
 0x211   :  { %1847 = vst [vmem:[%s3490_s4 + $0xc8] sm:$0xff] %v1448_v53  ;;  %1848 = vst [vmem:[%s3490_s4 + $0xd0] sm:$0xff] %v1449_v9  ;;  %v1479_v35 = vmul.f32 %v3080_v4, %v3628_v48  ;;  %v1480_v59 = vmul.f32 %v3080_v4, %v3629_v39  ;;  %v1481_v42 = vmul.f32 %v3080_v4, %v3630_v8 }
 0x212   :  { %1849 = vst [vmem:[%s3490_s4 + $0xd8] sm:$0xff] %v1450_v56  ;;  %1850 = vst [vmem:[%s3490_s4 + $0xe0] sm:$0xff] %v1451_v18  ;;  %v1482_v46 = vmul.f32 %v3080_v4, %v3600_v28  ;;  %v1483_v50 = vmul.f32 %v3080_v4, %v3602_v34  ;;  %v1484_v54 = vmul.f32 %v3080_v4, %v3604_v45 }
 0x213   :  { %1851 = vst [vmem:[%s3490_s4 + $0xe8] sm:$0xff] %v1452_v60  ;;  %1852 = vst [vmem:[%s3490_s4 + $0xf0] sm:$0xff] %v1453_v38  ;;  %v1485_v58 = vmul.f32 %v3080_v4, %v3606_v12  ;;  %v1486_v62 = vmul.f32 %v3080_v4, %v3608_v37  ;;  %v1487_v52 = vmul.f32 %v3080_v4, %v3631_v3  ;;  %v3632_v60 = vld [vmem:[#allocation9_spill] sm:$0xff] }
 0x214   :  { %1853 = vst [vmem:[%s3490_s4 + $0xf8] sm:$0xff] %v1454_v32  ;;  %v1488_v16 = vadd.f32 %v1472_v17, %v3114_v33  ;;  %v1489_v20 = vadd.f32 %v1473_v6, %v3114_v33  ;;  %v1490_v28 = vadd.f32 %v1474_v44, %v3114_v33  ;;  %v1491_v34 = vadd.f32 %v1475_v10, %v3114_v33  ;;  %v3633_v32 = vld [vmem:[#allocation11_spill] sm:$0xff]  ;;  %v3634_v17 = vld [vmem:[#allocation13_spill] sm:$0xff] }
 0x215   :  { %v1492_v27 = vadd.f32 %v1476_v1, %v3114_v33  ;;  %v1493_v45 = vadd.f32 %v1477_v30, %v3114_v33  ;;  %v1494_v12 = vadd.f32 %v1478_v13, %v3114_v33  ;;  %v1495_v22 = vadd.f32 %v1479_v35, %v3114_v33  ;;  %v3635_v6 = vld [vmem:[#allocation15_spill] sm:$0xff]  ;;  %v3636_v44 = vld [vmem:[#allocation17_spill] sm:$0xff] }
 0x216   :  { %v1496_v37 = vadd.f32 %v1480_v59, %v3114_v33  ;;  %v1497_v40 = vadd.f32 %v1481_v42, %v3114_v33  ;;  %v1498_v31 = vadd.f32 %v1482_v46, %v3114_v33  ;;  %v1499_v7 = vadd.f32 %v1483_v50, %v3114_v33  ;;  %v3637_v10 = vld [vmem:[#allocation19_spill] sm:$0xff]  ;;  %v3638_v1 = vld [vmem:[#allocation21_spill] sm:$0xff] }
 0x217   :  { %v1500_v11 = vadd.f32 %v1484_v54, %v3114_v33  ;;  %v1501_v43 = vadd.f32 %v1485_v58, %v3114_v33  ;;  %v1502_v15 = vadd.f32 %v1486_v62, %v3114_v33  ;;  %v1503_v19 = vadd.f32 %v1487_v52, %v3114_v33  ;;  %v3639_v30 = vld [vmem:[#allocation23_spill] sm:$0xff]  ;;  %v3640_v13 = vld [vmem:[#allocation25_spill] sm:$0xff] }
 0x218   :  { %v1504_v57 = vmax.f32 %v1488_v16, 0.0  ;;  %v1505_v23 = vmax.f32 %v1489_v20, 0.0  ;;  %v1506_v36 = vmax.f32 %v1490_v28, 0.0  ;;  %v1507_v47 = vmax.f32 %v1491_v34, 0.0  ;;  %v3641_v35 = vld [vmem:[#allocation27_spill] sm:$0xff]  ;;  %v3642_v59 = vld [vmem:[#allocation29_spill] sm:$0xff] }
 0x219   :  { %v1508_v5 = vmax.f32 %v1492_v27, 0.0  ;;  %v1509_v51 = vmax.f32 %v1493_v45, 0.0  ;;  %v1510_v26 = vmax.f32 %v1494_v12, 0.0  ;;  %v1511_v55 = vmax.f32 %v1495_v22, 0.0  ;;  %v3643_v42 = vld [vmem:[#allocation31_spill] sm:$0xff]  ;;  %v3644_v50 = vld [vmem:[#allocation33_spill] sm:$0xff] }
 0x21a   :  { %v1512_v2 = vmax.f32 %v1496_v37, 0.0  ;;  %v1513_v49 = vmax.f32 %v1497_v40, 0.0  ;;  %1854 = vst [vmem:[%s3490_s4 + $0x100] sm:$0xff] %v1504_v57  ;;  %1855 = vst [vmem:[%s3490_s4 + $0x108] sm:$0xff] %v1505_v23  ;;  %v1514_v29 = vmax.f32 %v1498_v31, 0.0  ;;  %v1515_v0 = vmax.f32 %v1499_v7, 0.0 }
 0x21b   :  { %v1516_v53 = vmax.f32 %v1500_v11, 0.0  ;;  %v1517_v9 = vmax.f32 %v1501_v43, 0.0  ;;  %1856 = vst [vmem:[%s3490_s4 + $0x110] sm:$0xff] %v1506_v36  ;;  %1857 = vst [vmem:[%s3490_s4 + $0x118] sm:$0xff] %v1507_v47  ;;  %v1518_v56 = vmax.f32 %v1502_v15, 0.0  ;;  %v1519_v18 = vmax.f32 %v1503_v19, 0.0 }
 0x21c   :  { %1858 = vst [vmem:[%s3490_s4 + $0x120] sm:$0xff] %v1508_v5  ;;  %1859 = vst [vmem:[%s3490_s4 + $0x128] sm:$0xff] %v1509_v51  ;;  %v1537_v38 = vmul.f32 %v3080_v4, %v3632_v60  ;;  %v1538_v24 = vmul.f32 %v3080_v4, %v3633_v32  ;;  %v1539_v25 = vmul.f32 %v3080_v4, %v3634_v17  ;;  %v3645_v58 = vld [vmem:[#allocation35_spill] sm:$0xff]  ;;  %v3646_v3 = vld [vmem:[#allocation37_spill] sm:$0xff] }
 0x21d   :  { %1860 = vst [vmem:[%s3490_s4 + $0x130] sm:$0xff] %v1510_v26  ;;  %1861 = vst [vmem:[%s3490_s4 + $0x138] sm:$0xff] %v1511_v55  ;;  %v1540_v14 = vmul.f32 %v3080_v4, %v3635_v6  ;;  %v1541_v61 = vmul.f32 %v3080_v4, %v3636_v44  ;;  %v1542_v21 = vmul.f32 %v3080_v4, %v3637_v10  ;;  %v3647_v16 = vld [vmem:[#allocation39_spill] sm:$0xff] }
 0x21e   :  { %1862 = vst [vmem:[%s3490_s4 + $0x140] sm:$0xff] %v1512_v2  ;;  %1863 = vst [vmem:[%s3490_s4 + $0x148] sm:$0xff] %v1513_v49  ;;  %v1543_v41 = vmul.f32 %v3080_v4, %v3638_v1  ;;  %v1544_v63 = vmul.f32 %v3080_v4, %v3639_v30  ;;  %v1545_v48 = vmul.f32 %v3080_v4, %v3640_v13 }
 0x21f   :  { %1864 = vst [vmem:[%s3490_s4 + $0x150] sm:$0xff] %v1514_v29  ;;  %1865 = vst [vmem:[%s3490_s4 + $0x158] sm:$0xff] %v1515_v0  ;;  %v1546_v39 = vmul.f32 %v3080_v4, %v3641_v35  ;;  %v1547_v8 = vmul.f32 %v3080_v4, %v3642_v59  ;;  %v1548_v46 = vmul.f32 %v3080_v4, %v3643_v42 }
 0x220   :  { %1866 = vst [vmem:[%s3490_s4 + $0x160] sm:$0xff] %v1516_v53  ;;  %1867 = vst [vmem:[%s3490_s4 + $0x168] sm:$0xff] %v1517_v9  ;;  %v1549_v54 = vmul.f32 %v3080_v4, %v3644_v50  ;;  %v1550_v62 = vmul.f32 %v3080_v4, %v3645_v58  ;;  %v1551_v52 = vmul.f32 %v3080_v4, %v3646_v3 }
 0x221   :  { %1868 = vst [vmem:[%s3490_s4 + $0x170] sm:$0xff] %v1518_v56  ;;  %1869 = vst [vmem:[%s3490_s4 + $0x178] sm:$0xff] %v1519_v18  ;;  %v1552_v20 = vmul.f32 %v3080_v4, %v3647_v16  ;;  %v1553_v28 = vadd.f32 %v1537_v38, %v3114_v33  ;;  %v1554_v34 = vadd.f32 %v1538_v24, %v3114_v33 }
 0x222   :  { %v1555_v27 = vadd.f32 %v1539_v25, %v3114_v33  ;;  %v1556_v45 = vadd.f32 %v1540_v14, %v3114_v33  ;;  %v1557_v12 = vadd.f32 %v1541_v61, %v3114_v33  ;;  %v1558_v22 = vadd.f32 %v1542_v21, %v3114_v33 }
 0x223   :  { %v1559_v37 = vadd.f32 %v1543_v41, %v3114_v33  ;;  %v1560_v40 = vadd.f32 %v1544_v63, %v3114_v33  ;;  %v1561_v31 = vadd.f32 %v1545_v48, %v3114_v33  ;;  %v1562_v4 = vadd.f32 %v1546_v39, %v3114_v33 }
 0x224   :  { %v1563_v7 = vadd.f32 %v1547_v8, %v3114_v33  ;;  %v1564_v11 = vadd.f32 %v1548_v46, %v3114_v33  ;;  %v1565_v43 = vadd.f32 %v1549_v54, %v3114_v33  ;;  %v1566_v15 = vadd.f32 %v1550_v62, %v3114_v33 }
 0x225   :  { %v1567_v19 = vadd.f32 %v1551_v52, %v3114_v33  ;;  %v1568_v57 = vadd.f32 %v1552_v20, %v3114_v33  ;;  %v1569_v23 = vmax.f32 %v1553_v28, 0.0  ;;  %v1570_v36 = vmax.f32 %v1554_v34, 0.0 }
 0x226   :  { %v1571_v47 = vmax.f32 %v1555_v27, 0.0  ;;  %v1572_v5 = vmax.f32 %v1556_v45, 0.0  ;;  %v1573_v51 = vmax.f32 %v1557_v12, 0.0  ;;  %v1574_v26 = vmax.f32 %v1558_v22, 0.0 }
 0x227   :  { %v1575_v55 = vmax.f32 %v1559_v37, 0.0  ;;  %v1576_v2 = vmax.f32 %v1560_v40, 0.0  ;;  %v1577_v49 = vmax.f32 %v1561_v31, 0.0  ;;  %v1578_v29 = vmax.f32 %v1562_v4, 0.0  ;;  %1870 = vst [vmem:[%s3490_s4 + $0x180] sm:$0xff] %v1569_v23  ;;  %1871 = vst [vmem:[%s3490_s4 + $0x188] sm:$0xff] %v1570_v36 }
 0x228   :  { %v1579_v0 = vmax.f32 %v1563_v7, 0.0  ;;  %v1580_v33 = vmax.f32 %v1564_v11, 0.0  ;;  %v1581_v53 = vmax.f32 %v1565_v43, 0.0  ;;  %v1582_v9 = vmax.f32 %v1566_v15, 0.0  ;;  %1872 = vst [vmem:[%s3490_s4 + $0x190] sm:$0xff] %v1571_v47  ;;  %1873 = vst [vmem:[%s3490_s4 + $0x198] sm:$0xff] %v1572_v5 }
 0x229   :  { %1874 = vst [vmem:[%s3490_s4 + $0x1a0] sm:$0xff] %v1573_v51  ;;  %1875 = vst [vmem:[%s3490_s4 + $0x1a8] sm:$0xff] %v1574_v26  ;;  %v1583_v56 = vmax.f32 %v1567_v19, 0.0  ;;  %v1584_v18 = vmax.f32 %v1568_v57, 0.0 }
 0x22a   :  { %1876 = vst [vmem:[%s3490_s4 + $0x1b0] sm:$0xff] %v1575_v55  ;;  %1877 = vst [vmem:[%s3490_s4 + $0x1b8] sm:$0xff] %v1576_v2 }
 0x22b   :  { %1878 = vst [vmem:[%s3490_s4 + $0x1c0] sm:$0xff] %v1577_v49  ;;  %1879 = vst [vmem:[%s3490_s4 + $0x1c8] sm:$0xff] %v1578_v29 }
 0x22c   :  { %1880 = vst [vmem:[%s3490_s4 + $0x1d0] sm:$0xff] %v1579_v0  ;;  %1881 = vst [vmem:[%s3490_s4 + $0x1d8] sm:$0xff] %v1580_v33 }
 0x22d   :  { %1882 = vst [vmem:[%s3490_s4 + $0x1e0] sm:$0xff] %v1581_v53  ;;  %1883 = vst [vmem:[%s3490_s4 + $0x1e8] sm:$0xff] %v1582_v9 }
 0x22e   :  { %1884 = vst [vmem:[%s3490_s4 + $0x1f0] sm:$0xff] %v1583_v56  ;;  %1885 = vst [vmem:[%s3490_s4 + $0x1f8] sm:$0xff] %v1584_v18 }

// kernel: generator_face_forward.11
= control target key start
LH: loop header
LB: loop body
LE: loop exit
PB: predicated region body
PF: predicated region fallthrough
CT: control target
= control target key end

     0   :  { %s1488_s12 = smov 0   ;;  %s1791_s0 = inlined_call_operand.vmem [shape: f32[4,512,64], index: 0, kind: input, shape index: {}]   ;;  %s1792_s1 = inlined_call_operand.vmem [shape: f32[4,64,128], index: 1, kind: input, shape index: {}]   ;;  %s1793_s2 = inlined_call_operand.vmem [shape: f32[1,128], index: 2, kind: input, shape index: {}]   ;;  %s1794_s3 = inlined_call_operand.vmem [shape: f32[4,512,128], index: 3, kind: output, shape index: {}]  }
   0x1 LB: > { %s1043_s13 = sadd.s32 4294967295, %s1466_s12   ;;  %p1047_p0 = scmp.ge.s32.totalorder %s1466_s12, 1  ;;  %s1466_s12 = sphi %s1488_s12, %s13_s12  }
   0x2   : > { %p147_p1 = scmp.lt.s32.totalorder %s1466_s12, 5 }
   0x4   : > { %p148_p2 = pnand %p1047_p0, %p147_p1 }
   0x5   : > { %p176_p3 = scmp.lt.s32.totalorder (!%p148_p2), %s1043_s13, 3 }
   0x6   : > { %151 = sbr.rel (%p148_p2) target bundleno = 305 (0x131), region = 32 }
   0xb   : > { %s1796_s13 = smov (!%p176_p3, %s1043_s13), 3  ;;  %vm270_vm0 = vcmask 523264  }
   0xc   : > { %s1122_s14 = sshll.u32 %s1796_s13, 6  ;;  %s1121_s18 = sshll.u32 %s1796_s13, 9 }
   0xd   : > { %s1502_s17 = scalar_lea.vmem %s1792_s1, %s1122_s14  ;;  %s1517_s21 = scalar_lea.vmem %s1791_s0, %s1121_s18 }
   0xe   : > { %v262_v0 = vld [vmem:[%s1502_s17 + $0x38] sm:$0xff]  ;;  %v261_v1 = vld [vmem:[%s1502_s17 + $0x30] sm:$0xff]  ;;  %v260_v2 = vld [vmem:[%s1502_s17 + $0x28] sm:$0xff]  ;;  %s1672_s26 = scalar_lea.vmem %s1794_s3, %s1121_s18 }
   0xf   : > { %1196 = vmatprep.subr.mxu0 %v262_v0  ;;  %1308 = vmatprep.subr.mxu1 %v262_v0  ;;  %v259_v3 = vld [vmem:[%s1502_s17 + $0x20] sm:$0xff]  ;;  %v258_v4 = vld [vmem:[%s1502_s17 + $0x18] sm:$0xff]  ;;  %v257_v5 = vld [vmem:[%s1502_s17 + $0x10] sm:$0xff] }
  0x10   : > { %1197 = vmatpush3.msra.mxu0 %v262_v0  ;;  %1316 = vmatpush3.msra.mxu1 %v262_v0  ;;  %v256_v6 = vld [vmem:[%s1502_s17 + $0x8] sm:$0xff]  ;;  %v255_v7 = vld [vmem:[%s1502_s17] sm:$0xff]  ;;  %v193_v12 = vld [vmem:[%s1517_s21 + $0x10] sm:$0xff] }
  0x11   : > { %1198 = vmatprep.subr.mxu0 %v261_v1  ;;  %1309 = vmatprep.subr.mxu1 %v261_v1  ;;  %v191_v8 = vld [vmem:[%s1517_s21] sm:$0xff]  ;;  %v192_v10 = vld [vmem:[%s1517_s21 + $0x8] sm:$0xff]  ;;  %v225_v13 = vld [vmem:[%s1517_s21 + $0x110] sm:$0xff] }
  0x12   : > { %1199 = vmatpush3.msra.mxu0 %v261_v1  ;;  %1317 = vmatpush3.msra.mxu1 %v261_v1  ;;  %v223_v9 = vld [vmem:[%s1517_s21 + $0x100] sm:$0xff]  ;;  %v224_v11 = vld [vmem:[%s1517_s21 + $0x108] sm:$0xff]  ;;  %v194_v14 = vld [vmem:[%s1517_s21 + $0x18] sm:$0xff] }
  0x13   : > { %1200 = vmatprep.subr.mxu0 %v260_v2  ;;  %1310 = vmatprep.subr.mxu1 %v260_v2  ;;  %v226_v15 = vld [vmem:[%s1517_s21 + $0x118] sm:$0xff]  ;;  %v195_v16 = vld [vmem:[%s1517_s21 + $0x20] sm:$0xff]  ;;  %v196_v18 = vld [vmem:[%s1517_s21 + $0x28] sm:$0xff] }
  0x14   : > { %1201 = vmatpush3.msra.mxu0 %v260_v2  ;;  %1318 = vmatpush3.msra.mxu1 %v260_v2  ;;  %v227_v17 = vld [vmem:[%s1517_s21 + $0x120] sm:$0xff]  ;;  %v228_v19 = vld [vmem:[%s1517_s21 + $0x128] sm:$0xff]  ;;  %v197_v20 = vld [vmem:[%s1517_s21 + $0x30] sm:$0xff] }
  0x15   : > { %1202 = vmatprep.subr.mxu0 %v259_v3  ;;  %1311 = vmatprep.subr.mxu1 %v259_v3  ;;  %v229_v21 = vld [vmem:[%s1517_s21 + $0x130] sm:$0xff]  ;;  %v198_v22 = vld [vmem:[%s1517_s21 + $0x38] sm:$0xff]  ;;  %v199_v24 = vld [vmem:[%s1517_s21 + $0x40] sm:$0xff] }
  0x16   : > { %1203 = vmatpush3.msra.mxu0 %v259_v3  ;;  %1319 = vmatpush3.msra.mxu1 %v259_v3  ;;  %v230_v23 = vld [vmem:[%s1517_s21 + $0x138] sm:$0xff]  ;;  %v231_v25 = vld [vmem:[%s1517_s21 + $0x140] sm:$0xff]  ;;  %v200_v26 = vld [vmem:[%s1517_s21 + $0x48] sm:$0xff] }
  0x17   : > { %1204 = vmatprep.subr.mxu0 %v258_v4  ;;  %1312 = vmatprep.subr.mxu1 %v258_v4  ;;  %v232_v27 = vld [vmem:[%s1517_s21 + $0x148] sm:$0xff]  ;;  %v201_v28 = vld [vmem:[%s1517_s21 + $0x50] sm:$0xff]  ;;  %v202_v30 = vld [vmem:[%s1517_s21 + $0x58] sm:$0xff] }
  0x18   : > { %1205 = vmatpush3.msra.mxu0 %v258_v4  ;;  %1320 = vmatpush3.msra.mxu1 %v258_v4  ;;  %v233_v29 = vld [vmem:[%s1517_s21 + $0x150] sm:$0xff]  ;;  %v234_v31 = vld [vmem:[%s1517_s21 + $0x158] sm:$0xff]  ;;  %v203_v32 = vld [vmem:[%s1517_s21 + $0x60] sm:$0xff] }
  0x19   : > { %1206 = vmatprep.subr.mxu0 %v257_v5  ;;  %1313 = vmatprep.subr.mxu1 %v257_v5  ;;  %v235_v33 = vld [vmem:[%s1517_s21 + $0x160] sm:$0xff]  ;;  %v204_v34 = vld [vmem:[%s1517_s21 + $0x68] sm:$0xff]  ;;  %v205_v36 = vld [vmem:[%s1517_s21 + $0x70] sm:$0xff] }
  0x1a   : > { %1207 = vmatpush3.msra.mxu0 %v257_v5  ;;  %1321 = vmatpush3.msra.mxu1 %v257_v5  ;;  %v236_v35 = vld [vmem:[%s1517_s21 + $0x168] sm:$0xff]  ;;  %v237_v37 = vld [vmem:[%s1517_s21 + $0x170] sm:$0xff]  ;;  %v206_v38 = vld [vmem:[%s1517_s21 + $0x78] sm:$0xff] }
  0x1b   : > { %1208 = vmatprep.subr.mxu0 %v256_v6  ;;  %1314 = vmatprep.subr.mxu1 %v256_v6  ;;  %v238_v39 = vld [vmem:[%s1517_s21 + $0x178] sm:$0xff]  ;;  %v207_v40 = vld [vmem:[%s1517_s21 + $0x80] sm:$0xff]  ;;  %v208_v42 = vld [vmem:[%s1517_s21 + $0x88] sm:$0xff] }
  0x1c   : > { %1209 = vmatpush3.msra.mxu0 %v256_v6  ;;  %1322 = vmatpush3.msra.mxu1 %v256_v6  ;;  %v239_v41 = vld [vmem:[%s1517_s21 + $0x180] sm:$0xff]  ;;  %v240_v43 = vld [vmem:[%s1517_s21 + $0x188] sm:$0xff]  ;;  %v209_v44 = vld [vmem:[%s1517_s21 + $0x90] sm:$0xff] }
  0x1d   : > { %1210 = vmatprep.subr.mxu0 %v255_v7  ;;  %1315 = vmatprep.subr.mxu1 %v255_v7  ;;  %v241_v45 = vld [vmem:[%s1517_s21 + $0x190] sm:$0xff]  ;;  %v210_v46 = vld [vmem:[%s1517_s21 + $0x98] sm:$0xff]  ;;  %v211_v48 = vld [vmem:[%s1517_s21 + $0xa0] sm:$0xff] }
  0x1e   : > { %1211 = vmatpush3.msra.mxu0 %v255_v7  ;;  %1323 = vmatpush3.msra.mxu1 %v255_v7  ;;  %v242_v47 = vld [vmem:[%s1517_s21 + $0x198] sm:$0xff]  ;;  %v243_v49 = vld [vmem:[%s1517_s21 + $0x1a0] sm:$0xff]  ;;  %v212_v50 = vld [vmem:[%s1517_s21 + $0xa8] sm:$0xff] }
  0x1f   : > { %1212 = vmatprep.mubr.msk.f32.mxu0 %vm270_vm0, %v191_v8  ;;  %1260 = vmatprep.mubr.msk.f32.mxu1 %vm270_vm0, %v223_v9  ;;  %v244_v51 = vld [vmem:[%s1517_s21 + $0x1a8] sm:$0xff]  ;;  %v213_v52 = vld [vmem:[%s1517_s21 + $0xb0] sm:$0xff]  ;;  %v214_v54 = vld [vmem:[%s1517_s21 + $0xb8] sm:$0xff] }
  0x20   : > { %1213 = vmatmul.mubr.msk.f32.vlgmr.msra.gmra.mxu0 %vm270_vm0, %v192_v10  ;;  %1261 = vmatmul.mubr.msk.f32.vlgmr.msra.gmra.mxu1 %vm270_vm0, %v224_v11  ;;  %v245_v53 = vld [vmem:[%s1517_s21 + $0x1b0] sm:$0xff]  ;;  %v246_v55 = vld [vmem:[%s1517_s21 + $0x1b8] sm:$0xff]  ;;  %v215_v56 = vld [vmem:[%s1517_s21 + $0xc0] sm:$0xff] }
  0x21   : > { %1215 = vmatprep.mubr.msk.f32.mxu0 %vm270_vm0, %v193_v12  ;;  %1263 = vmatprep.mubr.msk.f32.mxu1 %vm270_vm0, %v225_v13  ;;  %v247_v57 = vld [vmem:[%s1517_s21 + $0x1c0] sm:$0xff]  ;;  %v216_v58 = vld [vmem:[%s1517_s21 + $0xc8] sm:$0xff]  ;;  %v217_v60 = vld [vmem:[%s1517_s21 + $0xd0] sm:$0xff] }
  0x22   : > { %v248_v59 = vld [vmem:[%s1517_s21 + $0x1c8] sm:$0xff]  ;;  %v249_v61 = vld [vmem:[%s1517_s21 + $0x1d0] sm:$0xff]  ;;  %v218_v62 = vld [vmem:[%s1517_s21 + $0xd8] sm:$0xff] }
  0x23   : > { %v250_v63 = vld [vmem:[%s1517_s21 + $0x1d8] sm:$0xff]  ;;  %v219_v0 = vld [vmem:[%s1517_s21 + $0xe0] sm:$0xff]  ;;  %v220_v2 = vld [vmem:[%s1517_s21 + $0xe8] sm:$0xff] }
  0x24   : > { %1216 = vmatmul.mubr.msk.f32.gmra.mxu0 %vm270_vm0, %v194_v14  ;;  %1264 = vmatmul.mubr.msk.f32.gmra.mxu1 %vm270_vm0, %v226_v15  ;;  %v251_v1 = vld [vmem:[%s1517_s21 + $0x1e0] sm:$0xff]  ;;  %v252_v3 = vld [vmem:[%s1517_s21 + $0x1e8] sm:$0xff]  ;;  %v221_v4 = vld [vmem:[%s1517_s21 + $0xf0] sm:$0xff] }
  0x25   : > { %1218 = vmatprep.mubr.msk.f32.mxu0 %vm270_vm0, %v195_v16  ;;  %1266 = vmatprep.mubr.msk.f32.mxu1 %vm270_vm0, %v227_v17  ;;  %v253_v5 = vld [vmem:[%s1517_s21 + $0x1f0] sm:$0xff]  ;;  %v222_v6 = vld [vmem:[%s1517_s21 + $0xf8] sm:$0xff]  ;;  %v1651_v8 = vld [vmem:[%s1793_s2] ss:$0 sm:$0xff] }
  0x26   : > { %v254_v7 = vld [vmem:[%s1517_s21 + $0x1f8] sm:$0xff] }
  0x28   : > { %1219 = vmatmul.mubr.msk.f32.gmra.mxu0 %vm270_vm0, %v196_v18  ;;  %1267 = vmatmul.mubr.msk.f32.gmra.mxu1 %vm270_vm0, %v228_v19 }
  0x29   : > { %1221 = vmatprep.mubr.msk.f32.mxu0 %vm270_vm0, %v197_v20  ;;  %1269 = vmatprep.mubr.msk.f32.mxu1 %vm270_vm0, %v229_v21 }
  0x2c   : > { %1222 = vmatmul.mubr.msk.f32.gmra.mxu0 %vm270_vm0, %v198_v22  ;;  %1270 = vmatmul.mubr.msk.f32.gmra.mxu1 %vm270_vm0, %v230_v23 }
  0x2d   : > { %1224 = vmatprep.mubr.msk.f32.mxu0 %vm270_vm0, %v199_v24  ;;  %1272 = vmatprep.mubr.msk.f32.mxu1 %vm270_vm0, %v231_v25 }
  0x30   : > { %1225 = vmatmul.mubr.msk.f32.gmra.mxu0 %vm270_vm0, %v200_v26  ;;  %1273 = vmatmul.mubr.msk.f32.gmra.mxu1 %vm270_vm0, %v232_v27 }
  0x31   : > { %1227 = vmatprep.mubr.msk.f32.mxu0 %vm270_vm0, %v201_v28  ;;  %1275 = vmatprep.mubr.msk.f32.mxu1 %vm270_vm0, %v233_v29 }
  0x34   : > { %1228 = vmatmul.mubr.msk.f32.gmra.mxu0 %vm270_vm0, %v202_v30  ;;  %1276 = vmatmul.mubr.msk.f32.gmra.mxu1 %vm270_vm0, %v234_v31 }
  0x35   : > { %1230 = vmatprep.mubr.msk.f32.mxu0 %vm270_vm0, %v203_v32  ;;  %1278 = vmatprep.mubr.msk.f32.mxu1 %vm270_vm0, %v235_v33 }
  0x38   : > { %1231 = vmatmul.mubr.msk.f32.gmra.mxu0 %vm270_vm0, %v204_v34  ;;  %1279 = vmatmul.mubr.msk.f32.gmra.mxu1 %vm270_vm0, %v236_v35 }
  0x39   : > { %1233 = vmatprep.mubr.msk.f32.mxu0 %vm270_vm0, %v205_v36  ;;  %1281 = vmatprep.mubr.msk.f32.mxu1 %vm270_vm0, %v237_v37 }
  0x3c   : > { %1234 = vmatmul.mubr.msk.f32.gmra.mxu0 %vm270_vm0, %v206_v38  ;;  %1282 = vmatmul.mubr.msk.f32.gmra.mxu1 %vm270_vm0, %v238_v39 }
  0x3d   : > { %1236 = vmatprep.mubr.msk.f32.mxu0 %vm270_vm0, %v207_v40  ;;  %1284 = vmatprep.mubr.msk.f32.mxu1 %vm270_vm0, %v239_v41 }
  0x40   : > { %1237 = vmatmul.mubr.msk.f32.gmra.mxu0 %vm270_vm0, %v208_v42  ;;  %1285 = vmatmul.mubr.msk.f32.gmra.mxu1 %vm270_vm0, %v240_v43 }
  0x41   : > { %1239 = vmatprep.mubr.msk.f32.mxu0 %vm270_vm0, %v209_v44  ;;  %1287 = vmatprep.mubr.msk.f32.mxu1 %vm270_vm0, %v241_v45 }
  0x44   : > { %1240 = vmatmul.mubr.msk.f32.gmra.mxu0 %vm270_vm0, %v210_v46  ;;  %1288 = vmatmul.mubr.msk.f32.gmra.mxu1 %vm270_vm0, %v242_v47 }
  0x45   : > { %1242 = vmatprep.mubr.msk.f32.mxu0 %vm270_vm0, %v211_v48  ;;  %1290 = vmatprep.mubr.msk.f32.mxu1 %vm270_vm0, %v243_v49 }
  0x48   : > { %1243 = vmatmul.mubr.msk.f32.gmra.mxu0 %vm270_vm0, %v212_v50  ;;  %1291 = vmatmul.mubr.msk.f32.gmra.mxu1 %vm270_vm0, %v244_v51 }
  0x49   : > { %1245 = vmatprep.mubr.msk.f32.mxu0 %vm270_vm0, %v213_v52  ;;  %1293 = vmatprep.mubr.msk.f32.mxu1 %vm270_vm0, %v245_v53 }
  0x4c   : > { %1246 = vmatmul.mubr.msk.f32.gmra.mxu0 %vm270_vm0, %v214_v54  ;;  %1294 = vmatmul.mubr.msk.f32.gmra.mxu1 %vm270_vm0, %v246_v55 }
  0x4d   : > { %1248 = vmatprep.mubr.msk.f32.mxu0 %vm270_vm0, %v215_v56  ;;  %1296 = vmatprep.mubr.msk.f32.mxu1 %vm270_vm0, %v247_v57 }
  0x50   : > { %1249 = vmatmul.mubr.msk.f32.gmra.mxu0 %vm270_vm0, %v216_v58  ;;  %1297 = vmatmul.mubr.msk.f32.gmra.mxu1 %vm270_vm0, %v248_v59 }
  0x51   : > { %1251 = vmatprep.mubr.msk.f32.mxu0 %vm270_vm0, %v217_v60  ;;  %1299 = vmatprep.mubr.msk.f32.mxu1 %vm270_vm0, %v249_v61 }
  0x54   : > { %1252 = vmatmul.mubr.msk.f32.gmra.mxu0 %vm270_vm0, %v218_v62  ;;  %1300 = vmatmul.mubr.msk.f32.gmra.mxu1 %vm270_vm0, %v250_v63 }
  0x55   : > { %1254 = vmatprep.mubr.msk.f32.mxu0 %vm270_vm0, %v219_v0  ;;  %1302 = vmatprep.mubr.msk.f32.mxu1 %vm270_vm0, %v251_v1 }
  0x58   : > { %1255 = vmatmul.mubr.msk.f32.gmra.mxu0 %vm270_vm0, %v220_v2  ;;  %1303 = vmatmul.mubr.msk.f32.gmra.mxu1 %vm270_vm0, %v252_v3 }
  0x59   : > { %1257 = vmatprep.mubr.msk.f32.mxu0 %vm270_vm0, %v221_v4  ;;  %1305 = vmatprep.mubr.msk.f32.mxu1 %vm270_vm0, %v253_v5 }
  0x5c   : > { %1258 = vmatmul.mubr.msk.f32.gmra.mxu0 %vm270_vm0, %v222_v6  ;;  %1306 = vmatmul.mubr.msk.f32.gmra.mxu1 %vm270_vm0, %v254_v7 }
  0xe0   : > { %v1214_v9 = vpop.f32.mrf.mxu0  ;;  %v1262_v10 = vpop.f32.mrf.mxu1 }
  0xe1   : > { %v535_v11 = vadd.f32 %v1214_v9, %v1651_v8  ;;  %v695_v12 = vadd.f32 %v1262_v10, %v1651_v8 }
  0xe2   : > { %v529_v13 = vpop.f32.mrf.mxu0  ;;  %v689_v14 = vpop.f32.mrf.mxu1 }
  0xe3   : > { %1332 = vtanh.f32 %v535_v11  ;;  %v530_v15 = vadd.f32 %v1651_v8, %v529_v13  ;;  %v690_v16 = vadd.f32 %v1651_v8, %v689_v14 }
  0xe4   : > { %1334 = vtanh.f32 %v695_v12  ;;  %v1217_v17 = vpop.f32.mrf.mxu0  ;;  %v1265_v18 = vpop.f32.mrf.mxu1 }
  0xe5   : > { %1336 = vtanh.f32 %v530_v15  ;;  %v545_v19 = vadd.f32 %v1217_v17, %v1651_v8  ;;  %v705_v20 = vadd.f32 %v1265_v18, %v1651_v8 }
  0xe6   : > { %1338 = vtanh.f32 %v690_v16  ;;  %v539_v21 = vpop.f32.mrf.mxu0  ;;  %v699_v22 = vpop.f32.mrf.mxu1 }
  0xe7   : > { %1340 = vtanh.f32 %v545_v19  ;;  %v540_v23 = vadd.f32 %v1651_v8, %v539_v21  ;;  %v700_v24 = vadd.f32 %v1651_v8, %v699_v22 }
  0xe8   : > { %1342 = vtanh.f32 %v705_v20  ;;  %v1220_v25 = vpop.f32.mrf.mxu0  ;;  %v1268_v26 = vpop.f32.mrf.mxu1 }
  0xe9   : > { %1344 = vtanh.f32 %v540_v23  ;;  %v555_v27 = vadd.f32 %v1220_v25, %v1651_v8  ;;  %v715_v28 = vadd.f32 %v1268_v26, %v1651_v8 }
  0xea   : > { %1346 = vtanh.f32 %v700_v24  ;;  %v549_v29 = vpop.f32.mrf.mxu0  ;;  %v709_v30 = vpop.f32.mrf.mxu1 }
  0xeb   : > { %1348 = vtanh.f32 %v555_v27  ;;  %v550_v31 = vadd.f32 %v1651_v8, %v549_v29  ;;  %v710_v32 = vadd.f32 %v1651_v8, %v709_v30 }
  0xec   : > { %1350 = vtanh.f32 %v715_v28  ;;  %v1223_v33 = vpop.f32.mrf.mxu0  ;;  %v1271_v34 = vpop.f32.mrf.mxu1 }
  0xed   : > { %1352 = vtanh.f32 %v550_v31  ;;  %v565_v35 = vadd.f32 %v1223_v33, %v1651_v8  ;;  %v725_v36 = vadd.f32 %v1271_v34, %v1651_v8 }
  0xee   : > { %1354 = vtanh.f32 %v710_v32  ;;  %v559_v37 = vpop.f32.mrf.mxu0  ;;  %v719_v38 = vpop.f32.mrf.mxu1 }
  0xef   : > { %1356 = vtanh.f32 %v565_v35  ;;  %v560_v39 = vadd.f32 %v1651_v8, %v559_v37  ;;  %v720_v40 = vadd.f32 %v1651_v8, %v719_v38 }
  0xf0   : > { %v1333_v41 = vpop.eup %1332  ;;  %1358 = vtanh.f32 %v725_v36  ;;  %v1226_v42 = vpop.f32.mrf.mxu0 }
  0xf1   : > { %v1274_v43 = vpop.f32.mrf.mxu1  ;;  %v1335_v44 = vpop.eup %1334  ;;  %913 = vst [vmem:[%s1672_s26 + $0x8] sm:$0xff] %v1333_v41  ;;  %1360 = vtanh.f32 %v560_v39  ;;  %v575_v45 = vadd.f32 %v1226_v42, %v1651_v8 }
  0xf2   : > { %v735_v46 = vadd.f32 %v1274_v43, %v1651_v8  ;;  %v1337_v47 = vpop.eup %1336  ;;  %945 = vst [vmem:[%s1672_s26 + $0x108] sm:$0xff] %v1335_v44  ;;  %1362 = vtanh.f32 %v720_v40  ;;  %v569_v48 = vpop.f32.mrf.mxu0 }
  0xf3   : > { %v729_v49 = vpop.f32.mrf.mxu1  ;;  %v1339_v50 = vpop.eup %1338  ;;  %912 = vst [vmem:[%s1672_s26] sm:$0xff] %v1337_v47  ;;  %1364 = vtanh.f32 %v575_v45  ;;  %v570_v51 = vadd.f32 %v1651_v8, %v569_v48 }
  0xf4   : > { %v730_v52 = vadd.f32 %v1651_v8, %v729_v49  ;;  %v1341_v53 = vpop.eup %1340  ;;  %944 = vst [vmem:[%s1672_s26 + $0x100] sm:$0xff] %v1339_v50  ;;  %1366 = vtanh.f32 %v735_v46  ;;  %v1229_v54 = vpop.f32.mrf.mxu0 }
  0xf5   : > { %v1277_v55 = vpop.f32.mrf.mxu1  ;;  %v1343_v56 = vpop.eup %1342  ;;  %915 = vst [vmem:[%s1672_s26 + $0x18] sm:$0xff] %v1341_v53  ;;  %1368 = vtanh.f32 %v570_v51  ;;  %v585_v57 = vadd.f32 %v1229_v54, %v1651_v8 }
  0xf6   : > { %v745_v58 = vadd.f32 %v1277_v55, %v1651_v8  ;;  %v1345_v59 = vpop.eup %1344  ;;  %947 = vst [vmem:[%s1672_s26 + $0x118] sm:$0xff] %v1343_v56  ;;  %1370 = vtanh.f32 %v730_v52  ;;  %v579_v60 = vpop.f32.mrf.mxu0 }
  0xf7   : > { %v739_v61 = vpop.f32.mrf.mxu1  ;;  %v1347_v62 = vpop.eup %1346  ;;  %914 = vst [vmem:[%s1672_s26 + $0x10] sm:$0xff] %v1345_v59  ;;  %1372 = vtanh.f32 %v585_v57  ;;  %v580_v63 = vadd.f32 %v1651_v8, %v579_v60 }
  0xf8   : > { %v740_v0 = vadd.f32 %v1651_v8, %v739_v61  ;;  %v1349_v1 = vpop.eup %1348  ;;  %946 = vst [vmem:[%s1672_s26 + $0x110] sm:$0xff] %v1347_v62  ;;  %1374 = vtanh.f32 %v745_v58  ;;  %v1232_v2 = vpop.f32.mrf.mxu0 }
  0xf9   : > { %v1280_v3 = vpop.f32.mrf.mxu1  ;;  %v1351_v4 = vpop.eup %1350  ;;  %917 = vst [vmem:[%s1672_s26 + $0x28] sm:$0xff] %v1349_v1  ;;  %1376 = vtanh.f32 %v580_v63  ;;  %v595_v5 = vadd.f32 %v1232_v2, %v1651_v8 }
  0xfa   : > { %v755_v6 = vadd.f32 %v1280_v3, %v1651_v8  ;;  %v1353_v7 = vpop.eup %1352  ;;  %949 = vst [vmem:[%s1672_s26 + $0x128] sm:$0xff] %v1351_v4  ;;  %1378 = vtanh.f32 %v740_v0  ;;  %v589_v9 = vpop.f32.mrf.mxu0 }
  0xfb   : > { %v749_v10 = vpop.f32.mrf.mxu1  ;;  %v1355_v11 = vpop.eup %1354  ;;  %916 = vst [vmem:[%s1672_s26 + $0x20] sm:$0xff] %v1353_v7  ;;  %1380 = vtanh.f32 %v595_v5  ;;  %v590_v12 = vadd.f32 %v1651_v8, %v589_v9 }
  0xfc   : > { %v750_v13 = vadd.f32 %v1651_v8, %v749_v10  ;;  %v1357_v14 = vpop.eup %1356  ;;  %948 = vst [vmem:[%s1672_s26 + $0x120] sm:$0xff] %v1355_v11  ;;  %1382 = vtanh.f32 %v755_v6  ;;  %v1235_v15 = vpop.f32.mrf.mxu0 }
  0xfd   : > { %v1283_v16 = vpop.f32.mrf.mxu1  ;;  %v1359_v17 = vpop.eup %1358  ;;  %919 = vst [vmem:[%s1672_s26 + $0x38] sm:$0xff] %v1357_v14  ;;  %1384 = vtanh.f32 %v590_v12  ;;  %v605_v18 = vadd.f32 %v1235_v15, %v1651_v8 }
  0xfe   : > { %v765_v19 = vadd.f32 %v1283_v16, %v1651_v8  ;;  %v1361_v20 = vpop.eup %1360  ;;  %951 = vst [vmem:[%s1672_s26 + $0x138] sm:$0xff] %v1359_v17  ;;  %1386 = vtanh.f32 %v750_v13  ;;  %v599_v21 = vpop.f32.mrf.mxu0 }
  0xff   : > { %v759_v22 = vpop.f32.mrf.mxu1  ;;  %v1363_v23 = vpop.eup %1362  ;;  %918 = vst [vmem:[%s1672_s26 + $0x30] sm:$0xff] %v1361_v20  ;;  %1388 = vtanh.f32 %v605_v18  ;;  %v600_v24 = vadd.f32 %v1651_v8, %v599_v21 }
 0x100   : > { %v760_v25 = vadd.f32 %v1651_v8, %v759_v22  ;;  %v1365_v26 = vpop.eup %1364  ;;  %950 = vst [vmem:[%s1672_s26 + $0x130] sm:$0xff] %v1363_v23  ;;  %1390 = vtanh.f32 %v765_v19  ;;  %v1238_v27 = vpop.f32.mrf.mxu0 }
 0x101   : > { %v1286_v28 = vpop.f32.mrf.mxu1  ;;  %v1367_v29 = vpop.eup %1366  ;;  %921 = vst [vmem:[%s1672_s26 + $0x48] sm:$0xff] %v1365_v26  ;;  %1392 = vtanh.f32 %v600_v24  ;;  %v615_v30 = vadd.f32 %v1238_v27, %v1651_v8 }
 0x102   : > { %v775_v31 = vadd.f32 %v1286_v28, %v1651_v8  ;;  %v1369_v32 = vpop.eup %1368  ;;  %953 = vst [vmem:[%s1672_s26 + $0x148] sm:$0xff] %v1367_v29  ;;  %1394 = vtanh.f32 %v760_v25  ;;  %v609_v33 = vpop.f32.mrf.mxu0 }
 0x103   : > { %v769_v34 = vpop.f32.mrf.mxu1  ;;  %v1371_v35 = vpop.eup %1370  ;;  %920 = vst [vmem:[%s1672_s26 + $0x40] sm:$0xff] %v1369_v32  ;;  %1396 = vtanh.f32 %v615_v30  ;;  %v610_v36 = vadd.f32 %v1651_v8, %v609_v33 }
 0x104   : > { %v770_v37 = vadd.f32 %v1651_v8, %v769_v34  ;;  %v1373_v38 = vpop.eup %1372  ;;  %952 = vst [vmem:[%s1672_s26 + $0x140] sm:$0xff] %v1371_v35  ;;  %1398 = vtanh.f32 %v775_v31  ;;  %v1241_v39 = vpop.f32.mrf.mxu0 }
 0x105   : > { %v1289_v40 = vpop.f32.mrf.mxu1  ;;  %v1375_v41 = vpop.eup %1374  ;;  %923 = vst [vmem:[%s1672_s26 + $0x58] sm:$0xff] %v1373_v38  ;;  %1400 = vtanh.f32 %v610_v36  ;;  %v625_v42 = vadd.f32 %v1241_v39, %v1651_v8 }
 0x106   : > { %v785_v43 = vadd.f32 %v1289_v40, %v1651_v8  ;;  %v1377_v44 = vpop.eup %1376  ;;  %955 = vst [vmem:[%s1672_s26 + $0x158] sm:$0xff] %v1375_v41  ;;  %1402 = vtanh.f32 %v770_v37  ;;  %v619_v45 = vpop.f32.mrf.mxu0 }
 0x107   : > { %v779_v46 = vpop.f32.mrf.mxu1  ;;  %v1379_v47 = vpop.eup %1378  ;;  %922 = vst [vmem:[%s1672_s26 + $0x50] sm:$0xff] %v1377_v44  ;;  %1404 = vtanh.f32 %v625_v42  ;;  %v620_v48 = vadd.f32 %v1651_v8, %v619_v45 }
 0x108   : > { %v780_v49 = vadd.f32 %v1651_v8, %v779_v46  ;;  %v1381_v50 = vpop.eup %1380  ;;  %954 = vst [vmem:[%s1672_s26 + $0x150] sm:$0xff] %v1379_v47  ;;  %1406 = vtanh.f32 %v785_v43  ;;  %v1244_v51 = vpop.f32.mrf.mxu0 }
 0x109   : > { %v1292_v52 = vpop.f32.mrf.mxu1  ;;  %v1383_v53 = vpop.eup %1382  ;;  %925 = vst [vmem:[%s1672_s26 + $0x68] sm:$0xff] %v1381_v50  ;;  %1408 = vtanh.f32 %v620_v48  ;;  %v635_v54 = vadd.f32 %v1244_v51, %v1651_v8 }
 0x10a   : > { %v795_v55 = vadd.f32 %v1292_v52, %v1651_v8  ;;  %v1385_v56 = vpop.eup %1384  ;;  %957 = vst [vmem:[%s1672_s26 + $0x168] sm:$0xff] %v1383_v53  ;;  %1410 = vtanh.f32 %v780_v49  ;;  %v629_v57 = vpop.f32.mrf.mxu0 }
 0x10b   : > { %v789_v58 = vpop.f32.mrf.mxu1  ;;  %v1387_v59 = vpop.eup %1386  ;;  %924 = vst [vmem:[%s1672_s26 + $0x60] sm:$0xff] %v1385_v56  ;;  %1412 = vtanh.f32 %v635_v54  ;;  %v630_v60 = vadd.f32 %v1651_v8, %v629_v57 }
 0x10c   : > { %v790_v61 = vadd.f32 %v1651_v8, %v789_v58  ;;  %v1389_v62 = vpop.eup %1388  ;;  %956 = vst [vmem:[%s1672_s26 + $0x160] sm:$0xff] %v1387_v59  ;;  %1414 = vtanh.f32 %v795_v55  ;;  %v1247_v63 = vpop.f32.mrf.mxu0 }
 0x10d   : > { %v1295_v0 = vpop.f32.mrf.mxu1  ;;  %v1391_v1 = vpop.eup %1390  ;;  %927 = vst [vmem:[%s1672_s26 + $0x78] sm:$0xff] %v1389_v62  ;;  %1416 = vtanh.f32 %v630_v60  ;;  %v645_v2 = vadd.f32 %v1247_v63, %v1651_v8 }
 0x10e   : > { %v805_v3 = vadd.f32 %v1295_v0, %v1651_v8  ;;  %v1393_v4 = vpop.eup %1392  ;;  %959 = vst [vmem:[%s1672_s26 + $0x178] sm:$0xff] %v1391_v1  ;;  %1418 = vtanh.f32 %v790_v61  ;;  %v639_v5 = vpop.f32.mrf.mxu0 }
 0x10f   : > { %v799_v6 = vpop.f32.mrf.mxu1  ;;  %v1395_v7 = vpop.eup %1394  ;;  %926 = vst [vmem:[%s1672_s26 + $0x70] sm:$0xff] %v1393_v4  ;;  %1420 = vtanh.f32 %v645_v2  ;;  %v640_v9 = vadd.f32 %v1651_v8, %v639_v5 }
 0x110   : > { %v800_v10 = vadd.f32 %v1651_v8, %v799_v6  ;;  %v1397_v11 = vpop.eup %1396  ;;  %958 = vst [vmem:[%s1672_s26 + $0x170] sm:$0xff] %v1395_v7  ;;  %1422 = vtanh.f32 %v805_v3  ;;  %v1250_v12 = vpop.f32.mrf.mxu0 }
 0x111   : > { %v1298_v13 = vpop.f32.mrf.mxu1  ;;  %v1399_v14 = vpop.eup %1398  ;;  %929 = vst [vmem:[%s1672_s26 + $0x88] sm:$0xff] %v1397_v11  ;;  %1424 = vtanh.f32 %v640_v9  ;;  %v655_v15 = vadd.f32 %v1250_v12, %v1651_v8 }
 0x112   : > { %v815_v16 = vadd.f32 %v1298_v13, %v1651_v8  ;;  %v1401_v17 = vpop.eup %1400  ;;  %961 = vst [vmem:[%s1672_s26 + $0x188] sm:$0xff] %v1399_v14  ;;  %1426 = vtanh.f32 %v800_v10  ;;  %v649_v18 = vpop.f32.mrf.mxu0 }
 0x113   : > { %v809_v19 = vpop.f32.mrf.mxu1  ;;  %v1403_v20 = vpop.eup %1402  ;;  %928 = vst [vmem:[%s1672_s26 + $0x80] sm:$0xff] %v1401_v17  ;;  %1428 = vtanh.f32 %v655_v15  ;;  %v650_v21 = vadd.f32 %v1651_v8, %v649_v18 }
 0x114   : > { %v810_v22 = vadd.f32 %v1651_v8, %v809_v19  ;;  %v1405_v23 = vpop.eup %1404  ;;  %960 = vst [vmem:[%s1672_s26 + $0x180] sm:$0xff] %v1403_v20  ;;  %1430 = vtanh.f32 %v815_v16  ;;  %v1253_v24 = vpop.f32.mrf.mxu0 }
 0x115   : > { %v1301_v25 = vpop.f32.mrf.mxu1  ;;  %v1407_v26 = vpop.eup %1406  ;;  %931 = vst [vmem:[%s1672_s26 + $0x98] sm:$0xff] %v1405_v23  ;;  %1432 = vtanh.f32 %v650_v21  ;;  %v665_v27 = vadd.f32 %v1253_v24, %v1651_v8 }
 0x116   : > { %v825_v28 = vadd.f32 %v1301_v25, %v1651_v8  ;;  %v1409_v29 = vpop.eup %1408  ;;  %963 = vst [vmem:[%s1672_s26 + $0x198] sm:$0xff] %v1407_v26  ;;  %1434 = vtanh.f32 %v810_v22  ;;  %v659_v30 = vpop.f32.mrf.mxu0 }
 0x117   : > { %v819_v31 = vpop.f32.mrf.mxu1  ;;  %v1411_v32 = vpop.eup %1410  ;;  %930 = vst [vmem:[%s1672_s26 + $0x90] sm:$0xff] %v1409_v29  ;;  %1436 = vtanh.f32 %v665_v27  ;;  %v660_v33 = vadd.f32 %v1651_v8, %v659_v30 }
 0x118   : > { %v820_v34 = vadd.f32 %v1651_v8, %v819_v31  ;;  %v1413_v35 = vpop.eup %1412  ;;  %962 = vst [vmem:[%s1672_s26 + $0x190] sm:$0xff] %v1411_v32  ;;  %1438 = vtanh.f32 %v825_v28  ;;  %v1256_v36 = vpop.f32.mrf.mxu0 }
 0x119   : > { %v1304_v37 = vpop.f32.mrf.mxu1  ;;  %v1415_v38 = vpop.eup %1414  ;;  %933 = vst [vmem:[%s1672_s26 + $0xa8] sm:$0xff] %v1413_v35  ;;  %1440 = vtanh.f32 %v660_v33  ;;  %v675_v39 = vadd.f32 %v1256_v36, %v1651_v8 }
 0x11a   : > { %v835_v40 = vadd.f32 %v1304_v37, %v1651_v8  ;;  %v1417_v41 = vpop.eup %1416  ;;  %965 = vst [vmem:[%s1672_s26 + $0x1a8] sm:$0xff] %v1415_v38  ;;  %1442 = vtanh.f32 %v820_v34  ;;  %v669_v42 = vpop.f32.mrf.mxu0 }
 0x11b   : > { %v829_v43 = vpop.f32.mrf.mxu1  ;;  %v1419_v44 = vpop.eup %1418  ;;  %932 = vst [vmem:[%s1672_s26 + $0xa0] sm:$0xff] %v1417_v41  ;;  %1444 = vtanh.f32 %v675_v39  ;;  %v670_v45 = vadd.f32 %v1651_v8, %v669_v42 }
 0x11c   : > { %v830_v46 = vadd.f32 %v1651_v8, %v829_v43  ;;  %v1421_v47 = vpop.eup %1420  ;;  %964 = vst [vmem:[%s1672_s26 + $0x1a0] sm:$0xff] %v1419_v44  ;;  %1446 = vtanh.f32 %v835_v40  ;;  %v1259_v48 = vpop.f32.mrf.mxu0 }
 0x11d   : > { %v1307_v49 = vpop.f32.mrf.mxu1  ;;  %v1423_v50 = vpop.eup %1422  ;;  %935 = vst [vmem:[%s1672_s26 + $0xb8] sm:$0xff] %v1421_v47  ;;  %1448 = vtanh.f32 %v670_v45  ;;  %v685_v51 = vadd.f32 %v1259_v48, %v1651_v8 }
 0x11e   : > { %v845_v52 = vadd.f32 %v1307_v49, %v1651_v8  ;;  %v1425_v53 = vpop.eup %1424  ;;  %967 = vst [vmem:[%s1672_s26 + $0x1b8] sm:$0xff] %v1423_v50  ;;  %1450 = vtanh.f32 %v830_v46  ;;  %v679_v54 = vpop.f32.mrf.mxu0 }
 0x11f   : > { %v839_v55 = vpop.f32.mrf.mxu1  ;;  %v1427_v56 = vpop.eup %1426  ;;  %934 = vst [vmem:[%s1672_s26 + $0xb0] sm:$0xff] %v1425_v53  ;;  %1452 = vtanh.f32 %v685_v51  ;;  %v680_v57 = vadd.f32 %v1651_v8, %v679_v54 }
 0x120   : > { %v840_v58 = vadd.f32 %v1651_v8, %v839_v55  ;;  %v1429_v59 = vpop.eup %1428  ;;  %966 = vst [vmem:[%s1672_s26 + $0x1b0] sm:$0xff] %v1427_v56  ;;  %1454 = vtanh.f32 %v845_v52 }
 0x121   : > { %v1431_v60 = vpop.eup %1430  ;;  %937 = vst [vmem:[%s1672_s26 + $0xc8] sm:$0xff] %v1429_v59  ;;  %1456 = vtanh.f32 %v680_v57 }
 0x122   : > { %v1433_v61 = vpop.eup %1432  ;;  %969 = vst [vmem:[%s1672_s26 + $0x1c8] sm:$0xff] %v1431_v60  ;;  %1458 = vtanh.f32 %v840_v58 }
 0x123   : > { %v1435_v62 = vpop.eup %1434  ;;  %936 = vst [vmem:[%s1672_s26 + $0xc0] sm:$0xff] %v1433_v61 }
 0x124   : > { %v1437_v63 = vpop.eup %1436  ;;  %968 = vst [vmem:[%s1672_s26 + $0x1c0] sm:$0xff] %v1435_v62 }
 0x125   : > { %v1439_v8 = vpop.eup %1438  ;;  %939 = vst [vmem:[%s1672_s26 + $0xd8] sm:$0xff] %v1437_v63 }
 0x126   : > { %v1441_v0 = vpop.eup %1440  ;;  %971 = vst [vmem:[%s1672_s26 + $0x1d8] sm:$0xff] %v1439_v8 }
 0x127   : > { %v1443_v1 = vpop.eup %1442  ;;  %938 = vst [vmem:[%s1672_s26 + $0xd0] sm:$0xff] %v1441_v0 }
 0x128   : > { %v1445_v2 = vpop.eup %1444  ;;  %970 = vst [vmem:[%s1672_s26 + $0x1d0] sm:$0xff] %v1443_v1 }
 0x129   : > { %v1447_v3 = vpop.eup %1446  ;;  %941 = vst [vmem:[%s1672_s26 + $0xe8] sm:$0xff] %v1445_v2 }
 0x12a   : > { %v1449_v4 = vpop.eup %1448  ;;  %973 = vst [vmem:[%s1672_s26 + $0x1e8] sm:$0xff] %v1447_v3 }
 0x12b   : > { %v1451_v5 = vpop.eup %1450  ;;  %940 = vst [vmem:[%s1672_s26 + $0xe0] sm:$0xff] %v1449_v4 }
 0x12c   : > { %v1453_v6 = vpop.eup %1452  ;;  %972 = vst [vmem:[%s1672_s26 + $0x1e0] sm:$0xff] %v1451_v5 }
 0x12d   : > { %v1455_v7 = vpop.eup %1454  ;;  %943 = vst [vmem:[%s1672_s26 + $0xf8] sm:$0xff] %v1453_v6 }
 0x12e   : > { %v1457_v9 = vpop.eup %1456  ;;  %975 = vst [vmem:[%s1672_s26 + $0x1f8] sm:$0xff] %v1455_v7 }
 0x12f   : > { %v1459_v10 = vpop.eup %1458  ;;  %942 = vst [vmem:[%s1672_s26 + $0xf0] sm:$0xff] %v1457_v9 }
 0x130   : > { %974 = vst [vmem:[%s1672_s26 + $0x1f0] sm:$0xff] %v1459_v10 }
 0x131 PF: > { %s13_s12 = sadd.s32 1, %s1466_s12  }
 0x132   : > { %p10_p4 = scmp.ge.s32.totalorder %s13_s12, 6  }
 0x134   :  { %12 = sbr.rel (!%p10_p4) target bundleno = 1 (0x1), region = 65 }

</bundles_post_ra>
